<compile_context>
chip_gen: v7x
topology: tpu7x:2x2x1
jax: 0.10.0
libtpu: 0.0.40
codegen_flags: <defaults>
</compile_context>

<pallas_src>
import jax
import jax.numpy as jnp
from jax.experimental import pallas as pl
from jax.experimental.pallas import tpu as pltpu

IN_C = 3             # per-token feature size fed as inputs_embeds
OUT_C = 3            # fc output channels
HIDDEN = 32          # stand-in for ViT hidden size 768
HEADS = 4
DHEAD = HIDDEN // HEADS
MLP = 4 * HIDDEN
LAYERS = 2           # stand-in for 12 encoder layers
LN_EPS = 1e-12       # HF ViT layer_norm_eps
ATTN_SCALE = 1.0 / float(DHEAD) ** 0.5

PARAM_KEYS = [
    "embed_w", "embed_b",
    "ln1_g", "ln1_b",
    "w_qkv", "b_qkv",
    "wo", "bo",
    "ln2_g", "ln2_b",
    "w1", "b1", "w2", "b2",
    "lnf_g", "lnf_b",
    "fc_w", "fc_b",
]


# ------------------------------ in-kernel math ------------------------------

def _erf_f32(x):
    """erf via Abramowitz & Stegun 7.1.26 (|error| <= 1.5e-7, i.e. f32-exact)."""
    p = 0.3275911
    a1, a2, a3, a4, a5 = (0.254829592, -0.284496736, 1.421413741,
                          -1.453152027, 1.061405429)
    z = jnp.abs(x)
    t = 1.0 / (1.0 + p * z)
    y = 1.0 - (((((a5 * t + a4) * t + a3) * t + a2) * t + a1) * t) * jnp.exp(-z * z)
    return jnp.where(x >= 0, y, -y)


def _gelu_exact(x):
    # Matches torch.nn.GELU / HF ViT exact-erf GELU to f32 precision.
    return 0.5 * x * (1.0 + _erf_f32(x * 0.7071067811865476))


def _layer_norm(v, g, b):
    mu = jnp.mean(v, axis=-1, keepdims=True)
    var = jnp.mean(jnp.square(v - mu), axis=-1, keepdims=True)
    return (v - mu) * jax.lax.rsqrt(var + LN_EPS) * g + b


# --------------------------------- kernel -----------------------------------

def _fused_vit_kernel(
    x_ref,                       # [1, S, IN_C]
    emb_w, emb_b,                # [IN_C, HIDDEN], [1, HIDDEN]
    ln1_g, ln1_b,                # [L, 1, HIDDEN]
    w_qkv, b_qkv,                # [L, HIDDEN, 3*HIDDEN], [L, 1, 3*HIDDEN]
    wo, bo,                      # [L, HIDDEN, HIDDEN], [L, 1, HIDDEN]
    ln2_g, ln2_b,                # [L, 1, HIDDEN]
    w1, b1,                      # [L, HIDDEN, MLP], [L, 1, MLP]
    w2, b2,                      # [L, MLP, HIDDEN], [L, 1, HIDDEN]
    lnf_g, lnf_b,                # [1, HIDDEN]
    fc_w, fc_b,                  # [OUT_C, HIDDEN], [OUT_C, 1]
    out_ref,                     # [1, OUT_C, S]
):
    x = x_ref[0]                                                    # [S, IN_C]
    h = jnp.dot(x, emb_w[...], preferred_element_type=jnp.float32) + emb_b[...]

    for l in range(LAYERS):                      # unrolled (static) layer loop
        # ---- self-attention block (pre-LN), residual fused ----
        hn = _layer_norm(h, ln1_g[l], ln1_b[l])
        # fused QKV projection: one MXU matmul instead of 12 per-head ones
        qkv = jnp.dot(hn, w_qkv[l], preferred_element_type=jnp.float32) + b_qkv[l]
        q_all = qkv[:, :HIDDEN] * ATTN_SCALE                        # [S, HIDDEN]
        k_all = qkv[:, HIDDEN:2 * HIDDEN]
        v_all = qkv[:, 2 * HIDDEN:]

        ctx_parts = []
        for hh in range(HEADS):                  # unrolled head loop
            lo, hi = hh * DHEAD, (hh + 1) * DHEAD
            qh = q_all[:, lo:hi]                                    # [S, DHEAD]
            kh = k_all[:, lo:hi]
            vh = v_all[:, lo:hi]
            # scores: q @ k^T without materializing the transpose
            s = jax.lax.dot_general(qh, kh, (((1,), (1,)), ((), ())),
                                    preferred_element_type=jnp.float32)  # [S, S]
            s = s - jnp.max(s, axis=-1, keepdims=True)
            e = jnp.exp(s)
            p = e * pl.reciprocal(jnp.sum(e, axis=-1, keepdims=True), approx=True)
            ctx_parts.append(jnp.dot(p, vh, preferred_element_type=jnp.float32))
        ctx = jnp.concatenate(ctx_parts, axis=1)                    # [S, HIDDEN]
        # fused output projection: one matmul instead of 4 per-head ones
        h = h + jnp.dot(ctx, wo[l], preferred_element_type=jnp.float32) + bo[l]

        # ---- MLP block (pre-LN), residual fused ----
        hn = _layer_norm(h, ln2_g[l], ln2_b[l])
        m = jnp.dot(hn, w1[l], preferred_element_type=jnp.float32) + b1[l]
        m = _gelu_exact(m)
        h = h + jnp.dot(m, w2[l], preferred_element_type=jnp.float32) + b2[l]

    h = _layer_norm(h, lnf_g[...], lnf_b[...])                      # last_hidden_state

    # fc projection, written transposed ([OUT_C, S]) so the HBM store is
    # lane-dense (S = 128 lanes) instead of a 3-wide masked store.
    out_t = jax.lax.dot_general(fc_w[...], h, (((1,), (1,)), ((), ())),
                                preferred_element_type=jnp.float32)  # [OUT_C, S]
    out_ref[0] = (out_t + fc_b[...]).astype(out_ref.dtype)


# ------------------------------- parameters ---------------------------------

def init_params(key):
    ks = jax.random.split(key, 8)

    def dense(k, shape):
        return 0.02 * jax.random.normal(k, shape, jnp.float32)

    p = {}
    p["embed_w"] = dense(ks[0], (IN_C, HIDDEN))
    p["embed_b"] = jnp.zeros((1, HIDDEN), jnp.float32)
    p["ln1_g"] = jnp.ones((LAYERS, 1, HIDDEN), jnp.float32)
    p["ln1_b"] = jnp.zeros((LAYERS, 1, HIDDEN), jnp.float32)
    # fused QKV: columns are [q | k | v], each HIDDEN wide, heads contiguous.
    p["w_qkv"] = dense(ks[1], (LAYERS, HIDDEN, 3 * HIDDEN))
    p["b_qkv"] = jnp.zeros((LAYERS, 1, 3 * HIDDEN), jnp.float32)
    p["wo"] = dense(ks[2], (LAYERS, HIDDEN, HIDDEN))
    p["bo"] = jnp.zeros((LAYERS, 1, HIDDEN), jnp.float32)
    p["ln2_g"] = jnp.ones((LAYERS, 1, HIDDEN), jnp.float32)
    p["ln2_b"] = jnp.zeros((LAYERS, 1, HIDDEN), jnp.float32)
    p["w1"] = dense(ks[3], (LAYERS, HIDDEN, MLP))
    p["b1"] = jnp.zeros((LAYERS, 1, MLP), jnp.float32)
    p["w2"] = dense(ks[4], (LAYERS, MLP, HIDDEN))
    p["b2"] = jnp.zeros((LAYERS, 1, HIDDEN), jnp.float32)
    p["lnf_g"] = jnp.ones((1, HIDDEN), jnp.float32)
    p["lnf_b"] = jnp.zeros((1, HIDDEN), jnp.float32)
    p["fc_w"] = dense(ks[5], (OUT_C, HIDDEN))   # PyTorch nn.Linear weight layout
    p["fc_b"] = jnp.zeros((OUT_C, 1), jnp.float32)
    return p


# --------------------------------- forward ----------------------------------

def _replicated_spec(shape):
    nd = len(shape)
    return pl.BlockSpec(shape, lambda b: (0,) * nd)


def foreground_forward(params, frame1, frame3):
    B, C, H, W = frame1.shape
    assert C == IN_C
    # [B, 3, HW] ++ [B, 3, HW] -> [B, 3, S] -> [B, S, 3]  (frame1 tokens first)
    x = jnp.concatenate(
        [frame1.reshape(B, C, H * W), frame3.reshape(B, C, H * W)], axis=2
    ).transpose(0, 2, 1)                                            # [B, S, 3]
    S = x.shape[1]

    weight_args = [params[k] for k in PARAM_KEYS]
    in_specs = [pl.BlockSpec((1, S, C), lambda b: (b, 0, 0))]
    in_specs += [_replicated_spec(w.shape) for w in weight_args]

    out_t = pl.pallas_call(
        _fused_vit_kernel,
        out_shape=jax.ShapeDtypeStruct((B, OUT_C, S), jnp.float32),
        grid=(B,),
        in_specs=in_specs,
        out_specs=pl.BlockSpec((1, OUT_C, S), lambda b: (b, 0, 0)),
        compiler_params=pltpu.CompilerParams(
            dimension_semantics=("parallel",),   # v7x: one batch per TensorCore
        ),
    )(x, *weight_args)                                              # [B, 3, S]

    # TODO(synk): the reference's .view(B, 3, h, w) is inconsistent with the
    # 2*h*w-token sequence it feeds the ViT; keep the first h*w (frame1-position)
    # tokens so the output reshape is well-defined.
    return out_t[:, :, : H * W].reshape(B, OUT_C, H, W)


# ----------------------------------- main ------------------------------------

if __name__ == "__main__":
    key = jax.random.PRNGKey(0)
    kp, k1, k3 = jax.random.split(key, 3)
    params = init_params(kp)

    B, H, W = 2, 8, 8                    # S = 2*H*W = 128 tokens
    frame1 = jax.random.normal(k1, (B, 3, H, W), jnp.float32)
    frame3 = jax.random.normal(k3, (B, 3, H, W), jnp.float32)

    out = jax.jit(foreground_forward)(params, frame1, frame3)
    jax.block_until_ready(out)
    assert out.shape == (B, 3, H, W) and out.dtype == jnp.float32
    print("KERNEL_OK")
</pallas_src>

<mosaic_0001>
module attributes {stable_mosaic.version = 11 : i64} {
  func.func @_fused_vit_kernel(%arg0: i32, %arg1: memref<1x128x3xf32, #tpu.memory_space<vmem>>, %arg2: memref<3x32xf32, #tpu.memory_space<vmem>>, %arg3: memref<1x32xf32, #tpu.memory_space<vmem>>, %arg4: memref<2x1x32xf32, #tpu.memory_space<vmem>>, %arg5: memref<2x1x32xf32, #tpu.memory_space<vmem>>, %arg6: memref<2x32x96xf32, #tpu.memory_space<vmem>>, %arg7: memref<2x1x96xf32, #tpu.memory_space<vmem>>, %arg8: memref<2x32x32xf32, #tpu.memory_space<vmem>>, %arg9: memref<2x1x32xf32, #tpu.memory_space<vmem>>, %arg10: memref<2x1x32xf32, #tpu.memory_space<vmem>>, %arg11: memref<2x1x32xf32, #tpu.memory_space<vmem>>, %arg12: memref<2x32x128xf32, #tpu.memory_space<vmem>>, %arg13: memref<2x1x128xf32, #tpu.memory_space<vmem>>, %arg14: memref<2x128x32xf32, #tpu.memory_space<vmem>>, %arg15: memref<2x1x32xf32, #tpu.memory_space<vmem>>, %arg16: memref<1x32xf32, #tpu.memory_space<vmem>>, %arg17: memref<1x32xf32, #tpu.memory_space<vmem>>, %arg18: memref<3x32xf32, #tpu.memory_space<vmem>>, %arg19: memref<3x1xf32, #tpu.memory_space<vmem>>, %arg20: memref<1x3x128xf32, #tpu.memory_space<vmem>>) attributes {dimension_semantics = [#tpu.dimension_semantics<parallel>], iteration_bounds = array<i64: 2>, scalar_prefetch = 0 : i64, scratch_operands = 0 : i64, tpu.core_type = #tpu.core_type<tc>, window_params = [{transform_indices = @transform_0, window_bounds = array<i64: 1, 128, 3>}, {pipeline_mode = #tpu.pipeline_mode<synchronous>, transform_indices = @transform_1, window_bounds = array<i64: 3, 32>}, {pipeline_mode = #tpu.pipeline_mode<synchronous>, transform_indices = @transform_2, window_bounds = array<i64: 1, 32>}, {pipeline_mode = #tpu.pipeline_mode<synchronous>, transform_indices = @transform_3, window_bounds = array<i64: 2, 1, 32>}, {pipeline_mode = #tpu.pipeline_mode<synchronous>, transform_indices = @transform_4, window_bounds = array<i64: 2, 1, 32>}, {pipeline_mode = #tpu.pipeline_mode<synchronous>, transform_indices = @transform_5, window_bounds = array<i64: 2, 32, 96>}, {pipeline_mode = #tpu.pipeline_mode<synchronous>, transform_indices = @transform_6, window_bounds = array<i64: 2, 1, 96>}, {pipeline_mode = #tpu.pipeline_mode<synchronous>, transform_indices = @transform_7, window_bounds = array<i64: 2, 32, 32>}, {pipeline_mode = #tpu.pipeline_mode<synchronous>, transform_indices = @transform_8, window_bounds = array<i64: 2, 1, 32>}, {pipeline_mode = #tpu.pipeline_mode<synchronous>, transform_indices = @transform_9, window_bounds = array<i64: 2, 1, 32>}, {pipeline_mode = #tpu.pipeline_mode<synchronous>, transform_indices = @transform_10, window_bounds = array<i64: 2, 1, 32>}, {pipeline_mode = #tpu.pipeline_mode<synchronous>, transform_indices = @transform_11, window_bounds = array<i64: 2, 32, 128>}, {pipeline_mode = #tpu.pipeline_mode<synchronous>, transform_indices = @transform_12, window_bounds = array<i64: 2, 1, 128>}, {pipeline_mode = #tpu.pipeline_mode<synchronous>, transform_indices = @transform_13, window_bounds = array<i64: 2, 128, 32>}, {pipeline_mode = #tpu.pipeline_mode<synchronous>, transform_indices = @transform_14, window_bounds = array<i64: 2, 1, 32>}, {pipeline_mode = #tpu.pipeline_mode<synchronous>, transform_indices = @transform_15, window_bounds = array<i64: 1, 32>}, {pipeline_mode = #tpu.pipeline_mode<synchronous>, transform_indices = @transform_16, window_bounds = array<i64: 1, 32>}, {pipeline_mode = #tpu.pipeline_mode<synchronous>, transform_indices = @transform_17, window_bounds = array<i64: 3, 32>}, {pipeline_mode = #tpu.pipeline_mode<synchronous>, transform_indices = @transform_18, window_bounds = array<i64: 3, 1>}, {transform_indices = @transform_19, window_bounds = array<i64: 1, 3, 128>}]} {
    %c0 = arith.constant 0 : index
    %c0_0 = arith.constant 0 : index
    %c0_1 = arith.constant 0 : index
    %0 = vector.load %arg1[%c0, %c0_0, %c0_1] : memref<1x128x3xf32, #tpu.memory_space<vmem>>, vector<1x128x3xf32>
    %1 = vector.shape_cast %0 : vector<1x128x3xf32> to vector<128x3xf32>
    %c0_2 = arith.constant 0 : index
    %c0_3 = arith.constant 0 : index
    %2 = vector.load %arg2[%c0_2, %c0_3] : memref<3x32xf32, #tpu.memory_space<vmem>>, vector<3x32xf32>
    %cst = arith.constant dense<0.000000e+00> : vector<128x32xf32>
    %3 = tpu.matmul %1, %2, %cst {dimension_numbers = #tpu.dot_dimension_numbers<[1], [0], [0], [1], [0, 0, 1, 1], [], []>} : vector<128x3xf32>, vector<3x32xf32>, vector<128x32xf32> -> vector<128x32xf32>
    %c0_4 = arith.constant 0 : index
    %c0_5 = arith.constant 0 : index
    %4 = vector.load %arg3[%c0_4, %c0_5] : memref<1x32xf32, #tpu.memory_space<vmem>>, vector<1x32xf32>
    %5 = vector.broadcast %4 : vector<1x32xf32> to vector<128x32xf32>
    %6 = arith.addf %3, %5 : vector<128x32xf32>
    %c0_6 = arith.constant 0 : index
    %c0_7 = arith.constant 0 : index
    %c0_8 = arith.constant 0 : index
    %7 = vector.load %arg4[%c0_6, %c0_7, %c0_8] : memref<2x1x32xf32, #tpu.memory_space<vmem>>, vector<1x1x32xf32>
    %8 = vector.shape_cast %7 : vector<1x1x32xf32> to vector<1x32xf32>
    %c0_9 = arith.constant 0 : index
    %c0_10 = arith.constant 0 : index
    %c0_11 = arith.constant 0 : index
    %9 = vector.load %arg5[%c0_9, %c0_10, %c0_11] : memref<2x1x32xf32, #tpu.memory_space<vmem>>, vector<1x1x32xf32>
    %10 = vector.shape_cast %9 : vector<1x1x32xf32> to vector<1x32xf32>
    %cst_12 = arith.constant dense<0.000000e+00> : vector<128xf32>
    %11 = vector.multi_reduction <add>, %6, %cst_12 [1] : vector<128x32xf32> to vector<128xf32>
    %12 = vector.shape_cast %11 : vector<128xf32> to vector<128x1xf32>
    %cst_13 = arith.constant 3.200000e+01 : f32
    %13 = vector.broadcast %cst_13 : f32 to vector<128x1xf32>
    %14 = arith.divf %12, %13 : vector<128x1xf32>
    %15 = vector.broadcast %14 : vector<128x1xf32> to vector<128x32xf32>
    %16 = arith.subf %6, %15 : vector<128x32xf32>
    %17 = arith.mulf %16, %16 : vector<128x32xf32>
    %cst_14 = arith.constant dense<0.000000e+00> : vector<128xf32>
    %18 = vector.multi_reduction <add>, %17, %cst_14 [1] : vector<128x32xf32> to vector<128xf32>
    %19 = vector.shape_cast %18 : vector<128xf32> to vector<128x1xf32>
    %cst_15 = arith.constant 3.200000e+01 : f32
    %20 = vector.broadcast %cst_15 : f32 to vector<128x1xf32>
    %21 = arith.divf %19, %20 : vector<128x1xf32>
    %22 = vector.broadcast %14 : vector<128x1xf32> to vector<128x32xf32>
    %23 = arith.subf %6, %22 : vector<128x32xf32>
    %cst_16 = arith.constant 9.99999996E-13 : f32
    %24 = vector.broadcast %cst_16 : f32 to vector<128x1xf32>
    %25 = arith.addf %21, %24 : vector<128x1xf32>
    %26 = math.rsqrt %25 : vector<128x1xf32>
    %27 = vector.broadcast %26 : vector<128x1xf32> to vector<128x32xf32>
    %28 = arith.mulf %23, %27 : vector<128x32xf32>
    %29 = vector.broadcast %8 : vector<1x32xf32> to vector<128x32xf32>
    %30 = arith.mulf %28, %29 : vector<128x32xf32>
    %31 = vector.broadcast %10 : vector<1x32xf32> to vector<128x32xf32>
    %32 = arith.addf %30, %31 : vector<128x32xf32>
    %c0_17 = arith.constant 0 : index
    %c0_18 = arith.constant 0 : index
    %c0_19 = arith.constant 0 : index
    %33 = vector.load %arg6[%c0_17, %c0_18, %c0_19] : memref<2x32x96xf32, #tpu.memory_space<vmem>>, vector<1x32x96xf32>
    %34 = vector.shape_cast %33 : vector<1x32x96xf32> to vector<32x96xf32>
    %cst_20 = arith.constant dense<0.000000e+00> : vector<128x96xf32>
    %35 = tpu.matmul %32, %34, %cst_20 {dimension_numbers = #tpu.dot_dimension_numbers<[1], [0], [0], [1], [0, 0, 1, 1], [], []>} : vector<128x32xf32>, vector<32x96xf32>, vector<128x96xf32> -> vector<128x96xf32>
    %c0_21 = arith.constant 0 : index
    %c0_22 = arith.constant 0 : index
    %c0_23 = arith.constant 0 : index
    %36 = vector.load %arg7[%c0_21, %c0_22, %c0_23] : memref<2x1x96xf32, #tpu.memory_space<vmem>>, vector<1x1x96xf32>
    %37 = vector.shape_cast %36 : vector<1x1x96xf32> to vector<1x96xf32>
    %38 = vector.broadcast %37 : vector<1x96xf32> to vector<128x96xf32>
    %39 = arith.addf %35, %38 : vector<128x96xf32>
    %40 = vector.extract_strided_slice %39 {offsets = [0, 0], sizes = [128, 32], strides = [1, 1]} : vector<128x96xf32> to vector<128x32xf32>
    %cst_24 = arith.constant 0.353553385 : f32
    %41 = vector.broadcast %cst_24 : f32 to vector<128x32xf32>
    %42 = arith.mulf %40, %41 : vector<128x32xf32>
    %43 = vector.extract_strided_slice %39 {offsets = [0, 32], sizes = [128, 32], strides = [1, 1]} : vector<128x96xf32> to vector<128x32xf32>
    %44 = vector.extract_strided_slice %39 {offsets = [0, 64], sizes = [128, 32], strides = [1, 1]} : vector<128x96xf32> to vector<128x32xf32>
    %45 = vector.extract_strided_slice %42 {offsets = [0, 0], sizes = [128, 8], strides = [1, 1]} : vector<128x32xf32> to vector<128x8xf32>
    %46 = vector.extract_strided_slice %43 {offsets = [0, 0], sizes = [128, 8], strides = [1, 1]} : vector<128x32xf32> to vector<128x8xf32>
    %47 = vector.extract_strided_slice %44 {offsets = [0, 0], sizes = [128, 8], strides = [1, 1]} : vector<128x32xf32> to vector<128x8xf32>
    %cst_25 = arith.constant dense<0.000000e+00> : vector<128x128xf32>
    %48 = tpu.matmul %45, %46, %cst_25 {dimension_numbers = #tpu.dot_dimension_numbers<[1], [1], [0], [0], [0, 0, 1, 0], [], []>} : vector<128x8xf32>, vector<128x8xf32>, vector<128x128xf32> -> vector<128x128xf32>
    %cst_26 = arith.constant dense<0xFF800000> : vector<128xf32>
    %49 = vector.multi_reduction <maximumf>, %48, %cst_26 [1] : vector<128x128xf32> to vector<128xf32>
    %50 = vector.shape_cast %49 : vector<128xf32> to vector<128x1xf32>
    %51 = vector.broadcast %50 : vector<128x1xf32> to vector<128x128xf32>
    %52 = arith.subf %48, %51 : vector<128x128xf32>
    %53 = math.exp %52 : vector<128x128xf32>
    %cst_27 = arith.constant dense<0.000000e+00> : vector<128xf32>
    %54 = vector.multi_reduction <add>, %53, %cst_27 [1] : vector<128x128xf32> to vector<128xf32>
    %55 = vector.shape_cast %54 : vector<128xf32> to vector<128x1xf32>
    %56 = tpu.reciprocal %55 {approx = true} : vector<128x1xf32> -> vector<128x1xf32>
    %57 = vector.broadcast %56 : vector<128x1xf32> to vector<128x128xf32>
    %58 = arith.mulf %53, %57 : vector<128x128xf32>
    %cst_28 = arith.constant dense<0.000000e+00> : vector<128x8xf32>
    %59 = tpu.matmul %58, %47, %cst_28 {dimension_numbers = #tpu.dot_dimension_numbers<[1], [0], [0], [1], [0, 0, 1, 1], [], []>} : vector<128x128xf32>, vector<128x8xf32>, vector<128x8xf32> -> vector<128x8xf32>
    %60 = vector.extract_strided_slice %42 {offsets = [0, 8], sizes = [128, 8], strides = [1, 1]} : vector<128x32xf32> to vector<128x8xf32>
    %61 = vector.extract_strided_slice %43 {offsets = [0, 8], sizes = [128, 8], strides = [1, 1]} : vector<128x32xf32> to vector<128x8xf32>
    %62 = vector.extract_strided_slice %44 {offsets = [0, 8], sizes = [128, 8], strides = [1, 1]} : vector<128x32xf32> to vector<128x8xf32>
    %cst_29 = arith.constant dense<0.000000e+00> : vector<128x128xf32>
    %63 = tpu.matmul %60, %61, %cst_29 {dimension_numbers = #tpu.dot_dimension_numbers<[1], [1], [0], [0], [0, 0, 1, 0], [], []>} : vector<128x8xf32>, vector<128x8xf32>, vector<128x128xf32> -> vector<128x128xf32>
    %cst_30 = arith.constant dense<0xFF800000> : vector<128xf32>
    %64 = vector.multi_reduction <maximumf>, %63, %cst_30 [1] : vector<128x128xf32> to vector<128xf32>
    %65 = vector.shape_cast %64 : vector<128xf32> to vector<128x1xf32>
    %66 = vector.broadcast %65 : vector<128x1xf32> to vector<128x128xf32>
    %67 = arith.subf %63, %66 : vector<128x128xf32>
    %68 = math.exp %67 : vector<128x128xf32>
    %cst_31 = arith.constant dense<0.000000e+00> : vector<128xf32>
    %69 = vector.multi_reduction <add>, %68, %cst_31 [1] : vector<128x128xf32> to vector<128xf32>
    %70 = vector.shape_cast %69 : vector<128xf32> to vector<128x1xf32>
    %71 = tpu.reciprocal %70 {approx = true} : vector<128x1xf32> -> vector<128x1xf32>
    %72 = vector.broadcast %71 : vector<128x1xf32> to vector<128x128xf32>
    %73 = arith.mulf %68, %72 : vector<128x128xf32>
    %cst_32 = arith.constant dense<0.000000e+00> : vector<128x8xf32>
    %74 = tpu.matmul %73, %62, %cst_32 {dimension_numbers = #tpu.dot_dimension_numbers<[1], [0], [0], [1], [0, 0, 1, 1], [], []>} : vector<128x128xf32>, vector<128x8xf32>, vector<128x8xf32> -> vector<128x8xf32>
    %75 = vector.extract_strided_slice %42 {offsets = [0, 16], sizes = [128, 8], strides = [1, 1]} : vector<128x32xf32> to vector<128x8xf32>
    %76 = vector.extract_strided_slice %43 {offsets = [0, 16], sizes = [128, 8], strides = [1, 1]} : vector<128x32xf32> to vector<128x8xf32>
    %77 = vector.extract_strided_slice %44 {offsets = [0, 16], sizes = [128, 8], strides = [1, 1]} : vector<128x32xf32> to vector<128x8xf32>
    %cst_33 = arith.constant dense<0.000000e+00> : vector<128x128xf32>
    %78 = tpu.matmul %75, %76, %cst_33 {dimension_numbers = #tpu.dot_dimension_numbers<[1], [1], [0], [0], [0, 0, 1, 0], [], []>} : vector<128x8xf32>, vector<128x8xf32>, vector<128x128xf32> -> vector<128x128xf32>
    %cst_34 = arith.constant dense<0xFF800000> : vector<128xf32>
    %79 = vector.multi_reduction <maximumf>, %78, %cst_34 [1] : vector<128x128xf32> to vector<128xf32>
    %80 = vector.shape_cast %79 : vector<128xf32> to vector<128x1xf32>
    %81 = vector.broadcast %80 : vector<128x1xf32> to vector<128x128xf32>
    %82 = arith.subf %78, %81 : vector<128x128xf32>
    %83 = math.exp %82 : vector<128x128xf32>
    %cst_35 = arith.constant dense<0.000000e+00> : vector<128xf32>
    %84 = vector.multi_reduction <add>, %83, %cst_35 [1] : vector<128x128xf32> to vector<128xf32>
    %85 = vector.shape_cast %84 : vector<128xf32> to vector<128x1xf32>
    %86 = tpu.reciprocal %85 {approx = true} : vector<128x1xf32> -> vector<128x1xf32>
    %87 = vector.broadcast %86 : vector<128x1xf32> to vector<128x128xf32>
    %88 = arith.mulf %83, %87 : vector<128x128xf32>
    %cst_36 = arith.constant dense<0.000000e+00> : vector<128x8xf32>
    %89 = tpu.matmul %88, %77, %cst_36 {dimension_numbers = #tpu.dot_dimension_numbers<[1], [0], [0], [1], [0, 0, 1, 1], [], []>} : vector<128x128xf32>, vector<128x8xf32>, vector<128x8xf32> -> vector<128x8xf32>
    %90 = vector.extract_strided_slice %42 {offsets = [0, 24], sizes = [128, 8], strides = [1, 1]} : vector<128x32xf32> to vector<128x8xf32>
    %91 = vector.extract_strided_slice %43 {offsets = [0, 24], sizes = [128, 8], strides = [1, 1]} : vector<128x32xf32> to vector<128x8xf32>
    %92 = vector.extract_strided_slice %44 {offsets = [0, 24], sizes = [128, 8], strides = [1, 1]} : vector<128x32xf32> to vector<128x8xf32>
    %cst_37 = arith.constant dense<0.000000e+00> : vector<128x128xf32>
    %93 = tpu.matmul %90, %91, %cst_37 {dimension_numbers = #tpu.dot_dimension_numbers<[1], [1], [0], [0], [0, 0, 1, 0], [], []>} : vector<128x8xf32>, vector<128x8xf32>, vector<128x128xf32> -> vector<128x128xf32>
    %cst_38 = arith.constant dense<0xFF800000> : vector<128xf32>
    %94 = vector.multi_reduction <maximumf>, %93, %cst_38 [1] : vector<128x128xf32> to vector<128xf32>
    %95 = vector.shape_cast %94 : vector<128xf32> to vector<128x1xf32>
    %96 = vector.broadcast %95 : vector<128x1xf32> to vector<128x128xf32>
    %97 = arith.subf %93, %96 : vector<128x128xf32>
    %98 = math.exp %97 : vector<128x128xf32>
    %cst_39 = arith.constant dense<0.000000e+00> : vector<128xf32>
    %99 = vector.multi_reduction <add>, %98, %cst_39 [1] : vector<128x128xf32> to vector<128xf32>
    %100 = vector.shape_cast %99 : vector<128xf32> to vector<128x1xf32>
    %101 = tpu.reciprocal %100 {approx = true} : vector<128x1xf32> -> vector<128x1xf32>
    %102 = vector.broadcast %101 : vector<128x1xf32> to vector<128x128xf32>
    %103 = arith.mulf %98, %102 : vector<128x128xf32>
    %cst_40 = arith.constant dense<0.000000e+00> : vector<128x8xf32>
    %104 = tpu.matmul %103, %92, %cst_40 {dimension_numbers = #tpu.dot_dimension_numbers<[1], [0], [0], [1], [0, 0, 1, 1], [], []>} : vector<128x128xf32>, vector<128x8xf32>, vector<128x8xf32> -> vector<128x8xf32>
    %105 = tpu.concatenate %59, %74, %89, %104 in 1 : vector<128x8xf32>, vector<128x8xf32>, vector<128x8xf32>, vector<128x8xf32> -> vector<128x32xf32>
    %c0_41 = arith.constant 0 : index
    %c0_42 = arith.constant 0 : index
    %c0_43 = arith.constant 0 : index
    %106 = vector.load %arg8[%c0_41, %c0_42, %c0_43] : memref<2x32x32xf32, #tpu.memory_space<vmem>>, vector<1x32x32xf32>
    %107 = vector.shape_cast %106 : vector<1x32x32xf32> to vector<32x32xf32>
    %cst_44 = arith.constant dense<0.000000e+00> : vector<128x32xf32>
    %108 = tpu.matmul %105, %107, %cst_44 {dimension_numbers = #tpu.dot_dimension_numbers<[1], [0], [0], [1], [0, 0, 1, 1], [], []>} : vector<128x32xf32>, vector<32x32xf32>, vector<128x32xf32> -> vector<128x32xf32>
    %109 = arith.addf %6, %108 : vector<128x32xf32>
    %c0_45 = arith.constant 0 : index
    %c0_46 = arith.constant 0 : index
    %c0_47 = arith.constant 0 : index
    %110 = vector.load %arg9[%c0_45, %c0_46, %c0_47] : memref<2x1x32xf32, #tpu.memory_space<vmem>>, vector<1x1x32xf32>
    %111 = vector.shape_cast %110 : vector<1x1x32xf32> to vector<1x32xf32>
    %112 = vector.broadcast %111 : vector<1x32xf32> to vector<128x32xf32>
    %113 = arith.addf %109, %112 : vector<128x32xf32>
    %c0_48 = arith.constant 0 : index
    %c0_49 = arith.constant 0 : index
    %c0_50 = arith.constant 0 : index
    %114 = vector.load %arg10[%c0_48, %c0_49, %c0_50] : memref<2x1x32xf32, #tpu.memory_space<vmem>>, vector<1x1x32xf32>
    %115 = vector.shape_cast %114 : vector<1x1x32xf32> to vector<1x32xf32>
    %c0_51 = arith.constant 0 : index
    %c0_52 = arith.constant 0 : index
    %c0_53 = arith.constant 0 : index
    %116 = vector.load %arg11[%c0_51, %c0_52, %c0_53] : memref<2x1x32xf32, #tpu.memory_space<vmem>>, vector<1x1x32xf32>
    %117 = vector.shape_cast %116 : vector<1x1x32xf32> to vector<1x32xf32>
    %cst_54 = arith.constant dense<0.000000e+00> : vector<128xf32>
    %118 = vector.multi_reduction <add>, %113, %cst_54 [1] : vector<128x32xf32> to vector<128xf32>
    %119 = vector.shape_cast %118 : vector<128xf32> to vector<128x1xf32>
    %cst_55 = arith.constant 3.200000e+01 : f32
    %120 = vector.broadcast %cst_55 : f32 to vector<128x1xf32>
    %121 = arith.divf %119, %120 : vector<128x1xf32>
    %122 = vector.broadcast %121 : vector<128x1xf32> to vector<128x32xf32>
    %123 = arith.subf %113, %122 : vector<128x32xf32>
    %124 = arith.mulf %123, %123 : vector<128x32xf32>
    %cst_56 = arith.constant dense<0.000000e+00> : vector<128xf32>
    %125 = vector.multi_reduction <add>, %124, %cst_56 [1] : vector<128x32xf32> to vector<128xf32>
    %126 = vector.shape_cast %125 : vector<128xf32> to vector<128x1xf32>
    %cst_57 = arith.constant 3.200000e+01 : f32
    %127 = vector.broadcast %cst_57 : f32 to vector<128x1xf32>
    %128 = arith.divf %126, %127 : vector<128x1xf32>
    %129 = vector.broadcast %121 : vector<128x1xf32> to vector<128x32xf32>
    %130 = arith.subf %113, %129 : vector<128x32xf32>
    %cst_58 = arith.constant 9.99999996E-13 : f32
    %131 = vector.broadcast %cst_58 : f32 to vector<128x1xf32>
    %132 = arith.addf %128, %131 : vector<128x1xf32>
    %133 = math.rsqrt %132 : vector<128x1xf32>
    %134 = vector.broadcast %133 : vector<128x1xf32> to vector<128x32xf32>
    %135 = arith.mulf %130, %134 : vector<128x32xf32>
    %136 = vector.broadcast %115 : vector<1x32xf32> to vector<128x32xf32>
    %137 = arith.mulf %135, %136 : vector<128x32xf32>
    %138 = vector.broadcast %117 : vector<1x32xf32> to vector<128x32xf32>
    %139 = arith.addf %137, %138 : vector<128x32xf32>
    %c0_59 = arith.constant 0 : index
    %c0_60 = arith.constant 0 : index
    %c0_61 = arith.constant 0 : index
    %140 = vector.load %arg12[%c0_59, %c0_60, %c0_61] : memref<2x32x128xf32, #tpu.memory_space<vmem>>, vector<1x32x128xf32>
    %141 = vector.shape_cast %140 : vector<1x32x128xf32> to vector<32x128xf32>
    %cst_62 = arith.constant dense<0.000000e+00> : vector<128x128xf32>
    %142 = tpu.matmul %139, %141, %cst_62 {dimension_numbers = #tpu.dot_dimension_numbers<[1], [0], [0], [1], [0, 0, 1, 1], [], []>} : vector<128x32xf32>, vector<32x128xf32>, vector<128x128xf32> -> vector<128x128xf32>
    %c0_63 = arith.constant 0 : index
    %c0_64 = arith.constant 0 : index
    %c0_65 = arith.constant 0 : index
    %143 = vector.load %arg13[%c0_63, %c0_64, %c0_65] : memref<2x1x128xf32, #tpu.memory_space<vmem>>, vector<1x1x128xf32>
    %144 = vector.shape_cast %143 : vector<1x1x128xf32> to vector<1x128xf32>
    %145 = vector.broadcast %144 : vector<1x128xf32> to vector<128x128xf32>
    %146 = arith.addf %142, %145 : vector<128x128xf32>
    %cst_66 = arith.constant 5.000000e-01 : f32
    %147 = vector.broadcast %cst_66 : f32 to vector<128x128xf32>
    %148 = arith.mulf %147, %146 : vector<128x128xf32>
    %cst_67 = arith.constant 0.707106769 : f32
    %149 = vector.broadcast %cst_67 : f32 to vector<128x128xf32>
    %150 = arith.mulf %146, %149 : vector<128x128xf32>
    %151 = math.absf %150 : vector<128x128xf32>
    %cst_68 = arith.constant 0.327591091 : f32
    %152 = vector.broadcast %cst_68 : f32 to vector<128x128xf32>
    %153 = arith.mulf %152, %151 : vector<128x128xf32>
    %cst_69 = arith.constant 1.000000e+00 : f32
    %154 = vector.broadcast %cst_69 : f32 to vector<128x128xf32>
    %155 = arith.addf %154, %153 : vector<128x128xf32>
    %cst_70 = arith.constant 1.000000e+00 : f32
    %156 = vector.broadcast %cst_70 : f32 to vector<128x128xf32>
    %157 = arith.divf %156, %155 : vector<128x128xf32>
    %cst_71 = arith.constant 1.06140542 : f32
    %158 = vector.broadcast %cst_71 : f32 to vector<128x128xf32>
    %159 = arith.mulf %158, %157 : vector<128x128xf32>
    %cst_72 = arith.constant -1.45315206 : f32
    %160 = vector.broadcast %cst_72 : f32 to vector<128x128xf32>
    %161 = arith.addf %159, %160 : vector<128x128xf32>
    %162 = arith.mulf %161, %157 : vector<128x128xf32>
    %cst_73 = arith.constant 1.42141378 : f32
    %163 = vector.broadcast %cst_73 : f32 to vector<128x128xf32>
    %164 = arith.addf %162, %163 : vector<128x128xf32>
    %165 = arith.mulf %164, %157 : vector<128x128xf32>
    %cst_74 = arith.constant -0.284496725 : f32
    %166 = vector.broadcast %cst_74 : f32 to vector<128x128xf32>
    %167 = arith.addf %165, %166 : vector<128x128xf32>
    %168 = arith.mulf %167, %157 : vector<128x128xf32>
    %cst_75 = arith.constant 0.254829586 : f32
    %169 = vector.broadcast %cst_75 : f32 to vector<128x128xf32>
    %170 = arith.addf %168, %169 : vector<128x128xf32>
    %171 = arith.mulf %170, %157 : vector<128x128xf32>
    %cst_76 = arith.constant 0.000000e+00 : f32
    %172 = vector.broadcast %cst_76 : f32 to vector<128x128xf32>
    %173 = arith.subf %172, %151 : vector<128x128xf32>
    %174 = arith.mulf %173, %151 : vector<128x128xf32>
    %175 = math.exp %174 : vector<128x128xf32>
    %176 = arith.mulf %171, %175 : vector<128x128xf32>
    %cst_77 = arith.constant 1.000000e+00 : f32
    %177 = vector.broadcast %cst_77 : f32 to vector<128x128xf32>
    %178 = arith.subf %177, %176 : vector<128x128xf32>
    %cst_78 = arith.constant 0.000000e+00 : f32
    %179 = vector.broadcast %cst_78 : f32 to vector<128x128xf32>
    %180 = arith.cmpf oge, %150, %179 : vector<128x128xf32>
    %cst_79 = arith.constant 0.000000e+00 : f32
    %181 = vector.broadcast %cst_79 : f32 to vector<128x128xf32>
    %182 = arith.subf %181, %178 : vector<128x128xf32>
    %183 = arith.select %180, %178, %182 : vector<128x128xi1>, vector<128x128xf32>
    %cst_80 = arith.constant 1.000000e+00 : f32
    %184 = vector.broadcast %cst_80 : f32 to vector<128x128xf32>
    %185 = arith.addf %184, %183 : vector<128x128xf32>
    %186 = arith.mulf %148, %185 : vector<128x128xf32>
    %c0_81 = arith.constant 0 : index
    %c0_82 = arith.constant 0 : index
    %c0_83 = arith.constant 0 : index
    %187 = vector.load %arg14[%c0_81, %c0_82, %c0_83] : memref<2x128x32xf32, #tpu.memory_space<vmem>>, vector<1x128x32xf32>
    %188 = vector.shape_cast %187 : vector<1x128x32xf32> to vector<128x32xf32>
    %cst_84 = arith.constant dense<0.000000e+00> : vector<128x32xf32>
    %189 = tpu.matmul %186, %188, %cst_84 {dimension_numbers = #tpu.dot_dimension_numbers<[1], [0], [0], [1], [0, 0, 1, 1], [], []>} : vector<128x128xf32>, vector<128x32xf32>, vector<128x32xf32> -> vector<128x32xf32>
    %190 = arith.addf %113, %189 : vector<128x32xf32>
    %c0_85 = arith.constant 0 : index
    %c0_86 = arith.constant 0 : index
    %c0_87 = arith.constant 0 : index
    %191 = vector.load %arg15[%c0_85, %c0_86, %c0_87] : memref<2x1x32xf32, #tpu.memory_space<vmem>>, vector<1x1x32xf32>
    %192 = vector.shape_cast %191 : vector<1x1x32xf32> to vector<1x32xf32>
    %193 = vector.broadcast %192 : vector<1x32xf32> to vector<128x32xf32>
    %194 = arith.addf %190, %193 : vector<128x32xf32>
    %c1 = arith.constant 1 : index
    %c0_88 = arith.constant 0 : index
    %c0_89 = arith.constant 0 : index
    %195 = vector.load %arg4[%c1, %c0_88, %c0_89] : memref<2x1x32xf32, #tpu.memory_space<vmem>>, vector<1x1x32xf32>
    %196 = vector.shape_cast %195 : vector<1x1x32xf32> to vector<1x32xf32>
    %c1_90 = arith.constant 1 : index
    %c0_91 = arith.constant 0 : index
    %c0_92 = arith.constant 0 : index
    %197 = vector.load %arg5[%c1_90, %c0_91, %c0_92] : memref<2x1x32xf32, #tpu.memory_space<vmem>>, vector<1x1x32xf32>
    %198 = vector.shape_cast %197 : vector<1x1x32xf32> to vector<1x32xf32>
    %cst_93 = arith.constant dense<0.000000e+00> : vector<128xf32>
    %199 = vector.multi_reduction <add>, %194, %cst_93 [1] : vector<128x32xf32> to vector<128xf32>
    %200 = vector.shape_cast %199 : vector<128xf32> to vector<128x1xf32>
    %cst_94 = arith.constant 3.200000e+01 : f32
    %201 = vector.broadcast %cst_94 : f32 to vector<128x1xf32>
    %202 = arith.divf %200, %201 : vector<128x1xf32>
    %203 = vector.broadcast %202 : vector<128x1xf32> to vector<128x32xf32>
    %204 = arith.subf %194, %203 : vector<128x32xf32>
    %205 = arith.mulf %204, %204 : vector<128x32xf32>
    %cst_95 = arith.constant dense<0.000000e+00> : vector<128xf32>
    %206 = vector.multi_reduction <add>, %205, %cst_95 [1] : vector<128x32xf32> to vector<128xf32>
    %207 = vector.shape_cast %206 : vector<128xf32> to vector<128x1xf32>
    %cst_96 = arith.constant 3.200000e+01 : f32
    %208 = vector.broadcast %cst_96 : f32 to vector<128x1xf32>
    %209 = arith.divf %207, %208 : vector<128x1xf32>
    %210 = vector.broadcast %202 : vector<128x1xf32> to vector<128x32xf32>
    %211 = arith.subf %194, %210 : vector<128x32xf32>
    %cst_97 = arith.constant 9.99999996E-13 : f32
    %212 = vector.broadcast %cst_97 : f32 to vector<128x1xf32>
    %213 = arith.addf %209, %212 : vector<128x1xf32>
    %214 = math.rsqrt %213 : vector<128x1xf32>
    %215 = vector.broadcast %214 : vector<128x1xf32> to vector<128x32xf32>
    %216 = arith.mulf %211, %215 : vector<128x32xf32>
    %217 = vector.broadcast %196 : vector<1x32xf32> to vector<128x32xf32>
    %218 = arith.mulf %216, %217 : vector<128x32xf32>
    %219 = vector.broadcast %198 : vector<1x32xf32> to vector<128x32xf32>
    %220 = arith.addf %218, %219 : vector<128x32xf32>
    %c1_98 = arith.constant 1 : index
    %c0_99 = arith.constant 0 : index
    %c0_100 = arith.constant 0 : index
    %221 = vector.load %arg6[%c1_98, %c0_99, %c0_100] : memref<2x32x96xf32, #tpu.memory_space<vmem>>, vector<1x32x96xf32>
    %222 = vector.shape_cast %221 : vector<1x32x96xf32> to vector<32x96xf32>
    %cst_101 = arith.constant dense<0.000000e+00> : vector<128x96xf32>
    %223 = tpu.matmul %220, %222, %cst_101 {dimension_numbers = #tpu.dot_dimension_numbers<[1], [0], [0], [1], [0, 0, 1, 1], [], []>} : vector<128x32xf32>, vector<32x96xf32>, vector<128x96xf32> -> vector<128x96xf32>
    %c1_102 = arith.constant 1 : index
    %c0_103 = arith.constant 0 : index
    %c0_104 = arith.constant 0 : index
    %224 = vector.load %arg7[%c1_102, %c0_103, %c0_104] : memref<2x1x96xf32, #tpu.memory_space<vmem>>, vector<1x1x96xf32>
    %225 = vector.shape_cast %224 : vector<1x1x96xf32> to vector<1x96xf32>
    %226 = vector.broadcast %225 : vector<1x96xf32> to vector<128x96xf32>
    %227 = arith.addf %223, %226 : vector<128x96xf32>
    %228 = vector.extract_strided_slice %227 {offsets = [0, 0], sizes = [128, 32], strides = [1, 1]} : vector<128x96xf32> to vector<128x32xf32>
    %cst_105 = arith.constant 0.353553385 : f32
    %229 = vector.broadcast %cst_105 : f32 to vector<128x32xf32>
    %230 = arith.mulf %228, %229 : vector<128x32xf32>
    %231 = vector.extract_strided_slice %227 {offsets = [0, 32], sizes = [128, 32], strides = [1, 1]} : vector<128x96xf32> to vector<128x32xf32>
    %232 = vector.extract_strided_slice %227 {offsets = [0, 64], sizes = [128, 32], strides = [1, 1]} : vector<128x96xf32> to vector<128x32xf32>
    %233 = vector.extract_strided_slice %230 {offsets = [0, 0], sizes = [128, 8], strides = [1, 1]} : vector<128x32xf32> to vector<128x8xf32>
    %234 = vector.extract_strided_slice %231 {offsets = [0, 0], sizes = [128, 8], strides = [1, 1]} : vector<128x32xf32> to vector<128x8xf32>
    %235 = vector.extract_strided_slice %232 {offsets = [0, 0], sizes = [128, 8], strides = [1, 1]} : vector<128x32xf32> to vector<128x8xf32>
    %cst_106 = arith.constant dense<0.000000e+00> : vector<128x128xf32>
    %236 = tpu.matmul %233, %234, %cst_106 {dimension_numbers = #tpu.dot_dimension_numbers<[1], [1], [0], [0], [0, 0, 1, 0], [], []>} : vector<128x8xf32>, vector<128x8xf32>, vector<128x128xf32> -> vector<128x128xf32>
    %cst_107 = arith.constant dense<0xFF800000> : vector<128xf32>
    %237 = vector.multi_reduction <maximumf>, %236, %cst_107 [1] : vector<128x128xf32> to vector<128xf32>
    %238 = vector.shape_cast %237 : vector<128xf32> to vector<128x1xf32>
    %239 = vector.broadcast %238 : vector<128x1xf32> to vector<128x128xf32>
    %240 = arith.subf %236, %239 : vector<128x128xf32>
    %241 = math.exp %240 : vector<128x128xf32>
    %cst_108 = arith.constant dense<0.000000e+00> : vector<128xf32>
    %242 = vector.multi_reduction <add>, %241, %cst_108 [1] : vector<128x128xf32> to vector<128xf32>
    %243 = vector.shape_cast %242 : vector<128xf32> to vector<128x1xf32>
    %244 = tpu.reciprocal %243 {approx = true} : vector<128x1xf32> -> vector<128x1xf32>
    %245 = vector.broadcast %244 : vector<128x1xf32> to vector<128x128xf32>
    %246 = arith.mulf %241, %245 : vector<128x128xf32>
    %cst_109 = arith.constant dense<0.000000e+00> : vector<128x8xf32>
    %247 = tpu.matmul %246, %235, %cst_109 {dimension_numbers = #tpu.dot_dimension_numbers<[1], [0], [0], [1], [0, 0, 1, 1], [], []>} : vector<128x128xf32>, vector<128x8xf32>, vector<128x8xf32> -> vector<128x8xf32>
    %248 = vector.extract_strided_slice %230 {offsets = [0, 8], sizes = [128, 8], strides = [1, 1]} : vector<128x32xf32> to vector<128x8xf32>
    %249 = vector.extract_strided_slice %231 {offsets = [0, 8], sizes = [128, 8], strides = [1, 1]} : vector<128x32xf32> to vector<128x8xf32>
    %250 = vector.extract_strided_slice %232 {offsets = [0, 8], sizes = [128, 8], strides = [1, 1]} : vector<128x32xf32> to vector<128x8xf32>
    %cst_110 = arith.constant dense<0.000000e+00> : vector<128x128xf32>
    %251 = tpu.matmul %248, %249, %cst_110 {dimension_numbers = #tpu.dot_dimension_numbers<[1], [1], [0], [0], [0, 0, 1, 0], [], []>} : vector<128x8xf32>, vector<128x8xf32>, vector<128x128xf32> -> vector<128x128xf32>
    %cst_111 = arith.constant dense<0xFF800000> : vector<128xf32>
    %252 = vector.multi_reduction <maximumf>, %251, %cst_111 [1] : vector<128x128xf32> to vector<128xf32>
    %253 = vector.shape_cast %252 : vector<128xf32> to vector<128x1xf32>
    %254 = vector.broadcast %253 : vector<128x1xf32> to vector<128x128xf32>
    %255 = arith.subf %251, %254 : vector<128x128xf32>
    %256 = math.exp %255 : vector<128x128xf32>
    %cst_112 = arith.constant dense<0.000000e+00> : vector<128xf32>
    %257 = vector.multi_reduction <add>, %256, %cst_112 [1] : vector<128x128xf32> to vector<128xf32>
    %258 = vector.shape_cast %257 : vector<128xf32> to vector<128x1xf32>
    %259 = tpu.reciprocal %258 {approx = true} : vector<128x1xf32> -> vector<128x1xf32>
    %260 = vector.broadcast %259 : vector<128x1xf32> to vector<128x128xf32>
    %261 = arith.mulf %256, %260 : vector<128x128xf32>
    %cst_113 = arith.constant dense<0.000000e+00> : vector<128x8xf32>
    %262 = tpu.matmul %261, %250, %cst_113 {dimension_numbers = #tpu.dot_dimension_numbers<[1], [0], [0], [1], [0, 0, 1, 1], [], []>} : vector<128x128xf32>, vector<128x8xf32>, vector<128x8xf32> -> vector<128x8xf32>
    %263 = vector.extract_strided_slice %230 {offsets = [0, 16], sizes = [128, 8], strides = [1, 1]} : vector<128x32xf32> to vector<128x8xf32>
    %264 = vector.extract_strided_slice %231 {offsets = [0, 16], sizes = [128, 8], strides = [1, 1]} : vector<128x32xf32> to vector<128x8xf32>
    %265 = vector.extract_strided_slice %232 {offsets = [0, 16], sizes = [128, 8], strides = [1, 1]} : vector<128x32xf32> to vector<128x8xf32>
    %cst_114 = arith.constant dense<0.000000e+00> : vector<128x128xf32>
    %266 = tpu.matmul %263, %264, %cst_114 {dimension_numbers = #tpu.dot_dimension_numbers<[1], [1], [0], [0], [0, 0, 1, 0], [], []>} : vector<128x8xf32>, vector<128x8xf32>, vector<128x128xf32> -> vector<128x128xf32>
    %cst_115 = arith.constant dense<0xFF800000> : vector<128xf32>
    %267 = vector.multi_reduction <maximumf>, %266, %cst_115 [1] : vector<128x128xf32> to vector<128xf32>
    %268 = vector.shape_cast %267 : vector<128xf32> to vector<128x1xf32>
    %269 = vector.broadcast %268 : vector<128x1xf32> to vector<128x128xf32>
    %270 = arith.subf %266, %269 : vector<128x128xf32>
    %271 = math.exp %270 : vector<128x128xf32>
    %cst_116 = arith.constant dense<0.000000e+00> : vector<128xf32>
    %272 = vector.multi_reduction <add>, %271, %cst_116 [1] : vector<128x128xf32> to vector<128xf32>
    %273 = vector.shape_cast %272 : vector<128xf32> to vector<128x1xf32>
    %274 = tpu.reciprocal %273 {approx = true} : vector<128x1xf32> -> vector<128x1xf32>
    %275 = vector.broadcast %274 : vector<128x1xf32> to vector<128x128xf32>
    %276 = arith.mulf %271, %275 : vector<128x128xf32>
    %cst_117 = arith.constant dense<0.000000e+00> : vector<128x8xf32>
    %277 = tpu.matmul %276, %265, %cst_117 {dimension_numbers = #tpu.dot_dimension_numbers<[1], [0], [0], [1], [0, 0, 1, 1], [], []>} : vector<128x128xf32>, vector<128x8xf32>, vector<128x8xf32> -> vector<128x8xf32>
    %278 = vector.extract_strided_slice %230 {offsets = [0, 24], sizes = [128, 8], strides = [1, 1]} : vector<128x32xf32> to vector<128x8xf32>
    %279 = vector.extract_strided_slice %231 {offsets = [0, 24], sizes = [128, 8], strides = [1, 1]} : vector<128x32xf32> to vector<128x8xf32>
    %280 = vector.extract_strided_slice %232 {offsets = [0, 24], sizes = [128, 8], strides = [1, 1]} : vector<128x32xf32> to vector<128x8xf32>
    %cst_118 = arith.constant dense<0.000000e+00> : vector<128x128xf32>
    %281 = tpu.matmul %278, %279, %cst_118 {dimension_numbers = #tpu.dot_dimension_numbers<[1], [1], [0], [0], [0, 0, 1, 0], [], []>} : vector<128x8xf32>, vector<128x8xf32>, vector<128x128xf32> -> vector<128x128xf32>
    %cst_119 = arith.constant dense<0xFF800000> : vector<128xf32>
    %282 = vector.multi_reduction <maximumf>, %281, %cst_119 [1] : vector<128x128xf32> to vector<128xf32>
    %283 = vector.shape_cast %282 : vector<128xf32> to vector<128x1xf32>
    %284 = vector.broadcast %283 : vector<128x1xf32> to vector<128x128xf32>
    %285 = arith.subf %281, %284 : vector<128x128xf32>
    %286 = math.exp %285 : vector<128x128xf32>
    %cst_120 = arith.constant dense<0.000000e+00> : vector<128xf32>
    %287 = vector.multi_reduction <add>, %286, %cst_120 [1] : vector<128x128xf32> to vector<128xf32>
    %288 = vector.shape_cast %287 : vector<128xf32> to vector<128x1xf32>
    %289 = tpu.reciprocal %288 {approx = true} : vector<128x1xf32> -> vector<128x1xf32>
    %290 = vector.broadcast %289 : vector<128x1xf32> to vector<128x128xf32>
    %291 = arith.mulf %286, %290 : vector<128x128xf32>
    %cst_121 = arith.constant dense<0.000000e+00> : vector<128x8xf32>
    %292 = tpu.matmul %291, %280, %cst_121 {dimension_numbers = #tpu.dot_dimension_numbers<[1], [0], [0], [1], [0, 0, 1, 1], [], []>} : vector<128x128xf32>, vector<128x8xf32>, vector<128x8xf32> -> vector<128x8xf32>
    %293 = tpu.concatenate %247, %262, %277, %292 in 1 : vector<128x8xf32>, vector<128x8xf32>, vector<128x8xf32>, vector<128x8xf32> -> vector<128x32xf32>
    %c1_122 = arith.constant 1 : index
    %c0_123 = arith.constant 0 : index
    %c0_124 = arith.constant 0 : index
    %294 = vector.load %arg8[%c1_122, %c0_123, %c0_124] : memref<2x32x32xf32, #tpu.memory_space<vmem>>, vector<1x32x32xf32>
    %295 = vector.shape_cast %294 : vector<1x32x32xf32> to vector<32x32xf32>
    %cst_125 = arith.constant dense<0.000000e+00> : vector<128x32xf32>
    %296 = tpu.matmul %293, %295, %cst_125 {dimension_numbers = #tpu.dot_dimension_numbers<[1], [0], [0], [1], [0, 0, 1, 1], [], []>} : vector<128x32xf32>, vector<32x32xf32>, vector<128x32xf32> -> vector<128x32xf32>
    %297 = arith.addf %194, %296 : vector<128x32xf32>
    %c1_126 = arith.constant 1 : index
    %c0_127 = arith.constant 0 : index
    %c0_128 = arith.constant 0 : index
    %298 = vector.load %arg9[%c1_126, %c0_127, %c0_128] : memref<2x1x32xf32, #tpu.memory_space<vmem>>, vector<1x1x32xf32>
    %299 = vector.shape_cast %298 : vector<1x1x32xf32> to vector<1x32xf32>
    %300 = vector.broadcast %299 : vector<1x32xf32> to vector<128x32xf32>
    %301 = arith.addf %297, %300 : vector<128x32xf32>
    %c1_129 = arith.constant 1 : index
    %c0_130 = arith.constant 0 : index
    %c0_131 = arith.constant 0 : index
    %302 = vector.load %arg10[%c1_129, %c0_130, %c0_131] : memref<2x1x32xf32, #tpu.memory_space<vmem>>, vector<1x1x32xf32>
    %303 = vector.shape_cast %302 : vector<1x1x32xf32> to vector<1x32xf32>
    %c1_132 = arith.constant 1 : index
    %c0_133 = arith.constant 0 : index
    %c0_134 = arith.constant 0 : index
    %304 = vector.load %arg11[%c1_132, %c0_133, %c0_134] : memref<2x1x32xf32, #tpu.memory_space<vmem>>, vector<1x1x32xf32>
    %305 = vector.shape_cast %304 : vector<1x1x32xf32> to vector<1x32xf32>
    %cst_135 = arith.constant dense<0.000000e+00> : vector<128xf32>
    %306 = vector.multi_reduction <add>, %301, %cst_135 [1] : vector<128x32xf32> to vector<128xf32>
    %307 = vector.shape_cast %306 : vector<128xf32> to vector<128x1xf32>
    %cst_136 = arith.constant 3.200000e+01 : f32
    %308 = vector.broadcast %cst_136 : f32 to vector<128x1xf32>
    %309 = arith.divf %307, %308 : vector<128x1xf32>
    %310 = vector.broadcast %309 : vector<128x1xf32> to vector<128x32xf32>
    %311 = arith.subf %301, %310 : vector<128x32xf32>
    %312 = arith.mulf %311, %311 : vector<128x32xf32>
    %cst_137 = arith.constant dense<0.000000e+00> : vector<128xf32>
    %313 = vector.multi_reduction <add>, %312, %cst_137 [1] : vector<128x32xf32> to vector<128xf32>
    %314 = vector.shape_cast %313 : vector<128xf32> to vector<128x1xf32>
    %cst_138 = arith.constant 3.200000e+01 : f32
    %315 = vector.broadcast %cst_138 : f32 to vector<128x1xf32>
    %316 = arith.divf %314, %315 : vector<128x1xf32>
    %317 = vector.broadcast %309 : vector<128x1xf32> to vector<128x32xf32>
    %318 = arith.subf %301, %317 : vector<128x32xf32>
    %cst_139 = arith.constant 9.99999996E-13 : f32
    %319 = vector.broadcast %cst_139 : f32 to vector<128x1xf32>
    %320 = arith.addf %316, %319 : vector<128x1xf32>
    %321 = math.rsqrt %320 : vector<128x1xf32>
    %322 = vector.broadcast %321 : vector<128x1xf32> to vector<128x32xf32>
    %323 = arith.mulf %318, %322 : vector<128x32xf32>
    %324 = vector.broadcast %303 : vector<1x32xf32> to vector<128x32xf32>
    %325 = arith.mulf %323, %324 : vector<128x32xf32>
    %326 = vector.broadcast %305 : vector<1x32xf32> to vector<128x32xf32>
    %327 = arith.addf %325, %326 : vector<128x32xf32>
    %c1_140 = arith.constant 1 : index
    %c0_141 = arith.constant 0 : index
    %c0_142 = arith.constant 0 : index
    %328 = vector.load %arg12[%c1_140, %c0_141, %c0_142] : memref<2x32x128xf32, #tpu.memory_space<vmem>>, vector<1x32x128xf32>
    %329 = vector.shape_cast %328 : vector<1x32x128xf32> to vector<32x128xf32>
    %cst_143 = arith.constant dense<0.000000e+00> : vector<128x128xf32>
    %330 = tpu.matmul %327, %329, %cst_143 {dimension_numbers = #tpu.dot_dimension_numbers<[1], [0], [0], [1], [0, 0, 1, 1], [], []>} : vector<128x32xf32>, vector<32x128xf32>, vector<128x128xf32> -> vector<128x128xf32>
    %c1_144 = arith.constant 1 : index
    %c0_145 = arith.constant 0 : index
    %c0_146 = arith.constant 0 : index
    %331 = vector.load %arg13[%c1_144, %c0_145, %c0_146] : memref<2x1x128xf32, #tpu.memory_space<vmem>>, vector<1x1x128xf32>
    %332 = vector.shape_cast %331 : vector<1x1x128xf32> to vector<1x128xf32>
    %333 = vector.broadcast %332 : vector<1x128xf32> to vector<128x128xf32>
    %334 = arith.addf %330, %333 : vector<128x128xf32>
    %cst_147 = arith.constant 5.000000e-01 : f32
    %335 = vector.broadcast %cst_147 : f32 to vector<128x128xf32>
    %336 = arith.mulf %335, %334 : vector<128x128xf32>
    %cst_148 = arith.constant 0.707106769 : f32
    %337 = vector.broadcast %cst_148 : f32 to vector<128x128xf32>
    %338 = arith.mulf %334, %337 : vector<128x128xf32>
    %339 = math.absf %338 : vector<128x128xf32>
    %cst_149 = arith.constant 0.327591091 : f32
    %340 = vector.broadcast %cst_149 : f32 to vector<128x128xf32>
    %341 = arith.mulf %340, %339 : vector<128x128xf32>
    %cst_150 = arith.constant 1.000000e+00 : f32
    %342 = vector.broadcast %cst_150 : f32 to vector<128x128xf32>
    %343 = arith.addf %342, %341 : vector<128x128xf32>
    %cst_151 = arith.constant 1.000000e+00 : f32
    %344 = vector.broadcast %cst_151 : f32 to vector<128x128xf32>
    %345 = arith.divf %344, %343 : vector<128x128xf32>
    %cst_152 = arith.constant 1.06140542 : f32
    %346 = vector.broadcast %cst_152 : f32 to vector<128x128xf32>
    %347 = arith.mulf %346, %345 : vector<128x128xf32>
    %cst_153 = arith.constant -1.45315206 : f32
    %348 = vector.broadcast %cst_153 : f32 to vector<128x128xf32>
    %349 = arith.addf %347, %348 : vector<128x128xf32>
    %350 = arith.mulf %349, %345 : vector<128x128xf32>
    %cst_154 = arith.constant 1.42141378 : f32
    %351 = vector.broadcast %cst_154 : f32 to vector<128x128xf32>
    %352 = arith.addf %350, %351 : vector<128x128xf32>
    %353 = arith.mulf %352, %345 : vector<128x128xf32>
    %cst_155 = arith.constant -0.284496725 : f32
    %354 = vector.broadcast %cst_155 : f32 to vector<128x128xf32>
    %355 = arith.addf %353, %354 : vector<128x128xf32>
    %356 = arith.mulf %355, %345 : vector<128x128xf32>
    %cst_156 = arith.constant 0.254829586 : f32
    %357 = vector.broadcast %cst_156 : f32 to vector<128x128xf32>
    %358 = arith.addf %356, %357 : vector<128x128xf32>
    %359 = arith.mulf %358, %345 : vector<128x128xf32>
    %cst_157 = arith.constant 0.000000e+00 : f32
    %360 = vector.broadcast %cst_157 : f32 to vector<128x128xf32>
    %361 = arith.subf %360, %339 : vector<128x128xf32>
    %362 = arith.mulf %361, %339 : vector<128x128xf32>
    %363 = math.exp %362 : vector<128x128xf32>
    %364 = arith.mulf %359, %363 : vector<128x128xf32>
    %cst_158 = arith.constant 1.000000e+00 : f32
    %365 = vector.broadcast %cst_158 : f32 to vector<128x128xf32>
    %366 = arith.subf %365, %364 : vector<128x128xf32>
    %cst_159 = arith.constant 0.000000e+00 : f32
    %367 = vector.broadcast %cst_159 : f32 to vector<128x128xf32>
    %368 = arith.cmpf oge, %338, %367 : vector<128x128xf32>
    %cst_160 = arith.constant 0.000000e+00 : f32
    %369 = vector.broadcast %cst_160 : f32 to vector<128x128xf32>
    %370 = arith.subf %369, %366 : vector<128x128xf32>
    %371 = arith.select %368, %366, %370 : vector<128x128xi1>, vector<128x128xf32>
    %cst_161 = arith.constant 1.000000e+00 : f32
    %372 = vector.broadcast %cst_161 : f32 to vector<128x128xf32>
    %373 = arith.addf %372, %371 : vector<128x128xf32>
    %374 = arith.mulf %336, %373 : vector<128x128xf32>
    %c1_162 = arith.constant 1 : index
    %c0_163 = arith.constant 0 : index
    %c0_164 = arith.constant 0 : index
    %375 = vector.load %arg14[%c1_162, %c0_163, %c0_164] : memref<2x128x32xf32, #tpu.memory_space<vmem>>, vector<1x128x32xf32>
    %376 = vector.shape_cast %375 : vector<1x128x32xf32> to vector<128x32xf32>
    %cst_165 = arith.constant dense<0.000000e+00> : vector<128x32xf32>
    %377 = tpu.matmul %374, %376, %cst_165 {dimension_numbers = #tpu.dot_dimension_numbers<[1], [0], [0], [1], [0, 0, 1, 1], [], []>} : vector<128x128xf32>, vector<128x32xf32>, vector<128x32xf32> -> vector<128x32xf32>
    %378 = arith.addf %301, %377 : vector<128x32xf32>
    %c1_166 = arith.constant 1 : index
    %c0_167 = arith.constant 0 : index
    %c0_168 = arith.constant 0 : index
    %379 = vector.load %arg15[%c1_166, %c0_167, %c0_168] : memref<2x1x32xf32, #tpu.memory_space<vmem>>, vector<1x1x32xf32>
    %380 = vector.shape_cast %379 : vector<1x1x32xf32> to vector<1x32xf32>
    %381 = vector.broadcast %380 : vector<1x32xf32> to vector<128x32xf32>
    %382 = arith.addf %378, %381 : vector<128x32xf32>
    %c0_169 = arith.constant 0 : index
    %c0_170 = arith.constant 0 : index
    %383 = vector.load %arg16[%c0_169, %c0_170] : memref<1x32xf32, #tpu.memory_space<vmem>>, vector<1x32xf32>
    %c0_171 = arith.constant 0 : index
    %c0_172 = arith.constant 0 : index
    %384 = vector.load %arg17[%c0_171, %c0_172] : memref<1x32xf32, #tpu.memory_space<vmem>>, vector<1x32xf32>
    %cst_173 = arith.constant dense<0.000000e+00> : vector<128xf32>
    %385 = vector.multi_reduction <add>, %382, %cst_173 [1] : vector<128x32xf32> to vector<128xf32>
    %386 = vector.shape_cast %385 : vector<128xf32> to vector<128x1xf32>
    %cst_174 = arith.constant 3.200000e+01 : f32
    %387 = vector.broadcast %cst_174 : f32 to vector<128x1xf32>
    %388 = arith.divf %386, %387 : vector<128x1xf32>
    %389 = vector.broadcast %388 : vector<128x1xf32> to vector<128x32xf32>
    %390 = arith.subf %382, %389 : vector<128x32xf32>
    %391 = arith.mulf %390, %390 : vector<128x32xf32>
    %cst_175 = arith.constant dense<0.000000e+00> : vector<128xf32>
    %392 = vector.multi_reduction <add>, %391, %cst_175 [1] : vector<128x32xf32> to vector<128xf32>
    %393 = vector.shape_cast %392 : vector<128xf32> to vector<128x1xf32>
    %cst_176 = arith.constant 3.200000e+01 : f32
    %394 = vector.broadcast %cst_176 : f32 to vector<128x1xf32>
    %395 = arith.divf %393, %394 : vector<128x1xf32>
    %396 = vector.broadcast %388 : vector<128x1xf32> to vector<128x32xf32>
    %397 = arith.subf %382, %396 : vector<128x32xf32>
    %cst_177 = arith.constant 9.99999996E-13 : f32
    %398 = vector.broadcast %cst_177 : f32 to vector<128x1xf32>
    %399 = arith.addf %395, %398 : vector<128x1xf32>
    %400 = math.rsqrt %399 : vector<128x1xf32>
    %401 = vector.broadcast %400 : vector<128x1xf32> to vector<128x32xf32>
    %402 = arith.mulf %397, %401 : vector<128x32xf32>
    %403 = vector.broadcast %383 : vector<1x32xf32> to vector<128x32xf32>
    %404 = arith.mulf %402, %403 : vector<128x32xf32>
    %405 = vector.broadcast %384 : vector<1x32xf32> to vector<128x32xf32>
    %406 = arith.addf %404, %405 : vector<128x32xf32>
    %c0_178 = arith.constant 0 : index
    %c0_179 = arith.constant 0 : index
    %407 = vector.load %arg18[%c0_178, %c0_179] : memref<3x32xf32, #tpu.memory_space<vmem>>, vector<3x32xf32>
    %cst_180 = arith.constant dense<0.000000e+00> : vector<3x128xf32>
    %408 = tpu.matmul %407, %406, %cst_180 {dimension_numbers = #tpu.dot_dimension_numbers<[1], [1], [0], [0], [0, 0, 1, 0], [], []>} : vector<3x32xf32>, vector<128x32xf32>, vector<3x128xf32> -> vector<3x128xf32>
    %c0_181 = arith.constant 0 : index
    %c0_182 = arith.constant 0 : index
    %409 = vector.load %arg19[%c0_181, %c0_182] : memref<3x1xf32, #tpu.memory_space<vmem>>, vector<3x1xf32>
    %410 = vector.broadcast %409 : vector<3x1xf32> to vector<3x128xf32>
    %411 = arith.addf %408, %410 : vector<3x128xf32>
    %c0_183 = arith.constant 0 : index
    %c0_184 = arith.constant 0 : index
    %c0_185 = arith.constant 0 : index
    %412 = vector.load %arg20[%c0_183, %c0_184, %c0_185] : memref<1x3x128xf32, #tpu.memory_space<vmem>>, vector<1x3x128xf32>
    %413 = vector.shape_cast %412 : vector<1x3x128xf32> to vector<3x128xf32>
    %414 = vector.shape_cast %411 : vector<3x128xf32> to vector<1x3x128xf32>
    tpu.vector_store %arg20[%c0_183, %c0_184, %c0_185], %414 {strides = array<i32>} : memref<1x3x128xf32, #tpu.memory_space<vmem>>, vector<1x3x128xf32>,
    return
  }
  func.func @transform_0(%arg0: i32) -> (i32, i32, i32) {
    %c0_i32 = arith.constant 0 : i32
    %c0_i32_0 = arith.constant 0 : i32
    %c0_i32_1 = arith.constant 0 : i32
    return %arg0, %c0_i32, %c0_i32_0 : i32, i32, i32
  }
  func.func @transform_1(%arg0: i32) -> (i32, i32) {
    %c0_i32 = arith.constant 0 : i32
    %c0_i32_0 = arith.constant 0 : i32
    %c0_i32_1 = arith.constant 0 : i32
    return %c0_i32, %c0_i32_0 : i32, i32
  }
  func.func @transform_2(%arg0: i32) -> (i32, i32) {
    %c0_i32 = arith.constant 0 : i32
    %c0_i32_0 = arith.constant 0 : i32
    %c0_i32_1 = arith.constant 0 : i32
    return %c0_i32, %c0_i32_0 : i32, i32
  }
  func.func @transform_3(%arg0: i32) -> (i32, i32, i32) {
    %c0_i32 = arith.constant 0 : i32
    %c0_i32_0 = arith.constant 0 : i32
    %c0_i32_1 = arith.constant 0 : i32
    %c0_i32_2 = arith.constant 0 : i32
    return %c0_i32, %c0_i32_0, %c0_i32_1 : i32, i32, i32
  }
  func.func @transform_4(%arg0: i32) -> (i32, i32, i32) {
    %c0_i32 = arith.constant 0 : i32
    %c0_i32_0 = arith.constant 0 : i32
    %c0_i32_1 = arith.constant 0 : i32
    %c0_i32_2 = arith.constant 0 : i32
    return %c0_i32, %c0_i32_0, %c0_i32_1 : i32, i32, i32
  }
  func.func @transform_5(%arg0: i32) -> (i32, i32, i32) {
    %c0_i32 = arith.constant 0 : i32
    %c0_i32_0 = arith.constant 0 : i32
    %c0_i32_1 = arith.constant 0 : i32
    %c0_i32_2 = arith.constant 0 : i32
    return %c0_i32, %c0_i32_0, %c0_i32_1 : i32, i32, i32
  }
  func.func @transform_6(%arg0: i32) -> (i32, i32, i32) {
    %c0_i32 = arith.constant 0 : i32
    %c0_i32_0 = arith.constant 0 : i32
    %c0_i32_1 = arith.constant 0 : i32
    %c0_i32_2 = arith.constant 0 : i32
    return %c0_i32, %c0_i32_0, %c0_i32_1 : i32, i32, i32
  }
  func.func @transform_7(%arg0: i32) -> (i32, i32, i32) {
    %c0_i32 = arith.constant 0 : i32
    %c0_i32_0 = arith.constant 0 : i32
    %c0_i32_1 = arith.constant 0 : i32
    %c0_i32_2 = arith.constant 0 : i32
    return %c0_i32, %c0_i32_0, %c0_i32_1 : i32, i32, i32
  }
  func.func @transform_8(%arg0: i32) -> (i32, i32, i32) {
    %c0_i32 = arith.constant 0 : i32
    %c0_i32_0 = arith.constant 0 : i32
    %c0_i32_1 = arith.constant 0 : i32
    %c0_i32_2 = arith.constant 0 : i32
    return %c0_i32, %c0_i32_0, %c0_i32_1 : i32, i32, i32
  }
  func.func @transform_9(%arg0: i32) -> (i32, i32, i32) {
    %c0_i32 = arith.constant 0 : i32
    %c0_i32_0 = arith.constant 0 : i32
    %c0_i32_1 = arith.constant 0 : i32
    %c0_i32_2 = arith.constant 0 : i32
    return %c0_i32, %c0_i32_0, %c0_i32_1 : i32, i32, i32
  }
  func.func @transform_10(%arg0: i32) -> (i32, i32, i32) {
    %c0_i32 = arith.constant 0 : i32
    %c0_i32_0 = arith.constant 0 : i32
    %c0_i32_1 = arith.constant 0 : i32
    %c0_i32_2 = arith.constant 0 : i32
    return %c0_i32, %c0_i32_0, %c0_i32_1 : i32, i32, i32
  }
  func.func @transform_11(%arg0: i32) -> (i32, i32, i32) {
    %c0_i32 = arith.constant 0 : i32
    %c0_i32_0 = arith.constant 0 : i32
    %c0_i32_1 = arith.constant 0 : i32
    %c0_i32_2 = arith.constant 0 : i32
    return %c0_i32, %c0_i32_0, %c0_i32_1 : i32, i32, i32
  }
  func.func @transform_12(%arg0: i32) -> (i32, i32, i32) {
    %c0_i32 = arith.constant 0 : i32
    %c0_i32_0 = arith.constant 0 : i32
    %c0_i32_1 = arith.constant 0 : i32
    %c0_i32_2 = arith.constant 0 : i32
    return %c0_i32, %c0_i32_0, %c0_i32_1 : i32, i32, i32
  }
  func.func @transform_13(%arg0: i32) -> (i32, i32, i32) {
    %c0_i32 = arith.constant 0 : i32
    %c0_i32_0 = arith.constant 0 : i32
    %c0_i32_1 = arith.constant 0 : i32
    %c0_i32_2 = arith.constant 0 : i32
    return %c0_i32, %c0_i32_0, %c0_i32_1 : i32, i32, i32
  }
  func.func @transform_14(%arg0: i32) -> (i32, i32, i32) {
    %c0_i32 = arith.constant 0 : i32
    %c0_i32_0 = arith.constant 0 : i32
    %c0_i32_1 = arith.constant 0 : i32
    %c0_i32_2 = arith.constant 0 : i32
    return %c0_i32, %c0_i32_0, %c0_i32_1 : i32, i32, i32
  }
  func.func @transform_15(%arg0: i32) -> (i32, i32) {
    %c0_i32 = arith.constant 0 : i32
    %c0_i32_0 = arith.constant 0 : i32
    %c0_i32_1 = arith.constant 0 : i32
    return %c0_i32, %c0_i32_0 : i32, i32
  }
  func.func @transform_16(%arg0: i32) -> (i32, i32) {
    %c0_i32 = arith.constant 0 : i32
    %c0_i32_0 = arith.constant 0 : i32
    %c0_i32_1 = arith.constant 0 : i32
    return %c0_i32, %c0_i32_0 : i32, i32
  }
  func.func @transform_17(%arg0: i32) -> (i32, i32) {
    %c0_i32 = arith.constant 0 : i32
    %c0_i32_0 = arith.constant 0 : i32
    %c0_i32_1 = arith.constant 0 : i32
    return %c0_i32, %c0_i32_0 : i32, i32
  }
  func.func @transform_18(%arg0: i32) -> (i32, i32) {
    %c0_i32 = arith.constant 0 : i32
    %c0_i32_0 = arith.constant 0 : i32
    %c0_i32_1 = arith.constant 0 : i32
    return %c0_i32, %c0_i32_0 : i32, i32
  }
  func.func @transform_19(%arg0: i32) -> (i32, i32, i32) {
    %c0_i32 = arith.constant 0 : i32
    %c0_i32_0 = arith.constant 0 : i32
    %c0_i32_1 = arith.constant 0 : i32
    return %arg0, %c0_i32, %c0_i32_0 : i32, i32, i32
  }
}

</mosaic_0001>

<bundles_post_ra>
// kernel: foreground_forward.1
= control target key start
LH: loop header
LB: loop body
LE: loop exit
PB: predicated region body
PF: predicated region fallthrough
CT: control target
= control target key end

     0   :  { %s19742_s0 = inlined_call_operand.vmem [shape: f32[2,128,3], index: 0, kind: input, shape index: {}]   ;;  %s19743_s1 = inlined_call_operand.vmem [shape: f32[3,32], index: 1, kind: input, shape index: {}]   ;;  %s19744_s2 = inlined_call_operand.vmem [shape: f32[1,32], index: 2, kind: input, shape index: {}]   ;;  %s19745_s3 = inlined_call_operand.vmem [shape: f32[2,1,32], index: 3, kind: input, shape index: {}]   ;;  %s19746_s4 = inlined_call_operand.vmem [shape: f32[2,1,32], index: 4, kind: input, shape index: {}]   ;;  %s19747_s5 = inlined_call_operand.vmem [shape: f32[2,32,96], index: 5, kind: input, shape index: {}]   ;;  %s19748_s6 = inlined_call_operand.vmem [shape: f32[2,1,96], index: 6, kind: input, shape index: {}]   ;;  %s19749_s7 = inlined_call_operand.vmem [shape: f32[2,32,32], index: 7, kind: input, shape index: {}]   ;;  %s19750_s8 = inlined_call_operand.vmem [shape: f32[2,1,32], index: 8, kind: input, shape index: {}]   ;;  %s19751_s9 = inlined_call_operand.vmem [shape: f32[2,1,32], index: 9, kind: input, shape index: {}]   ;;  %s19752_s10 = inlined_call_operand.vmem [shape: f32[2,1,32], index: 10, kind: input, shape index: {}]   ;;  %s19753_s11 = inlined_call_operand.vmem [shape: f32[2,32,128], index: 11, kind: input, shape index: {}]   ;;  %s19754_s12 = inlined_call_operand.vmem [shape: f32[2,1,128], index: 12, kind: input, shape index: {}]   ;;  %s19755_s13 = inlined_call_operand.vmem [shape: f32[2,128,32], index: 13, kind: input, shape index: {}]   ;;  %s19756_s14 = inlined_call_operand.vmem [shape: f32[2,1,32], index: 14, kind: input, shape index: {}]   ;;  %s19757_s15 = inlined_call_operand.vmem [shape: f32[1,32], index: 15, kind: input, shape index: {}]   ;;  %s19758_s16 = inlined_call_operand.vmem [shape: f32[1,32], index: 16, kind: input, shape index: {}]   ;;  %s19759_s17 = inlined_call_operand.vmem [shape: f32[3,32], index: 17, kind: input, shape index: {}]   ;;  %s19760_s18 = inlined_call_operand.vmem [shape: f32[3,1], index: 18, kind: input, shape index: {}]   ;;  %s19761_s19 = inlined_call_operand.vmem [shape: f32[2,3,128], index: 19, kind: output, shape index: {}]  }
   0x1   :  { %19825 = sst [smem:[#allocation51_spill]] %s19742_s0  ;;  %s15056_s0 = smov 0  }
   0x2   :  { %19826 = sst [smem:[#allocation52_spill]] %s19743_s1 }
   0x3   :  { %19827 = sst [smem:[#allocation53_spill]] %s19744_s2 }
   0x4   :  { %19828 = sst [smem:[#allocation54_spill]] %s19745_s3 }
   0x5 LB: > { %s10236_s30 = sadd.s32 4294967295, %s14936_s0   ;;  %p10240_p0 = scmp.ge.s32.totalorder %s14936_s0, 1  ;;  %s14936_s0 = sphi %s15056_s0, %s29_s0  }
   0x6   : > { %p537_p1 = scmp.lt.s32.totalorder %s14936_s0, 3 }
   0x8   : > { %p538_p2 = pnand %p10240_p0, %p537_p1 }
   0xa   : > { %541 = sbr.rel (%p538_p2) target bundleno = 9766 (0x2626), region = 96 }
  0x11   : > { %s19829_s1 = sld [smem:[#allocation52_spill]]  ;;  %vm674_vm0 = vcmask 1042432   ;;  %p592_p3 = scmp.lt.s32.totalorder %s10236_s30, 1  ;;  %vm625_vm1 = vcmask 23552   ;;  %vm825_vm2 = vcmask 261120   ;;  %vm1347_vm3 = vcmask 64512  }
  0x12   : > { %s19830_s24 = sld [smem:[#allocation51_spill]]  ;;  %s19831_s27 = sld [smem:[#allocation53_spill]]  ;;  %vm15464_vm4 = vmpackc.low %vm1347_vm3, %vm1347_vm3  ;;  %vm3948_vm5 = vcmask 130048   ;;  %vm3965_vm6 = vcmask 195584  }
  0x13   : > { %s20058_s30 = smov (!%p592_p3, %s10236_s30), 1  ;;  %s19848_s3 = sld [smem:[#allocation54_spill]] }
  0x14   : > { %s10687_s22 = sshll.u32 %s20058_s30, 7  ;;  %s14938_s20 = smov 96  }
  0x15   : > { %s14939_s21 = smov 64   ;;  %s19791_s2 = smov 56  }
  0x16   : > { %s19789_s23 = smov 80   ;;  %s19783_s26 = smov 72  }
  0x17   : > { %v617_v0 = vld [vmem:[%s19829_s1] sm:$0x7]  ;;  %s19795_s1 = smov 88   ;;  %s19779_s28 = smov 40  }
  0x18   : > { %11418 = vmatprep.subr.msk.mxu0 %vm674_vm0, %v617_v0  ;;  %s15073_s25 = scalar_lea.vmem %s19830_s24, %s10687_s22  ;;  %v10244_v17 = vld [vmem:[%s19831_s27] ss:$0 sm:$0xff]  ;;  %s19793_s22 = smov 120  }
  0x19   : > { %11419 = vmatpush3.msk.msra.mxu0 %vm674_vm0, %v617_v0  ;;  %v601_v1 = vld [vmem:[%s15073_s25] sm:$0xff]  ;;  %v602_v2 = vld [vmem:[%s15073_s25 + $0x8] sm:$0xff]  ;;  %v603_v3 = vld [vmem:[%s15073_s25 + $0x10] sm:$0xff]  ;;  %s19787_s24 = smov 112   ;;  %s19781_s27 = smov 104  }
  0x1a   : > { %11420 = vmatprep.mubr.msk.f32.mxu0 %vm625_vm1, %v601_v1  ;;  %v604_v4 = vld [vmem:[%s15073_s25 + $0x18] sm:$0xff]  ;;  %v605_v5 = vld [vmem:[%s15073_s25 + $0x20] sm:$0xff]  ;;  %v606_v6 = vld [vmem:[%s15073_s25 + $0x28] sm:$0xff]  ;;  %s14949_s29 = smov 8  }
  0x1b   : > { %11421 = vmatmul.mubr.msk.f32.vlgmr.msra.gmra.mrb[0].mxu0 %vm625_vm1, %v602_v2  ;;  %v607_v7 = vld [vmem:[%s15073_s25 + $0x30] sm:$0xff]  ;;  %v608_v8 = vld [vmem:[%s15073_s25 + $0x38] sm:$0xff]  ;;  %v609_v9 = vld [vmem:[%s15073_s25 + $0x40] sm:$0xff] }
  0x1c   : > { %11423 = vmatprep.mubr.msk.f32.mxu0 %vm625_vm1, %v603_v3  ;;  %v610_v10 = vld [vmem:[%s15073_s25 + $0x48] sm:$0xff]  ;;  %v611_v11 = vld [vmem:[%s15073_s25 + $0x50] sm:$0xff]  ;;  %v612_v12 = vld [vmem:[%s15073_s25 + $0x58] sm:$0xff] }
  0x1d   : > { %v613_v13 = vld [vmem:[%s15073_s25 + $0x60] sm:$0xff]  ;;  %v614_v14 = vld [vmem:[%s15073_s25 + $0x68] sm:$0xff]  ;;  %v615_v15 = vld [vmem:[%s15073_s25 + $0x70] sm:$0xff] }
  0x1e   : > { %v616_v16 = vld [vmem:[%s15073_s25 + $0x78] sm:$0xff]  ;;  %s19785_s25 = smov 48  }
  0x1f   : > { %11424 = vmatmul.mubr.msk.f32.gmra.mrb[2].mxu0 %vm625_vm1, %v604_v4 }
  0x20   : > { %11426 = vmatprep.mubr.msk.f32.mxu0 %vm625_vm1, %v605_v5 }
  0x23   : > { %11427 = vmatmul.mubr.msk.f32.gmra.mrb[4].mxu0 %vm625_vm1, %v606_v6 }
  0x24   : > { %11429 = vmatprep.mubr.msk.f32.mxu0 %vm625_vm1, %v607_v7 }
  0x27   : > { %11430 = vmatmul.mubr.msk.f32.gmra.mrb[6].mxu0 %vm625_vm1, %v608_v8 }
  0x28   : > { %11432 = vmatprep.mubr.msk.f32.mxu0 %vm625_vm1, %v609_v9 }
  0x2b   : > { %11433 = vmatmul.mubr.msk.f32.gmra.mrb[8].mxu0 %vm625_vm1, %v610_v10 }
  0x2c   : > { %11435 = vmatprep.mubr.msk.f32.mxu0 %vm625_vm1, %v611_v11 }
  0x2f   : > { %11436 = vmatmul.mubr.msk.f32.gmra.mrb[10].mxu0 %vm625_vm1, %v612_v12 }
  0x30   : > { %11438 = vmatprep.mubr.msk.f32.mxu0 %vm625_vm1, %v613_v13 }
  0x33   : > { %11439 = vmatmul.mubr.msk.f32.gmra.mrb[12].mxu0 %vm625_vm1, %v614_v14 }
  0x34   : > { %11441 = vmatprep.mubr.msk.f32.mxu0 %vm625_vm1, %v615_v15 }
  0x37   : > { %11442 = vmatmul.mubr.msk.f32.gmra.mrb[14].mxu0 %vm625_vm1, %v616_v16 }
  0xee   : > { %v11422_v18 = vpop.f32.mrb[0].mxu0 }
  0xef   : > { %v744_v19 = vpop.f32.mrb[1].mxu0  ;;  %v15112_v21 = vadd.f32 %v11422_v18, %v10244_v17 }
  0xf0   : > { %v15110_v20 = vadd.f32 %v10244_v17, %v744_v19 }
  0xf1   : > { %19833 = vst [vmem:[#allocation3_spill] sm:$0xff] %v15112_v21  ;;  %v829_v29 = vsel %vm825_vm2, %v15112_v21, 0.0 }
  0xf2   : > { %19832 = vst [vmem:[#allocation2_spill] sm:$0xff] %v15110_v20  ;;  %v11425_v22 = vpop.f32.mrb[2].mxu0  ;;  %v826_v23 = vsel %vm825_vm2, %v15110_v20, 0.0 }
  0xf3   : > { %v754_v24 = vpop.f32.mrb[3].mxu0  ;;  %827 = vadd.xlane.f32.xlu0 %v826_v23  ;;  %v15116_v25 = vadd.f32 %v11425_v22, %v10244_v17 }
  0xf4   : > { %v15118_v26 = vadd.f32 %v10244_v17, %v754_v24 }
  0xf5   : > { %19834 = vst [vmem:[#allocation4_spill] sm:$0xff] %v15116_v25  ;;  %v835_v33 = vsel %vm825_vm2, %v15116_v25, 0.0 }
  0xf6   : > { %19835 = vst [vmem:[#allocation5_spill] sm:$0xff] %v15118_v26  ;;  %v11428_v27 = vpop.f32.mrb[4].mxu0  ;;  %v832_v28 = vsel %vm825_vm2, %v15118_v26, 0.0 }
  0xf7   : > { %v764_v30 = vpop.f32.mrb[5].mxu0  ;;  %833 = vadd.xlane.f32.xlu1 %v832_v28  ;;  %830 = vadd.xlane.f32.xlu0 %v829_v29  ;;  %v15124_v31 = vadd.f32 %v11428_v27, %v10244_v17 }
  0xf8   : > { %v15126_v32 = vadd.f32 %v10244_v17, %v764_v30 }
  0xf9   : > { %19836 = vst [vmem:[#allocation6_spill] sm:$0xff] %v15124_v31  ;;  %v841_v39 = vsel %vm825_vm2, %v15124_v31, 0.0 }
  0xfa   : > { %19837 = vst [vmem:[#allocation7_spill] sm:$0xff] %v15126_v32  ;;  %v11431_v34 = vpop.f32.mrb[6].mxu0  ;;  %v838_v35 = vsel %vm825_vm2, %v15126_v32, 0.0 }
  0xfb   : > { %v774_v36 = vpop.f32.mrb[7].mxu0  ;;  %836 = vadd.xlane.f32.xlu1 %v835_v33  ;;  %839 = vadd.xlane.f32.xlu0 %v838_v35  ;;  %v15132_v37 = vadd.f32 %v11431_v34, %v10244_v17 }
  0xfc   : > { %v15134_v38 = vadd.f32 %v10244_v17, %v774_v36 }
  0xfd   : > { %19838 = vst [vmem:[#allocation8_spill] sm:$0xff] %v15132_v37  ;;  %v847_v45 = vsel %vm825_vm2, %v15132_v37, 0.0 }
  0xfe   : > { %19839 = vst [vmem:[#allocation9_spill] sm:$0xff] %v15134_v38  ;;  %v11434_v40 = vpop.f32.mrb[8].mxu0  ;;  %v844_v41 = vsel %vm825_vm2, %v15134_v38, 0.0 }
  0xff   : > { %v784_v42 = vpop.f32.mrb[9].mxu0  ;;  %842 = vadd.xlane.f32.xlu1 %v841_v39  ;;  %845 = vadd.xlane.f32.xlu0 %v844_v41  ;;  %v15140_v43 = vadd.f32 %v11434_v40, %v10244_v17 }
 0x100   : > { %v15142_v44 = vadd.f32 %v10244_v17, %v784_v42 }
 0x101   : > { %19840 = vst [vmem:[#allocation10_spill] sm:$0xff] %v15140_v43  ;;  %v853_v51 = vsel %vm825_vm2, %v15140_v43, 0.0 }
 0x102   : > { %19841 = vst [vmem:[#allocation11_spill] sm:$0xff] %v15142_v44  ;;  %v11437_v46 = vpop.f32.mrb[10].mxu0  ;;  %v850_v47 = vsel %vm825_vm2, %v15142_v44, 0.0 }
 0x103   : > { %v794_v48 = vpop.f32.mrb[11].mxu0  ;;  %848 = vadd.xlane.f32.xlu1 %v847_v45  ;;  %851 = vadd.xlane.f32.xlu0 %v850_v47  ;;  %v15148_v49 = vadd.f32 %v11437_v46, %v10244_v17 }
 0x104   : > { %v15150_v50 = vadd.f32 %v10244_v17, %v794_v48 }
 0x105   : > { %19842 = vst [vmem:[#allocation12_spill] sm:$0xff] %v15148_v49  ;;  %v859_v57 = vsel %vm825_vm2, %v15148_v49, 0.0 }
 0x106   : > { %19843 = vst [vmem:[#allocation13_spill] sm:$0xff] %v15150_v50  ;;  %v11440_v52 = vpop.f32.mrb[12].mxu0  ;;  %v856_v53 = vsel %vm825_vm2, %v15150_v50, 0.0 }
 0x107   : > { %v804_v54 = vpop.f32.mrb[13].mxu0  ;;  %854 = vadd.xlane.f32.xlu1 %v853_v51  ;;  %857 = vadd.xlane.f32.xlu0 %v856_v53  ;;  %v15156_v55 = vadd.f32 %v11440_v52, %v10244_v17 }
 0x108   : > { %v15158_v56 = vadd.f32 %v10244_v17, %v804_v54 }
 0x109   : > { %19844 = vst [vmem:[#allocation14_spill] sm:$0xff] %v15156_v55  ;;  %v865_v63 = vsel %vm825_vm2, %v15156_v55, 0.0 }
 0x10a   : > { %19845 = vst [vmem:[#allocation15_spill] sm:$0xff] %v15158_v56  ;;  %v11443_v58 = vpop.f32.mrb[14].mxu0  ;;  %v862_v59 = vsel %vm825_vm2, %v15158_v56, 0.0 }
 0x10b   : > { %v814_v60 = vpop.f32.mrb[15].mxu0  ;;  %860 = vadd.xlane.f32.xlu1 %v859_v57  ;;  %863 = vadd.xlane.f32.xlu0 %v862_v59  ;;  %v15164_v61 = vadd.f32 %v11443_v58, %v10244_v17 }
 0x10c   : > { %v15166_v62 = vadd.f32 %v10244_v17, %v814_v60 }
 0x10d   : > { %19846 = vst [vmem:[#allocation16_spill] sm:$0xff] %v15164_v61  ;;  %v871_v1 = vsel %vm825_vm2, %v15164_v61, 0.0 }
 0x10e   : > { %19847 = vst [vmem:[#allocation17_spill] sm:$0xff] %v15166_v62  ;;  %v868_v0 = vsel %vm825_vm2, %v15166_v62, 0.0 }
 0x10f   : > { %866 = vadd.xlane.f32.xlu1 %v865_v63  ;;  %869 = vadd.xlane.f32.xlu0 %v868_v0 }
 0x113   : > { %872 = vadd.xlane.f32.xlu1 %v871_v1 }
 0x180   : > { %v828_v2 = vpop.xlane.xlu0 %827 }
 0x181   : > { %v875_v3 = vmul.f32 0.03125, %v828_v2 }
 0x183   : > { %v15175_v4 = vsub.f32 %v15110_v20, %v875_v3 }
 0x184   : > { %v834_v5 = vpop.xlane.xlu1 %833  ;;  %v831_v6 = vpop.xlane.xlu0 %830 }
 0x185   : > { %v877_v7 = vmul.f32 0.03125, %v834_v5  ;;  %v876_v8 = vmul.f32 0.03125, %v831_v6  ;;  %v907_v9 = vmul.f32 %v15175_v4, %v15175_v4 }
 0x187   : > { %v15180_v10 = vsub.f32 %v15118_v26, %v877_v7  ;;  %v15183_v11 = vsub.f32 %v15112_v21, %v876_v8  ;;  %v923_v12 = vsel %vm825_vm2, %v907_v9, 0.0 }
 0x188   : > { %v837_v13 = vpop.xlane.xlu1 %836  ;;  %924 = vadd.xlane.f32.xlu0 %v923_v12  ;;  %v840_v14 = vpop.xlane.xlu0 %839 }
 0x189   : > { %v878_v15 = vmul.f32 0.03125, %v837_v13  ;;  %v879_v16 = vmul.f32 0.03125, %v840_v14  ;;  %v909_v17 = vmul.f32 %v15180_v10, %v15180_v10  ;;  %v908_v18 = vmul.f32 %v15183_v11, %v15183_v11 }
 0x18b   : > { %v15191_v19 = vsub.f32 %v15116_v25, %v878_v15  ;;  %v15194_v22 = vsub.f32 %v15126_v32, %v879_v16  ;;  %v929_v23 = vsel %vm825_vm2, %v909_v17, 0.0  ;;  %v926_v24 = vsel %vm825_vm2, %v908_v18, 0.0 }
 0x18c   : > { %v843_v27 = vpop.xlane.xlu1 %842  ;;  %930 = vadd.xlane.f32.xlu0 %v929_v23  ;;  %927 = vadd.xlane.f32.xlu1 %v926_v24  ;;  %v846_v28 = vpop.xlane.xlu0 %845 }
 0x18d   : > { %v880_v29 = vmul.f32 0.03125, %v843_v27  ;;  %v881_v30 = vmul.f32 0.03125, %v846_v28  ;;  %v910_v33 = vmul.f32 %v15191_v19, %v15191_v19  ;;  %v911_v34 = vmul.f32 %v15194_v22, %v15194_v22 }
 0x18f   : > { %v15203_v35 = vsub.f32 %v15124_v31, %v880_v29  ;;  %v15206_v36 = vsub.f32 %v15134_v38, %v881_v30  ;;  %v932_v39 = vsel %vm825_vm2, %v910_v33, 0.0  ;;  %v935_v40 = vsel %vm825_vm2, %v911_v34, 0.0 }
 0x190   : > { %v849_v41 = vpop.xlane.xlu1 %848  ;;  %933 = vadd.xlane.f32.xlu1 %v932_v39  ;;  %936 = vadd.xlane.f32.xlu0 %v935_v40  ;;  %v852_v42 = vpop.xlane.xlu0 %851 }
 0x191   : > { %v882_v45 = vmul.f32 0.03125, %v849_v41  ;;  %v883_v46 = vmul.f32 0.03125, %v852_v42  ;;  %v912_v47 = vmul.f32 %v15203_v35, %v15203_v35  ;;  %v913_v48 = vmul.f32 %v15206_v36, %v15206_v36 }
 0x193   : > { %v15215_v51 = vsub.f32 %v15132_v37, %v882_v45  ;;  %v15218_v52 = vsub.f32 %v15142_v44, %v883_v46  ;;  %v938_v53 = vsel %vm825_vm2, %v912_v47, 0.0  ;;  %v941_v54 = vsel %vm825_vm2, %v913_v48, 0.0 }
 0x194   : > { %v855_v57 = vpop.xlane.xlu1 %854  ;;  %939 = vadd.xlane.f32.xlu1 %v938_v53  ;;  %942 = vadd.xlane.f32.xlu0 %v941_v54  ;;  %v858_v58 = vpop.xlane.xlu0 %857  ;;  %v1079_v54 = vld [vmem:[%s19747_s5] sm:$0xff] }
 0x195   : > { %v884_v59 = vmul.f32 0.03125, %v855_v57  ;;  %v885_v60 = vmul.f32 0.03125, %v858_v58  ;;  %v914_v63 = vmul.f32 %v15215_v51, %v15215_v51  ;;  %v915_v0 = vmul.f32 %v15218_v52, %v15218_v52  ;;  %v1080_v57 = vld [vmem:[%s19747_s5 + $0x8] sm:$0xff] }
 0x196   : > { %v12679_v58 = vpack.c.bf16 %v1080_v57, %v1079_v54 }
 0x197   : > { %v15227_v1 = vsub.f32 %v15140_v43, %v884_v59  ;;  %v15230_v2 = vsub.f32 %v15150_v50, %v885_v60  ;;  %v944_v3 = vsel %vm825_vm2, %v914_v63, 0.0  ;;  %v947_v5 = vsel %vm825_vm2, %v915_v0, 0.0  ;;  %v1081_v60 = vld [vmem:[%s19747_s5 + $0x10] sm:$0xff]  ;;  %v1082_v63 = vld [vmem:[%s19747_s5 + $0x18] sm:$0xff] }
 0x198   : > { %v861_v6 = vpop.xlane.xlu1 %860  ;;  %945 = vadd.xlane.f32.xlu1 %v944_v3  ;;  %948 = vadd.xlane.f32.xlu0 %v947_v5  ;;  %v864_v7 = vpop.xlane.xlu0 %863  ;;  %v12683_v0 = vpack.c.bf16 %v1082_v63, %v1081_v60 }
 0x199   : > { %v886_v8 = vmul.f32 0.03125, %v861_v6  ;;  %v887_v9 = vmul.f32 0.03125, %v864_v7  ;;  %v916_v12 = vmul.f32 %v15227_v1, %v15227_v1  ;;  %v917_v13 = vmul.f32 %v15230_v2, %v15230_v2  ;;  %12680 = vmatprep.subr.bf16.mxu1 %v12679_v58 }
 0x19a   : > { %12682 = vmatpush3.bf16.msra.mxu1 %v12679_v58 }
 0x19b   : > { %v15239_v14 = vsub.f32 %v15148_v49, %v886_v8  ;;  %v15242_v15 = vsub.f32 %v15158_v56, %v887_v9  ;;  %v950_v16 = vsel %vm825_vm2, %v916_v12, 0.0  ;;  %v953_v17 = vsel %vm825_vm2, %v917_v13, 0.0  ;;  %12684 = vmatprep.subr.bf16.mxu1 %v12683_v0 }
 0x19c   : > { %v867_v18 = vpop.xlane.xlu1 %866  ;;  %951 = vadd.xlane.f32.xlu1 %v950_v16  ;;  %954 = vadd.xlane.f32.xlu0 %v953_v17  ;;  %v870_v23 = vpop.xlane.xlu0 %869 }
 0x19d   : > { %v888_v24 = vmul.f32 0.03125, %v867_v18  ;;  %v889_v27 = vmul.f32 0.03125, %v870_v23  ;;  %v918_v28 = vmul.f32 %v15239_v14, %v15239_v14  ;;  %v919_v29 = vmul.f32 %v15242_v15, %v15242_v15 }
 0x19e   : > { %12686 = vmatpush3.bf16.msra.mxu1 %v12683_v0 }
 0x19f   : > { %v15251_v30 = vsub.f32 %v15156_v55, %v888_v24  ;;  %v15254_v33 = vsub.f32 %v15166_v62, %v889_v27  ;;  %v956_v34 = vsel %vm825_vm2, %v918_v28, 0.0  ;;  %v959_v39 = vsel %vm825_vm2, %v919_v29, 0.0 }
 0x1a0   : > { %v873_v40 = vpop.xlane.xlu1 %872  ;;  %957 = vadd.xlane.f32.xlu1 %v956_v34  ;;  %960 = vadd.xlane.f32.xlu0 %v959_v39 }
 0x1a1   : > { %v890_v41 = vmul.f32 0.03125, %v873_v40  ;;  %v920_v42 = vmul.f32 %v15251_v30, %v15251_v30  ;;  %v921_v45 = vmul.f32 %v15254_v33, %v15254_v33 }
 0x1a3   : > { %v15263_v46 = vsub.f32 %v15164_v61, %v890_v41  ;;  %v962_v47 = vsel %vm825_vm2, %v920_v42, 0.0  ;;  %v965_v48 = vsel %vm825_vm2, %v921_v45, 0.0 }
 0x1a4   : > { %963 = vadd.xlane.f32.xlu1 %v962_v47  ;;  %966 = vadd.xlane.f32.xlu0 %v965_v48  ;;  %v15285_v47 = vld [vmem:[%s19848_s3] ss:$0 sm:$0xff] }
 0x1a5   : > { %v922_v53 = vmul.f32 %v15263_v46, %v15263_v46 }
 0x1a7   : > { %v968_v59 = vsel %vm825_vm2, %v922_v53, 0.0 }
 0x1a8   : > { %969 = vadd.xlane.f32.xlu1 %v968_v59  ;;  %v15291_v59 = vld [vmem:[%s19746_s4] ss:$0 sm:$0xff] }
 0x215   : > { %v925_v3 = vpop.xlane.xlu0 %924 }
 0x216   : > { %v971_v5 = vmul.f32 0.03125, %v925_v3 }
 0x218   : > { %v987_v6 = vadd.f32 1e-12, %v971_v5 }
 0x219   : > { %v928_v7 = vpop.xlane.xlu1 %927  ;;  %v931_v8 = vpop.xlane.xlu0 %930 }
 0x21a   : > { %14130 = vrsqrt.f32 %v987_v6  ;;  %v972_v9 = vmul.f32 0.03125, %v928_v7  ;;  %v973_v12 = vmul.f32 0.03125, %v931_v8 }
 0x21c   : > { %v988_v13 = vadd.f32 1e-12, %v972_v9  ;;  %v989_v16 = vadd.f32 1e-12, %v973_v12 }
 0x21d   : > { %v934_v17 = vpop.xlane.xlu1 %933  ;;  %v937_v18 = vpop.xlane.xlu0 %936 }
 0x21e   : > { %14132 = vrsqrt.f32 %v988_v13  ;;  %v974_v23 = vmul.f32 0.03125, %v934_v17  ;;  %v975_v24 = vmul.f32 0.03125, %v937_v18 }
 0x21f   : > { %14134 = vrsqrt.f32 %v989_v16 }
 0x220   : > { %v990_v27 = vadd.f32 1e-12, %v974_v23  ;;  %v991_v28 = vadd.f32 1e-12, %v975_v24 }
 0x221   : > { %v940_v29 = vpop.xlane.xlu1 %939  ;;  %v943_v34 = vpop.xlane.xlu0 %942 }
 0x222   : > { %14136 = vrsqrt.f32 %v990_v27  ;;  %v976_v39 = vmul.f32 0.03125, %v940_v29  ;;  %v977_v40 = vmul.f32 0.03125, %v943_v34 }
 0x223   : > { %14138 = vrsqrt.f32 %v991_v28 }
 0x224   : > { %v14131_v41 = vpop.eup %14130  ;;  %v992_v42 = vadd.f32 1e-12, %v976_v39  ;;  %v993_v45 = vadd.f32 1e-12, %v977_v40 }
 0x225   : > { %v946_v48 = vpop.xlane.xlu1 %945  ;;  %v949_v53 = vpop.xlane.xlu0 %948  ;;  %v1019_v54 = vmul.f32 %v14131_v41, %v15175_v4 }
 0x226   : > { %14140 = vrsqrt.f32 %v992_v42  ;;  %v978_v57 = vmul.f32 0.03125, %v946_v48  ;;  %v979_v58 = vmul.f32 0.03125, %v949_v53 }
 0x227   : > { %14142 = vrsqrt.f32 %v993_v45  ;;  %v1041_v60 = vmul.f32 %v15285_v47, %v1019_v54 }
 0x228   : > { %v14133_v63 = vpop.eup %14132  ;;  %v994_v0 = vadd.f32 1e-12, %v978_v57  ;;  %v995_v3 = vadd.f32 1e-12, %v979_v58 }
 0x229   : > { %v14135_v5 = vpop.eup %14134  ;;  %v952_v6 = vpop.xlane.xlu1 %951  ;;  %v1063_v8 = vadd.f32 %v15291_v59, %v1041_v60  ;;  %v1020_v4 = vmul.f32 %v14133_v63, %v15183_v11 }
 0x22a   : > { %v955_v7 = vpop.xlane.xlu0 %954  ;;  %14144 = vrsqrt.f32 %v994_v0  ;;  %v980_v9 = vmul.f32 0.03125, %v952_v6  ;;  %v1021_v13 = vmul.f32 %v14135_v5, %v15180_v10 }
 0x22b   : > { %v981_v12 = vmul.f32 0.03125, %v955_v7  ;;  %14146 = vrsqrt.f32 %v995_v3  ;;  %11452 = vmatprep.mubr.msk.f32.mxu1 %vm825_vm2, %v1063_v8  ;;  %v1042_v16 = vmul.f32 %v15285_v47, %v1020_v4 }
 0x22c   : > { %v14137_v17 = vpop.eup %14136  ;;  %v996_v18 = vadd.f32 1e-12, %v980_v9  ;;  %v1043_v24 = vmul.f32 %v15285_v47, %v1021_v13 }
 0x22d   : > { %v997_v23 = vadd.f32 1e-12, %v981_v12  ;;  %v14139_v27 = vpop.eup %14138  ;;  %v958_v28 = vpop.xlane.xlu1 %957  ;;  %v1064_v11 = vadd.f32 %v15291_v59, %v1042_v16  ;;  %v1022_v34 = vmul.f32 %v14137_v17, %v15191_v19 }
 0x22e   : > { %v961_v29 = vpop.xlane.xlu0 %960  ;;  %14148 = vrsqrt.f32 %v996_v18  ;;  %v982_v39 = vmul.f32 0.03125, %v958_v28  ;;  %v1065_v40 = vadd.f32 %v15291_v59, %v1043_v24  ;;  %v1023_v42 = vmul.f32 %v14139_v27, %v15194_v22 }
 0x22f   : > { %v983_v10 = vmul.f32 0.03125, %v961_v29  ;;  %14150 = vrsqrt.f32 %v997_v23  ;;  %11453 = vmatmul.mubr.msk.f32.vlgmr.msra.gmra.mrb[0].mxu1 %vm825_vm2, %v1064_v11  ;;  %v1044_v41 = vmul.f32 %v15285_v47, %v1022_v34 }
 0x230   : > { %v14141_v45 = vpop.eup %14140  ;;  %v998_v48 = vadd.f32 1e-12, %v982_v39  ;;  %11455 = vmatprep.mubr.msk.f32.mxu1 %vm825_vm2, %v1065_v40  ;;  %v1045_v60 = vmul.f32 %v15285_v47, %v1023_v42 }
 0x231   : > { %v999_v53 = vadd.f32 1e-12, %v983_v10  ;;  %v14143_v54 = vpop.eup %14142  ;;  %v964_v57 = vpop.xlane.xlu1 %963  ;;  %v1066_v58 = vadd.f32 %v15291_v59, %v1044_v41  ;;  %v1024_v63 = vmul.f32 %v14141_v45, %v15203_v35 }
 0x232   : > { %v967_v19 = vpop.xlane.xlu0 %966  ;;  %14152 = vrsqrt.f32 %v998_v48  ;;  %v984_v0 = vmul.f32 0.03125, %v964_v57  ;;  %v1025_v5 = vmul.f32 %v14143_v54, %v15206_v36  ;;  %v1067_v22 = vadd.f32 %v15291_v59, %v1045_v60 }
 0x233   : > { %v985_v3 = vmul.f32 0.03125, %v967_v19  ;;  %14154 = vrsqrt.f32 %v999_v53  ;;  %11456 = vmatmul.mubr.msk.f32.gmra.mrb[2].mxu1 %vm825_vm2, %v1066_v58  ;;  %v1046_v6 = vmul.f32 %v15285_v47, %v1024_v63 }
 0x234   : > { %v14145_v7 = vpop.eup %14144  ;;  %v1000_v8 = vadd.f32 1e-12, %v984_v0  ;;  %v1047_v9 = vmul.f32 %v15285_v47, %v1025_v5  ;;  %11458 = vmatprep.mubr.msk.f32.mxu1 %vm825_vm2, %v1067_v22 }
 0x235   : > { %v1001_v4 = vadd.f32 1e-12, %v985_v3  ;;  %v14147_v12 = vpop.eup %14146  ;;  %v970_v35 = vpop.xlane.xlu1 %969  ;;  %v1068_v13 = vadd.f32 %v15291_v59, %v1046_v6  ;;  %v1026_v36 = vmul.f32 %v14145_v7, %v15215_v51  ;;  %v10264_v6 = vld [vmem:[%s19748_s6] ss:$0 sm:$0xff] }
 0x236   : > { %14156 = vrsqrt.f32 %v1000_v8  ;;  %v986_v16 = vmul.f32 0.03125, %v970_v35  ;;  %v1069_v17 = vadd.f32 %v15291_v59, %v1047_v9  ;;  %v1027_v18 = vmul.f32 %v14147_v12, %v15218_v52 }
 0x237   : > { %14158 = vrsqrt.f32 %v1001_v4  ;;  %11459 = vmatmul.mubr.msk.f32.gmra.mrb[4].mxu1 %vm825_vm2, %v1068_v13  ;;  %v1048_v23 = vmul.f32 %v15285_v47, %v1026_v36 }
 0x238   : > { %v14149_v24 = vpop.eup %14148  ;;  %v1002_v27 = vadd.f32 1e-12, %v986_v16  ;;  %11461 = vmatprep.mubr.msk.f32.mxu1 %vm825_vm2, %v1069_v17  ;;  %v1049_v28 = vmul.f32 %v15285_v47, %v1027_v18 }
 0x239   : > { %v14151_v29 = vpop.eup %14150  ;;  %v1070_v51 = vadd.f32 %v15291_v59, %v1048_v23  ;;  %v1028_v11 = vmul.f32 %v14149_v24, %v15227_v1 }
 0x23a   : > { %14160 = vrsqrt.f32 %v1002_v27  ;;  %v1071_v34 = vadd.f32 %v15291_v59, %v1049_v28  ;;  %v1029_v52 = vmul.f32 %v14151_v29, %v15230_v2 }
 0x23b   : > { %11462 = vmatmul.mubr.msk.f32.gmra.mrb[6].mxu1 %vm825_vm2, %v1070_v51  ;;  %v1050_v39 = vmul.f32 %v15285_v47, %v1028_v11 }
 0x23c   : > { %v14153_v10 = vpop.eup %14152  ;;  %11464 = vmatprep.mubr.msk.f32.mxu1 %vm825_vm2, %v1071_v34  ;;  %v1051_v40 = vmul.f32 %v15285_v47, %v1029_v52 }
 0x23d   : > { %v14155_v41 = vpop.eup %14154  ;;  %v1072_v42 = vadd.f32 %v15291_v59, %v1050_v39  ;;  %v1030_v45 = vmul.f32 %v14153_v10, %v15239_v14 }
 0x23e   : > { %v1073_v1 = vadd.f32 %v15291_v59, %v1051_v40  ;;  %v1031_v48 = vmul.f32 %v14155_v41, %v15242_v15 }
 0x23f   : > { %11465 = vmatmul.mubr.msk.f32.gmra.mrb[8].mxu1 %vm825_vm2, %v1072_v42  ;;  %v1052_v2 = vmul.f32 %v15285_v47, %v1030_v45 }
 0x240   : > { %v14157_v53 = vpop.eup %14156  ;;  %11467 = vmatprep.mubr.msk.f32.mxu1 %vm825_vm2, %v1073_v1  ;;  %v1053_v54 = vmul.f32 %v15285_v47, %v1031_v48 }
 0x241   : > { %v14159_v57 = vpop.eup %14158  ;;  %v1074_v19 = vadd.f32 %v15291_v59, %v1052_v2  ;;  %v1032_v58 = vmul.f32 %v14157_v53, %v15251_v30 }
 0x242   : > { %v1075_v14 = vadd.f32 %v15291_v59, %v1053_v54  ;;  %v1033_v60 = vmul.f32 %v14159_v57, %v15254_v33 }
 0x243   : > { %11468 = vmatmul.mubr.msk.f32.gmra.mrb[10].mxu1 %vm825_vm2, %v1074_v19  ;;  %v1054_v15 = vmul.f32 %v15285_v47, %v1032_v58 }
 0x244   : > { %v14161_v63 = vpop.eup %14160  ;;  %11470 = vmatprep.mubr.msk.f32.mxu1 %vm825_vm2, %v1075_v14  ;;  %v1055_v0 = vmul.f32 %v15285_v47, %v1033_v60 }
 0x245   : > { %v1076_v3 = vadd.f32 %v15291_v59, %v1054_v15  ;;  %v1034_v5 = vmul.f32 %v14161_v63, %v15263_v46 }
 0x246   : > { %v1077_v22 = vadd.f32 %v15291_v59, %v1055_v0 }
 0x247   : > { %11471 = vmatmul.mubr.msk.f32.gmra.mrb[12].mxu1 %vm825_vm2, %v1076_v3  ;;  %v1056_v30 = vmul.f32 %v15285_v47, %v1034_v5 }
 0x248   : > { %11473 = vmatprep.mubr.msk.f32.mxu1 %vm825_vm2, %v1077_v22  ;;  %v19849_v22 = vmov 0 }
 0x249   : > { %v1078_v33 = vadd.f32 %v15291_v59, %v1056_v30  ;;  %v19850_v22 = vsel %vm15464_vm4, 4294967295, %v19849_v22 }
 0x24a   : > { %19851 = vst [vmem:[#allocation18_spill] sm:$0xff] %v19850_v22 }
 0x24b   : > { %11474 = vmatmul.mubr.msk.f32.gmra.mrb[14].mxu1 %vm825_vm2, %v1078_v33 }
 0x302   : > { %v11454_v7 = vpop.f32.mrb[0].mxu1 }
 0x303   : > { %v15359_v8 = vadd.f32 %v11454_v7, %v10264_v6  ;;  %v1204_v46 = vpop.f32.mrb[1].mxu1 }
 0x304   : > { %v1205_v4 = vadd.f32 %v10264_v6, %v1204_v46 }
 0x306   : > { %v11457_v9 = vpop.f32.mrb[2].mxu1  ;;  %v15362_v12 = vpack.i.bf16 %v15359_v8, %v1205_v4  ;;  %v15364_v47 = vmul.f32 0.35355338, %v1205_v4 }
 0x307   : > { %v15366_v35 = vadd.f32 %v11457_v9, %v10264_v6  ;;  %v1214_v59 = vpop.f32.mrb[3].mxu1 }
 0x308   : > { %v15368_v13 = vadd.f32 %v10264_v6, %v1214_v59  ;;  %13490 = vrot.lane.b32.xlu0 %v15362_v12, %s14938_s20  ;;  %11508 = vmatprep.mubr.msk.f32.mxu0 %vm1347_vm3, %v15364_v47 }
 0x30a   : > { %v11460_v36 = vpop.f32.mrb[4].mxu1  ;;  %v15376_v16 = vpack.i.bf16 %v15366_v35, %v15368_v13 }
 0x30b   : > { %v15378_v17 = vadd.f32 %v11460_v36, %v10264_v6  ;;  %v1224_v18 = vpop.f32.mrb[5].mxu1 }
 0x30c   : > { %v15380_v23 = vadd.f32 %v10264_v6, %v1224_v18  ;;  %13495 = vrot.lane.b32.xlu1 %v15376_v16, %s14938_s20 }
 0x30e   : > { %v11463_v24 = vpop.f32.mrb[6].mxu1  ;;  %v15386_v27 = vpack.i.bf16 %v15378_v17, %v15380_v23 }
 0x30f   : > { %v15388_v28 = vadd.f32 %v11463_v24, %v10264_v6  ;;  %v1234_v29 = vpop.f32.mrb[7].mxu1 }
 0x310   : > { %v15390_v51 = vadd.f32 %v10264_v6, %v1234_v29  ;;  %13500 = vrot.lane.b32.xlu1 %v15386_v27, %s14938_s20 }
 0x312   : > { %v11466_v11 = vpop.f32.mrb[8].mxu1  ;;  %v15396_v34 = vpack.i.bf16 %v15388_v28, %v15390_v51 }
 0x313   : > { %v15398_v52 = vadd.f32 %v11466_v11, %v10264_v6  ;;  %v1244_v39 = vpop.f32.mrb[9].mxu1 }
 0x314   : > { %v15400_v10 = vadd.f32 %v10264_v6, %v1244_v39  ;;  %13505 = vrot.lane.b32.xlu1 %v15396_v34, %s14938_s20 }
 0x316   : > { %v11469_v40 = vpop.f32.mrb[10].mxu1  ;;  %v15406_v41 = vpack.i.bf16 %v15398_v52, %v15400_v10 }
 0x317   : > { %v15408_v42 = vadd.f32 %v11469_v40, %v10264_v6  ;;  %v1254_v45 = vpop.f32.mrb[11].mxu1 }
 0x318   : > { %v15410_v1 = vadd.f32 %v10264_v6, %v1254_v45  ;;  %13510 = vrot.lane.b32.xlu0 %v15406_v41, %s14938_s20 }
 0x31a   : > { %v11472_v48 = vpop.f32.mrb[12].mxu1  ;;  %v15416_v2 = vpack.i.bf16 %v15408_v42, %v15410_v1 }
 0x31b   : > { %v15418_v53 = vadd.f32 %v11472_v48, %v10264_v6  ;;  %v1264_v54 = vpop.f32.mrb[13].mxu1 }
 0x31c   : > { %v15420_v57 = vadd.f32 %v10264_v6, %v1264_v54  ;;  %13515 = vrot.lane.b32.xlu1 %v15416_v2, %s14938_s20 }
 0x31e   : > { %v11475_v19 = vpop.f32.mrb[14].mxu1  ;;  %v15426_v58 = vpack.i.bf16 %v15418_v53, %v15420_v57 }
 0x31f   : > { %v15428_v14 = vadd.f32 %v11475_v19, %v10264_v6  ;;  %v1274_v60 = vpop.f32.mrb[15].mxu1 }
 0x320   : > { %v15430_v15 = vadd.f32 %v10264_v6, %v1274_v60  ;;  %13520 = vrot.lane.b32.xlu0 %v15426_v58, %s14938_s20 }
 0x322   : > { %v15436_v63 = vpack.i.bf16 %v15428_v14, %v15430_v15 }
 0x324   : > { %13530 = vrot.lane.b32.xlu0 %v15362_v12, %s14939_s21  ;;  %13525 = vrot.lane.b32.xlu1 %v15436_v63, %s14938_s20 }
 0x328   : > { %13545 = vrot.lane.b32.xlu0 %v15396_v34, %s14939_s21  ;;  %13535 = vrot.lane.b32.xlu1 %v15376_v16, %s14939_s21 }
 0x32c   : > { %13550 = vrot.lane.b32.xlu0 %v15406_v41, %s14939_s21  ;;  %13540 = vrot.lane.b32.xlu1 %v15386_v27, %s14939_s21 }
 0x330   : > { %13565 = vrot.lane.b32.xlu0 %v15362_v12, %s19795_s1  ;;  %13555 = vrot.lane.b32.xlu1 %v15416_v2, %s14939_s21 }
 0x334   : > { %13575 = vrot.lane.b32.xlu0 %v15386_v27, %s19795_s1  ;;  %13560 = vrot.lane.b32.xlu1 %v15426_v58, %s14939_s21 }
 0x338   : > { %13570 = vrot.lane.b32.xlu1 %v15376_v16, %s19795_s1 }
 0x33c   : > { %13580 = vrot.lane.b32.xlu1 %v15436_v63, %s14939_s21 }
 0x37a   : > { %v13491_v0 = vpop.permute.xlu0 %13490 }
 0x37b   : > { %v13493_v3 = vunpack.i.h.bf16 %v13491_v0  ;;  %v13492_v5 = vunpack.i.l.bf16 %v13491_v0 }
 0x37d   : > { %v12687_v30 = vpack.c.bf16 %v13493_v3, %v13492_v5 }
 0x37e   : > { %v13496_v33 = vpop.permute.xlu1 %13495 }
 0x37f   : > { %v13498_v6 = vunpack.i.h.bf16 %v13496_v33  ;;  %v13497_v7 = vunpack.i.l.bf16 %v13496_v33  ;;  %12689 = vmatprep.subr.msk.bf16.mxu0 %vm15464_vm4, %v12687_v30 }
 0x380   : > { %12692 = vmatpush3.bf16.xpose.msk.msra.mxu0 %vm15464_vm4, %v12687_v30 }
 0x381   : > { %v12693_v46 = vpack.c.bf16 %v13498_v6, %v13497_v7 }
 0x382   : > { %v13501_v4 = vpop.permute.xlu1 %13500 }
 0x383   : > { %v13503_v9 = vunpack.i.h.bf16 %v13501_v4  ;;  %v13502_v59 = vunpack.i.l.bf16 %v13501_v4  ;;  %12695 = vmatprep.subr.msk.bf16.mxu0 %vm15464_vm4, %v12693_v46 }
 0x385   : > { %v12699_v36 = vpack.c.bf16 %v13503_v9, %v13502_v59 }
 0x386   : > { %v13506_v18 = vpop.permute.xlu1 %13505 }
 0x387   : > { %v13508_v24 = vunpack.i.h.bf16 %v13506_v18  ;;  %v13507_v29 = vunpack.i.l.bf16 %v13506_v18 }
 0x388   : > { %12698 = vmatpush3.bf16.xpose.msk.msra.mxu0 %vm15464_vm4, %v12693_v46 }
 0x389   : > { %12701 = vmatprep.subr.msk.bf16.mxu0 %vm15464_vm4, %v12699_v36  ;;  %v12705_v39 = vpack.c.bf16 %v13508_v24, %v13507_v29 }
 0x38a   : > { %v13511_v11 = vpop.permute.xlu0 %13510 }
 0x38b   : > { %v13513_v48 = vunpack.i.h.bf16 %v13511_v11  ;;  %v13512_v54 = vunpack.i.l.bf16 %v13511_v11 }
 0x38d   : > { %v12711_v0 = vpack.c.bf16 %v13513_v48, %v13512_v54 }
 0x38e   : > { %v13516_v40 = vpop.permute.xlu1 %13515 }
 0x38f   : > { %v13518_v33 = vunpack.i.h.bf16 %v13516_v40  ;;  %v13517_v6 = vunpack.i.l.bf16 %v13516_v40 }
 0x390   : > { %12704 = vmatpush3.bf16.xpose.msk.msra.mxu0 %vm15464_vm4, %v12699_v36 }
 0x391   : > { %12707 = vmatprep.subr.msk.bf16.mxu0 %vm15464_vm4, %v12705_v39  ;;  %v12717_v36 = vpack.c.bf16 %v13518_v33, %v13517_v6 }
 0x392   : > { %v13521_v45 = vpop.permute.xlu0 %13520 }
 0x393   : > { %v13523_v54 = vunpack.i.h.bf16 %v13521_v45 }
 0x396   : > { %v13526_v19 = vpop.permute.xlu1 %13525  ;;  %v13531_v60 = vpop.permute.xlu0 %13530 }
 0x397   : > { %v13533_v3 = vunpack.i.h.bf16 %v13531_v60  ;;  %v13532_v5 = vunpack.i.l.bf16 %v13531_v60 }
 0x398   : > { %12710 = vmatpush3.bf16.xpose.msk.msra.mxu0 %vm15464_vm4, %v12705_v39 }
 0x399   : > { %12713 = vmatprep.subr.msk.bf16.mxu0 %vm15464_vm4, %v12711_v0  ;;  %v12735_v30 = vpack.c.bf16 %v13533_v3, %v13532_v5  ;;  %v13522_v3 = vunpack.i.l.bf16 %v13521_v45  ;;  %v13528_v45 = vunpack.i.h.bf16 %v13526_v19 }
 0x39a   : > { %v13536_v7 = vpop.permute.xlu1 %13535  ;;  %v13546_v46 = vpop.permute.xlu0 %13545 }
 0x39b   : > { %v13538_v4 = vunpack.i.h.bf16 %v13536_v7  ;;  %v13537_v9 = vunpack.i.l.bf16 %v13536_v7  ;;  %12736 = vmatprep.subr.bf16.mxu1 %v12735_v30  ;;  %v13548_v24 = vunpack.i.h.bf16 %v13546_v46  ;;  %v13547_v29 = vunpack.i.l.bf16 %v13546_v46 }
 0x39c   : > { %12738 = vmatpush3.bf16.msra.mxu1 %v12735_v30  ;;  %v12723_v7 = vpack.c.bf16 %v13523_v54, %v13522_v3 }
 0x39d   : > { %v12739_v59 = vpack.c.bf16 %v13538_v4, %v13537_v9  ;;  %v12747_v33 = vpack.c.bf16 %v13548_v24, %v13547_v29 }
 0x39e   : > { %v13541_v18 = vpop.permute.xlu1 %13540  ;;  %v13551_v39 = vpop.permute.xlu0 %13550 }
 0x39f   : > { %v13543_v11 = vunpack.i.h.bf16 %v13541_v18  ;;  %v13542_v48 = vunpack.i.l.bf16 %v13541_v18  ;;  %12740 = vmatprep.subr.bf16.mxu1 %v12739_v59  ;;  %v13553_v5 = vunpack.i.h.bf16 %v13551_v39  ;;  %v13552_v30 = vunpack.i.l.bf16 %v13551_v39 }
 0x3a0   : > { %12716 = vmatpush3.bf16.xpose.msk.msra.mxu0 %vm15464_vm4, %v12711_v0  ;;  %12742 = vmatpush3.bf16.msra.mxu1 %v12739_v59  ;;  %v13527_v59 = vunpack.i.l.bf16 %v13526_v19 }
 0x3a1   : > { %12719 = vmatprep.subr.msk.bf16.mxu0 %vm15464_vm4, %v12717_v36  ;;  %v12743_v40 = vpack.c.bf16 %v13543_v11, %v13542_v48  ;;  %v12751_v9 = vpack.c.bf16 %v13553_v5, %v13552_v30  ;;  %v15508_v30 = vmul.f32 0.35355338, %v15359_v8  ;;  %v15528_v8 = vmul.f32 0.35355338, %v15378_v17 }
 0x3a2   : > { %v13556_v60 = vpop.permute.xlu1 %13555  ;;  %v12729_v48 = vpack.c.bf16 %v13528_v45, %v13527_v59  ;;  %v15548_v17 = vmul.f32 0.35355338, %v15398_v52  ;;  %v15568_v52 = vmul.f32 0.35355338, %v15418_v53 }
 0x3a3   : > { %12744 = vmatprep.subr.bf16.mxu1 %v12743_v40  ;;  %v13558_v46 = vunpack.i.h.bf16 %v13556_v60  ;;  %v13557_v4 = vunpack.i.l.bf16 %v13556_v60 }
 0x3a4   : > { %12746 = vmatpush3.bf16.msra.mxu1 %v12743_v40 }
 0x3a5   : > { %12748 = vmatprep.subr.bf16.mxu1 %v12747_v33  ;;  %v12755_v29 = vpack.c.bf16 %v13558_v46, %v13557_v4 }
 0x3a6   : > { %v13561_v6 = vpop.permute.xlu1 %13560 }
 0x3a7   : > { %v13563_v18 = vunpack.i.h.bf16 %v13561_v6  ;;  %v13562_v24 = vunpack.i.l.bf16 %v13561_v6  ;;  %v15518_v6 = vmul.f32 0.35355338, %v15366_v35  ;;  %v15538_v35 = vmul.f32 0.35355338, %v15388_v28 }
 0x3a8   : > { %12722 = vmatpush3.bf16.xpose.msk.msra.mxu0 %vm15464_vm4, %v12717_v36  ;;  %12750 = vmatpush3.bf16.msra.mxu1 %v12747_v33  ;;  %v13566_v36 = vpop.permute.xlu0 %13565  ;;  %v15511_v33 = vmul.f32 0.35355338, %v15368_v13  ;;  %v15531_v13 = vmul.f32 0.35355338, %v15390_v51  ;;  %v15551_v51 = vmul.f32 0.35355338, %v15410_v1 }
 0x3a9   : > { %12725 = vmatprep.subr.msk.bf16.mxu0 %vm15464_vm4, %v12723_v7  ;;  %12752 = vmatprep.subr.bf16.mxu1 %v12751_v9  ;;  %v12759_v54 = vpack.c.bf16 %v13563_v18, %v13562_v24  ;;  %v13568_v19 = vunpack.i.h.bf16 %v13566_v36  ;;  %v13567_v60 = vunpack.i.l.bf16 %v13566_v36  ;;  %v15558_v28 = vmul.f32 0.35355338, %v15408_v42 }
 0x3aa   : > { %v15494_v0 = vpop.permute.xlu1 %13570  ;;  %v15571_v1 = vmul.f32 0.35355338, %v15430_v15  ;;  %v15578_v42 = vmul.f32 0.35355338, %v15428_v14 }
 0x3ab   : > { %v15500_v5 = vpack.c.bf16 %v13568_v19, %v13567_v60 }
 0x3ac   : > { %12754 = vmatpush3.bf16.msra.mxu1 %v12751_v9 }
 0x3ad   : > { %12756 = vmatprep.subr.bf16.mxu1 %v12755_v29 }
 0x3ae   : > { %v13581_v11 = vpop.permute.xlu1 %13580 }
 0x3af   : > { %v13583_v39 = vunpack.i.h.bf16 %v13581_v11  ;;  %v13582_v40 = vunpack.i.l.bf16 %v13581_v11 }
 0x3b0   : > { %12728 = vmatpush3.bf16.xpose.msk.msra.mxu0 %vm15464_vm4, %v12723_v7  ;;  %12758 = vmatpush3.bf16.msra.mxu1 %v12755_v29  ;;  %v15521_v7 = vmul.f32 0.35355338, %v15380_v23  ;;  %v15541_v23 = vmul.f32 0.35355338, %v15400_v10  ;;  %v15561_v10 = vmul.f32 0.35355338, %v15420_v57 }
 0x3b1   : > { %12731 = vmatprep.subr.msk.bf16.mxu0 %vm15464_vm4, %v12729_v48  ;;  %12760 = vmatprep.subr.bf16.mxu1 %v12759_v54  ;;  %v12763_v3 = vpack.c.bf16 %v13583_v39, %v13582_v40 }
 0x3b4   : > { %12762 = vmatpush3.bf16.msra.mxu1 %v12759_v54  ;;  %v15613_v54 = vpop.permute.xlu0 %13575 }
 0x3b5   : > { %12764 = vmatprep.subr.bf16.mxu1 %v12763_v3 }
 0x3b8   : > { %12734 = vmatpush3.bf16.xpose.msk.msra.mxu0 %vm15464_vm4, %v12729_v48  ;;  %12766 = vmatpush3.bf16.msra.mxu1 %v12763_v3 }
 0x3b9   : > { %12769 = vmatprep.subr.msk.bf16.mxu1 %vm15464_vm4, %v15500_v5 }
 0x3bf   : > { %11509 = vmatmul.mubr.msk.f32.vlgmr.msra.gmra.mrb[16].mxu0 %vm1347_vm3, %v15508_v30 }
 0x3c0   : > { %11511 = vmatprep.mubr.msk.f32.mxu0 %vm1347_vm3, %v15511_v33 }
 0x3c3   : > { %11512 = vmatmul.mubr.msk.f32.gmra.mrb[18].mxu0 %vm1347_vm3, %v15518_v6 }
 0x3c4   : > { %11514 = vmatprep.mubr.msk.f32.mxu0 %vm1347_vm3, %v15521_v7 }
 0x3c7   : > { %11515 = vmatmul.mubr.msk.f32.gmra.mrb[20].mxu0 %vm1347_vm3, %v15528_v8 }
 0x3c8   : > { %11517 = vmatprep.mubr.msk.f32.mxu0 %vm1347_vm3, %v15531_v13 }
 0x3cb   : > { %11518 = vmatmul.mubr.msk.f32.gmra.mrb[22].mxu0 %vm1347_vm3, %v15538_v35 }
 0x3cc   : > { %11520 = vmatprep.mubr.msk.f32.mxu0 %vm1347_vm3, %v15541_v23 }
 0x3cf   : > { %11521 = vmatmul.mubr.msk.f32.gmra.mrb[24].mxu0 %vm1347_vm3, %v15548_v17 }
 0x3d0   : > { %11523 = vmatprep.mubr.msk.f32.mxu0 %vm1347_vm3, %v15551_v51 }
 0x3d3   : > { %11524 = vmatmul.mubr.msk.f32.gmra.mrb[26].mxu0 %vm1347_vm3, %v15558_v28 }
 0x3d4   : > { %11526 = vmatprep.mubr.msk.f32.mxu0 %vm1347_vm3, %v15561_v10 }
 0x3d7   : > { %11527 = vmatmul.mubr.msk.f32.gmra.mrb[28].mxu0 %vm1347_vm3, %v15568_v52 }
 0x3d8   : > { %11529 = vmatprep.mubr.msk.f32.mxu0 %vm1347_vm3, %v15571_v1 }
 0x3db   : > { %11530 = vmatmul.mubr.msk.f32.gmra.mrb[30].mxu0 %vm1347_vm3, %v15578_v42 }
 0x492   : > { %v11510_v57 = vpop.f32.mrb[16].mxu0 }
 0x493   : > { %1575 = vmax.xlane.f32.xlu1 %v11510_v57  ;;  %v1494_v46 = vpop.f32.mrb[17].mxu0 }
 0x494   : > { %1573 = vmax.xlane.f32.xlu0 %v1494_v46 }
 0x496   : > { %v11513_v53 = vpop.f32.mrb[18].mxu0 }
 0x497   : > { %v1504_v4 = vpop.f32.mrb[19].mxu0 }
 0x498   : > { %1579 = vmax.xlane.f32.xlu0 %v11513_v53 }
 0x49a   : > { %v11516_v15 = vpop.f32.mrb[20].mxu0 }
 0x49b   : > { %v15582_v9 = vpop.f32.mrb[21].mxu0 }
 0x49c   : > { %1577 = vmax.xlane.f32.xlu0 %v1504_v4 }
 0x49e   : > { %v11519_v45 = vpop.f32.mrb[22].mxu0 }
 0x49f   : > { %v15584_v59 = vpop.f32.mrb[23].mxu0 }
 0x4a0   : > { %1581 = vmax.xlane.f32.xlu0 %v15582_v9 }
 0x4a2   : > { %v15587_v14 = vpop.f32.mrb[24].mxu0 }
 0x4a3   : > { %v15589_v18 = vpop.f32.mrb[25].mxu0 }
 0x4a4   : > { %13585 = vrot.lane.b32.xlu1 %v15396_v34, %s19795_s1  ;;  %1585 = vmax.xlane.f32.xlu0 %v15584_v59 }
 0x4a6   : > { %v15594_v24 = vpop.f32.mrb[26].mxu0 }
 0x4a7   : > { %v1544_v29 = vpop.f32.mrb[27].mxu0 }
 0x4a8   : > { %1589 = vmax.xlane.f32.xlu0 %v15589_v18 }
 0x4aa   : > { %v15597_v11 = vpop.f32.mrb[28].mxu0 }
 0x4ab   : > { %v15599_v48 = vpop.f32.mrb[29].mxu0 }
 0x4ac   : > { %1593 = vmax.xlane.f32.xlu0 %v1544_v29 }
 0x4ae   : > { %v15601_v39 = vpop.f32.mrb[30].mxu0 }
 0x4af   : > { %v15603_v40 = vpop.f32.mrb[31].mxu0 }
 0x4b0   : > { %1597 = vmax.xlane.f32.xlu0 %v15599_v48 }
 0x4b4   : > { %1601 = vmax.xlane.f32.xlu0 %v15603_v40 }
 0x4c8   : > { %1583 = vmax.xlane.f32.xlu1 %v11516_v15 }
 0x4ca   : > { %13590 = vrot.lane.b32.xlu0 %v15406_v41, %s19795_s1 }
 0x4cc   : > { %1587 = vmax.xlane.f32.xlu1 %v11519_v45 }
 0x4d0   : > { %1591 = vmax.xlane.f32.xlu1 %v15587_v14 }
 0x4d4   : > { %1595 = vmax.xlane.f32.xlu1 %v15594_v24 }
 0x4d8   : > { %1599 = vmax.xlane.f32.xlu1 %v15597_v11 }
 0x4dc   : > { %1603 = vmax.xlane.f32.xlu1 %v15601_v39 }
 0x520   : > { %v1576_v36 = vpop.xlane.xlu1 %1575 }
 0x521   : > { %v1606_v19 = vsub.f32 %v11510_v57, %v1576_v36  ;;  %v1574_v60 = vpop.xlane.xlu0 %1573 }
 0x522   : > { %v1605_v3 = vsub.f32 %v1494_v46, %v1574_v60 }
 0x523   : > { %v1623_v62 = vmul.f32 1.442695, %v1606_v19 }
 0x524   : > { %v1621_v61 = vmul.f32 1.442695, %v1605_v3 }
 0x525   : > { %14162 = vpow2.f32 %v1623_v62  ;;  %v1580_v50 = vpop.xlane.xlu0 %1579  ;;  %v15625_v62 = vpop.permute.xlu1 %13585 }
 0x526   : > { %14164 = vpow2.f32 %v1621_v61  ;;  %v1608_v36 = vsub.f32 %v11513_v53, %v1580_v50 }
 0x528   : > { %v1627_v43 = vmul.f32 1.442695, %v1608_v36 }
 0x529   : > { %v1578_v49 = vpop.xlane.xlu0 %1577 }
 0x52a   : > { %v1607_v61 = vsub.f32 %v1504_v4, %v1578_v49 }
 0x52c   : > { %v1625_v3 = vmul.f32 1.442695, %v1607_v61 }
 0x52d   : > { %v1582_v57 = vpop.xlane.xlu0 %1581 }
 0x52e   : > { %14166 = vpow2.f32 %v1625_v3  ;;  %v1609_v32 = vsub.f32 %v15582_v9, %v1582_v57 }
 0x52f   : > { %v15615_v56 = vpop.eup %14162  ;;  %14168 = vpow2.f32 %v1627_v43 }
 0x530   : > { %v15617_v55 = vpop.eup %14164  ;;  %1655 = vadd.xlane.f32.xlu0 %v15615_v56  ;;  %v1629_v49 = vmul.f32 1.442695, %v1609_v32 }
 0x531   : > { %1653 = vadd.xlane.f32.xlu1 %v15617_v55  ;;  %v1586_v46 = vpop.xlane.xlu0 %1585 }
 0x532   : > { %v1611_v26 = vsub.f32 %v15584_v59, %v1586_v46 }
 0x534   : > { %v1633_v53 = vmul.f32 1.442695, %v1611_v26 }
 0x535   : > { %v1590_v19 = vpop.xlane.xlu0 %1589 }
 0x536   : > { %v1613_v9 = vsub.f32 %v15589_v18, %v1590_v19 }
 0x538   : > { %v1637_v26 = vmul.f32 1.442695, %v1613_v9 }
 0x539   : > { %v1594_v25 = vpop.xlane.xlu0 %1593 }
 0x53a   : > { %v1615_v50 = vsub.f32 %v1544_v29, %v1594_v25 }
 0x542   : > { %13595 = vrot.lane.b32.xlu1 %v15416_v2, %s19795_s1 }
 0x546   : > { %13600 = vrot.lane.b32.xlu0 %v15426_v58, %s19795_s1 }
 0x555   : > { %v1584_v60 = vpop.xlane.xlu1 %1583 }
 0x556   : > { %v1610_v44 = vsub.f32 %v11516_v15, %v1584_v60 }
 0x558   : > { %v1631_v38 = vmul.f32 1.442695, %v1610_v44  ;;  %v1641_v44 = vmul.f32 1.442695, %v1615_v50 }
 0x559   : > { %v1588_v37 = vpop.xlane.xlu1 %1587 }
 0x55a   : > { %v1612_v31 = vsub.f32 %v11519_v45, %v1588_v37  ;;  %14170 = vpow2.f32 %v1631_v38  ;;  %v1598_v37 = vpop.xlane.xlu0 %1597  ;;  %v15631_v45 = vpop.eup %14166 }
 0x55b   : > { %v15633_v59 = vpop.eup %14168 }
 0x55c   : > { %v1635_v20 = vmul.f32 1.442695, %v1612_v31 }
 0x55d   : > { %v1592_v21 = vpop.xlane.xlu1 %1591 }
 0x55e   : > { %14172 = vpow2.f32 %v1635_v20  ;;  %v1614_v4 = vsub.f32 %v15587_v14, %v1592_v21  ;;  %v1617_v20 = vsub.f32 %v15599_v48, %v1598_v37  ;;  %v1602_v46 = vpop.xlane.xlu0 %1601 }
 0x55f   : > { %14174 = vpow2.f32 %v1629_v49 }
 0x560   : > { %14176 = vpow2.f32 %v1633_v53  ;;  %v1639_v43 = vmul.f32 1.442695, %v1614_v4  ;;  %v1645_v29 = vmul.f32 1.442695, %v1617_v20  ;;  %v13572_v20 = vunpack.i.l.bf16 %v15494_v0 }
 0x561   : > { %v1596_v15 = vpop.xlane.xlu1 %1595  ;;  %14178 = vpow2.f32 %v1641_v44 }
 0x562   : > { %14180 = vpow2.f32 %v1639_v43  ;;  %v1616_v32 = vsub.f32 %v15594_v24, %v1596_v15  ;;  %v1619_v24 = vsub.f32 %v15603_v40, %v1602_v46  ;;  %v13591_v15 = vpop.permute.xlu0 %13590 }
 0x564   : > { %v15639_v25 = vpop.eup %14170 }
 0x565   : > { %v1600_v31 = vpop.xlane.xlu1 %1599  ;;  %1657 = vadd.xlane.f32.xlu0 %v15631_v45 }
 0x566   : > { %v1618_v21 = vsub.f32 %v15597_v11, %v1600_v31  ;;  %1659 = vadd.xlane.f32.xlu1 %v15633_v59  ;;  %v1643_v11 = vmul.f32 1.442695, %v1616_v32  ;;  %v13573_v31 = vunpack.i.h.bf16 %v15494_v0 }
 0x568   : > { %v15642_v38 = vpop.eup %14172  ;;  %v1647_v14 = vmul.f32 1.442695, %v1618_v21  ;;  %v12773_v32 = vpack.c.bf16 %v13573_v31, %v13572_v20 }
 0x569   : > { %v1604_v18 = vpop.xlane.xlu1 %1603  ;;  %1663 = vadd.xlane.f32.xlu0 %v15639_v25  ;;  %v15647_v57 = vpop.eup %14174 }
 0x56a   : > { %14182 = vpow2.f32 %v1647_v14  ;;  %1667 = vadd.xlane.f32.xlu1 %v15642_v38  ;;  %v1620_v48 = vsub.f32 %v15601_v39, %v1604_v18  ;;  %v15649_v61 = vpop.eup %14176  ;;  %v1649_v39 = vmul.f32 1.442695, %v1619_v24  ;;  %v13578_v14 = vunpack.i.h.bf16 %v15613_v54 }
 0x56b   : > { %14184 = vpow2.f32 %v1637_v26  ;;  %v15654_v19 = vpop.eup %14178  ;;  %v13577_v18 = vunpack.i.l.bf16 %v15613_v54  ;;  %v13592_v54 = vunpack.i.l.bf16 %v13591_v15 }
 0x56c   : > { %14186 = vpow2.f32 %v1645_v29  ;;  %v1651_v36 = vmul.f32 1.442695, %v1620_v48  ;;  %v15656_v60 = vpop.eup %14180 }
 0x56d   : > { %1661 = vadd.xlane.f32.xlu0 %v15647_v57  ;;  %14188 = vpow2.f32 %v1643_v11  ;;  %v12779_v29 = vpack.c.bf16 %v13578_v14, %v13577_v18 }
 0x56e   : > { %1665 = vadd.xlane.f32.xlu1 %v15649_v61  ;;  %14190 = vpow2.f32 %v1651_v36 }
 0x56f   : > { %14192 = vpow2.f32 %v1649_v39 }
 0x571   : > { %1673 = vadd.xlane.f32.xlu0 %v15654_v19 }
 0x572   : > { %1671 = vadd.xlane.f32.xlu1 %v15656_v60 }
 0x574   : > { %v15660_v3 = vpop.eup %14182 }
 0x575   : > { %v15662_v49 = vpop.eup %14184  ;;  %1679 = vadd.xlane.f32.xlu0 %v15660_v3 }
 0x576   : > { %1669 = vadd.xlane.f32.xlu1 %v15662_v49  ;;  %v15666_v40 = vpop.eup %14186 }
 0x577   : > { %v15668_v50 = vpop.eup %14188 }
 0x578   : > { %v15672_v53 = vpop.eup %14190 }
 0x579   : > { %1677 = vadd.xlane.f32.xlu0 %v15666_v40  ;;  %v15675_v4 = vpop.eup %14192 }
 0x57a   : > { %1675 = vadd.xlane.f32.xlu1 %v15668_v50 }
 0x57e   : > { %1683 = vadd.xlane.f32.xlu1 %v15672_v53 }
 0x582   : > { %1681 = vadd.xlane.f32.xlu1 %v15675_v4 }
 0x58f   : > { %13605 = vrot.lane.b32.xlu0 %v15436_v63, %s19795_s1  ;;  %s19956_s1 = smov 88  }
 0x593   : > { %1910 = vrot.lane.b32.xlu0 %v15364_v47, %s19793_s22  ;;  %1912 = vrot.lane.b32.xlu1 %v15508_v30, %s19793_s22 }
 0x597   : > { %1914 = vrot.lane.b32.xlu0 %v15511_v33, %s19793_s22  ;;  %1916 = vrot.lane.b32.xlu1 %v15518_v6, %s19793_s22 }
 0x59b   : > { %1918 = vrot.lane.b32.xlu0 %v15521_v7, %s19793_s22  ;;  %1920 = vrot.lane.b32.xlu1 %v15528_v8, %s19793_s22 }
 0x59f   : > { %1922 = vrot.lane.b32.xlu0 %v15531_v13, %s19793_s22  ;;  %1924 = vrot.lane.b32.xlu1 %v15538_v35, %s19793_s22 }
 0x5a3   : > { %1926 = vrot.lane.b32.xlu0 %v15541_v23, %s19793_s22  ;;  %1928 = vrot.lane.b32.xlu1 %v15548_v17, %s19793_s22 }
 0x5a7   : > { %1930 = vrot.lane.b32.xlu0 %v15551_v51, %s19793_s22  ;;  %1932 = vrot.lane.b32.xlu1 %v15558_v28, %s19793_s22 }
 0x5ab   : > { %1934 = vrot.lane.b32.xlu0 %v15561_v10, %s19793_s22  ;;  %1936 = vrot.lane.b32.xlu1 %v15568_v52, %s19793_s22 }
 0x5af   : > { %1938 = vrot.lane.b32.xlu0 %v15571_v1, %s19793_s22  ;;  %1940 = vrot.lane.b32.xlu1 %v15578_v42, %s19793_s22  ;;  %s19960_s22 = smov 80  }
 0x5b3   : > { %13610 = vrot.lane.b32.xlu0 %v15362_v12, %s19791_s2  ;;  %13615 = vrot.lane.b32.xlu1 %v15376_v16, %s19791_s2 }
 0x5b7   : > { %13625 = vrot.lane.b32.xlu0 %v15396_v34, %s19791_s2  ;;  %13620 = vrot.lane.b32.xlu1 %v15386_v27, %s19791_s2 }
 0x5bb   : > { %13630 = vrot.lane.b32.xlu0 %v15406_v41, %s19791_s2  ;;  %13635 = vrot.lane.b32.xlu1 %v15416_v2, %s19791_s2 }
 0x5bd   : > { %v1656_v44 = vpop.xlane.xlu0 %1655 }
 0x5be   : > { %14194 = vrcp.f32 %v1656_v44  ;;  %v1654_v9 = vpop.xlane.xlu1 %1653 }
 0x5bf   : > { %14196 = vrcp.f32 %v1654_v9  ;;  %13650 = vrot.lane.b32.xlu0 %v15362_v12, %s19789_s23  ;;  %13640 = vrot.lane.b32.xlu1 %v15426_v58, %s19791_s2 }
 0x5c1   : > { %v13601_v36 = vpop.permute.xlu0 %13600 }
 0x5c2   : > { %v13596_v48 = vpop.permute.xlu1 %13595  ;;  %v13603_v39 = vunpack.i.h.bf16 %v13601_v36 }
 0x5c3   : > { %13660 = vrot.lane.b32.xlu0 %v15386_v27, %s19789_s23  ;;  %13645 = vrot.lane.b32.xlu1 %v15436_v63, %s19791_s2  ;;  %v13598_v46 = vunpack.i.h.bf16 %v13596_v48  ;;  %v13597_v24 = vunpack.i.l.bf16 %v13596_v48  ;;  %s19978_s2 = smov 48  }
 0x5c7   : > { %13655 = vrot.lane.b32.xlu1 %v15376_v16, %s19789_s23 }
 0x5c8   : > { %v14195_v37 = vpop.eup %14194 }
 0x5c9   : > { %v14197_v43 = vpop.eup %14196  ;;  %v1702_v26 = vmul.f32 %v14195_v37, %v15615_v56  ;;  %v13587_v56 = vunpack.i.l.bf16 %v15625_v62 }
 0x5ca   : > { %v1701_v21 = vmul.f32 %v14197_v43, %v15617_v55  ;;  %v13588_v55 = vunpack.i.h.bf16 %v15625_v62  ;;  %v12797_v62 = vpack.c.bf16 %v13598_v46, %v13597_v24 }
 0x5cc   : > { %11564 = vmatprep.mubr.f32.mxu1 %v1701_v21  ;;  %v12785_v0 = vpack.c.bf16 %v13588_v55, %v13587_v56 }
 0x5cd   : > { %11565 = vmatmul.mubr.f32.vlgmr.msra.gmra.mrb[16].mxu1 %v1702_v26 }
 0x5ce   : > { %12772 = vmatpush3.bf16.xpose.msk.msra.mxu1 %vm15464_vm4, %v15500_v5  ;;  %v13593_v5 = vunpack.i.h.bf16 %v13591_v15  ;;  %v13602_v15 = vunpack.i.l.bf16 %v13601_v36 }
 0x5cf   : > { %12775 = vmatprep.subr.msk.bf16.mxu1 %vm15464_vm4, %v12773_v32 }
 0x5d0   : > { %v12791_v11 = vpack.c.bf16 %v13593_v5, %v13592_v54  ;;  %v12803_v37 = vpack.c.bf16 %v13603_v39, %v13602_v15 }
 0x5d6   : > { %12778 = vmatpush3.bf16.xpose.msk.msra.mxu1 %vm15464_vm4, %v12773_v32 }
 0x5d7   : > { %12781 = vmatprep.subr.msk.bf16.mxu1 %vm15464_vm4, %v12779_v29 }
 0x5de   : > { %12784 = vmatpush3.bf16.xpose.msk.msra.mxu1 %vm15464_vm4, %v12779_v29 }
 0x5df   : > { %12787 = vmatprep.subr.msk.bf16.mxu1 %vm15464_vm4, %v12785_v0 }
 0x5e6   : > { %12790 = vmatpush3.bf16.xpose.msk.msra.mxu1 %vm15464_vm4, %v12785_v0 }
 0x5e7   : > { %12793 = vmatprep.subr.msk.bf16.mxu1 %vm15464_vm4, %v12791_v11 }
 0x5ee   : > { %12796 = vmatpush3.bf16.xpose.msk.msra.mxu1 %vm15464_vm4, %v12791_v11 }
 0x5ef   : > { %12799 = vmatprep.subr.msk.bf16.mxu1 %vm15464_vm4, %v12797_v62 }
 0x5f2   : > { %v1658_v44 = vpop.xlane.xlu0 %1657 }
 0x5f3   : > { %14198 = vrcp.f32 %v1658_v44  ;;  %v1660_v9 = vpop.xlane.xlu1 %1659 }
 0x5f4   : > { %14200 = vrcp.f32 %v1660_v9 }
 0x5f6   : > { %12802 = vmatpush3.bf16.xpose.msk.msra.mxu1 %vm15464_vm4, %v12797_v62  ;;  %v1664_v43 = vpop.xlane.xlu0 %1663 }
 0x5f7   : > { %12805 = vmatprep.subr.msk.bf16.mxu1 %vm15464_vm4, %v12803_v37  ;;  %v1668_v31 = vpop.xlane.xlu1 %1667  ;;  %14202 = vrcp.f32 %v1664_v43 }
 0x5fa   : > { %v1662_v20 = vpop.xlane.xlu0 %1661 }
 0x5fb   : > { %14204 = vrcp.f32 %v1662_v20  ;;  %v1666_v21 = vpop.xlane.xlu1 %1665 }
 0x5fc   : > { %14206 = vrcp.f32 %v1666_v21 }
 0x5fd   : > { %v14199_v26 = vpop.eup %14198  ;;  %14208 = vrcp.f32 %v1668_v31 }
 0x5fe   : > { %v14201_v32 = vpop.eup %14200  ;;  %12808 = vmatpush3.bf16.xpose.msk.msra.mxu1 %vm15464_vm4, %v12803_v37  ;;  %v1674_v14 = vpop.xlane.xlu0 %1673  ;;  %v1703_v18 = vmul.f32 %v14199_v26, %v15631_v45 }
 0x5ff   : > { %v1672_v29 = vpop.xlane.xlu1 %1671  ;;  %v1704_v55 = vmul.f32 %v14201_v32, %v15633_v59  ;;  %14210 = vrcp.f32 %v1674_v14 }
 0x600   : > { %11567 = vmatprep.mubr.f32.mxu1 %v1703_v18  ;;  %14212 = vrcp.f32 %v1672_v29 }
 0x601   : > { %11568 = vmatmul.mubr.f32.gmra.mrb[18].mxu1 %v1704_v55  ;;  %v14203_v5 = vpop.eup %14202 }
 0x602   : > { %v1680_v56 = vpop.xlane.xlu0 %1679  ;;  %v1706_v45 = vmul.f32 %v14203_v5, %v15639_v25 }
 0x603   : > { %v1670_v0 = vpop.xlane.xlu1 %1669 }
 0x604   : > { %14214 = vrcp.f32 %v1670_v0 }
 0x605   : > { %v14205_v54 = vpop.eup %14204 }
 0x606   : > { %v14207_v11 = vpop.eup %14206  ;;  %v1678_v48 = vpop.xlane.xlu0 %1677  ;;  %v1705_v46 = vmul.f32 %v14205_v54, %v15647_v57 }
 0x607   : > { %14216 = vrcp.f32 %v1678_v48  ;;  %v1676_v24 = vpop.xlane.xlu1 %1675  ;;  %v1707_v62 = vmul.f32 %v14207_v11, %v15649_v61  ;;  %v14209_v59 = vpop.eup %14208 }
 0x608   : > { %14218 = vrcp.f32 %v1676_v24  ;;  %11570 = vmatprep.mubr.f32.mxu1 %v1705_v46  ;;  %v1708_v9 = vmul.f32 %v14209_v59, %v15642_v38 }
 0x609   : > { %11571 = vmatmul.mubr.f32.gmra.mrb[20].mxu1 %v1706_v45  ;;  %14220 = vrcp.f32 %v1680_v56  ;;  %v14211_v37 = vpop.eup %14210 }
 0x60a   : > { %11573 = vmatprep.mubr.f32.mxu1 %v1707_v62  ;;  %v13606_v36 = vpop.permute.xlu0 %13605  ;;  %v14213_v57 = vpop.eup %14212  ;;  %v1711_v26 = vmul.f32 %v14211_v37, %v15654_v19 }
 0x60b   : > { %v13608_v39 = vunpack.i.h.bf16 %v13606_v36  ;;  %v13607_v15 = vunpack.i.l.bf16 %v13606_v36  ;;  %v1684_v44 = vpop.xlane.xlu1 %1683  ;;  %v1710_v21 = vmul.f32 %v14213_v57, %v15656_v60 }
 0x60c   : > { %14222 = vrcp.f32 %v1684_v44 }
 0x60d   : > { %v12809_v43 = vpack.c.bf16 %v13608_v39, %v13607_v15  ;;  %11574 = vmatmul.mubr.f32.gmra.mrb[22].mxu1 %v1708_v9 }
 0x60e   : > { %v14215_v31 = vpop.eup %14214  ;;  %v1911_v25 = vpop.permute.xlu0 %1910 }
 0x60f   : > { %v1682_v61 = vpop.xlane.xlu1 %1681  ;;  %12811 = vmatprep.subr.msk.bf16.mxu1 %vm15464_vm4, %v12809_v43  ;;  %v1709_v20 = vmul.f32 %v14215_v31, %v15662_v49 }
 0x610   : > { %14224 = vrcp.f32 %v1682_v61  ;;  %12814 = vmatpush3.bf16.xpose.msk.msra.mxu1 %vm15464_vm4, %v12809_v43 }
 0x611   : > { %v14217_v38 = vpop.eup %14216  ;;  %11576 = vmatprep.mubr.f32.mxu1 %v1709_v20 }
 0x612   : > { %v14219_v32 = vpop.eup %14218  ;;  %11577 = vmatmul.mubr.f32.gmra.mrb[24].mxu1 %v1710_v21  ;;  %v1915_v14 = vpop.permute.xlu0 %1914  ;;  %v1713_v49 = vmul.f32 %v14217_v38, %v15666_v40 }
 0x613   : > { %v1913_v18 = vpop.permute.xlu1 %1912  ;;  %11579 = vmatprep.mubr.f32.mxu1 %v1711_v26  ;;  %v1712_v29 = vmul.f32 %v14219_v32, %v15668_v50  ;;  %v14221_v55 = vpop.eup %14220 }
 0x614   : > { %v1714_v60 = vmul.f32 %v14221_v55, %v15660_v3 }
 0x616   : > { %11580 = vmatmul.mubr.f32.gmra.mrb[26].mxu1 %v1712_v29  ;;  %v1919_v56 = vpop.permute.xlu0 %1918  ;;  %v14223_v5 = vpop.eup %14222 }
 0x617   : > { %v1917_v0 = vpop.permute.xlu1 %1916  ;;  %11582 = vmatprep.mubr.f32.mxu1 %v1713_v49  ;;  %v1716_v46 = vmul.f32 %v14223_v5, %v15672_v53 }
 0x61a   : > { %v14225_v54 = vpop.eup %14224  ;;  %11583 = vmatmul.mubr.f32.gmra.mrb[28].mxu1 %v1714_v60  ;;  %v1923_v19 = vpop.permute.xlu0 %1922 }
 0x61b   : > { %v1921_v11 = vpop.permute.xlu1 %1920  ;;  %v1715_v48 = vmul.f32 %v14225_v54, %v15675_v4 }
 0x61d   : > { %11585 = vmatprep.mubr.f32.mxu1 %v1715_v48 }
 0x61e   : > { %11586 = vmatmul.mubr.f32.gmra.mrb[30].mxu1 %v1716_v46  ;;  %v1927_v50 = vpop.permute.xlu0 %1926 }
 0x61f   : > { %v1925_v24 = vpop.permute.xlu1 %1924  ;;  %11620 = vmatprep.mubr.msk.f32.mxu1 %vm1347_vm3, %v1911_v25 }
 0x622   : > { %v1931_v40 = vpop.permute.xlu0 %1930  ;;  %11621 = vmatmul.mubr.msk.f32.vlgmr.msra.gmra.mrb[32].mxu1 %vm1347_vm3, %v1913_v18 }
 0x623   : > { %v1929_v45 = vpop.permute.xlu1 %1928  ;;  %11623 = vmatprep.mubr.msk.f32.mxu1 %vm1347_vm3, %v1915_v14 }
 0x626   : > { %v1935_v3 = vpop.permute.xlu0 %1934  ;;  %11624 = vmatmul.mubr.msk.f32.gmra.mrb[34].mxu1 %vm1347_vm3, %v1917_v0 }
 0x627   : > { %v1933_v62 = vpop.permute.xlu1 %1932  ;;  %11626 = vmatprep.mubr.msk.f32.mxu1 %vm1347_vm3, %v1919_v56 }
 0x62a   : > { %v1939_v4 = vpop.permute.xlu0 %1938  ;;  %11627 = vmatmul.mubr.msk.f32.gmra.mrb[36].mxu1 %vm1347_vm3, %v1921_v11 }
 0x62b   : > { %v1937_v53 = vpop.permute.xlu1 %1936  ;;  %11629 = vmatprep.mubr.msk.f32.mxu1 %vm1347_vm3, %v1923_v19 }
 0x62e   : > { %v13611_v59 = vpop.permute.xlu0 %13610  ;;  %11630 = vmatmul.mubr.msk.f32.gmra.mrb[38].mxu1 %vm1347_vm3, %v1925_v24 }
 0x62f   : > { %v13613_v36 = vunpack.i.h.bf16 %v13611_v59  ;;  %v13612_v39 = vunpack.i.l.bf16 %v13611_v59  ;;  %v1941_v15 = vpop.permute.xlu1 %1940  ;;  %11632 = vmatprep.mubr.msk.f32.mxu1 %vm1347_vm3, %v1927_v50 }
 0x631   : > { %v12815_v44 = vpack.c.bf16 %v13613_v36, %v13612_v39 }
 0x632   : > { %11633 = vmatmul.mubr.msk.f32.gmra.mrb[40].mxu1 %vm1347_vm3, %v1929_v45  ;;  %v13626_v9 = vpop.permute.xlu0 %13625 }
 0x633   : > { %v13616_v37 = vpop.permute.xlu1 %13615  ;;  %11635 = vmatprep.mubr.msk.f32.mxu1 %vm1347_vm3, %v1931_v40  ;;  %12816 = vmatprep.subr.bf16.mxu0 %v12815_v44  ;;  %v13628_v61 = vunpack.i.h.bf16 %v13626_v9  ;;  %v13627_v20 = vunpack.i.l.bf16 %v13626_v9 }
 0x634   : > { %v13618_v57 = vunpack.i.h.bf16 %v13616_v37  ;;  %v13617_v43 = vunpack.i.l.bf16 %v13616_v37  ;;  %12818 = vmatpush3.bf16.msra.mxu0 %v12815_v44 }
 0x635   : > { %v12827_v55 = vpack.c.bf16 %v13628_v61, %v13627_v20 }
 0x636   : > { %11636 = vmatmul.mubr.msk.f32.gmra.mrb[42].mxu1 %vm1347_vm3, %v1933_v62  ;;  %v12819_v31 = vpack.c.bf16 %v13618_v57, %v13617_v43  ;;  %v13631_v26 = vpop.permute.xlu0 %13630 }
 0x637   : > { %v13621_v25 = vpop.permute.xlu1 %13620  ;;  %11638 = vmatprep.mubr.msk.f32.mxu1 %vm1347_vm3, %v1935_v3  ;;  %v13633_v18 = vunpack.i.h.bf16 %v13631_v26  ;;  %v13632_v29 = vunpack.i.l.bf16 %v13631_v26 }
 0x638   : > { %v13623_v21 = vunpack.i.h.bf16 %v13621_v25  ;;  %v13622_v38 = vunpack.i.l.bf16 %v13621_v25  ;;  %12820 = vmatprep.subr.bf16.mxu0 %v12819_v31 }
 0x639   : > { %12822 = vmatpush3.bf16.msra.mxu0 %v12819_v31  ;;  %v12831_v60 = vpack.c.bf16 %v13633_v18, %v13632_v29 }
 0x63a   : > { %11639 = vmatmul.mubr.msk.f32.gmra.mrb[44].mxu1 %vm1347_vm3, %v1937_v53  ;;  %v12823_v32 = vpack.c.bf16 %v13623_v21, %v13622_v38  ;;  %v13651_v24 = vpop.permute.xlu0 %13650 }
 0x63b   : > { %v13636_v14 = vpop.permute.xlu1 %13635  ;;  %11641 = vmatprep.mubr.msk.f32.mxu1 %vm1347_vm3, %v1939_v4  ;;  %v13653_v40 = vunpack.i.h.bf16 %v13651_v24  ;;  %v13652_v45 = vunpack.i.l.bf16 %v13651_v24 }
 0x63c   : > { %12824 = vmatprep.subr.bf16.mxu0 %v12823_v32  ;;  %v13638_v56 = vunpack.i.h.bf16 %v13636_v14  ;;  %v13637_v0 = vunpack.i.l.bf16 %v13636_v14 }
 0x63d   : > { %12826 = vmatpush3.bf16.msra.mxu0 %v12823_v32  ;;  %v15803_v62 = vpack.c.bf16 %v13653_v40, %v13652_v45 }
 0x63e   : > { %11642 = vmatmul.mubr.msk.f32.gmra.mrb[46].mxu1 %vm1347_vm3, %v1941_v15  ;;  %12828 = vmatprep.subr.bf16.mxu0 %v12827_v55  ;;  %v12835_v19 = vpack.c.bf16 %v13638_v56, %v13637_v0 }
 0x63f   : > { %v13641_v49 = vpop.permute.xlu1 %13640 }
 0x640   : > { %v13643_v5 = vunpack.i.h.bf16 %v13641_v49  ;;  %v13642_v54 = vunpack.i.l.bf16 %v13641_v49 }
 0x641   : > { %12830 = vmatpush3.bf16.msra.mxu0 %v12827_v55 }
 0x642   : > { %12832 = vmatprep.subr.bf16.mxu0 %v12831_v60  ;;  %v12839_v50 = vpack.c.bf16 %v13643_v5, %v13642_v54 }
 0x643   : > { %v13646_v11 = vpop.permute.xlu1 %13645 }
 0x644   : > { %v13648_v48 = vunpack.i.h.bf16 %v13646_v11  ;;  %v13647_v46 = vunpack.i.l.bf16 %v13646_v11 }
 0x645   : > { %12834 = vmatpush3.bf16.msra.mxu0 %v12831_v60 }
 0x646   : > { %12836 = vmatprep.subr.bf16.mxu0 %v12835_v19  ;;  %v12843_v3 = vpack.c.bf16 %v13648_v48, %v13647_v46 }
 0x647   : > { %v15871_v46 = vpop.permute.xlu1 %13655 }
 0x649   : > { %12838 = vmatpush3.bf16.msra.mxu0 %v12835_v19 }
 0x64a   : > { %12840 = vmatprep.subr.bf16.mxu0 %v12839_v50 }
 0x64d   : > { %12842 = vmatpush3.bf16.msra.mxu0 %v12839_v50  ;;  %v15873_v50 = vpop.permute.xlu0 %13660 }
 0x64e   : > { %12844 = vmatprep.subr.bf16.mxu0 %v12843_v3 }
 0x651   : > { %12846 = vmatpush3.bf16.msra.mxu0 %v12843_v3 }
 0x652   : > { %12849 = vmatprep.subr.msk.bf16.mxu0 %vm15464_vm4, %v15803_v62 }
 0x6a0   : > { %v15808_v4 = vpop.f32.mrb[16].mxu1 }
 0x6a1   : > { %19852 = vst [vmem:[#allocation19_spill] sm:$0xff] %v15808_v4  ;;  %v15810_v53 = vpop.f32.mrb[17].mxu1 }
 0x6a2   : > { %19853 = vst [vmem:[#allocation20_spill] sm:$0xff] %v15810_v53 }
 0x6d4   : > { %v15812_v59 = vpop.f32.mrb[18].mxu1 }
 0x6d5   : > { %19854 = vst [vmem:[#allocation21_spill] sm:$0xff] %v15812_v59  ;;  %v15814_v36 = vpop.f32.mrb[19].mxu1 }
 0x6d6   : > { %19855 = vst [vmem:[#allocation22_spill] sm:$0xff] %v15814_v36 }
 0x6dc   : > { %v15816_v39 = vpop.f32.mrb[20].mxu1 }
 0x6dd   : > { %19856 = vst [vmem:[#allocation23_spill] sm:$0xff] %v15816_v39  ;;  %v15818_v15 = vpop.f32.mrb[21].mxu1 }
 0x6de   : > { %19857 = vst [vmem:[#allocation24_spill] sm:$0xff] %v15818_v15 }
 0x6e0   : > { %v15820_v44 = vpop.f32.mrb[22].mxu1 }
 0x6e1   : > { %19858 = vst [vmem:[#allocation25_spill] sm:$0xff] %v15820_v44  ;;  %v15822_v9 = vpop.f32.mrb[23].mxu1 }
 0x6e2   : > { %19859 = vst [vmem:[#allocation26_spill] sm:$0xff] %v15822_v9 }
 0x6e5   : > { %v15824_v37 = vpop.f32.mrb[24].mxu1 }
 0x6e6   : > { %19860 = vst [vmem:[#allocation27_spill] sm:$0xff] %v15824_v37  ;;  %v15826_v57 = vpop.f32.mrb[25].mxu1 }
 0x6e7   : > { %19861 = vst [vmem:[#allocation28_spill] sm:$0xff] %v15826_v57 }
 0x6e9   : > { %v15828_v43 = vpop.f32.mrb[26].mxu1 }
 0x6ea   : > { %19862 = vst [vmem:[#allocation29_spill] sm:$0xff] %v15828_v43  ;;  %v15830_v31 = vpop.f32.mrb[27].mxu1 }
 0x6eb   : > { %19863 = vst [vmem:[#allocation30_spill] sm:$0xff] %v15830_v31 }
 0x6ed   : > { %v15832_v25 = vpop.f32.mrb[28].mxu1 }
 0x6ee   : > { %19864 = vst [vmem:[#allocation31_spill] sm:$0xff] %v15832_v25  ;;  %v15834_v61 = vpop.f32.mrb[29].mxu1 }
 0x6ef   : > { %19865 = vst [vmem:[#allocation32_spill] sm:$0xff] %v15834_v61 }
 0x6f1   : > { %v15836_v20 = vpop.f32.mrb[30].mxu1 }
 0x6f2   : > { %19866 = vst [vmem:[#allocation33_spill] sm:$0xff] %v15836_v20  ;;  %v15838_v21 = vpop.f32.mrb[31].mxu1 }
 0x6f3   : > { %19867 = vst [vmem:[#allocation34_spill] sm:$0xff] %v15838_v21 }
 0x6f5   : > { %v11622_v38 = vpop.f32.mrb[32].mxu1 }
 0x6f6   : > { %2185 = vmax.xlane.f32.xlu1 %v11622_v38  ;;  %v2104_v26 = vpop.f32.mrb[33].mxu1 }
 0x6f7   : > { %2183 = vmax.xlane.f32.xlu0 %v2104_v26 }
 0x6f9   : > { %v11625_v32 = vpop.f32.mrb[34].mxu1 }
 0x6fa   : > { %v2114_v14 = vpop.f32.mrb[35].mxu1 }
 0x6fb   : > { %2189 = vmax.xlane.f32.xlu0 %v11625_v32 }
 0x6fd   : > { %v11628_v18 = vpop.f32.mrb[36].mxu1 }
 0x6fe   : > { %v15840_v29 = vpop.f32.mrb[37].mxu1 }
 0x6ff   : > { %2187 = vmax.xlane.f32.xlu0 %v2114_v14 }
 0x701   : > { %v11631_v55 = vpop.f32.mrb[38].mxu1 }
 0x702   : > { %v15842_v49 = vpop.f32.mrb[39].mxu1 }
 0x703   : > { %2191 = vmax.xlane.f32.xlu0 %v15840_v29 }
 0x705   : > { %v15845_v56 = vpop.f32.mrb[40].mxu1 }
 0x706   : > { %v15847_v0 = vpop.f32.mrb[41].mxu1 }
 0x707   : > { %13665 = vrot.lane.b32.xlu1 %v15396_v34, %s19789_s23  ;;  %2195 = vmax.xlane.f32.xlu0 %v15842_v49 }
 0x709   : > { %v15852_v60 = vpop.f32.mrb[42].mxu1 }
 0x70a   : > { %v2154_v5 = vpop.f32.mrb[43].mxu1 }
 0x70b   : > { %2199 = vmax.xlane.f32.xlu0 %v15847_v0 }
 0x70d   : > { %v15855_v54 = vpop.f32.mrb[44].mxu1 }
 0x70e   : > { %v15857_v19 = vpop.f32.mrb[45].mxu1 }
 0x70f   : > { %2203 = vmax.xlane.f32.xlu0 %v2154_v5 }
 0x711   : > { %v15859_v11 = vpop.f32.mrb[46].mxu1 }
 0x712   : > { %v15861_v48 = vpop.f32.mrb[47].mxu1 }
 0x713   : > { %2207 = vmax.xlane.f32.xlu0 %v15857_v19 }
 0x717   : > { %2211 = vmax.xlane.f32.xlu0 %v15861_v48 }
 0x72b   : > { %2193 = vmax.xlane.f32.xlu1 %v11628_v18 }
 0x72d   : > { %13670 = vrot.lane.b32.xlu0 %v15406_v41, %s19789_s23 }
 0x72f   : > { %2197 = vmax.xlane.f32.xlu1 %v11631_v55 }
 0x733   : > { %2201 = vmax.xlane.f32.xlu1 %v15845_v56 }
 0x737   : > { %2205 = vmax.xlane.f32.xlu1 %v15852_v60 }
 0x73b   : > { %2209 = vmax.xlane.f32.xlu1 %v15855_v54 }
 0x73f   : > { %2213 = vmax.xlane.f32.xlu1 %v15859_v11 }
 0x783   : > { %v2186_v24 = vpop.xlane.xlu1 %2185 }
 0x784   : > { %v2216_v40 = vsub.f32 %v11622_v38, %v2186_v24  ;;  %v2184_v45 = vpop.xlane.xlu0 %2183 }
 0x785   : > { %v2215_v3 = vsub.f32 %v2104_v26, %v2184_v45 }
 0x786   : > { %v2233_v20 = vmul.f32 1.442695, %v2216_v40 }
 0x787   : > { %v2231_v21 = vmul.f32 1.442695, %v2215_v3 }
 0x788   : > { %14226 = vpow2.f32 %v2233_v20  ;;  %v2190_v43 = vpop.xlane.xlu0 %2189  ;;  %v15885_v20 = vpop.permute.xlu1 %13665 }
 0x789   : > { %14228 = vpow2.f32 %v2231_v21  ;;  %v2218_v24 = vsub.f32 %v11625_v32, %v2190_v43 }
 0x78b   : > { %v2237_v57 = vmul.f32 1.442695, %v2218_v24 }
 0x78c   : > { %v2188_v31 = vpop.xlane.xlu0 %2187 }
 0x78d   : > { %v2217_v21 = vsub.f32 %v2114_v14, %v2188_v31 }
 0x78f   : > { %v2235_v3 = vmul.f32 1.442695, %v2217_v21 }
 0x790   : > { %v2192_v38 = vpop.xlane.xlu0 %2191 }
 0x791   : > { %14230 = vpow2.f32 %v2235_v3  ;;  %v2219_v39 = vsub.f32 %v15840_v29, %v2192_v38 }
 0x792   : > { %v15875_v25 = vpop.eup %14226  ;;  %14232 = vpow2.f32 %v2237_v57 }
 0x793   : > { %v15877_v61 = vpop.eup %14228  ;;  %2265 = vadd.xlane.f32.xlu0 %v15875_v25  ;;  %v2239_v31 = vmul.f32 1.442695, %v2219_v39 }
 0x794   : > { %2263 = vadd.xlane.f32.xlu1 %v15877_v61  ;;  %v2196_v26 = vpop.xlane.xlu0 %2195 }
 0x795   : > { %v2221_v59 = vsub.f32 %v15842_v49, %v2196_v26 }
 0x797   : > { %v2243_v32 = vmul.f32 1.442695, %v2221_v59 }
 0x798   : > { %v2200_v40 = vpop.xlane.xlu0 %2199 }
 0x799   : > { %v2223_v29 = vsub.f32 %v15847_v0, %v2200_v40 }
 0x79c   : > { %v2204_v36 = vpop.xlane.xlu0 %2203 }
 0x79d   : > { %v2225_v43 = vsub.f32 %v2154_v5, %v2204_v36  ;;  %v2247_v36 = vmul.f32 1.442695, %v2223_v29 }
 0x7a5   : > { %13675 = vrot.lane.b32.xlu1 %v15416_v2, %s19789_s23 }
 0x7a9   : > { %13680 = vrot.lane.b32.xlu0 %v15426_v58, %s19789_s23 }
 0x7b8   : > { %v2194_v45 = vpop.xlane.xlu1 %2193 }
 0x7b9   : > { %v2220_v37 = vsub.f32 %v11628_v18, %v2194_v45 }
 0x7bb   : > { %v2241_v44 = vmul.f32 1.442695, %v2220_v37  ;;  %v2251_v37 = vmul.f32 1.442695, %v2225_v43 }
 0x7bc   : > { %v2198_v9 = vpop.xlane.xlu1 %2197 }
 0x7bd   : > { %v2222_v15 = vsub.f32 %v11631_v55, %v2198_v9  ;;  %14234 = vpow2.f32 %v2241_v44  ;;  %v2208_v9 = vpop.xlane.xlu0 %2207  ;;  %v15891_v55 = vpop.eup %14230 }
 0x7be   : > { %v15893_v49 = vpop.eup %14232 }
 0x7bf   : > { %v2245_v4 = vmul.f32 1.442695, %v2222_v15 }
 0x7c0   : > { %v2202_v53 = vpop.xlane.xlu1 %2201 }
 0x7c1   : > { %14236 = vpow2.f32 %v2245_v4  ;;  %v2224_v14 = vsub.f32 %v15845_v56, %v2202_v53  ;;  %v2227_v4 = vsub.f32 %v15857_v19, %v2208_v9  ;;  %v2212_v26 = vpop.xlane.xlu0 %2211 }
 0x7c2   : > { %14238 = vpow2.f32 %v2239_v31 }
 0x7c3   : > { %14240 = vpow2.f32 %v2243_v32  ;;  %v2249_v57 = vmul.f32 1.442695, %v2224_v14  ;;  %v2255_v5 = vmul.f32 1.442695, %v2227_v4  ;;  %v13657_v4 = vunpack.i.l.bf16 %v15871_v46 }
 0x7c4   : > { %v2206_v18 = vpop.xlane.xlu1 %2205  ;;  %14242 = vpow2.f32 %v2251_v37 }
 0x7c5   : > { %14244 = vpow2.f32 %v2249_v57  ;;  %v2226_v39 = vsub.f32 %v15852_v60, %v2206_v18  ;;  %v2229_v60 = vsub.f32 %v15861_v48, %v2212_v26  ;;  %v13671_v18 = vpop.permute.xlu0 %13670 }
 0x7c7   : > { %v15899_v59 = vpop.eup %14234 }
 0x7c8   : > { %v2210_v15 = vpop.xlane.xlu1 %2209  ;;  %2267 = vadd.xlane.f32.xlu0 %v15891_v55 }
 0x7c9   : > { %v2228_v53 = vsub.f32 %v15855_v54, %v2210_v15  ;;  %2269 = vadd.xlane.f32.xlu1 %v15893_v49  ;;  %v2253_v54 = vmul.f32 1.442695, %v2226_v39  ;;  %v13658_v15 = vunpack.i.h.bf16 %v15871_v46 }
 0x7cb   : > { %v15902_v44 = vpop.eup %14236  ;;  %v2257_v56 = vmul.f32 1.442695, %v2228_v53  ;;  %v12853_v39 = vpack.c.bf16 %v13658_v15, %v13657_v4 }
 0x7cc   : > { %v2214_v0 = vpop.xlane.xlu1 %2213  ;;  %2273 = vadd.xlane.f32.xlu0 %v15899_v59  ;;  %v15907_v38 = vpop.eup %14238 }
 0x7cd   : > { %14246 = vpow2.f32 %v2257_v56  ;;  %2277 = vadd.xlane.f32.xlu1 %v15902_v44  ;;  %v2230_v19 = vsub.f32 %v15859_v11, %v2214_v0  ;;  %v15909_v21 = vpop.eup %14240  ;;  %v2259_v11 = vmul.f32 1.442695, %v2229_v60  ;;  %v13663_v56 = vunpack.i.h.bf16 %v15873_v50 }
 0x7ce   : > { %14248 = vpow2.f32 %v2247_v36  ;;  %v15914_v40 = vpop.eup %14242  ;;  %v13662_v0 = vunpack.i.l.bf16 %v15873_v50  ;;  %v13672_v50 = vunpack.i.l.bf16 %v13671_v18 }
 0x7cf   : > { %14250 = vpow2.f32 %v2255_v5  ;;  %v2261_v24 = vmul.f32 1.442695, %v2230_v19  ;;  %v15916_v45 = vpop.eup %14244 }
 0x7d0   : > { %2271 = vadd.xlane.f32.xlu0 %v15907_v38  ;;  %14252 = vpow2.f32 %v2253_v54  ;;  %v12859_v5 = vpack.c.bf16 %v13663_v56, %v13662_v0 }
 0x7d1   : > { %2275 = vadd.xlane.f32.xlu1 %v15909_v21  ;;  %14254 = vpow2.f32 %v2261_v24 }
 0x7d2   : > { %14256 = vpow2.f32 %v2259_v11 }
 0x7d4   : > { %2283 = vadd.xlane.f32.xlu0 %v15914_v40 }
 0x7d5   : > { %2281 = vadd.xlane.f32.xlu1 %v15916_v45 }
 0x7d7   : > { %v15920_v3 = vpop.eup %14246 }
 0x7d8   : > { %v15922_v31 = vpop.eup %14248  ;;  %2289 = vadd.xlane.f32.xlu0 %v15920_v3 }
 0x7d9   : > { %2279 = vadd.xlane.f32.xlu1 %v15922_v31  ;;  %v15926_v48 = vpop.eup %14250 }
 0x7da   : > { %v15928_v43 = vpop.eup %14252 }
 0x7db   : > { %v15932_v32 = vpop.eup %14254 }
 0x7dc   : > { %2287 = vadd.xlane.f32.xlu0 %v15926_v48  ;;  %v15935_v14 = vpop.eup %14256 }
 0x7dd   : > { %2285 = vadd.xlane.f32.xlu1 %v15928_v43 }
 0x7e1   : > { %2293 = vadd.xlane.f32.xlu1 %v15932_v32 }
 0x7e5   : > { %2291 = vadd.xlane.f32.xlu1 %v15935_v14 }
 0x7f2   : > { %13685 = vrot.lane.b32.xlu0 %v15436_v63, %s19789_s23  ;;  %s19979_s23 = smov 72  }
 0x7f6   : > { %2520 = vrot.lane.b32.xlu0 %v15364_v47, %s19787_s24  ;;  %2522 = vrot.lane.b32.xlu1 %v15508_v30, %s19787_s24 }
 0x7fa   : > { %2524 = vrot.lane.b32.xlu0 %v15511_v33, %s19787_s24  ;;  %2526 = vrot.lane.b32.xlu1 %v15518_v6, %s19787_s24 }
 0x7fe   : > { %2528 = vrot.lane.b32.xlu0 %v15521_v7, %s19787_s24  ;;  %2530 = vrot.lane.b32.xlu1 %v15528_v8, %s19787_s24 }
 0x802   : > { %2532 = vrot.lane.b32.xlu0 %v15531_v13, %s19787_s24  ;;  %2534 = vrot.lane.b32.xlu1 %v15538_v35, %s19787_s24 }
 0x806   : > { %2536 = vrot.lane.b32.xlu0 %v15541_v23, %s19787_s24  ;;  %2538 = vrot.lane.b32.xlu1 %v15548_v17, %s19787_s24 }
 0x80a   : > { %2540 = vrot.lane.b32.xlu0 %v15551_v51, %s19787_s24  ;;  %2542 = vrot.lane.b32.xlu1 %v15558_v28, %s19787_s24 }
 0x80e   : > { %2544 = vrot.lane.b32.xlu0 %v15561_v10, %s19787_s24  ;;  %2546 = vrot.lane.b32.xlu1 %v15568_v52, %s19787_s24 }
 0x812   : > { %2548 = vrot.lane.b32.xlu0 %v15571_v1, %s19787_s24  ;;  %2550 = vrot.lane.b32.xlu1 %v15578_v42, %s19787_s24  ;;  %s19996_s24 = smov 104  }
 0x816   : > { %13690 = vrot.lane.b32.xlu0 %v15362_v12, %s19785_s25  ;;  %13695 = vrot.lane.b32.xlu1 %v15376_v16, %s19785_s25 }
 0x81a   : > { %13705 = vrot.lane.b32.xlu0 %v15396_v34, %s19785_s25  ;;  %13700 = vrot.lane.b32.xlu1 %v15386_v27, %s19785_s25 }
 0x81e   : > { %13710 = vrot.lane.b32.xlu0 %v15406_v41, %s19785_s25  ;;  %13715 = vrot.lane.b32.xlu1 %v15416_v2, %s19785_s25 }
 0x820   : > { %v2266_v37 = vpop.xlane.xlu0 %2265 }
 0x821   : > { %14258 = vrcp.f32 %v2266_v37  ;;  %v2264_v29 = vpop.xlane.xlu1 %2263 }
 0x822   : > { %14260 = vrcp.f32 %v2264_v29  ;;  %13730 = vrot.lane.b32.xlu0 %v15362_v12, %s19783_s26  ;;  %13720 = vrot.lane.b32.xlu1 %v15426_v58, %s19785_s25 }
 0x824   : > { %v13681_v24 = vpop.permute.xlu0 %13680 }
 0x825   : > { %v13676_v19 = vpop.permute.xlu1 %13675  ;;  %v13683_v11 = vunpack.i.h.bf16 %v13681_v24 }
 0x826   : > { %13740 = vrot.lane.b32.xlu0 %v15386_v27, %s19783_s26  ;;  %13725 = vrot.lane.b32.xlu1 %v15436_v63, %s19785_s25  ;;  %v13678_v26 = vunpack.i.h.bf16 %v13676_v19  ;;  %v13677_v60 = vunpack.i.l.bf16 %v13676_v19  ;;  %s19997_s25 = smov 40  }
 0x82a   : > { %13735 = vrot.lane.b32.xlu1 %v15376_v16, %s19783_s26 }
 0x82b   : > { %v14259_v9 = vpop.eup %14258 }
 0x82c   : > { %v14261_v57 = vpop.eup %14260  ;;  %v2312_v36 = vmul.f32 %v14259_v9, %v15875_v25  ;;  %v13668_v25 = vunpack.i.h.bf16 %v15885_v20 }
 0x82d   : > { %v2311_v53 = vmul.f32 %v14261_v57, %v15877_v61  ;;  %v13667_v61 = vunpack.i.l.bf16 %v15885_v20  ;;  %v12877_v20 = vpack.c.bf16 %v13678_v26, %v13677_v60 }
 0x82f   : > { %11676 = vmatprep.mubr.f32.mxu0 %v2311_v53  ;;  %v12865_v46 = vpack.c.bf16 %v13668_v25, %v13667_v61 }
 0x830   : > { %11677 = vmatmul.mubr.f32.vlgmr.msra.gmra.mrb[32].mxu0 %v2312_v36 }
 0x831   : > { %12852 = vmatpush3.bf16.xpose.msk.msra.mxu0 %vm15464_vm4, %v15803_v62  ;;  %v13673_v62 = vunpack.i.h.bf16 %v13671_v18  ;;  %v13682_v18 = vunpack.i.l.bf16 %v13681_v24 }
 0x832   : > { %12855 = vmatprep.subr.msk.bf16.mxu0 %vm15464_vm4, %v12853_v39 }
 0x833   : > { %v12871_v54 = vpack.c.bf16 %v13673_v62, %v13672_v50  ;;  %v12883_v9 = vpack.c.bf16 %v13683_v11, %v13682_v18 }
 0x839   : > { %12858 = vmatpush3.bf16.xpose.msk.msra.mxu0 %vm15464_vm4, %v12853_v39 }
 0x83a   : > { %12861 = vmatprep.subr.msk.bf16.mxu0 %vm15464_vm4, %v12859_v5 }
 0x841   : > { %12864 = vmatpush3.bf16.xpose.msk.msra.mxu0 %vm15464_vm4, %v12859_v5 }
 0x842   : > { %12867 = vmatprep.subr.msk.bf16.mxu0 %vm15464_vm4, %v12865_v46 }
 0x849   : > { %12870 = vmatpush3.bf16.xpose.msk.msra.mxu0 %vm15464_vm4, %v12865_v46 }
 0x84a   : > { %12873 = vmatprep.subr.msk.bf16.mxu0 %vm15464_vm4, %v12871_v54 }
 0x851   : > { %12876 = vmatpush3.bf16.xpose.msk.msra.mxu0 %vm15464_vm4, %v12871_v54 }
 0x852   : > { %12879 = vmatprep.subr.msk.bf16.mxu0 %vm15464_vm4, %v12877_v20 }
 0x855   : > { %v2268_v37 = vpop.xlane.xlu0 %2267 }
 0x856   : > { %14262 = vrcp.f32 %v2268_v37  ;;  %v2270_v29 = vpop.xlane.xlu1 %2269 }
 0x857   : > { %14264 = vrcp.f32 %v2270_v29 }
 0x859   : > { %12882 = vmatpush3.bf16.xpose.msk.msra.mxu0 %vm15464_vm4, %v12877_v20  ;;  %v2274_v57 = vpop.xlane.xlu0 %2273 }
 0x85a   : > { %12885 = vmatprep.subr.msk.bf16.mxu0 %vm15464_vm4, %v12883_v9  ;;  %v2278_v15 = vpop.xlane.xlu1 %2277  ;;  %14266 = vrcp.f32 %v2274_v57 }
 0x85d   : > { %v2272_v4 = vpop.xlane.xlu0 %2271 }
 0x85e   : > { %14268 = vrcp.f32 %v2272_v4  ;;  %v2276_v53 = vpop.xlane.xlu1 %2275 }
 0x85f   : > { %14270 = vrcp.f32 %v2276_v53 }
 0x860   : > { %v14263_v36 = vpop.eup %14262  ;;  %14272 = vrcp.f32 %v2278_v15 }
 0x861   : > { %v14265_v39 = vpop.eup %14264  ;;  %12888 = vmatpush3.bf16.xpose.msk.msra.mxu0 %vm15464_vm4, %v12883_v9  ;;  %v2284_v56 = vpop.xlane.xlu0 %2283  ;;  %v2313_v0 = vmul.f32 %v14263_v36, %v15891_v55 }
 0x862   : > { %v2282_v5 = vpop.xlane.xlu1 %2281  ;;  %v2314_v25 = vmul.f32 %v14265_v39, %v15893_v49  ;;  %14274 = vrcp.f32 %v2284_v56 }
 0x863   : > { %11679 = vmatprep.mubr.f32.mxu0 %v2313_v0  ;;  %14276 = vrcp.f32 %v2282_v5 }
 0x864   : > { %11680 = vmatmul.mubr.f32.gmra.mrb[34].mxu0 %v2314_v25  ;;  %v14267_v62 = vpop.eup %14266 }
 0x865   : > { %v2290_v61 = vpop.xlane.xlu0 %2289  ;;  %v2316_v55 = vmul.f32 %v14267_v62, %v15899_v59 }
 0x866   : > { %v2280_v46 = vpop.xlane.xlu1 %2279 }
 0x867   : > { %14278 = vrcp.f32 %v2280_v46 }
 0x868   : > { %v14269_v50 = vpop.eup %14268 }
 0x869   : > { %v14271_v54 = vpop.eup %14270  ;;  %v2288_v19 = vpop.xlane.xlu0 %2287  ;;  %v2315_v26 = vmul.f32 %v14269_v50, %v15907_v38 }
 0x86a   : > { %14280 = vrcp.f32 %v2288_v19  ;;  %v2286_v60 = vpop.xlane.xlu1 %2285  ;;  %v2317_v20 = vmul.f32 %v14271_v54, %v15909_v21  ;;  %v14273_v49 = vpop.eup %14272 }
 0x86b   : > { %14282 = vrcp.f32 %v2286_v60  ;;  %11682 = vmatprep.mubr.f32.mxu0 %v2315_v26  ;;  %v2318_v29 = vmul.f32 %v14273_v49, %v15902_v44 }
 0x86c   : > { %11683 = vmatmul.mubr.f32.gmra.mrb[36].mxu0 %v2316_v55  ;;  %14284 = vrcp.f32 %v2290_v61  ;;  %v14275_v9 = vpop.eup %14274 }
 0x86d   : > { %11685 = vmatprep.mubr.f32.mxu0 %v2317_v20  ;;  %v13686_v24 = vpop.permute.xlu0 %13685  ;;  %v14277_v38 = vpop.eup %14276  ;;  %v2321_v36 = vmul.f32 %v14275_v9, %v15914_v40 }
 0x86e   : > { %v13688_v11 = vunpack.i.h.bf16 %v13686_v24  ;;  %v13687_v18 = vunpack.i.l.bf16 %v13686_v24  ;;  %v2294_v37 = vpop.xlane.xlu1 %2293  ;;  %v2320_v53 = vmul.f32 %v14277_v38, %v15916_v45 }
 0x86f   : > { %14286 = vrcp.f32 %v2294_v37 }
 0x870   : > { %v12889_v57 = vpack.c.bf16 %v13688_v11, %v13687_v18  ;;  %11686 = vmatmul.mubr.f32.gmra.mrb[38].mxu0 %v2318_v29 }
 0x871   : > { %v14279_v15 = vpop.eup %14278  ;;  %v2521_v59 = vpop.permute.xlu0 %2520 }
 0x872   : > { %v2292_v21 = vpop.xlane.xlu1 %2291  ;;  %12891 = vmatprep.subr.msk.bf16.mxu0 %vm15464_vm4, %v12889_v57  ;;  %v2319_v4 = vmul.f32 %v14279_v15, %v15922_v31 }
 0x873   : > { %14288 = vrcp.f32 %v2292_v21  ;;  %12894 = vmatpush3.bf16.xpose.msk.msra.mxu0 %vm15464_vm4, %v12889_v57 }
 0x874   : > { %v14281_v44 = vpop.eup %14280  ;;  %11688 = vmatprep.mubr.f32.mxu0 %v2319_v4 }
 0x875   : > { %v14283_v39 = vpop.eup %14282  ;;  %11689 = vmatmul.mubr.f32.gmra.mrb[40].mxu0 %v2320_v53  ;;  %v2525_v56 = vpop.permute.xlu0 %2524  ;;  %v2323_v31 = vmul.f32 %v14281_v44, %v15926_v48 }
 0x876   : > { %v2523_v0 = vpop.permute.xlu1 %2522  ;;  %11691 = vmatprep.mubr.f32.mxu0 %v2321_v36  ;;  %v2322_v5 = vmul.f32 %v14283_v39, %v15928_v43  ;;  %v14285_v25 = vpop.eup %14284 }
 0x877   : > { %v2324_v45 = vmul.f32 %v14285_v25, %v15920_v3 }
 0x879   : > { %11692 = vmatmul.mubr.f32.gmra.mrb[42].mxu0 %v2322_v5  ;;  %v2529_v61 = vpop.permute.xlu0 %2528  ;;  %v14287_v62 = vpop.eup %14286 }
 0x87a   : > { %v2527_v46 = vpop.permute.xlu1 %2526  ;;  %11694 = vmatprep.mubr.f32.mxu0 %v2323_v31  ;;  %v2326_v26 = vmul.f32 %v14287_v62, %v15932_v32 }
 0x87d   : > { %v14289_v50 = vpop.eup %14288  ;;  %11695 = vmatmul.mubr.f32.gmra.mrb[44].mxu0 %v2324_v45  ;;  %v2533_v40 = vpop.permute.xlu0 %2532 }
 0x87e   : > { %v2531_v54 = vpop.permute.xlu1 %2530  ;;  %v2325_v19 = vmul.f32 %v14289_v50, %v15935_v14 }
 0x880   : > { %11697 = vmatprep.mubr.f32.mxu0 %v2325_v19 }
 0x881   : > { %11698 = vmatmul.mubr.f32.gmra.mrb[46].mxu0 %v2326_v26  ;;  %v2537_v43 = vpop.permute.xlu0 %2536 }
 0x882   : > { %v2535_v60 = vpop.permute.xlu1 %2534  ;;  %11732 = vmatprep.mubr.msk.f32.mxu0 %vm1347_vm3, %v2521_v59 }
 0x885   : > { %v2541_v48 = vpop.permute.xlu0 %2540  ;;  %11733 = vmatmul.mubr.msk.f32.vlgmr.msra.gmra.mrb[48].mxu0 %vm1347_vm3, %v2523_v0 }
 0x886   : > { %v2539_v55 = vpop.permute.xlu1 %2538  ;;  %11735 = vmatprep.mubr.msk.f32.mxu0 %vm1347_vm3, %v2525_v56 }
 0x889   : > { %v2545_v3 = vpop.permute.xlu0 %2544  ;;  %11736 = vmatmul.mubr.msk.f32.gmra.mrb[50].mxu0 %vm1347_vm3, %v2527_v46 }
 0x88a   : > { %v2543_v20 = vpop.permute.xlu1 %2542  ;;  %11738 = vmatprep.mubr.msk.f32.mxu0 %vm1347_vm3, %v2529_v61 }
 0x88d   : > { %v2549_v14 = vpop.permute.xlu0 %2548  ;;  %11739 = vmatmul.mubr.msk.f32.gmra.mrb[52].mxu0 %vm1347_vm3, %v2531_v54 }
 0x88e   : > { %v2547_v32 = vpop.permute.xlu1 %2546  ;;  %11741 = vmatprep.mubr.msk.f32.mxu0 %vm1347_vm3, %v2533_v40 }
 0x891   : > { %v13691_v49 = vpop.permute.xlu0 %13690  ;;  %11742 = vmatmul.mubr.msk.f32.gmra.mrb[54].mxu0 %vm1347_vm3, %v2535_v60 }
 0x892   : > { %v13693_v24 = vunpack.i.h.bf16 %v13691_v49  ;;  %v13692_v11 = vunpack.i.l.bf16 %v13691_v49  ;;  %v2551_v18 = vpop.permute.xlu1 %2550  ;;  %11744 = vmatprep.mubr.msk.f32.mxu0 %vm1347_vm3, %v2537_v43 }
 0x894   : > { %v12895_v37 = vpack.c.bf16 %v13693_v24, %v13692_v11 }
 0x895   : > { %11745 = vmatmul.mubr.msk.f32.gmra.mrb[56].mxu0 %vm1347_vm3, %v2539_v55  ;;  %v13706_v29 = vpop.permute.xlu0 %13705 }
 0x896   : > { %v13696_v9 = vpop.permute.xlu1 %13695  ;;  %11747 = vmatprep.mubr.msk.f32.mxu0 %vm1347_vm3, %v2541_v48  ;;  %12896 = vmatprep.subr.bf16.mxu1 %v12895_v37  ;;  %v13708_v21 = vunpack.i.h.bf16 %v13706_v29  ;;  %v13707_v4 = vunpack.i.l.bf16 %v13706_v29 }
 0x897   : > { %v13698_v38 = vunpack.i.h.bf16 %v13696_v9  ;;  %v13697_v57 = vunpack.i.l.bf16 %v13696_v9  ;;  %12898 = vmatpush3.bf16.msra.mxu1 %v12895_v37 }
 0x898   : > { %v12907_v25 = vpack.c.bf16 %v13708_v21, %v13707_v4 }
 0x899   : > { %11748 = vmatmul.mubr.msk.f32.gmra.mrb[58].mxu0 %vm1347_vm3, %v2543_v20  ;;  %v12899_v15 = vpack.c.bf16 %v13698_v38, %v13697_v57  ;;  %v13711_v36 = vpop.permute.xlu0 %13710 }
 0x89a   : > { %v13701_v59 = vpop.permute.xlu1 %13700  ;;  %11750 = vmatprep.mubr.msk.f32.mxu0 %vm1347_vm3, %v2545_v3  ;;  %v13713_v0 = vunpack.i.h.bf16 %v13711_v36  ;;  %v13712_v5 = vunpack.i.l.bf16 %v13711_v36 }
 0x89b   : > { %v13703_v53 = vunpack.i.h.bf16 %v13701_v59  ;;  %v13702_v44 = vunpack.i.l.bf16 %v13701_v59  ;;  %12900 = vmatprep.subr.bf16.mxu1 %v12899_v15 }
 0x89c   : > { %12902 = vmatpush3.bf16.msra.mxu1 %v12899_v15  ;;  %v12911_v45 = vpack.c.bf16 %v13713_v0, %v13712_v5 }
 0x89d   : > { %11751 = vmatmul.mubr.msk.f32.gmra.mrb[60].mxu0 %vm1347_vm3, %v2547_v32  ;;  %v12903_v39 = vpack.c.bf16 %v13703_v53, %v13702_v44  ;;  %v13731_v60 = vpop.permute.xlu0 %13730 }
 0x89e   : > { %v13716_v56 = vpop.permute.xlu1 %13715  ;;  %11753 = vmatprep.mubr.msk.f32.mxu0 %vm1347_vm3, %v2549_v14  ;;  %v13733_v48 = vunpack.i.h.bf16 %v13731_v60  ;;  %v13732_v55 = vunpack.i.l.bf16 %v13731_v60 }
 0x89f   : > { %12904 = vmatprep.subr.bf16.mxu1 %v12903_v39  ;;  %v13718_v61 = vunpack.i.h.bf16 %v13716_v56  ;;  %v13717_v46 = vunpack.i.l.bf16 %v13716_v56 }
 0x8a0   : > { %12906 = vmatpush3.bf16.msra.mxu1 %v12903_v39  ;;  %v16063_v20 = vpack.c.bf16 %v13733_v48, %v13732_v55 }
 0x8a1   : > { %11754 = vmatmul.mubr.msk.f32.gmra.mrb[62].mxu0 %vm1347_vm3, %v2551_v18  ;;  %12908 = vmatprep.subr.bf16.mxu1 %v12907_v25  ;;  %v12915_v40 = vpack.c.bf16 %v13718_v61, %v13717_v46 }
 0x8a2   : > { %v13721_v31 = vpop.permute.xlu1 %13720 }
 0x8a3   : > { %v13723_v62 = vunpack.i.h.bf16 %v13721_v31  ;;  %v13722_v50 = vunpack.i.l.bf16 %v13721_v31 }
 0x8a4   : > { %12910 = vmatpush3.bf16.msra.mxu1 %v12907_v25 }
 0x8a5   : > { %12912 = vmatprep.subr.bf16.mxu1 %v12911_v45  ;;  %v12919_v43 = vpack.c.bf16 %v13723_v62, %v13722_v50 }
 0x8a6   : > { %v13726_v54 = vpop.permute.xlu1 %13725 }
 0x8a7   : > { %v13728_v19 = vunpack.i.h.bf16 %v13726_v54  ;;  %v13727_v26 = vunpack.i.l.bf16 %v13726_v54 }
 0x8a8   : > { %12914 = vmatpush3.bf16.msra.mxu1 %v12911_v45 }
 0x8a9   : > { %12916 = vmatprep.subr.bf16.mxu1 %v12915_v40  ;;  %v12923_v3 = vpack.c.bf16 %v13728_v19, %v13727_v26 }
 0x8aa   : > { %v16131_v26 = vpop.permute.xlu1 %13735 }
 0x8ac   : > { %12918 = vmatpush3.bf16.msra.mxu1 %v12915_v40 }
 0x8ad   : > { %12920 = vmatprep.subr.bf16.mxu1 %v12919_v43 }
 0x8b0   : > { %12922 = vmatpush3.bf16.msra.mxu1 %v12919_v43  ;;  %v16133_v43 = vpop.permute.xlu0 %13740 }
 0x8b1   : > { %12924 = vmatprep.subr.bf16.mxu1 %v12923_v3 }
 0x8b4   : > { %12926 = vmatpush3.bf16.msra.mxu1 %v12923_v3 }
 0x8b5   : > { %12929 = vmatprep.subr.msk.bf16.mxu1 %vm15464_vm4, %v16063_v20 }
 0x903   : > { %v16068_v14 = vpop.f32.mrb[32].mxu0 }
 0x904   : > { %19868 = vst [vmem:[#allocation35_spill] sm:$0xff] %v16068_v14  ;;  %v16070_v32 = vpop.f32.mrb[33].mxu0 }
 0x905   : > { %19869 = vst [vmem:[#allocation36_spill] sm:$0xff] %v16070_v32 }
 0x937   : > { %v16072_v49 = vpop.f32.mrb[34].mxu0 }
 0x938   : > { %19870 = vst [vmem:[#allocation37_spill] sm:$0xff] %v16072_v49  ;;  %v16074_v24 = vpop.f32.mrb[35].mxu0 }
 0x939   : > { %19871 = vst [vmem:[#allocation38_spill] sm:$0xff] %v16074_v24 }
 0x93f   : > { %v16076_v11 = vpop.f32.mrb[36].mxu0 }
 0x940   : > { %19872 = vst [vmem:[#allocation39_spill] sm:$0xff] %v16076_v11  ;;  %v16078_v18 = vpop.f32.mrb[37].mxu0 }
 0x941   : > { %19873 = vst [vmem:[#allocation40_spill] sm:$0xff] %v16078_v18 }
 0x943   : > { %v16080_v37 = vpop.f32.mrb[38].mxu0 }
 0x944   : > { %19874 = vst [vmem:[#allocation41_spill] sm:$0xff] %v16080_v37  ;;  %v16082_v29 = vpop.f32.mrb[39].mxu0 }
 0x945   : > { %19875 = vst [vmem:[#allocation42_spill] sm:$0xff] %v16082_v29 }
 0x948   : > { %v16084_v9 = vpop.f32.mrb[40].mxu0 }
 0x949   : > { %19876 = vst [vmem:[#allocation43_spill] sm:$0xff] %v16084_v9  ;;  %v16086_v38 = vpop.f32.mrb[41].mxu0 }
 0x94a   : > { %19877 = vst [vmem:[#allocation44_spill] sm:$0xff] %v16086_v38 }
 0x94c   : > { %v16088_v57 = vpop.f32.mrb[42].mxu0 }
 0x94d   : > { %19878 = vst [vmem:[#allocation45_spill] sm:$0xff] %v16088_v57  ;;  %v16090_v15 = vpop.f32.mrb[43].mxu0 }
 0x94e   : > { %19879 = vst [vmem:[#allocation46_spill] sm:$0xff] %v16090_v15 }
 0x950   : > { %v16092_v59 = vpop.f32.mrb[44].mxu0 }
 0x951   : > { %19880 = vst [vmem:[#allocation47_spill] sm:$0xff] %v16092_v59  ;;  %v16094_v21 = vpop.f32.mrb[45].mxu0 }
 0x952   : > { %19881 = vst [vmem:[#allocation48_spill] sm:$0xff] %v16094_v21 }
 0x954   : > { %v16096_v4 = vpop.f32.mrb[46].mxu0 }
 0x955   : > { %19882 = vst [vmem:[#allocation49_spill] sm:$0xff] %v16096_v4  ;;  %v16098_v53 = vpop.f32.mrb[47].mxu0 }
 0x956   : > { %19883 = vst [vmem:[#allocation50_spill] sm:$0xff] %v16098_v53 }
 0x958   : > { %v11734_v44 = vpop.f32.mrb[48].mxu0 }
 0x959   : > { %2795 = vmax.xlane.f32.xlu1 %v11734_v44  ;;  %v2714_v36 = vpop.f32.mrb[49].mxu0 }
 0x95a   : > { %2793 = vmax.xlane.f32.xlu0 %v2714_v36 }
 0x95c   : > { %v11737_v39 = vpop.f32.mrb[50].mxu0 }
 0x95d   : > { %v2724_v56 = vpop.f32.mrb[51].mxu0 }
 0x95e   : > { %2799 = vmax.xlane.f32.xlu0 %v11737_v39 }
 0x960   : > { %v11740_v0 = vpop.f32.mrb[52].mxu0 }
 0x961   : > { %v16100_v5 = vpop.f32.mrb[53].mxu0 }
 0x962   : > { %2797 = vmax.xlane.f32.xlu0 %v2724_v56 }
 0x964   : > { %v11743_v25 = vpop.f32.mrb[54].mxu0 }
 0x965   : > { %v16102_v31 = vpop.f32.mrb[55].mxu0 }
 0x966   : > { %2801 = vmax.xlane.f32.xlu0 %v16100_v5 }
 0x968   : > { %v16105_v61 = vpop.f32.mrb[56].mxu0 }
 0x969   : > { %v16107_v46 = vpop.f32.mrb[57].mxu0 }
 0x96a   : > { %13745 = vrot.lane.b32.xlu1 %v15396_v34, %s19783_s26  ;;  %2805 = vmax.xlane.f32.xlu0 %v16102_v31 }
 0x96c   : > { %v16112_v45 = vpop.f32.mrb[58].mxu0 }
 0x96d   : > { %v2764_v62 = vpop.f32.mrb[59].mxu0 }
 0x96e   : > { %2809 = vmax.xlane.f32.xlu0 %v16107_v46 }
 0x970   : > { %v16115_v50 = vpop.f32.mrb[60].mxu0 }
 0x971   : > { %v16117_v40 = vpop.f32.mrb[61].mxu0 }
 0x972   : > { %2813 = vmax.xlane.f32.xlu0 %v2764_v62 }
 0x974   : > { %v16119_v54 = vpop.f32.mrb[62].mxu0 }
 0x975   : > { %v16121_v19 = vpop.f32.mrb[63].mxu0 }
 0x976   : > { %2817 = vmax.xlane.f32.xlu0 %v16117_v40 }
 0x97a   : > { %2821 = vmax.xlane.f32.xlu0 %v16121_v19 }
 0x98e   : > { %2803 = vmax.xlane.f32.xlu1 %v11740_v0 }
 0x990   : > { %13750 = vrot.lane.b32.xlu0 %v15406_v41, %s19783_s26 }
 0x992   : > { %2807 = vmax.xlane.f32.xlu1 %v11743_v25 }
 0x996   : > { %2811 = vmax.xlane.f32.xlu1 %v16105_v61 }
 0x99a   : > { %2815 = vmax.xlane.f32.xlu1 %v16112_v45 }
 0x99e   : > { %2819 = vmax.xlane.f32.xlu1 %v16115_v50 }
 0x9a2   : > { %2823 = vmax.xlane.f32.xlu1 %v16119_v54 }
 0x9e6   : > { %v2796_v60 = vpop.xlane.xlu1 %2795 }
 0x9e7   : > { %v2826_v48 = vsub.f32 %v11734_v44, %v2796_v60  ;;  %v2794_v55 = vpop.xlane.xlu0 %2793 }
 0x9e8   : > { %v2825_v3 = vsub.f32 %v2714_v36, %v2794_v55 }
 0x9e9   : > { %v2843_v53 = vmul.f32 1.442695, %v2826_v48 }
 0x9ea   : > { %v2841_v4 = vmul.f32 1.442695, %v2825_v3 }
 0x9eb   : > { %14290 = vpow2.f32 %v2843_v53  ;;  %v2800_v15 = vpop.xlane.xlu0 %2799  ;;  %v16145_v53 = vpop.permute.xlu1 %13745 }
 0x9ec   : > { %14292 = vpow2.f32 %v2841_v4  ;;  %v2828_v60 = vsub.f32 %v11737_v39, %v2800_v15 }
 0x9ee   : > { %v2847_v38 = vmul.f32 1.442695, %v2828_v60 }
 0x9ef   : > { %v2798_v57 = vpop.xlane.xlu0 %2797 }
 0x9f0   : > { %v2827_v4 = vsub.f32 %v2724_v56, %v2798_v57 }
 0x9f2   : > { %v2845_v3 = vmul.f32 1.442695, %v2827_v4 }
 0x9f3   : > { %v2802_v44 = vpop.xlane.xlu0 %2801 }
 0x9f4   : > { %14294 = vpow2.f32 %v2845_v3  ;;  %v2829_v11 = vsub.f32 %v16100_v5, %v2802_v44 }
 0x9f5   : > { %v16135_v21 = vpop.eup %14290  ;;  %14296 = vpow2.f32 %v2847_v38 }
 0x9f6   : > { %v16137_v59 = vpop.eup %14292  ;;  %2875 = vadd.xlane.f32.xlu0 %v16135_v21  ;;  %v2849_v57 = vmul.f32 1.442695, %v2829_v11 }
 0x9f7   : > { %2873 = vadd.xlane.f32.xlu1 %v16137_v59  ;;  %v2806_v36 = vpop.xlane.xlu0 %2805 }
 0x9f8   : > { %v2831_v49 = vsub.f32 %v16102_v31, %v2806_v36 }
 0x9fa   : > { %v2853_v39 = vmul.f32 1.442695, %v2831_v49 }
 0x9fb   : > { %v2810_v48 = vpop.xlane.xlu0 %2809 }
 0x9fc   : > { %v2833_v5 = vsub.f32 %v16107_v46, %v2810_v48 }
 0x9ff   : > { %v2814_v24 = vpop.xlane.xlu0 %2813 }
 0xa00   : > { %v2835_v15 = vsub.f32 %v2764_v62, %v2814_v24  ;;  %v2857_v24 = vmul.f32 1.442695, %v2833_v5 }
 0xa08   : > { %13755 = vrot.lane.b32.xlu1 %v15416_v2, %s19783_s26 }
 0xa0c   : > { %13760 = vrot.lane.b32.xlu0 %v15426_v58, %s19783_s26 }
 0xa1b   : > { %v2804_v55 = vpop.xlane.xlu1 %2803 }
 0xa1c   : > { %v2830_v9 = vsub.f32 %v11740_v0, %v2804_v55 }
 0xa1e   : > { %v2851_v37 = vmul.f32 1.442695, %v2830_v9  ;;  %v2861_v9 = vmul.f32 1.442695, %v2835_v15 }
 0xa1f   : > { %v2808_v29 = vpop.xlane.xlu1 %2807 }
 0xa20   : > { %v2832_v18 = vsub.f32 %v11743_v25, %v2808_v29  ;;  %14298 = vpow2.f32 %v2851_v37  ;;  %v2818_v29 = vpop.xlane.xlu0 %2817  ;;  %v16151_v25 = vpop.eup %14294 }
 0xa21   : > { %v16153_v31 = vpop.eup %14296 }
 0xa22   : > { %v2855_v32 = vmul.f32 1.442695, %v2832_v18 }
 0xa23   : > { %v2812_v14 = vpop.xlane.xlu1 %2811 }
 0xa24   : > { %14300 = vpow2.f32 %v2855_v32  ;;  %v2834_v56 = vsub.f32 %v16105_v61, %v2812_v14  ;;  %v2837_v32 = vsub.f32 %v16117_v40, %v2818_v29  ;;  %v2822_v36 = vpop.xlane.xlu0 %2821 }
 0xa25   : > { %14302 = vpow2.f32 %v2849_v57 }
 0xa26   : > { %14304 = vpow2.f32 %v2853_v39  ;;  %v2859_v38 = vmul.f32 1.442695, %v2834_v56  ;;  %v2865_v62 = vmul.f32 1.442695, %v2837_v32 }
 0xa27   : > { %v2816_v0 = vpop.xlane.xlu1 %2815  ;;  %14306 = vpow2.f32 %v2861_v9 }
 0xa28   : > { %14308 = vpow2.f32 %v2859_v38  ;;  %v2836_v11 = vsub.f32 %v16112_v45, %v2816_v0  ;;  %v2839_v45 = vsub.f32 %v16121_v19, %v2822_v36 }
 0xa2a   : > { %v16159_v49 = vpop.eup %14298 }
 0xa2b   : > { %v2820_v18 = vpop.xlane.xlu1 %2819  ;;  %2877 = vadd.xlane.f32.xlu0 %v16151_v25 }
 0xa2c   : > { %v2838_v14 = vsub.f32 %v16115_v50, %v2820_v18  ;;  %2879 = vadd.xlane.f32.xlu1 %v16153_v31  ;;  %v2863_v50 = vmul.f32 1.442695, %v2836_v11 }
 0xa2e   : > { %v16162_v37 = vpop.eup %14300  ;;  %v2867_v61 = vmul.f32 1.442695, %v2838_v14 }
 0xa2f   : > { %v2824_v46 = vpop.xlane.xlu1 %2823  ;;  %2883 = vadd.xlane.f32.xlu0 %v16159_v49  ;;  %v16167_v44 = vpop.eup %14302 }
 0xa30   : > { %14310 = vpow2.f32 %v2867_v61  ;;  %2887 = vadd.xlane.f32.xlu1 %v16162_v37  ;;  %v2840_v40 = vsub.f32 %v16119_v54, %v2824_v46  ;;  %v16169_v4 = vpop.eup %14304  ;;  %v2869_v54 = vmul.f32 1.442695, %v2839_v45 }
 0xa31   : > { %14312 = vpow2.f32 %v2857_v24  ;;  %v16174_v48 = vpop.eup %14306 }
 0xa32   : > { %14314 = vpow2.f32 %v2865_v62  ;;  %v2871_v60 = vmul.f32 1.442695, %v2840_v40  ;;  %v16176_v55 = vpop.eup %14308 }
 0xa33   : > { %2881 = vadd.xlane.f32.xlu0 %v16167_v44  ;;  %14316 = vpow2.f32 %v2863_v50 }
 0xa34   : > { %2885 = vadd.xlane.f32.xlu1 %v16169_v4  ;;  %14318 = vpow2.f32 %v2871_v60 }
 0xa35   : > { %14320 = vpow2.f32 %v2869_v54 }
 0xa37   : > { %2893 = vadd.xlane.f32.xlu0 %v16174_v48 }
 0xa38   : > { %2891 = vadd.xlane.f32.xlu1 %v16176_v55 }
 0xa3a   : > { %v16180_v3 = vpop.eup %14310 }
 0xa3b   : > { %v16182_v57 = vpop.eup %14312  ;;  %2899 = vadd.xlane.f32.xlu0 %v16180_v3 }
 0xa3c   : > { %2889 = vadd.xlane.f32.xlu1 %v16182_v57  ;;  %v16186_v19 = vpop.eup %14314 }
 0xa3d   : > { %v16188_v15 = vpop.eup %14316 }
 0xa3e   : > { %v16192_v39 = vpop.eup %14318 }
 0xa3f   : > { %2897 = vadd.xlane.f32.xlu0 %v16186_v19  ;;  %v16195_v56 = vpop.eup %14320 }
 0xa40   : > { %2895 = vadd.xlane.f32.xlu1 %v16188_v15 }
 0xa44   : > { %2903 = vadd.xlane.f32.xlu1 %v16192_v39 }
 0xa48   : > { %2901 = vadd.xlane.f32.xlu1 %v16195_v56 }
 0xa55   : > { %13765 = vrot.lane.b32.xlu0 %v15436_v63, %s19783_s26  ;;  %s19797_s26 = smov 24  }
 0xa59   : > { %3130 = vrot.lane.b32.xlu0 %v15364_v47, %s19781_s27  ;;  %3132 = vrot.lane.b32.xlu1 %v15508_v30, %s19781_s27  ;;  %v13751_v47 = vpop.permute.xlu0 %13750 }
 0xa5d   : > { %3134 = vrot.lane.b32.xlu0 %v15511_v33, %s19781_s27  ;;  %3136 = vrot.lane.b32.xlu1 %v15518_v6, %s19781_s27 }
 0xa61   : > { %3138 = vrot.lane.b32.xlu0 %v15521_v7, %s19781_s27  ;;  %3140 = vrot.lane.b32.xlu1 %v15528_v8, %s19781_s27  ;;  %v13738_v8 = vunpack.i.h.bf16 %v16131_v26 }
 0xa65   : > { %3142 = vrot.lane.b32.xlu0 %v15531_v13, %s19781_s27  ;;  %3144 = vrot.lane.b32.xlu1 %v15538_v35, %s19781_s27  ;;  %v13742_v35 = vunpack.i.l.bf16 %v16133_v43 }
 0xa69   : > { %3146 = vrot.lane.b32.xlu0 %v15541_v23, %s19781_s27  ;;  %3148 = vrot.lane.b32.xlu1 %v15548_v17, %s19781_s27  ;;  %v13748_v17 = vunpack.i.h.bf16 %v16145_v53 }
 0xa6d   : > { %3150 = vrot.lane.b32.xlu0 %v15551_v51, %s19781_s27  ;;  %3152 = vrot.lane.b32.xlu1 %v15558_v28, %s19781_s27  ;;  %v13747_v51 = vunpack.i.l.bf16 %v16145_v53 }
 0xa6f   : > { %v12945_v28 = vpack.c.bf16 %v13748_v17, %v13747_v51 }
 0xa71   : > { %3154 = vrot.lane.b32.xlu0 %v15561_v10, %s19781_s27  ;;  %3156 = vrot.lane.b32.xlu1 %v15568_v52, %s19781_s27  ;;  %v13753_v10 = vunpack.i.h.bf16 %v13751_v47  ;;  %v13752_v52 = vunpack.i.l.bf16 %v13751_v47 }
 0xa75   : > { %3158 = vrot.lane.b32.xlu0 %v15571_v1, %s19781_s27  ;;  %3160 = vrot.lane.b32.xlu1 %v15578_v42, %s19781_s27  ;;  %v12951_v1 = vpack.c.bf16 %v13753_v10, %v13752_v52 }
 0xa79   : > { %13770 = vrot.lane.b32.xlu0 %v15362_v12, %s19779_s28  ;;  %13775 = vrot.lane.b32.xlu1 %v15376_v16, %s19779_s28  ;;  %v13737_v12 = vunpack.i.l.bf16 %v16131_v26 }
 0xa7d   : > { %13780 = vrot.lane.b32.xlu0 %v15386_v27, %s19779_s28  ;;  %13785 = vrot.lane.b32.xlu1 %v15396_v34, %s19779_s28  ;;  %v12933_v27 = vpack.c.bf16 %v13738_v8, %v13737_v12  ;;  %v13743_v34 = vunpack.i.h.bf16 %v16133_v43 }
 0xa7f   : > { %v12939_v23 = vpack.c.bf16 %v13743_v34, %v13742_v35 }
 0xa83   : > { %v2876_v30 = vpop.xlane.xlu0 %2875 }
 0xa84   : > { %14322 = vrcp.f32 %v2876_v30  ;;  %v2874_v33 = vpop.xlane.xlu1 %2873 }
 0xa85   : > { %14324 = vrcp.f32 %v2874_v33 }
 0xa87   : > { %v13761_v26 = vpop.permute.xlu0 %13760 }
 0xa88   : > { %v13756_v42 = vpop.permute.xlu1 %13755  ;;  %v13763_v43 = vunpack.i.h.bf16 %v13761_v26  ;;  %v13762_v53 = vunpack.i.l.bf16 %v13761_v26 }
 0xa8a   : > { %v12963_v5 = vpack.c.bf16 %v13763_v43, %v13762_v53 }
 0xa8e   : > { %v14323_v6 = vpop.eup %14322 }
 0xa8f   : > { %v14325_v7 = vpop.eup %14324  ;;  %v2922_v16 = vmul.f32 %v14323_v6, %v16135_v21 }
 0xa90   : > { %v2921_v13 = vmul.f32 %v14325_v7, %v16137_v59  ;;  %v13757_v59 = vunpack.i.l.bf16 %v13756_v42 }
 0xa92   : > { %11788 = vmatprep.mubr.f32.mxu1 %v2921_v13 }
 0xa93   : > { %11789 = vmatmul.mubr.f32.vlgmr.msra.gmra.mrb[48].mxu1 %v2922_v16 }
 0xa94   : > { %12932 = vmatpush3.bf16.xpose.msk.msra.mxu1 %vm15464_vm4, %v16063_v20  ;;  %v13758_v20 = vunpack.i.h.bf16 %v13756_v42 }
 0xa95   : > { %12935 = vmatprep.subr.msk.bf16.mxu1 %vm15464_vm4, %v12933_v27 }
 0xa96   : > { %v12957_v21 = vpack.c.bf16 %v13758_v20, %v13757_v59 }
 0xa9c   : > { %12938 = vmatpush3.bf16.xpose.msk.msra.mxu1 %vm15464_vm4, %v12933_v27 }
 0xa9d   : > { %12941 = vmatprep.subr.msk.bf16.mxu1 %vm15464_vm4, %v12939_v23 }
 0xaa4   : > { %12944 = vmatpush3.bf16.xpose.msk.msra.mxu1 %vm15464_vm4, %v12939_v23 }
 0xaa5   : > { %12947 = vmatprep.subr.msk.bf16.mxu1 %vm15464_vm4, %v12945_v28 }
 0xaac   : > { %12950 = vmatpush3.bf16.xpose.msk.msra.mxu1 %vm15464_vm4, %v12945_v28 }
 0xaad   : > { %12953 = vmatprep.subr.msk.bf16.mxu1 %vm15464_vm4, %v12951_v1 }
 0xab4   : > { %12956 = vmatpush3.bf16.xpose.msk.msra.mxu1 %vm15464_vm4, %v12951_v1 }
 0xab5   : > { %12959 = vmatprep.subr.msk.bf16.mxu1 %vm15464_vm4, %v12957_v21 }
 0xab8   : > { %v2878_v0 = vpop.xlane.xlu0 %2877 }
 0xab9   : > { %14326 = vrcp.f32 %v2878_v0  ;;  %v2880_v9 = vpop.xlane.xlu1 %2879 }
 0xaba   : > { %14328 = vrcp.f32 %v2880_v9 }
 0xabc   : > { %12962 = vmatpush3.bf16.xpose.msk.msra.mxu1 %vm15464_vm4, %v12957_v21  ;;  %v2884_v29 = vpop.xlane.xlu0 %2883 }
 0xabd   : > { %12965 = vmatprep.subr.msk.bf16.mxu1 %vm15464_vm4, %v12963_v5  ;;  %v2888_v38 = vpop.xlane.xlu1 %2887  ;;  %14330 = vrcp.f32 %v2884_v29 }
 0xac0   : > { %v2882_v18 = vpop.xlane.xlu0 %2881 }
 0xac1   : > { %14332 = vrcp.f32 %v2882_v18  ;;  %v2886_v32 = vpop.xlane.xlu1 %2885 }
 0xac2   : > { %14334 = vrcp.f32 %v2886_v32 }
 0xac3   : > { %v14327_v14 = vpop.eup %14326  ;;  %14336 = vrcp.f32 %v2888_v38 }
 0xac4   : > { %v14329_v24 = vpop.eup %14328  ;;  %12968 = vmatpush3.bf16.xpose.msk.msra.mxu1 %vm15464_vm4, %v12963_v5  ;;  %v2894_v11 = vpop.xlane.xlu0 %2893  ;;  %v2923_v61 = vmul.f32 %v14327_v14, %v16151_v25 }
 0xac5   : > { %v2892_v46 = vpop.xlane.xlu1 %2891  ;;  %v2924_v62 = vmul.f32 %v14329_v24, %v16153_v31  ;;  %14338 = vrcp.f32 %v2894_v11 }
 0xac6   : > { %11791 = vmatprep.mubr.f32.mxu1 %v2923_v61  ;;  %14340 = vrcp.f32 %v2892_v46 }
 0xac7   : > { %11792 = vmatmul.mubr.f32.gmra.mrb[50].mxu1 %v2924_v62  ;;  %v14331_v36 = vpop.eup %14330 }
 0xac8   : > { %v2900_v50 = vpop.xlane.xlu0 %2899  ;;  %v2926_v25 = vmul.f32 %v14331_v36, %v16159_v49 }
 0xac9   : > { %v2890_v40 = vpop.xlane.xlu1 %2889 }
 0xaca   : > { %14342 = vrcp.f32 %v2890_v40 }
 0xacb   : > { %v14333_v45 = vpop.eup %14332 }
 0xacc   : > { %v14335_v60 = vpop.eup %14334  ;;  %v2898_v54 = vpop.xlane.xlu0 %2897  ;;  %v2925_v47 = vmul.f32 %v14333_v45, %v16167_v44 }
 0xacd   : > { %14344 = vrcp.f32 %v2898_v54  ;;  %v2896_v30 = vpop.xlane.xlu1 %2895  ;;  %v2927_v33 = vmul.f32 %v14335_v60, %v16169_v4  ;;  %v14337_v31 = vpop.eup %14336 }
 0xace   : > { %14346 = vrcp.f32 %v2896_v30  ;;  %11794 = vmatprep.mubr.f32.mxu1 %v2925_v47  ;;  %v2928_v13 = vmul.f32 %v14337_v31, %v16162_v37 }
 0xacf   : > { %11795 = vmatmul.mubr.f32.gmra.mrb[52].mxu1 %v2926_v25  ;;  %14348 = vrcp.f32 %v2900_v50  ;;  %v14339_v16 = vpop.eup %14338 }
 0xad0   : > { %11797 = vmatprep.mubr.f32.mxu1 %v2927_v33  ;;  %v13766_v6 = vpop.permute.xlu0 %13765  ;;  %v14341_v44 = vpop.eup %14340  ;;  %v2931_v17 = vmul.f32 %v14339_v16, %v16174_v48 }
 0xad1   : > { %v13768_v7 = vunpack.i.h.bf16 %v13766_v6  ;;  %v13767_v8 = vunpack.i.l.bf16 %v13766_v6  ;;  %v2904_v12 = vpop.xlane.xlu1 %2903  ;;  %v2930_v23 = vmul.f32 %v14341_v44, %v16176_v55 }
 0xad2   : > { %14350 = vrcp.f32 %v2904_v12 }
 0xad3   : > { %v12969_v27 = vpack.c.bf16 %v13768_v7, %v13767_v8  ;;  %11798 = vmatmul.mubr.f32.gmra.mrb[54].mxu1 %v2928_v13 }
 0xad4   : > { %v14343_v34 = vpop.eup %14342  ;;  %v3131_v49 = vpop.permute.xlu0 %3130 }
 0xad5   : > { %v2902_v4 = vpop.xlane.xlu1 %2901  ;;  %12971 = vmatprep.subr.msk.bf16.mxu1 %vm15464_vm4, %v12969_v27  ;;  %v2929_v35 = vmul.f32 %v14343_v34, %v16182_v57 }
 0xad6   : > { %14352 = vrcp.f32 %v2902_v4  ;;  %12974 = vmatpush3.bf16.xpose.msk.msra.mxu1 %vm15464_vm4, %v12969_v27 }
 0xad7   : > { %v14345_v37 = vpop.eup %14344  ;;  %11800 = vmatprep.mubr.f32.mxu1 %v2929_v35 }
 0xad8   : > { %v14347_v51 = vpop.eup %14346  ;;  %11801 = vmatmul.mubr.f32.gmra.mrb[56].mxu1 %v2930_v23  ;;  %v3135_v28 = vpop.permute.xlu0 %3134  ;;  %v2933_v57 = vmul.f32 %v14345_v37, %v16186_v19 }
 0xad9   : > { %v3133_v10 = vpop.permute.xlu1 %3132  ;;  %11803 = vmatprep.mubr.f32.mxu1 %v2931_v17  ;;  %v2932_v52 = vmul.f32 %v14347_v51, %v16188_v15  ;;  %v14349_v1 = vpop.eup %14348 }
 0xada   : > { %v2934_v55 = vmul.f32 %v14349_v1, %v16180_v3 }
 0xadc   : > { %11804 = vmatmul.mubr.f32.gmra.mrb[58].mxu1 %v2932_v52  ;;  %v3139_v42 = vpop.permute.xlu0 %3138  ;;  %v14351_v59 = vpop.eup %14350 }
 0xadd   : > { %v3137_v20 = vpop.permute.xlu1 %3136  ;;  %11806 = vmatprep.mubr.f32.mxu1 %v2933_v57  ;;  %v2936_v53 = vmul.f32 %v14351_v59, %v16192_v39 }
 0xae0   : > { %v14353_v21 = vpop.eup %14352  ;;  %11807 = vmatmul.mubr.f32.gmra.mrb[60].mxu1 %v2934_v55  ;;  %v3143_v48 = vpop.permute.xlu0 %3142 }
 0xae1   : > { %v3141_v26 = vpop.permute.xlu1 %3140  ;;  %v2935_v43 = vmul.f32 %v14353_v21, %v16195_v56 }
 0xae3   : > { %11809 = vmatprep.mubr.f32.mxu1 %v2935_v43 }
 0xae4   : > { %11810 = vmatmul.mubr.f32.gmra.mrb[62].mxu1 %v2936_v53  ;;  %v3147_v15 = vpop.permute.xlu0 %3146 }
 0xae5   : > { %v3145_v0 = vpop.permute.xlu1 %3144  ;;  %11844 = vmatprep.mubr.msk.f32.mxu1 %vm1347_vm3, %v3131_v49 }
 0xae8   : > { %v3151_v19 = vpop.permute.xlu0 %3150  ;;  %11845 = vmatmul.mubr.msk.f32.vlgmr.msra.gmra.mrb[64].mxu1 %vm1347_vm3, %v3133_v10 }
 0xae9   : > { %v3149_v9 = vpop.permute.xlu1 %3148  ;;  %11847 = vmatprep.mubr.msk.f32.mxu1 %vm1347_vm3, %v3135_v28 }
 0xaec   : > { %v3155_v3 = vpop.permute.xlu0 %3154  ;;  %11848 = vmatmul.mubr.msk.f32.gmra.mrb[66].mxu1 %vm1347_vm3, %v3137_v20 }
 0xaed   : > { %v3153_v5 = vpop.permute.xlu1 %3152  ;;  %11850 = vmatprep.mubr.msk.f32.mxu1 %vm1347_vm3, %v3139_v42 }
 0xaf0   : > { %v3159_v56 = vpop.permute.xlu0 %3158  ;;  %11851 = vmatmul.mubr.msk.f32.gmra.mrb[68].mxu1 %vm1347_vm3, %v3141_v26 }
 0xaf1   : > { %v3157_v39 = vpop.permute.xlu1 %3156  ;;  %11853 = vmatprep.mubr.msk.f32.mxu1 %vm1347_vm3, %v3143_v48 }
 0xaf4   : > { %v13771_v29 = vpop.permute.xlu0 %13770  ;;  %11854 = vmatmul.mubr.msk.f32.gmra.mrb[70].mxu1 %vm1347_vm3, %v3145_v0 }
 0xaf5   : > { %v13773_v38 = vunpack.i.h.bf16 %v13771_v29  ;;  %v13772_v18 = vunpack.i.l.bf16 %v13771_v29  ;;  %v3161_v32 = vpop.permute.xlu1 %3160  ;;  %11856 = vmatprep.mubr.msk.f32.mxu1 %vm1347_vm3, %v3147_v15 }
 0xaf7   : > { %v12975_v14 = vpack.c.bf16 %v13773_v38, %v13772_v18 }
 0xaf8   : > { %v13781_v24 = vpop.permute.xlu0 %13780  ;;  %11857 = vmatmul.mubr.msk.f32.gmra.mrb[72].mxu1 %vm1347_vm3, %v3149_v9 }
 0xaf9   : > { %v13776_v11 = vpop.permute.xlu1 %13775  ;;  %11859 = vmatprep.mubr.msk.f32.mxu1 %vm1347_vm3, %v3151_v19  ;;  %12976 = vmatprep.subr.bf16.mxu0 %v12975_v14  ;;  %v13783_v61 = vunpack.i.h.bf16 %v13781_v24  ;;  %v13782_v46 = vunpack.i.l.bf16 %v13781_v24 }
 0xafa   : > { %v13778_v62 = vunpack.i.h.bf16 %v13776_v11  ;;  %v13777_v50 = vunpack.i.l.bf16 %v13776_v11  ;;  %12978 = vmatpush3.bf16.msra.mxu0 %v12975_v14 }
 0xafb   : > { %v12983_v54 = vpack.c.bf16 %v13783_v61, %v13782_v46 }
 0xafc   : > { %11860 = vmatmul.mubr.msk.f32.gmra.mrb[74].mxu1 %vm1347_vm3, %v3153_v5  ;;  %v12979_v40 = vpack.c.bf16 %v13778_v62, %v13777_v50 }
 0xafd   : > { %v13786_v36 = vpop.permute.xlu1 %13785  ;;  %11862 = vmatprep.mubr.msk.f32.mxu1 %vm1347_vm3, %v3155_v3 }
 0xafe   : > { %v13788_v45 = vunpack.i.h.bf16 %v13786_v36  ;;  %v13787_v60 = vunpack.i.l.bf16 %v13786_v36  ;;  %12980 = vmatprep.subr.bf16.mxu0 %v12979_v40 }
 0xaff   : > { %12982 = vmatpush3.bf16.msra.mxu0 %v12979_v40 }
 0xb00   : > { %11863 = vmatmul.mubr.msk.f32.gmra.mrb[76].mxu1 %vm1347_vm3, %v3157_v39  ;;  %12984 = vmatprep.subr.bf16.mxu0 %v12983_v54  ;;  %v12987_v47 = vpack.c.bf16 %v13788_v45, %v13787_v60 }
 0xb01   : > { %11865 = vmatprep.mubr.msk.f32.mxu1 %vm1347_vm3, %v3159_v56 }
 0xb03   : > { %12986 = vmatpush3.bf16.msra.mxu0 %v12983_v54 }
 0xb04   : > { %11866 = vmatmul.mubr.msk.f32.gmra.mrb[78].mxu1 %vm1347_vm3, %v3161_v32  ;;  %12988 = vmatprep.subr.bf16.mxu0 %v12987_v47 }
 0xb07   : > { %12990 = vmatpush3.bf16.msra.mxu0 %v12987_v47 }
 0xb66   : > { %v16309_v30 = vpop.f32.mrb[48].mxu1 }
 0xb67   : > { %v16311_v25 = vpop.f32.mrb[49].mxu1 }
 0xb9a   : > { %v16313_v33 = vpop.f32.mrb[50].mxu1 }
 0xb9b   : > { %v16315_v31 = vpop.f32.mrb[51].mxu1 }
 0xba2   : > { %v16317_v6 = vpop.f32.mrb[52].mxu1 }
 0xba3   : > { %v16319_v7 = vpop.f32.mrb[53].mxu1 }
 0xba6   : > { %v16321_v8 = vpop.f32.mrb[54].mxu1 }
 0xba7   : > { %v16323_v12 = vpop.f32.mrb[55].mxu1 }
 0xbab   : > { %v16325_v13 = vpop.f32.mrb[56].mxu1 }
 0xbac   : > { %v16327_v16 = vpop.f32.mrb[57].mxu1 }
 0xbaf   : > { %v16329_v44 = vpop.f32.mrb[58].mxu1 }
 0xbb0   : > { %v16331_v27 = vpop.f32.mrb[59].mxu1 }
 0xbb3   : > { %v16333_v34 = vpop.f32.mrb[60].mxu1 }
 0xbb4   : > { %v16335_v49 = vpop.f32.mrb[61].mxu1 }
 0xbb7   : > { %v16337_v4 = vpop.f32.mrb[62].mxu1 }
 0xbb8   : > { %v16339_v35 = vpop.f32.mrb[63].mxu1 }
 0xbbb   : > { %v11846_v23 = vpop.f32.mrb[64].mxu1 }
 0xbbc   : > { %3405 = vmax.xlane.f32.xlu1 %v11846_v23  ;;  %v3324_v37 = vpop.f32.mrb[65].mxu1 }
 0xbbd   : > { %3403 = vmax.xlane.f32.xlu0 %v3324_v37 }
 0xbbf   : > { %v11849_v17 = vpop.f32.mrb[66].mxu1 }
 0xbc0   : > { %v3334_v51 = vpop.f32.mrb[67].mxu1 }
 0xbc1   : > { %3409 = vmax.xlane.f32.xlu0 %v11849_v17 }
 0xbc3   : > { %v11852_v28 = vpop.f32.mrb[68].mxu1 }
 0xbc4   : > { %3413 = vmax.xlane.f32.xlu1 %v11852_v28  ;;  %v3344_v10 = vpop.f32.mrb[69].mxu1 }
 0xbc5   : > { %3407 = vmax.xlane.f32.xlu0 %v3334_v51 }
 0xbc7   : > { %v16341_v52 = vpop.f32.mrb[70].mxu1 }
 0xbc8   : > { %3417 = vmax.xlane.f32.xlu1 %v16341_v52  ;;  %v16344_v1 = vpop.f32.mrb[71].mxu1 }
 0xbc9   : > { %3411 = vmax.xlane.f32.xlu0 %v3344_v10 }
 0xbcb   : > { %v16346_v57 = vpop.f32.mrb[72].mxu1 }
 0xbcc   : > { %3421 = vmax.xlane.f32.xlu1 %v16346_v57  ;;  %v16349_v42 = vpop.f32.mrb[73].mxu1 }
 0xbcd   : > { %3415 = vmax.xlane.f32.xlu0 %v16344_v1 }
 0xbcf   : > { %v16352_v20 = vpop.f32.mrb[74].mxu1 }
 0xbd0   : > { %v16354_v55 = vpop.f32.mrb[75].mxu1 }
 0xbd1   : > { %3419 = vmax.xlane.f32.xlu0 %v16349_v42 }
 0xbd3   : > { %v16357_v59 = vpop.f32.mrb[76].mxu1 }
 0xbd4   : > { %v16359_v21 = vpop.f32.mrb[77].mxu1 }
 0xbd7   : > { %v16361_v48 = vpop.f32.mrb[78].mxu1 }
 0xbd8   : > { %v16363_v26 = vpop.f32.mrb[79].mxu1 }
 0xbdd   : > { %13795 = vrot.lane.b32.xlu1 %v15416_v2, %s19779_s28 }
 0xbe7   : > { %13790 = vrot.lane.b32.xlu0 %v15406_v41, %s19779_s28 }
 0xc01   : > { %3425 = vmax.xlane.f32.xlu1 %v16352_v20 }
 0xc05   : > { %3429 = vmax.xlane.f32.xlu1 %v16357_v59 }
 0xc06   : > { %3423 = vmax.xlane.f32.xlu0 %v16354_v55 }
 0xc09   : > { %3433 = vmax.xlane.f32.xlu1 %v16361_v48 }
 0xc0a   : > { %3427 = vmax.xlane.f32.xlu0 %v16359_v21 }
 0xc0e   : > { %3431 = vmax.xlane.f32.xlu0 %v16363_v26 }
 0xc49   : > { %v3406_v43 = vpop.xlane.xlu1 %3405 }
 0xc4a   : > { %v3436_v53 = vsub.f32 %v11846_v23, %v3406_v43  ;;  %v3404_v15 = vpop.xlane.xlu0 %3403 }
 0xc4b   : > { %v3435_v0 = vsub.f32 %v3324_v37, %v3404_v15 }
 0xc4c   : > { %v3453_v2 = vmul.f32 1.442695, %v3436_v53 }
 0xc4d   : > { %v3451_v19 = vmul.f32 1.442695, %v3435_v0 }
 0xc4e   : > { %14354 = vpow2.f32 %v3453_v2  ;;  %v3410_v41 = vpop.xlane.xlu0 %3409 }
 0xc4f   : > { %14356 = vpow2.f32 %v3451_v19  ;;  %v3438_v9 = vsub.f32 %v11849_v17, %v3410_v41 }
 0xc51   : > { %v3457_v3 = vmul.f32 1.442695, %v3438_v9  ;;  %v3414_v5 = vpop.xlane.xlu1 %3413 }
 0xc52   : > { %v3440_v56 = vsub.f32 %v11852_v28, %v3414_v5  ;;  %v3408_v39 = vpop.xlane.xlu0 %3407 }
 0xc53   : > { %14358 = vpow2.f32 %v3457_v3  ;;  %v3437_v29 = vsub.f32 %v3334_v51, %v3408_v39 }
 0xc54   : > { %v3461_v38 = vmul.f32 1.442695, %v3440_v56 }
 0xc55   : > { %v3455_v18 = vmul.f32 1.442695, %v3437_v29  ;;  %v3418_v32 = vpop.xlane.xlu1 %3417 }
 0xc56   : > { %14360 = vpow2.f32 %v3461_v38  ;;  %v3412_v14 = vpop.xlane.xlu0 %3411  ;;  %v3442_v53 = vsub.f32 %v16341_v52, %v3418_v32 }
 0xc57   : > { %14362 = vpow2.f32 %v3455_v18  ;;  %v3439_v24 = vsub.f32 %v3344_v10, %v3412_v14 }
 0xc58   : > { %v16375_v11 = vpop.eup %14354  ;;  %v3465_v0 = vmul.f32 1.442695, %v3442_v53 }
 0xc59   : > { %v16377_v61 = vpop.eup %14356  ;;  %v3459_v46 = vmul.f32 1.442695, %v3439_v24  ;;  %3485 = vadd.xlane.f32.xlu0 %v16375_v11  ;;  %v3422_v62 = vpop.xlane.xlu1 %3421 }
 0xc5a   : > { %v3416_v50 = vpop.xlane.xlu0 %3415  ;;  %3483 = vadd.xlane.f32.xlu1 %v16377_v61  ;;  %v3444_v41 = vsub.f32 %v16346_v57, %v3422_v62 }
 0xc5b   : > { %14364 = vpow2.f32 %v3459_v46  ;;  %v3441_v15 = vsub.f32 %v16344_v1, %v3416_v50 }
 0xc5c   : > { %14366 = vpow2.f32 %v3465_v0 }
 0xc5d   : > { %v16381_v40 = vpop.eup %14358  ;;  %v13796_v60 = vpop.permute.xlu1 %13795  ;;  %v3463_v19 = vmul.f32 1.442695, %v3441_v15 }
 0xc5e   : > { %v3420_v36 = vpop.xlane.xlu0 %3419  ;;  %3489 = vadd.xlane.f32.xlu0 %v16381_v40  ;;  %v13798_v23 = vunpack.i.h.bf16 %v13796_v60  ;;  %v13797_v37 = vunpack.i.l.bf16 %v13796_v60 }
 0xc5f   : > { %v3443_v2 = vsub.f32 %v16349_v42, %v3420_v36  ;;  %14368 = vpow2.f32 %v3463_v19 }
 0xc60   : > { %v16384_v45 = vpop.eup %14360  ;;  %v12995_v43 = vpack.c.bf16 %v13798_v23, %v13797_v37  ;;  %v19884_v37 = vld [vmem:[#allocation35_spill] sm:$0xff] }
 0xc61   : > { %v16386_v54 = vpop.eup %14362  ;;  %v3467_v9 = vmul.f32 1.442695, %v3443_v2 }
 0xc62   : > { %v13791_v47 = vpop.permute.xlu0 %13790  ;;  %3487 = vadd.xlane.f32.xlu1 %v16386_v54  ;;  %3493 = vadd.xlane.f32.xlu0 %v16384_v45 }
 0xc63   : > { %v13793_v17 = vunpack.i.h.bf16 %v13791_v47  ;;  %v13792_v51 = vunpack.i.l.bf16 %v13791_v47  ;;  %14370 = vpow2.f32 %v3467_v9 }
 0xc65   : > { %v16390_v28 = vpop.eup %14364  ;;  %v12991_v10 = vpack.c.bf16 %v13793_v17, %v13792_v51  ;;  %v19885_v17 = vld [vmem:[#allocation36_spill] sm:$0xff]  ;;  %v19886_v51 = vld [vmem:[#allocation38_spill] sm:$0xff] }
 0xc66   : > { %3491 = vadd.xlane.f32.xlu1 %v16390_v28  ;;  %v16404_v42 = vpop.eup %14366 }
 0xc67   : > { %12992 = vmatprep.subr.bf16.mxu0 %v12991_v10 }
 0xc68   : > { %12994 = vmatpush3.bf16.msra.mxu0 %v12991_v10  ;;  %v19887_v10 = vld [vmem:[#allocation37_spill] sm:$0xff] }
 0xc69   : > { %12996 = vmatprep.subr.bf16.mxu0 %v12995_v43  ;;  %v16409_v14 = vpop.eup %14368 }
 0xc6c   : > { %12998 = vmatpush3.bf16.msra.mxu0 %v12995_v43  ;;  %v19889_v43 = vld [vmem:[#allocation39_spill] sm:$0xff] }
 0xc77   : > { %13805 = vrot.lane.b32.xlu1 %v15436_v63, %s19779_s28  ;;  %v3469_v63 = vmul.f32 1.442695, %v3444_v41 }
 0xc78   : > { %13800 = vrot.lane.b32.xlu0 %v15426_v58, %s19779_s28  ;;  %s14950_s28 = smov 16  }
 0xc79   : > { %14372 = vpow2.f32 %v3469_v63 }
 0xc8e   : > { %v3426_v3 = vpop.xlane.xlu1 %3425 }
 0xc8f   : > { %v3446_v5 = vsub.f32 %v16352_v20, %v3426_v3 }
 0xc91   : > { %v3473_v58 = vmul.f32 1.442695, %v3446_v5 }
 0xc92   : > { %v3430_v56 = vpop.xlane.xlu1 %3429 }
 0xc93   : > { %v3448_v52 = vsub.f32 %v16357_v59, %v3430_v56  ;;  %v3424_v39 = vpop.xlane.xlu0 %3423  ;;  %14374 = vpow2.f32 %v3473_v58  ;;  %v16411_v59 = vpop.eup %14370 }
 0xc94   : > { %v3445_v1 = vsub.f32 %v16354_v55, %v3424_v39  ;;  %v16416_v62 = vpop.eup %14372 }
 0xc95   : > { %v3477_v57 = vmul.f32 1.442695, %v3448_v52 }
 0xc96   : > { %v3471_v29 = vmul.f32 1.442695, %v3445_v1  ;;  %v3434_v38 = vpop.xlane.xlu1 %3433 }
 0xc97   : > { %v3450_v18 = vsub.f32 %v16361_v48, %v3434_v38  ;;  %v3428_v32 = vpop.xlane.xlu0 %3427  ;;  %3497 = vadd.xlane.f32.xlu0 %v16404_v42 }
 0xc98   : > { %14376 = vpow2.f32 %v3471_v29  ;;  %v3447_v20 = vsub.f32 %v16359_v21, %v3428_v32 }
 0xc99   : > { %14378 = vpow2.f32 %v3477_v57  ;;  %v3481_v55 = vmul.f32 1.442695, %v3450_v18 }
 0xc9a   : > { %v3475_v24 = vmul.f32 1.442695, %v3447_v20 }
 0xc9b   : > { %3495 = vadd.xlane.f32.xlu1 %v16409_v14  ;;  %3499 = vadd.xlane.f32.xlu0 %v16411_v59  ;;  %v3432_v46 = vpop.xlane.xlu0 %3431 }
 0xc9c   : > { %14380 = vpow2.f32 %v3475_v24  ;;  %v3449_v48 = vsub.f32 %v16363_v26, %v3432_v46 }
 0xc9d   : > { %14382 = vpow2.f32 %v3481_v55  ;;  %v16419_v21 = vpop.eup %14374 }
 0xc9e   : > { %v3479_v50 = vmul.f32 1.442695, %v3449_v48 }
 0xc9f   : > { %3501 = vadd.xlane.f32.xlu1 %v16416_v62 }
 0xca0   : > { %14384 = vpow2.f32 %v3479_v50 }
 0xca2   : > { %v16421_v36 = vpop.eup %14376 }
 0xca3   : > { %3505 = vadd.xlane.f32.xlu1 %v16419_v21  ;;  %3503 = vadd.xlane.f32.xlu0 %v16421_v36  ;;  %v16425_v60 = vpop.eup %14378 }
 0xca6   : > { %v16427_v47 = vpop.eup %14380 }
 0xca7   : > { %3509 = vadd.xlane.f32.xlu1 %v16425_v60  ;;  %3507 = vadd.xlane.f32.xlu0 %v16427_v47  ;;  %v16431_v26 = vpop.eup %14382 }
 0xcaa   : > { %v16433_v23 = vpop.eup %14384 }
 0xcab   : > { %3513 = vadd.xlane.f32.xlu1 %v16431_v26  ;;  %3511 = vadd.xlane.f32.xlu0 %v16433_v23 }
 0xcbc   : > { %3758 = vrot.lane.b32.xlu1 %v19884_v37, %s14949_s29 }
 0xcc0   : > { %3820 = vrot.lane.b32.xlu1 %v16311_v25, %s14950_s28  ;;  %v19888_v25 = vld [vmem:[#allocation40_spill] sm:$0xff] }
 0xcc1   : > { %3756 = vrot.lane.b32.xlu0 %v19885_v17, %s14949_s29 }
 0xcc4   : > { %3822 = vrot.lane.b32.xlu1 %v16309_v30, %s14950_s28  ;;  %v19890_v30 = vld [vmem:[#allocation42_spill] sm:$0xff] }
 0xcc5   : > { %3760 = vrot.lane.b32.xlu0 %v19886_v51, %s14949_s29 }
 0xcc8   : > { %3762 = vrot.lane.b32.xlu1 %v19887_v10, %s14949_s29 }
 0xcc9   : > { %3824 = vrot.lane.b32.xlu0 %v16315_v31, %s14950_s28  ;;  %v19891_v31 = vld [vmem:[#allocation41_spill] sm:$0xff] }
 0xccc   : > { %3826 = vrot.lane.b32.xlu1 %v16313_v33, %s14950_s28  ;;  %v19892_v33 = vld [vmem:[#allocation44_spill] sm:$0xff] }
 0xccd   : > { %3764 = vrot.lane.b32.xlu0 %v19888_v25, %s14949_s29 }
 0xcd0   : > { %3766 = vrot.lane.b32.xlu1 %v19889_v43, %s14949_s29 }
 0xcd1   : > { %3828 = vrot.lane.b32.xlu0 %v16319_v7, %s14950_s28  ;;  %v19893_v7 = vld [vmem:[#allocation43_spill] sm:$0xff] }
 0xcd4   : > { %3830 = vrot.lane.b32.xlu1 %v16317_v6, %s14950_s28 }
 0xcd5   : > { %3768 = vrot.lane.b32.xlu0 %v19890_v30, %s14949_s29 }
 0xcd8   : > { %3770 = vrot.lane.b32.xlu1 %v19891_v31, %s14949_s29 }
 0xcd9   : > { %3832 = vrot.lane.b32.xlu0 %v16323_v12, %s14950_s28 }
 0xcdc   : > { %3834 = vrot.lane.b32.xlu1 %v16321_v8, %s14950_s28 }
 0xcdd   : > { %3772 = vrot.lane.b32.xlu0 %v19892_v33, %s14949_s29 }
 0xce0   : > { %3774 = vrot.lane.b32.xlu1 %v19893_v7, %s14949_s29 }
 0xce6   : > { %v3486_v53 = vpop.xlane.xlu0 %3485 }
 0xce7   : > { %v3484_v6 = vpop.xlane.xlu1 %3483 }
 0xce8   : > { %14386 = vrcp.f32 %v3484_v6 }
 0xce9   : > { %14388 = vrcp.f32 %v3486_v53 }
 0xceb   : > { %v3490_v15 = vpop.xlane.xlu0 %3489 }
 0xcef   : > { %v3488_v0 = vpop.xlane.xlu1 %3487  ;;  %v3494_v2 = vpop.xlane.xlu0 %3493 }
 0xcf0   : > { %14390 = vrcp.f32 %v3488_v0 }
 0xcf1   : > { %14392 = vrcp.f32 %v3490_v15 }
 0xcf2   : > { %v14387_v19 = vpop.eup %14386 }
 0xcf3   : > { %v3492_v41 = vpop.xlane.xlu1 %3491  ;;  %v13801_v12 = vpop.permute.xlu0 %13800  ;;  %v3531_v9 = vmul.f32 %v14387_v19, %v16377_v61 }
 0xcf4   : > { %v13803_v8 = vunpack.i.h.bf16 %v13801_v12  ;;  %v13802_v3 = vunpack.i.l.bf16 %v13801_v12  ;;  %14394 = vrcp.f32 %v3492_v41  ;;  %v14389_v39 = vpop.eup %14388 }
 0xcf5   : > { %11900 = vmatprep.mubr.f32.mxu0 %v3531_v9  ;;  %14396 = vrcp.f32 %v3494_v2  ;;  %v3532_v29 = vmul.f32 %v14389_v39, %v16375_v11 }
 0xcf6   : > { %v12999_v5 = vpack.c.bf16 %v13803_v8, %v13802_v3 }
 0xcf7   : > { %v13806_v63 = vpop.permute.xlu1 %13805 }
 0xcf8   : > { %v13808_v56 = vunpack.i.h.bf16 %v13806_v63  ;;  %v13807_v58 = vunpack.i.l.bf16 %v13806_v63  ;;  %13000 = vmatprep.subr.bf16.mxu0 %v12999_v5 }
 0xcf9   : > { %13002 = vmatpush3.bf16.msra.mxu0 %v12999_v5 }
 0xcfa   : > { %v13003_v52 = vpack.c.bf16 %v13808_v56, %v13807_v58  ;;  %v14391_v1 = vpop.eup %14390  ;;  %v19894_v56 = vld [vmem:[#allocation45_spill] sm:$0xff]  ;;  %v19895_v58 = vld [vmem:[#allocation46_spill] sm:$0xff] }
 0xcfb   : > { %v14393_v61 = vpop.eup %14392  ;;  %v3533_v38 = vmul.f32 %v14391_v1, %v16386_v54  ;;  %v19896_v1 = vld [vmem:[#allocation47_spill] sm:$0xff] }
 0xcfc   : > { %13004 = vmatprep.subr.bf16.mxu0 %v13003_v52  ;;  %v3534_v18 = vmul.f32 %v14393_v61, %v16381_v40  ;;  %v19897_v61 = vld [vmem:[#allocation48_spill] sm:$0xff] }
 0xcfd   : > { %13006 = vmatpush3.bf16.msra.mxu0 %v13003_v52 }
 0xcfe   : > { %v14395_v57 = vpop.eup %14394 }
 0xcff   : > { %v14397_v32 = vpop.eup %14396  ;;  %v3535_v20 = vmul.f32 %v14395_v57, %v16390_v28 }
 0xd00   : > { %11901 = vmatmul.mubr.f32.vlgmr.msra.gmra.mrb[64].mxu0 %v3532_v29  ;;  %v3536_v24 = vmul.f32 %v14397_v32, %v16384_v45 }
 0xd01   : > { %11903 = vmatprep.mubr.f32.mxu0 %v3533_v38 }
 0xd04   : > { %11904 = vmatmul.mubr.f32.gmra.mrb[66].mxu0 %v3534_v18 }
 0xd05   : > { %11906 = vmatprep.mubr.f32.mxu0 %v3535_v20 }
 0xd08   : > { %11907 = vmatmul.mubr.f32.gmra.mrb[68].mxu0 %v3536_v24 }
 0xd24   : > { %v3498_v55 = vpop.xlane.xlu0 %3497 }
 0xd25   : > { %14398 = vrcp.f32 %v3498_v55 }
 0xd28   : > { %v3496_v46 = vpop.xlane.xlu1 %3495  ;;  %v3500_v11 = vpop.xlane.xlu0 %3499 }
 0xd29   : > { %14400 = vrcp.f32 %v3496_v46 }
 0xd2a   : > { %14402 = vrcp.f32 %v3500_v11 }
 0xd2c   : > { %v3502_v54 = vpop.xlane.xlu1 %3501 }
 0xd2d   : > { %14404 = vrcp.f32 %v3502_v54  ;;  %v19898_v54 = vld [vmem:[#allocation49_spill] sm:$0xff] }
 0xd2f   : > { %v14399_v40 = vpop.eup %14398 }
 0xd30   : > { %v3506_v48 = vpop.xlane.xlu1 %3505  ;;  %v3504_v50 = vpop.xlane.xlu0 %3503  ;;  %v3538_v10 = vmul.f32 %v14399_v40, %v16404_v42 }
 0xd31   : > { %14406 = vrcp.f32 %v3506_v48  ;;  %v19899_v48 = vld [vmem:[#allocation50_spill] sm:$0xff] }
 0xd32   : > { %14408 = vrcp.f32 %v3504_v50 }
 0xd33   : > { %v14401_v37 = vpop.eup %14400 }
 0xd34   : > { %v14403_v28 = vpop.eup %14402  ;;  %v3510_v17 = vpop.xlane.xlu1 %3509  ;;  %v3537_v45 = vmul.f32 %v14401_v37, %v16409_v14 }
 0xd35   : > { %v3508_v51 = vpop.xlane.xlu0 %3507  ;;  %14410 = vrcp.f32 %v3510_v17  ;;  %v3539_v25 = vmul.f32 %v14403_v28, %v16411_v59 }
 0xd36   : > { %14412 = vrcp.f32 %v3508_v51  ;;  %11909 = vmatprep.mubr.f32.mxu0 %v3537_v45 }
 0xd37   : > { %v14405_v43 = vpop.eup %14404  ;;  %11910 = vmatmul.mubr.f32.gmra.mrb[70].mxu0 %v3538_v10 }
 0xd38   : > { %v3514_v30 = vpop.xlane.xlu1 %3513  ;;  %11912 = vmatprep.mubr.f32.mxu0 %v3539_v25  ;;  %v3540_v33 = vmul.f32 %v14405_v43, %v16416_v62 }
 0xd39   : > { %v3512_v31 = vpop.xlane.xlu0 %3511  ;;  %14414 = vrcp.f32 %v3514_v30 }
 0xd3a   : > { %14416 = vrcp.f32 %v3512_v31  ;;  %v19901_v31 = vld [vmem:[#allocation19_spill] sm:$0xff] }
 0xd3b   : > { %v14407_v7 = vpop.eup %14406  ;;  %11913 = vmatmul.mubr.f32.gmra.mrb[72].mxu0 %v3540_v33 }
 0xd3c   : > { %v14409_v53 = vpop.eup %14408  ;;  %v3542_v14 = vmul.f32 %v14407_v7, %v16419_v21  ;;  %v3982_v21 = vld [vmem:[%s19749_s7] sm:$0xff]  ;;  %v3759_v52 = vpop.permute.xlu1 %3758 }
 0xd3d   : > { %v3541_v42 = vmul.f32 %v14409_v53, %v16421_v36  ;;  %v3983_v36 = vld [vmem:[%s19749_s7 + $0x8] sm:$0xff]  ;;  %v3757_v20 = vpop.permute.xlu0 %3756  ;;  %v3933_v33 = vsel %vm1347_vm3, %v19901_v31, %v3759_v52 }
 0xd3f   : > { %v14411_v6 = vpop.eup %14410  ;;  %11915 = vmatprep.mubr.f32.mxu0 %v3541_v42 }
 0xd40   : > { %v14413_v15 = vpop.eup %14412  ;;  %11916 = vmatmul.mubr.f32.gmra.mrb[74].mxu0 %v3542_v14  ;;  %v3544_v59 = vmul.f32 %v14411_v6, %v16425_v60  ;;  %v3984_v60 = vld [vmem:[%s19749_s7 + $0x10] sm:$0xff]  ;;  %v3821_v38 = vpop.permute.xlu1 %3820 }
 0xd41   : > { %v3543_v0 = vmul.f32 %v14413_v15, %v16427_v47  ;;  %v13007_v47 = vpack.c.bf16 %v3983_v36, %v3982_v21  ;;  %v3761_v11 = vpop.permute.xlu0 %3760 }
 0xd43   : > { %v14415_v2 = vpop.eup %14414  ;;  %11918 = vmatprep.mubr.f32.mxu0 %v3543_v0  ;;  %13008 = vmatprep.subr.bf16.mxu0 %v13007_v47  ;;  %v19902_v0 = vld [vmem:[#allocation22_spill] sm:$0xff] }
 0xd44   : > { %v14417_v62 = vpop.eup %14416  ;;  %11919 = vmatmul.mubr.f32.gmra.mrb[76].mxu0 %v3544_v59  ;;  %v3546_v19 = vmul.f32 %v14415_v2, %v16431_v26  ;;  %v3985_v26 = vld [vmem:[%s19749_s7 + $0x18] sm:$0xff]  ;;  %v3823_v18 = vpop.permute.xlu1 %3822  ;;  %v3934_v2 = vsel %vm1347_vm3, %v19902_v0, %v3761_v11  ;;  %v19908_v11 = vld [vmem:[#allocation28_spill] sm:$0xff]  ;;  %v19913_v0 = vld [vmem:[#allocation31_spill] sm:$0xff] }
 0xd45   : > { %v3545_v41 = vmul.f32 %v14417_v62, %v16433_v23  ;;  %v13011_v23 = vpack.c.bf16 %v3985_v26, %v3984_v60  ;;  %13010 = vmatpush3.bf16.msra.mxu0 %v13007_v47  ;;  %v3950_v14 = vsel %vm3948_vm5, %v3933_v33, %v3823_v18 }
 0xd47   : > { %11921 = vmatprep.mubr.f32.mxu0 %v3545_v41  ;;  %13012 = vmatprep.subr.bf16.mxu0 %v13011_v23  ;;  %v19903_v41 = vld [vmem:[#allocation21_spill] sm:$0xff] }
 0xd48   : > { %11922 = vmatmul.mubr.f32.gmra.mrb[78].mxu0 %v3546_v19  ;;  %v3763_v46 = vpop.permute.xlu1 %3762 }
 0xd49   : > { %13014 = vmatpush3.bf16.msra.mxu0 %v13011_v23  ;;  %v3935_v21 = vsel %vm1347_vm3, %v19903_v41, %v3763_v46 }
 0xdd3   : > { %v11902_v12 = vpop.f32.mrb[64].mxu0 }
 0xdd4   : > { %3886 = vrot.lane.b32.xlu1 %v11902_v12, %s19797_s26  ;;  %v3661_v9 = vpop.f32.mrb[65].mxu0 }
 0xdd5   : > { %3884 = vrot.lane.b32.xlu0 %v3661_v9, %s19797_s26  ;;  %v19904_v9 = vld [vmem:[#allocation24_spill] sm:$0xff] }
 0xdd7   : > { %v11905_v8 = vpop.f32.mrb[66].mxu0 }
 0xdd8   : > { %3838 = vrot.lane.b32.xlu1 %v16325_v13, %s14950_s28  ;;  %v3671_v3 = vpop.f32.mrb[67].mxu0 }
 0xdd9   : > { %3836 = vrot.lane.b32.xlu0 %v16327_v16, %s14950_s28 }
 0xddb   : > { %v11908_v5 = vpop.f32.mrb[68].mxu0 }
 0xddc   : > { %3890 = vrot.lane.b32.xlu1 %v11905_v8, %s19797_s26  ;;  %v3681_v63 = vpop.f32.mrb[69].mxu0 }
 0xddd   : > { %3888 = vrot.lane.b32.xlu0 %v3671_v3, %s19797_s26 }
 0xde0   : > { %3778 = vrot.lane.b32.xlu1 %v19894_v56, %s14949_s29 }
 0xde1   : > { %3776 = vrot.lane.b32.xlu0 %v19895_v58, %s14949_s29 }
 0xde4   : > { %3894 = vrot.lane.b32.xlu1 %v11908_v5, %s19797_s26 }
 0xde5   : > { %3892 = vrot.lane.b32.xlu0 %v3681_v63, %s19797_s26  ;;  %v19905_v63 = vld [vmem:[#allocation23_spill] sm:$0xff] }
 0xde8   : > { %3842 = vrot.lane.b32.xlu1 %v16329_v44, %s14950_s28 }
 0xde9   : > { %3840 = vrot.lane.b32.xlu0 %v16331_v27, %s14950_s28 }
 0xe0a   : > { %v11911_v13 = vpop.f32.mrb[70].mxu0 }
 0xe0b   : > { %3898 = vrot.lane.b32.xlu1 %v11911_v13, %s19797_s26  ;;  %v3691_v16 = vpop.f32.mrb[71].mxu0 }
 0xe0c   : > { %3896 = vrot.lane.b32.xlu0 %v3691_v16, %s19797_s26 }
 0xe0e   : > { %v11914_v39 = vpop.f32.mrb[72].mxu0 }
 0xe0f   : > { %3782 = vrot.lane.b32.xlu1 %v19896_v1, %s14949_s29  ;;  %v3701_v29 = vpop.f32.mrb[73].mxu0 }
 0xe10   : > { %3780 = vrot.lane.b32.xlu0 %v19897_v61, %s14949_s29 }
 0xe13   : > { %v11917_v44 = vpop.f32.mrb[74].mxu0  ;;  %3902 = vrot.lane.b32.xlu1 %v11914_v39, %s19797_s26 }
 0xe14   : > { %v3711_v27 = vpop.f32.mrb[75].mxu0  ;;  %3900 = vrot.lane.b32.xlu0 %v3701_v29, %s19797_s26  ;;  %v19906_v29 = vld [vmem:[#allocation26_spill] sm:$0xff] }
 0xe17   : > { %v11920_v57 = vpop.f32.mrb[76].mxu0  ;;  %3846 = vrot.lane.b32.xlu1 %v16333_v34, %s14950_s28  ;;  %v3827_v34 = vpop.permute.xlu1 %3826 }
 0xe18   : > { %v3721_v32 = vpop.f32.mrb[77].mxu0  ;;  %3844 = vrot.lane.b32.xlu0 %v16335_v49, %s14950_s28  ;;  %v3825_v49 = vpop.permute.xlu0 %3824  ;;  %v3952_v60 = vsel %vm3948_vm5, %v3935_v21, %v3827_v34  ;;  %v19909_v34 = vld [vmem:[#allocation27_spill] sm:$0xff] }
 0xe19   : > { %v3951_v19 = vsel %vm3948_vm5, %v3934_v2, %v3825_v49 }
 0xe1b   : > { %v11923_v24 = vpop.f32.mrb[78].mxu0  ;;  %3906 = vrot.lane.b32.xlu1 %v11917_v44, %s19797_s26  ;;  %v3767_v50 = vpop.permute.xlu1 %3766 }
 0xe1c   : > { %v3731_v55 = vpop.f32.mrb[79].mxu0  ;;  %3904 = vrot.lane.b32.xlu0 %v3711_v27, %s19797_s26  ;;  %v3765_v40 = vpop.permute.xlu0 %3764  ;;  %v3937_v56 = vsel %vm1347_vm3, %v19905_v63, %v3767_v50  ;;  %v19907_v27 = vld [vmem:[#allocation25_spill] sm:$0xff] }
 0xe1d   : > { %v3936_v8 = vsel %vm1347_vm3, %v19904_v9, %v3765_v40  ;;  %v19915_v9 = vld [vmem:[#allocation33_spill] sm:$0xff] }
 0xe1f   : > { %3786 = vrot.lane.b32.xlu1 %v19898_v54, %s14949_s29  ;;  %v3831_v37 = vpop.permute.xlu1 %3830 }
 0xe20   : > { %3784 = vrot.lane.b32.xlu0 %v19899_v48, %s14949_s29  ;;  %v3829_v28 = vpop.permute.xlu0 %3828  ;;  %v3954_v13 = vsel %vm3948_vm5, %v3937_v56, %v3831_v37 }
 0xe21   : > { %v3953_v5 = vsel %vm3948_vm5, %v3936_v8, %v3829_v28 }
 0xe23   : > { %3910 = vrot.lane.b32.xlu1 %v11920_v57, %s19797_s26  ;;  %v3771_v17 = vpop.permute.xlu1 %3770 }
 0xe24   : > { %3908 = vrot.lane.b32.xlu0 %v3721_v32, %s19797_s26  ;;  %v3769_v51 = vpop.permute.xlu0 %3768  ;;  %v3939_v57 = vsel %vm1347_vm3, %v19907_v27, %v3771_v17 }
 0xe25   : > { %v3938_v61 = vsel %vm1347_vm3, %v19906_v29, %v3769_v51  ;;  %v19917_v29 = vld [vmem:[#allocation2_spill] sm:$0xff] }
 0xe27   : > { %3850 = vrot.lane.b32.xlu1 %v16337_v4, %s14950_s28  ;;  %v3835_v45 = vpop.permute.xlu1 %3834  ;;  %v19900_v4 = vld [vmem:[#allocation20_spill] sm:$0xff] }
 0xe28   : > { %3848 = vrot.lane.b32.xlu0 %v16339_v35, %s14950_s28  ;;  %v3833_v10 = vpop.permute.xlu0 %3832  ;;  %v3932_v30 = vsel %vm1347_vm3, %v19900_v4, %v3757_v20  ;;  %v3956_v32 = vsel %vm3948_vm5, %v3939_v57, %v3835_v45 }
 0xe29   : > { %v3949_v7 = vsel %vm3948_vm5, %v3932_v30, %v3821_v38  ;;  %v3955_v44 = vsel %vm3948_vm5, %v3938_v61, %v3833_v10  ;;  %v19910_v10 = vld [vmem:[#allocation30_spill] sm:$0xff] }
 0xe2b   : > { %3914 = vrot.lane.b32.xlu1 %v11923_v24, %s19797_s26  ;;  %v3775_v25 = vpop.permute.xlu1 %3774 }
 0xe2c   : > { %3912 = vrot.lane.b32.xlu0 %v3731_v55, %s19797_s26  ;;  %v3773_v43 = vpop.permute.xlu0 %3772  ;;  %v3941_v49 = vsel %vm1347_vm3, %v19909_v34, %v3775_v25  ;;  %v19911_v25 = vld [vmem:[#allocation29_spill] sm:$0xff]  ;;  %s19977_s26 = smov 112  }
 0xe2d   : > { %v3940_v54 = vsel %vm1347_vm3, %v19908_v11, %v3773_v43 }
 0xe46   : > { %v3887_v35 = vpop.permute.xlu1 %3886 }
 0xe47   : > { %v3885_v53 = vpop.permute.xlu0 %3884  ;;  %v3967_v6 = vsel %vm3965_vm6, %v3950_v14, %v3887_v35 }
 0xe48   : > { %v3966_v42 = vsel %vm3965_vm6, %v3949_v7, %v3885_v53 }
 0xe49   : > { %11932 = vmatprep.mubr.msk.f32.mxu0 %vm825_vm2, %v3966_v42 }
 0xe4a   : > { %v3839_v15 = vpop.permute.xlu1 %3838  ;;  %11933 = vmatmul.mubr.msk.f32.vlgmr.msra.gmra.mrb[80].mxu0 %vm825_vm2, %v3967_v6  ;;  %v19912_v6 = vld [vmem:[#allocation32_spill] sm:$0xff] }
 0xe4b   : > { %v3837_v59 = vpop.permute.xlu0 %3836  ;;  %v3958_v37 = vsel %vm3948_vm5, %v3941_v49, %v3839_v15  ;;  %v19920_v49 = vld [vmem:[#allocation6_spill] sm:$0xff] }
 0xe4c   : > { %v3957_v50 = vsel %vm3948_vm5, %v3940_v54, %v3837_v59 }
 0xe4e   : > { %v3891_v62 = vpop.permute.xlu1 %3890 }
 0xe4f   : > { %v3889_v36 = vpop.permute.xlu0 %3888  ;;  %v3969_v26 = vsel %vm3965_vm6, %v3952_v60, %v3891_v62 }
 0xe50   : > { %v3968_v47 = vsel %vm3965_vm6, %v3951_v19, %v3889_v36 }
 0xe51   : > { %11935 = vmatprep.mubr.msk.f32.mxu0 %vm825_vm2, %v3968_v47 }
 0xe52   : > { %v3779_v23 = vpop.permute.xlu1 %3778  ;;  %11936 = vmatmul.mubr.msk.f32.gmra.mrb[82].mxu0 %vm825_vm2, %v3969_v26  ;;  %v19914_v26 = vld [vmem:[#allocation34_spill] sm:$0xff] }
 0xe53   : > { %v3777_v12 = vpop.permute.xlu0 %3776  ;;  %v3943_v30 = vsel %vm1347_vm3, %v19911_v25, %v3779_v23  ;;  %v19922_v25 = vld [vmem:[#allocation8_spill] sm:$0xff] }
 0xe54   : > { %v3942_v43 = vsel %vm1347_vm3, %v19910_v10, %v3777_v12 }
 0xe56   : > { %v3895_v3 = vpop.permute.xlu1 %3894 }
 0xe57   : > { %v3893_v58 = vpop.permute.xlu0 %3892  ;;  %v3971_v52 = vsel %vm3965_vm6, %v3954_v13, %v3895_v3 }
 0xe58   : > { %v3970_v16 = vsel %vm3965_vm6, %v3953_v5, %v3893_v58 }
 0xe59   : > { %11938 = vmatprep.mubr.msk.f32.mxu0 %vm825_vm2, %v3970_v16  ;;  %v16628_v16 = vld [vmem:[%s19750_s8] ss:$0 sm:$0xff] }
 0xe5a   : > { %11939 = vmatmul.mubr.msk.f32.gmra.mrb[84].mxu0 %vm825_vm2, %v3971_v52  ;;  %v3843_v39 = vpop.permute.xlu1 %3842  ;;  %v19916_v52 = vld [vmem:[#allocation3_spill] sm:$0xff] }
 0xe5b   : > { %v3841_v1 = vpop.permute.xlu0 %3840  ;;  %v3960_v33 = vsel %vm3948_vm5, %v3943_v30, %v3843_v39 }
 0xe5c   : > { %v3959_v35 = vsel %vm3948_vm5, %v3942_v43, %v3841_v1 }
 0xe7d   : > { %v3899_v38 = vpop.permute.xlu1 %3898 }
 0xe7e   : > { %v3897_v18 = vpop.permute.xlu0 %3896  ;;  %v3973_v24 = vsel %vm3965_vm6, %v3956_v32, %v3899_v38 }
 0xe7f   : > { %v3972_v20 = vsel %vm3965_vm6, %v3955_v44, %v3897_v18 }
 0xe80   : > { %11941 = vmatprep.mubr.msk.f32.mxu0 %vm825_vm2, %v3972_v20  ;;  %v19918_v20 = vld [vmem:[#allocation4_spill] sm:$0xff] }
 0xe81   : > { %v3783_v55 = vpop.permute.xlu1 %3782  ;;  %11942 = vmatmul.mubr.msk.f32.gmra.mrb[86].mxu0 %vm825_vm2, %v3973_v24 }
 0xe82   : > { %v3781_v46 = vpop.permute.xlu0 %3780  ;;  %v3945_v2 = vsel %vm1347_vm3, %v19913_v0, %v3783_v55  ;;  %v19919_v55 = vld [vmem:[#allocation5_spill] sm:$0xff] }
 0xe83   : > { %v3944_v15 = vsel %vm1347_vm3, %v19912_v6, %v3781_v46 }
 0xe85   : > { %v3903_v48 = vpop.permute.xlu1 %3902 }
 0xe86   : > { %v3901_v40 = vpop.permute.xlu0 %3900  ;;  %v3975_v17 = vsel %vm3965_vm6, %v3958_v37, %v3903_v48  ;;  %v19921_v37 = vld [vmem:[#allocation7_spill] sm:$0xff] }
 0xe87   : > { %v3974_v28 = vsel %vm3965_vm6, %v3957_v50, %v3901_v40 }
 0xe88   : > { %11944 = vmatprep.mubr.msk.f32.mxu0 %vm825_vm2, %v3974_v28 }
 0xe89   : > { %v3847_v51 = vpop.permute.xlu1 %3846  ;;  %11945 = vmatmul.mubr.msk.f32.gmra.mrb[88].mxu0 %vm825_vm2, %v3975_v17 }
 0xe8a   : > { %v3845_v45 = vpop.permute.xlu0 %3844  ;;  %v3962_v41 = vsel %vm3948_vm5, %v3945_v2, %v3847_v51  ;;  %v19925_v2 = vld [vmem:[#allocation11_spill] sm:$0xff] }
 0xe8b   : > { %v3961_v62 = vsel %vm3948_vm5, %v3944_v15, %v3845_v45  ;;  %v19924_v15 = vld [vmem:[#allocation10_spill] sm:$0xff] }
 0xe8d   : > { %v3907_v4 = vpop.permute.xlu1 %3906 }
 0xe8e   : > { %v3905_v31 = vpop.permute.xlu0 %3904  ;;  %v3977_v53 = vsel %vm3965_vm6, %v3960_v33, %v3907_v4 }
 0xe8f   : > { %v3976_v7 = vsel %vm3965_vm6, %v3959_v35, %v3905_v31  ;;  %v19923_v31 = vld [vmem:[#allocation9_spill] sm:$0xff] }
 0xe90   : > { %11947 = vmatprep.mubr.msk.f32.mxu0 %vm825_vm2, %v3976_v7 }
 0xe91   : > { %v3787_v14 = vpop.permute.xlu1 %3786  ;;  %11948 = vmatmul.mubr.msk.f32.gmra.mrb[90].mxu0 %vm825_vm2, %v3977_v53 }
 0xe92   : > { %v3785_v42 = vpop.permute.xlu0 %3784  ;;  %v3947_v8 = vsel %vm1347_vm3, %v19915_v9, %v3787_v14 }
 0xe93   : > { %v3946_v23 = vsel %vm1347_vm3, %v19914_v26, %v3785_v42 }
 0xe95   : > { %v3911_v59 = vpop.permute.xlu1 %3910 }
 0xe96   : > { %v3909_v19 = vpop.permute.xlu0 %3908  ;;  %v3979_v36 = vsel %vm3965_vm6, %v3962_v41, %v3911_v59 }
 0xe97   : > { %v3978_v21 = vsel %vm3965_vm6, %v3961_v62, %v3909_v19 }
 0xe98   : > { %11950 = vmatprep.mubr.msk.f32.mxu0 %vm825_vm2, %v3978_v21 }
 0xe99   : > { %v3851_v60 = vpop.permute.xlu1 %3850  ;;  %11951 = vmatmul.mubr.msk.f32.gmra.mrb[92].mxu0 %vm825_vm2, %v3979_v36 }
 0xe9a   : > { %v3849_v47 = vpop.permute.xlu0 %3848  ;;  %v3964_v63 = vsel %vm3948_vm5, %v3947_v8, %v3851_v60 }
 0xe9b   : > { %v3963_v3 = vsel %vm3948_vm5, %v3946_v23, %v3849_v47  ;;  %v19926_v47 = vld [vmem:[#allocation12_spill] sm:$0xff] }
 0xe9d   : > { %v3915_v12 = vpop.permute.xlu1 %3914 }
 0xe9e   : > { %v3913_v5 = vpop.permute.xlu0 %3912  ;;  %v3981_v58 = vsel %vm3965_vm6, %v3964_v63, %v3915_v12  ;;  %v19927_v12 = vld [vmem:[#allocation13_spill] sm:$0xff] }
 0xe9f   : > { %v3980_v56 = vsel %vm3965_vm6, %v3963_v3, %v3913_v5 }
 0xea0   : > { %11953 = vmatprep.mubr.msk.f32.mxu0 %vm825_vm2, %v3980_v56 }
 0xea1   : > { %11954 = vmatmul.mubr.msk.f32.gmra.mrb[94].mxu0 %vm825_vm2, %v3981_v58  ;;  %v19928_v58 = vld [vmem:[#allocation14_spill] sm:$0xff] }
 0xf1d   : > { %v11934_v13 = vpop.f32.mrb[80].mxu0 }
 0xf1e   : > { %v4180_v39 = vadd.f32 %v11934_v13, %v19916_v52  ;;  %v4100_v1 = vpop.f32.mrb[81].mxu0 }
 0xf1f   : > { %v4179_v61 = vadd.f32 %v4100_v1, %v19917_v29 }
 0xf20   : > { %v16633_v38 = vadd.f32 %v16628_v16, %v4180_v39  ;;  %v19929_v39 = vld [vmem:[#allocation15_spill] sm:$0xff] }
 0xf21   : > { %v16636_v44 = vadd.f32 %v16628_v16, %v4179_v61 }
 0xf22   : > { %v4223_v27 = vsel %vm825_vm2, %v16633_v38, 0.0 }
 0xf23   : > { %4224 = vadd.xlane.f32.xlu1 %v4223_v27  ;;  %v4220_v57 = vsel %vm825_vm2, %v16636_v44, 0.0 }
 0xf24   : > { %4221 = vadd.xlane.f32.xlu0 %v4220_v57 }
 0xf25   : > { %v11937_v18 = vpop.f32.mrb[82].mxu0 }
 0xf26   : > { %v4110_v32 = vpop.f32.mrb[83].mxu0  ;;  %v4182_v24 = vadd.f32 %v11937_v18, %v19918_v20 }
 0xf27   : > { %v4181_v46 = vadd.f32 %v4110_v32, %v19919_v55  ;;  %v19932_v32 = vld [vmem:[#allocation16_spill] sm:$0xff]  ;;  %v19933_v55 = vld [vmem:[#allocation17_spill] sm:$0xff] }
 0xf28   : > { %v16648_v54 = vadd.f32 %v16628_v16, %v4182_v24 }
 0xf29   : > { %v16645_v11 = vadd.f32 %v16628_v16, %v4181_v46 }
 0xf2a   : > { %v4229_v17 = vsel %vm825_vm2, %v16648_v54, 0.0 }
 0xf2b   : > { %v4226_v48 = vsel %vm825_vm2, %v16645_v11, 0.0 }
 0xf2c   : > { %4227 = vadd.xlane.f32.xlu0 %v4226_v48 }
 0xf2d   : > { %v11940_v34 = vpop.f32.mrb[84].mxu0 }
 0xf2e   : > { %v4184_v50 = vadd.f32 %v11940_v34, %v19920_v49  ;;  %v4120_v40 = vpop.f32.mrb[85].mxu0 }
 0xf2f   : > { %v4183_v28 = vadd.f32 %v4120_v40, %v19921_v37 }
 0xf30   : > { %v16657_v51 = vadd.f32 %v16628_v16, %v4184_v50  ;;  %4230 = vadd.xlane.f32.xlu0 %v4229_v17 }
 0xf31   : > { %v16660_v45 = vadd.f32 %v16628_v16, %v4183_v28 }
 0xf32   : > { %v4235_v10 = vsel %vm825_vm2, %v16657_v51, 0.0 }
 0xf33   : > { %4236 = vadd.xlane.f32.xlu1 %v4235_v10  ;;  %v4232_v43 = vsel %vm825_vm2, %v16660_v45, 0.0 }
 0xf34   : > { %4233 = vadd.xlane.f32.xlu0 %v4232_v43 }
 0xf54   : > { %v11943_v4 = vpop.f32.mrb[86].mxu0 }
 0xf55   : > { %v4186_v30 = vadd.f32 %v11943_v4, %v19922_v25  ;;  %v4130_v35 = vpop.f32.mrb[87].mxu0 }
 0xf56   : > { %v4185_v33 = vadd.f32 %v4130_v35, %v19923_v31 }
 0xf57   : > { %v16669_v7 = vadd.f32 %v16628_v16, %v4186_v30 }
 0xf58   : > { %v16672_v53 = vadd.f32 %v16628_v16, %v4185_v33 }
 0xf59   : > { %v4241_v14 = vsel %vm825_vm2, %v16669_v7, 0.0 }
 0xf5a   : > { %4242 = vadd.xlane.f32.xlu1 %v4241_v14  ;;  %v4238_v42 = vsel %vm825_vm2, %v16672_v53, 0.0 }
 0xf5b   : > { %4239 = vadd.xlane.f32.xlu0 %v4238_v42 }
 0xf5c   : > { %v11946_v6 = vpop.f32.mrb[88].mxu0 }
 0xf5d   : > { %v4188_v59 = vadd.f32 %v11946_v6, %v19924_v15  ;;  %v4140_v0 = vpop.f32.mrb[89].mxu0 }
 0xf5e   : > { %v4187_v62 = vadd.f32 %v4140_v0, %v19925_v2 }
 0xf5f   : > { %v16681_v19 = vadd.f32 %v16628_v16, %v4188_v59 }
 0xf60   : > { %v16684_v41 = vadd.f32 %v16628_v16, %v4187_v62 }
 0xf61   : > { %v4247_v21 = vsel %vm825_vm2, %v16681_v19, 0.0 }
 0xf62   : > { %4248 = vadd.xlane.f32.xlu1 %v4247_v21  ;;  %v4244_v36 = vsel %vm825_vm2, %v16684_v41, 0.0 }
 0xf63   : > { %4245 = vadd.xlane.f32.xlu0 %v4244_v36 }
 0xf64   : > { %v11949_v60 = vpop.f32.mrb[90].mxu0 }
 0xf65   : > { %v4190_v26 = vadd.f32 %v11949_v60, %v19926_v47  ;;  %v4150_v23 = vpop.f32.mrb[91].mxu0 }
 0xf66   : > { %v4189_v9 = vadd.f32 %v4150_v23, %v19927_v12 }
 0xf67   : > { %v16693_v8 = vadd.f32 %v16628_v16, %v4190_v26 }
 0xf68   : > { %v16696_v3 = vadd.f32 %v16628_v16, %v4189_v9 }
 0xf69   : > { %v4253_v5 = vsel %vm825_vm2, %v16693_v8, 0.0 }
 0xf6a   : > { %4254 = vadd.xlane.f32.xlu1 %v4253_v5  ;;  %v4250_v63 = vsel %vm825_vm2, %v16696_v3, 0.0 }
 0xf6b   : > { %4251 = vadd.xlane.f32.xlu0 %v4250_v63  ;;  %v4472_v63 = vld [vmem:[%s19753_s11] sm:$0xff] }
 0xf6c   : > { %v11952_v56 = vpop.f32.mrb[92].mxu0 }
 0xf6d   : > { %v4192_v13 = vadd.f32 %v11952_v56, %v19928_v58  ;;  %v4160_v52 = vpop.f32.mrb[93].mxu0  ;;  %v4473_v56 = vld [vmem:[%s19753_s11 + $0x8] sm:$0xff] }
 0xf6e   : > { %v4191_v1 = vadd.f32 %v4160_v52, %v19929_v39  ;;  %v13015_v58 = vpack.c.bf16 %v4473_v56, %v4472_v63  ;;  %v4475_v52 = vld [vmem:[%s19753_s11 + $0x18] sm:$0xff] }
 0xf6f   : > { %v16705_v29 = vadd.f32 %v16628_v16, %v4192_v13  ;;  %v4474_v13 = vld [vmem:[%s19753_s11 + $0x10] sm:$0xff] }
 0xf70   : > { %v16708_v61 = vadd.f32 %v16628_v16, %v4191_v1  ;;  %13016 = vmatprep.subr.bf16.mxu1 %v13015_v58  ;;  %v13019_v39 = vpack.c.bf16 %v4475_v52, %v4474_v13 }
 0xf71   : > { %19930 = vst [vmem:[#allocation35_spill] sm:$0xff] %v16705_v29  ;;  %v4259_v27 = vsel %vm825_vm2, %v16705_v29, 0.0  ;;  %13018 = vmatpush3.bf16.msra.mxu1 %v13015_v58 }
 0xf72   : > { %19931 = vst [vmem:[#allocation36_spill] sm:$0xff] %v16708_v61  ;;  %4260 = vadd.xlane.f32.xlu1 %v4259_v27  ;;  %v4256_v57 = vsel %vm825_vm2, %v16708_v61, 0.0  ;;  %13020 = vmatprep.subr.bf16.mxu1 %v13019_v39 }
 0xf73   : > { %4257 = vadd.xlane.f32.xlu0 %v4256_v57 }
 0xf74   : > { %v11955_v18 = vpop.f32.mrb[94].mxu0 }
 0xf75   : > { %v4194_v20 = vadd.f32 %v11955_v18, %v19932_v32  ;;  %v4170_v24 = vpop.f32.mrb[95].mxu0  ;;  %13022 = vmatpush3.bf16.msra.mxu1 %v13019_v39 }
 0xf76   : > { %v4193_v46 = vadd.f32 %v4170_v24, %v19933_v55 }
 0xf77   : > { %v16717_v48 = vadd.f32 %v16628_v16, %v4194_v20 }
 0xf78   : > { %v16720_v34 = vadd.f32 %v16628_v16, %v4193_v46 }
 0xf79   : > { %19934 = vst [vmem:[#allocation38_spill] sm:$0xff] %v16717_v48  ;;  %v4265_v49 = vsel %vm825_vm2, %v16717_v48, 0.0 }
 0xf7a   : > { %19935 = vst [vmem:[#allocation37_spill] sm:$0xff] %v16720_v34  ;;  %4266 = vadd.xlane.f32.xlu1 %v4265_v49  ;;  %v4262_v50 = vsel %vm825_vm2, %v16720_v34, 0.0 }
 0xf7b   : > { %4263 = vadd.xlane.f32.xlu0 %v4262_v50 }
 0xfb0   : > { %v4225_v40 = vpop.xlane.xlu1 %4224 }
 0xfb1   : > { %v4269_v37 = vmul.f32 0.03125, %v4225_v40  ;;  %v4222_v28 = vpop.xlane.xlu0 %4221 }
 0xfb2   : > { %v4268_v17 = vmul.f32 0.03125, %v4222_v28 }
 0xfb3   : > { %v16727_v10 = vsub.f32 %v16633_v38, %v4269_v37 }
 0xfb4   : > { %v16730_v43 = vsub.f32 %v16636_v44, %v4268_v17 }
 0xfb5   : > { %v4301_v16 = vmul.f32 %v16727_v10, %v16727_v10 }
 0xfb6   : > { %v4300_v4 = vmul.f32 %v16730_v43, %v16730_v43 }
 0xfb7   : > { %v4319_v25 = vsel %vm825_vm2, %v4301_v16, 0.0 }
 0xfb8   : > { %4320 = vadd.xlane.f32.xlu1 %v4319_v25  ;;  %v4316_v30 = vsel %vm825_vm2, %v4300_v4, 0.0 }
 0xfb9   : > { %v4228_v35 = vpop.xlane.xlu0 %4227  ;;  %4317 = vadd.xlane.f32.xlu0 %v4316_v30 }
 0xfba   : > { %v4270_v31 = vmul.f32 0.03125, %v4228_v35 }
 0xfbc   : > { %v16739_v33 = vsub.f32 %v16645_v11, %v4270_v31 }
 0xfbd   : > { %v4231_v14 = vpop.xlane.xlu0 %4230 }
 0xfbe   : > { %v4271_v42 = vmul.f32 0.03125, %v4231_v14  ;;  %v4302_v6 = vmul.f32 %v16739_v33, %v16739_v33 }
 0xfc0   : > { %v16744_v15 = vsub.f32 %v16648_v54, %v4271_v42  ;;  %v4237_v59 = vpop.xlane.xlu1 %4236  ;;  %v4322_v0 = vsel %vm825_vm2, %v4302_v6, 0.0 }
 0xfc1   : > { %v4273_v2 = vmul.f32 0.03125, %v4237_v59  ;;  %v4234_v62 = vpop.xlane.xlu0 %4233  ;;  %4323 = vadd.xlane.f32.xlu0 %v4322_v0 }
 0xfc2   : > { %v4272_v21 = vmul.f32 0.03125, %v4234_v62  ;;  %v4303_v36 = vmul.f32 %v16744_v15, %v16744_v15 }
 0xfc3   : > { %v16750_v60 = vsub.f32 %v16657_v51, %v4273_v2 }
 0xfc4   : > { %v16753_v47 = vsub.f32 %v16660_v45, %v4272_v21  ;;  %v4325_v26 = vsel %vm825_vm2, %v4303_v36, 0.0 }
 0xfc5   : > { %4326 = vadd.xlane.f32.xlu1 %v4325_v26  ;;  %v4305_v23 = vmul.f32 %v16750_v60, %v16750_v60 }
 0xfc6   : > { %v4304_v12 = vmul.f32 %v16753_v47, %v16753_v47 }
 0xfc7   : > { %v4331_v9 = vsel %vm825_vm2, %v4305_v23, 0.0 }
 0xfc8   : > { %v4328_v5 = vsel %vm825_vm2, %v4304_v12, 0.0 }
 0xfc9   : > { %4332 = vadd.xlane.f32.xlu1 %v4331_v9  ;;  %4329 = vadd.xlane.f32.xlu0 %v4328_v5 }
 0xfe7   : > { %v4243_v1 = vpop.xlane.xlu1 %4242 }
 0xfe8   : > { %v4275_v27 = vmul.f32 0.03125, %v4243_v1  ;;  %v4240_v57 = vpop.xlane.xlu0 %4239 }
 0xfe9   : > { %v4274_v18 = vmul.f32 0.03125, %v4240_v57 }
 0xfea   : > { %v16775_v32 = vsub.f32 %v16669_v7, %v4275_v27 }
 0xfeb   : > { %v16778_v20 = vsub.f32 %v16672_v53, %v4274_v18 }
 0xfec   : > { %v4307_v24 = vmul.f32 %v16775_v32, %v16775_v32 }
 0xfed   : > { %v4306_v55 = vmul.f32 %v16778_v20, %v16778_v20 }
 0xfee   : > { %v4337_v46 = vsel %vm825_vm2, %v4307_v24, 0.0 }
 0xfef   : > { %v4249_v49 = vpop.xlane.xlu1 %4248  ;;  %4338 = vadd.xlane.f32.xlu1 %v4337_v46  ;;  %v4334_v50 = vsel %vm825_vm2, %v4306_v55, 0.0 }
 0xff0   : > { %v4277_v40 = vmul.f32 0.03125, %v4249_v49  ;;  %v4246_v37 = vpop.xlane.xlu0 %4245  ;;  %4335 = vadd.xlane.f32.xlu0 %v4334_v50 }
 0xff1   : > { %v4276_v28 = vmul.f32 0.03125, %v4246_v37 }
 0xff2   : > { %v16787_v17 = vsub.f32 %v16681_v19, %v4277_v40 }
 0xff3   : > { %v16790_v16 = vsub.f32 %v16684_v41, %v4276_v28 }
 0xff4   : > { %v4309_v4 = vmul.f32 %v16787_v17, %v16787_v17 }
 0xff5   : > { %v4308_v25 = vmul.f32 %v16790_v16, %v16790_v16 }
 0xff6   : > { %v4343_v30 = vsel %vm825_vm2, %v4309_v4, 0.0 }
 0xff7   : > { %v4255_v35 = vpop.xlane.xlu1 %4254  ;;  %4344 = vadd.xlane.f32.xlu1 %v4343_v30  ;;  %v4340_v31 = vsel %vm825_vm2, %v4308_v25, 0.0 }
 0xff8   : > { %v4279_v14 = vmul.f32 0.03125, %v4255_v35  ;;  %v4252_v42 = vpop.xlane.xlu0 %4251  ;;  %4341 = vadd.xlane.f32.xlu0 %v4340_v31 }
 0xff9   : > { %v4278_v6 = vmul.f32 0.03125, %v4252_v42 }
 0xffa   : > { %v16799_v59 = vsub.f32 %v16693_v8, %v4279_v14 }
 0xffb   : > { %v16802_v0 = vsub.f32 %v16696_v3, %v4278_v6 }
 0xffc   : > { %v4311_v2 = vmul.f32 %v16799_v59, %v16799_v59 }
 0xffd   : > { %v4310_v62 = vmul.f32 %v16802_v0, %v16802_v0 }
 0xffe   : > { %v4349_v21 = vsel %vm825_vm2, %v4311_v2, 0.0 }
 0xfff   : > { %v4261_v36 = vpop.xlane.xlu1 %4260  ;;  %4350 = vadd.xlane.f32.xlu1 %v4349_v21  ;;  %v4346_v26 = vsel %vm825_vm2, %v4310_v62, 0.0  ;;  %v16837_v62 = vld [vmem:[%s19751_s9] ss:$0 sm:$0xff] }
0x1000   : > { %v4281_v23 = vmul.f32 0.03125, %v4261_v36  ;;  %v4258_v12 = vpop.xlane.xlu0 %4257  ;;  %4347 = vadd.xlane.f32.xlu0 %v4346_v26 }
0x1001   : > { %v4280_v9 = vmul.f32 0.03125, %v4258_v12 }
0x1002   : > { %v16811_v5 = vsub.f32 %v16705_v29, %v4281_v23 }
0x1003   : > { %v16814_v63 = vsub.f32 %v16708_v61, %v4280_v9 }
0x1004   : > { %v4313_v56 = vmul.f32 %v16811_v5, %v16811_v5 }
0x1005   : > { %v4312_v58 = vmul.f32 %v16814_v63, %v16814_v63 }
0x1006   : > { %v4355_v13 = vsel %vm825_vm2, %v4313_v56, 0.0 }
0x1007   : > { %4356 = vadd.xlane.f32.xlu1 %v4355_v13  ;;  %v4267_v52 = vpop.xlane.xlu1 %4266  ;;  %v4352_v39 = vsel %vm825_vm2, %v4312_v58, 0.0 }
0x1008   : > { %v4283_v1 = vmul.f32 0.03125, %v4267_v52  ;;  %4353 = vadd.xlane.f32.xlu0 %v4352_v39  ;;  %v4264_v27 = vpop.xlane.xlu0 %4263  ;;  %v16845_v52 = vld [vmem:[%s19752_s10] ss:$0 sm:$0xff] }
0x1009   : > { %v4282_v57 = vmul.f32 0.03125, %v4264_v27 }
0x100a   : > { %v16823_v18 = vsub.f32 %v16717_v48, %v4283_v1 }
0x100b   : > { %v16826_v24 = vsub.f32 %v16720_v34, %v4282_v57 }
0x100c   : > { %v4315_v55 = vmul.f32 %v16823_v18, %v16823_v18 }
0x100d   : > { %v4314_v46 = vmul.f32 %v16826_v24, %v16826_v24 }
0x100e   : > { %v4361_v49 = vsel %vm825_vm2, %v4315_v55, 0.0 }
0x100f   : > { %4362 = vadd.xlane.f32.xlu1 %v4361_v49  ;;  %v4358_v50 = vsel %vm825_vm2, %v4314_v46, 0.0 }
0x1010   : > { %4359 = vadd.xlane.f32.xlu0 %v4358_v50 }
0x1045   : > { %v4321_v40 = vpop.xlane.xlu1 %4320 }
0x1046   : > { %v4365_v37 = vmul.f32 0.03125, %v4321_v40  ;;  %v4318_v28 = vpop.xlane.xlu0 %4317 }
0x1047   : > { %v4364_v4 = vmul.f32 0.03125, %v4318_v28 }
0x1048   : > { %v4381_v25 = vadd.f32 1e-12, %v4365_v37 }
0x1049   : > { %v4380_v30 = vadd.f32 1e-12, %v4364_v4 }
0x104a   : > { %14418 = vrsqrt.f32 %v4381_v25 }
0x104b   : > { %14420 = vrsqrt.f32 %v4380_v30 }
0x104e   : > { %v4324_v35 = vpop.xlane.xlu0 %4323 }
0x104f   : > { %v4366_v31 = vmul.f32 0.03125, %v4324_v35 }
0x1051   : > { %v4382_v14 = vadd.f32 1e-12, %v4366_v31 }
0x1052   : > { %v4327_v42 = vpop.xlane.xlu1 %4326 }
0x1053   : > { %14422 = vrsqrt.f32 %v4382_v14  ;;  %v4367_v6 = vmul.f32 0.03125, %v4327_v42 }
0x1054   : > { %v14419_v2 = vpop.eup %14418 }
0x1055   : > { %v14421_v21 = vpop.eup %14420  ;;  %v4413_v36 = vmul.f32 %v14419_v2, %v16727_v10  ;;  %v4383_v26 = vadd.f32 1e-12, %v4367_v6 }
0x1056   : > { %v4333_v23 = vpop.xlane.xlu1 %4332  ;;  %v4330_v12 = vpop.xlane.xlu0 %4329  ;;  %v4412_v9 = vmul.f32 %v14421_v21, %v16730_v43 }
0x1057   : > { %v4435_v56 = vmul.f32 %v16837_v62, %v4413_v36  ;;  %14424 = vrsqrt.f32 %v4383_v26  ;;  %v4369_v58 = vmul.f32 0.03125, %v4333_v23  ;;  %v4368_v13 = vmul.f32 0.03125, %v4330_v12 }
0x1058   : > { %v4434_v39 = vmul.f32 %v16837_v62, %v4412_v9 }
0x1059   : > { %v4385_v1 = vadd.f32 1e-12, %v4369_v58  ;;  %v4384_v27 = vadd.f32 1e-12, %v4368_v13  ;;  %v4457_v57 = vadd.f32 %v16845_v52, %v4435_v56 }
0x105a   : > { %v4456_v10 = vadd.f32 %v16845_v52, %v4434_v39 }
0x105b   : > { %14426 = vrsqrt.f32 %v4385_v1 }
0x105c   : > { %14428 = vrsqrt.f32 %v4384_v27  ;;  %11964 = vmatprep.mubr.msk.f32.mxu1 %vm825_vm2, %v4456_v10 }
0x105d   : > { %v14423_v43 = vpop.eup %14422  ;;  %11965 = vmatmul.mubr.msk.f32.vlgmr.msra.gmra.mrb[80].mxu1 %vm825_vm2, %v4457_v57 }
0x105e   : > { %v4414_v55 = vmul.f32 %v14423_v43, %v16739_v33 }
0x1060   : > { %v4436_v46 = vmul.f32 %v16837_v62, %v4414_v55 }
0x1061   : > { %v14425_v49 = vpop.eup %14424 }
0x1062   : > { %v4458_v50 = vadd.f32 %v16845_v52, %v4436_v46  ;;  %v4415_v40 = vmul.f32 %v14425_v49, %v16744_v15 }
0x1064   : > { %11967 = vmatprep.mubr.msk.f32.mxu1 %vm825_vm2, %v4458_v50  ;;  %v4437_v37 = vmul.f32 %v16837_v62, %v4415_v40 }
0x1065   : > { %v14427_v28 = vpop.eup %14426 }
0x1066   : > { %v14429_v4 = vpop.eup %14428  ;;  %v4459_v25 = vadd.f32 %v16845_v52, %v4437_v37  ;;  %v4417_v30 = vmul.f32 %v14427_v28, %v16750_v60 }
0x1067   : > { %v4416_v35 = vmul.f32 %v14429_v4, %v16753_v47 }
0x1068   : > { %11968 = vmatmul.mubr.msk.f32.gmra.mrb[82].mxu1 %vm825_vm2, %v4459_v25  ;;  %v4439_v33 = vmul.f32 %v16837_v62, %v4417_v30 }
0x1069   : > { %v4438_v31 = vmul.f32 %v16837_v62, %v4416_v35 }
0x106a   : > { %v4461_v15 = vadd.f32 %v16845_v52, %v4439_v33 }
0x106b   : > { %v4460_v14 = vadd.f32 %v16845_v52, %v4438_v31 }
0x106d   : > { %11970 = vmatprep.mubr.msk.f32.mxu1 %vm825_vm2, %v4460_v14 }
0x106e   : > { %11971 = vmatmul.mubr.msk.f32.gmra.mrb[84].mxu1 %vm825_vm2, %v4461_v15 }
0x107c   : > { %v4339_v42 = vpop.xlane.xlu1 %4338 }
0x107d   : > { %v4371_v6 = vmul.f32 0.03125, %v4339_v42  ;;  %v4336_v2 = vpop.xlane.xlu0 %4335 }
0x107e   : > { %v4370_v60 = vmul.f32 0.03125, %v4336_v2 }
0x107f   : > { %v4387_v21 = vadd.f32 1e-12, %v4371_v6 }
0x1080   : > { %v4386_v47 = vadd.f32 1e-12, %v4370_v60 }
0x1081   : > { %14430 = vrsqrt.f32 %v4387_v21 }
0x1082   : > { %14432 = vrsqrt.f32 %v4386_v47 }
0x1084   : > { %v4345_v36 = vpop.xlane.xlu1 %4344 }
0x1085   : > { %v4373_v26 = vmul.f32 0.03125, %v4345_v36  ;;  %v4342_v23 = vpop.xlane.xlu0 %4341 }
0x1086   : > { %v4372_v12 = vmul.f32 0.03125, %v4342_v23 }
0x1087   : > { %v4389_v9 = vadd.f32 1e-12, %v4373_v26 }
0x1088   : > { %v4388_v56 = vadd.f32 1e-12, %v4372_v12 }
0x1089   : > { %14434 = vrsqrt.f32 %v4389_v9 }
0x108a   : > { %14436 = vrsqrt.f32 %v4388_v56 }
0x108b   : > { %v14431_v58 = vpop.eup %14430 }
0x108c   : > { %v14433_v13 = vpop.eup %14432  ;;  %v4351_v39 = vpop.xlane.xlu1 %4350  ;;  %v4419_v1 = vmul.f32 %v14431_v58, %v16775_v32 }
0x108d   : > { %v4375_v27 = vmul.f32 0.03125, %v4351_v39  ;;  %v4348_v10 = vpop.xlane.xlu0 %4347  ;;  %v4418_v57 = vmul.f32 %v14433_v13, %v16778_v20 }
0x108e   : > { %v4374_v43 = vmul.f32 0.03125, %v4348_v10  ;;  %v4441_v55 = vmul.f32 %v16837_v62, %v4419_v1 }
0x108f   : > { %v4391_v46 = vadd.f32 1e-12, %v4375_v27  ;;  %v4440_v49 = vmul.f32 %v16837_v62, %v4418_v57 }
0x1090   : > { %v4390_v50 = vadd.f32 1e-12, %v4374_v43  ;;  %v4463_v37 = vadd.f32 %v16845_v52, %v4441_v55 }
0x1091   : > { %14438 = vrsqrt.f32 %v4391_v46  ;;  %v4462_v40 = vadd.f32 %v16845_v52, %v4440_v49 }
0x1092   : > { %14440 = vrsqrt.f32 %v4390_v50 }
0x1093   : > { %v14435_v28 = vpop.eup %14434  ;;  %11973 = vmatprep.mubr.msk.f32.mxu1 %vm825_vm2, %v4462_v40 }
0x1094   : > { %v14437_v32 = vpop.eup %14436  ;;  %v4357_v4 = vpop.xlane.xlu1 %4356  ;;  %11974 = vmatmul.mubr.msk.f32.gmra.mrb[86].mxu1 %vm825_vm2, %v4463_v37  ;;  %v4421_v20 = vmul.f32 %v14435_v28, %v16787_v17 }
0x1095   : > { %v4377_v25 = vmul.f32 0.03125, %v4357_v4  ;;  %v4354_v30 = vpop.xlane.xlu0 %4353  ;;  %v4420_v35 = vmul.f32 %v14437_v32, %v16790_v16  ;;  %v5108_v32 = vld [vmem:[%s19755_s13] sm:$0xff] }
0x1096   : > { %v4376_v33 = vmul.f32 0.03125, %v4354_v30  ;;  %v4443_v31 = vmul.f32 %v16837_v62, %v4421_v20  ;;  %v5112_v20 = vld [vmem:[%s19755_s13 + $0x20] sm:$0xff] }
0x1097   : > { %v4393_v15 = vadd.f32 1e-12, %v4377_v25  ;;  %v4442_v14 = vmul.f32 %v16837_v62, %v4420_v35  ;;  %v5113_v25 = vld [vmem:[%s19755_s13 + $0x28] sm:$0xff]  ;;  %v5114_v35 = vld [vmem:[%s19755_s13 + $0x30] sm:$0xff] }
0x1098   : > { %v4392_v42 = vadd.f32 1e-12, %v4376_v33  ;;  %v4465_v2 = vadd.f32 %v16845_v52, %v4443_v31  ;;  %v13031_v30 = vpack.c.bf16 %v5113_v25, %v5112_v20  ;;  %v5115_v33 = vld [vmem:[%s19755_s13 + $0x38] sm:$0xff] }
0x1099   : > { %14442 = vrsqrt.f32 %v4393_v15  ;;  %v4464_v6 = vadd.f32 %v16845_v52, %v4442_v14  ;;  %v13035_v31 = vpack.c.bf16 %v5115_v33, %v5114_v35  ;;  %v5116_v15 = vld [vmem:[%s19755_s13 + $0x40] sm:$0xff]  ;;  %v5117_v14 = vld [vmem:[%s19755_s13 + $0x48] sm:$0xff] }
0x109a   : > { %14444 = vrsqrt.f32 %v4392_v42  ;;  %v13039_v42 = vpack.c.bf16 %v5117_v14, %v5116_v15 }
0x109b   : > { %v14439_v60 = vpop.eup %14438  ;;  %11976 = vmatprep.mubr.msk.f32.mxu1 %vm825_vm2, %v4464_v6  ;;  %v5118_v6 = vld [vmem:[%s19755_s13 + $0x50] sm:$0xff] }
0x109c   : > { %v14441_v17 = vpop.eup %14440  ;;  %v4363_v21 = vpop.xlane.xlu1 %4362  ;;  %11977 = vmatmul.mubr.msk.f32.gmra.mrb[88].mxu1 %vm825_vm2, %v4465_v2  ;;  %v4423_v16 = vmul.f32 %v14439_v60, %v16799_v59  ;;  %v5119_v2 = vld [vmem:[%s19755_s13 + $0x58] sm:$0xff] }
0x109d   : > { %v4379_v47 = vmul.f32 0.03125, %v4363_v21  ;;  %v4360_v36 = vpop.xlane.xlu0 %4359  ;;  %v4422_v26 = vmul.f32 %v14441_v17, %v16802_v0  ;;  %v13043_v60 = vpack.c.bf16 %v5119_v2, %v5118_v6  ;;  %v5120_v17 = vld [vmem:[%s19755_s13 + $0x60] sm:$0xff]  ;;  %v5121_v21 = vld [vmem:[%s19755_s13 + $0x68] sm:$0xff] }
0x109e   : > { %v4378_v23 = vmul.f32 0.03125, %v4360_v36  ;;  %v4445_v12 = vmul.f32 %v16837_v62, %v4423_v16  ;;  %v13047_v16 = vpack.c.bf16 %v5121_v21, %v5120_v17  ;;  %v5123_v36 = vld [vmem:[%s19755_s13 + $0x78] sm:$0xff] }
0x109f   : > { %v4395_v9 = vadd.f32 1e-12, %v4379_v47  ;;  %v4444_v56 = vmul.f32 %v16837_v62, %v4422_v26  ;;  %v5122_v47 = vld [vmem:[%s19755_s13 + $0x70] sm:$0xff] }
0x10a0   : > { %v4394_v58 = vadd.f32 1e-12, %v4378_v23  ;;  %v4467_v39 = vadd.f32 %v16845_v52, %v4445_v12  ;;  %v13051_v26 = vpack.c.bf16 %v5123_v36, %v5122_v47  ;;  %v16959_v23 = vld [vmem:[%s19754_s12] ss:$0 sm:$0xff] }
0x10a1   : > { %14446 = vrsqrt.f32 %v4395_v9  ;;  %v4466_v13 = vadd.f32 %v16845_v52, %v4444_v56 }
0x10a2   : > { %14448 = vrsqrt.f32 %v4394_v58 }
0x10a3   : > { %v14443_v1 = vpop.eup %14442  ;;  %11979 = vmatprep.mubr.msk.f32.mxu1 %vm825_vm2, %v4466_v13 }
0x10a4   : > { %v14445_v59 = vpop.eup %14444  ;;  %11980 = vmatmul.mubr.msk.f32.gmra.mrb[90].mxu1 %vm825_vm2, %v4467_v39  ;;  %v4425_v0 = vmul.f32 %v14443_v1, %v16811_v5 }
0x10a5   : > { %v4424_v27 = vmul.f32 %v14445_v59, %v16814_v63 }
0x10a6   : > { %v4447_v10 = vmul.f32 %v16837_v62, %v4425_v0 }
0x10a7   : > { %v4446_v57 = vmul.f32 %v16837_v62, %v4424_v27 }
0x10a8   : > { %v4469_v55 = vadd.f32 %v16845_v52, %v4447_v10 }
0x10a9   : > { %v4468_v43 = vadd.f32 %v16845_v52, %v4446_v57 }
0x10ab   : > { %v14447_v46 = vpop.eup %14446  ;;  %11982 = vmatprep.mubr.msk.f32.mxu1 %vm825_vm2, %v4468_v43 }
0x10ac   : > { %v14449_v49 = vpop.eup %14448  ;;  %11983 = vmatmul.mubr.msk.f32.gmra.mrb[92].mxu1 %vm825_vm2, %v4469_v55  ;;  %v4427_v50 = vmul.f32 %v14447_v46, %v16823_v18  ;;  %v5109_v18 = vld [vmem:[%s19755_s13 + $0x8] sm:$0xff] }
0x10ad   : > { %v4426_v5 = vmul.f32 %v14449_v49, %v16826_v24  ;;  %v13023_v24 = vpack.c.bf16 %v5109_v18, %v5108_v32 }
0x10ae   : > { %v4449_v63 = vmul.f32 %v16837_v62, %v4427_v50 }
0x10af   : > { %v4448_v40 = vmul.f32 %v16837_v62, %v4426_v5  ;;  %13024 = vmatprep.subr.bf16.mxu0 %v13023_v24  ;;  %v5110_v62 = vld [vmem:[%s19755_s13 + $0x10] sm:$0xff] }
0x10b0   : > { %v4471_v28 = vadd.f32 %v16845_v52, %v4449_v63  ;;  %13026 = vmatpush3.bf16.msra.mxu0 %v13023_v24 }
0x10b1   : > { %v4470_v37 = vadd.f32 %v16845_v52, %v4448_v40  ;;  %v5111_v52 = vld [vmem:[%s19755_s13 + $0x18] sm:$0xff] }
0x10b2   : > { %v13027_v4 = vpack.c.bf16 %v5111_v52, %v5110_v62 }
0x10b3   : > { %11985 = vmatprep.mubr.msk.f32.mxu1 %vm825_vm2, %v4470_v37 }
0x10b4   : > { %11986 = vmatmul.mubr.msk.f32.gmra.mrb[94].mxu1 %vm825_vm2, %v4471_v28  ;;  %13028 = vmatprep.subr.bf16.mxu0 %v13027_v4 }
0x10b5   : > { %13030 = vmatpush3.bf16.msra.mxu0 %v13027_v4 }
0x10b6   : > { %13032 = vmatprep.subr.bf16.mxu0 %v13031_v30 }
0x10b9   : > { %13034 = vmatpush3.bf16.msra.mxu0 %v13031_v30 }
0x10ba   : > { %13036 = vmatprep.subr.bf16.mxu0 %v13035_v31 }
0x10bd   : > { %13038 = vmatpush3.bf16.msra.mxu0 %v13035_v31 }
0x10be   : > { %13040 = vmatprep.subr.bf16.mxu0 %v13039_v42 }
0x10c1   : > { %13042 = vmatpush3.bf16.msra.mxu0 %v13039_v42 }
0x10c2   : > { %13044 = vmatprep.subr.bf16.mxu0 %v13043_v60 }
0x10c5   : > { %13046 = vmatpush3.bf16.msra.mxu0 %v13043_v60 }
0x10c6   : > { %13048 = vmatprep.subr.bf16.mxu0 %v13047_v16 }
0x10c9   : > { %13050 = vmatpush3.bf16.msra.mxu0 %v13047_v16 }
0x10ca   : > { %13052 = vmatprep.subr.bf16.mxu0 %v13051_v26 }
0x10cd   : > { %13054 = vmatpush3.bf16.msra.mxu0 %v13051_v26 }
0x1130   : > { %v11966_v12 = vpop.f32.mrb[80].mxu1 }
0x1131   : > { %v16962_v9 = vadd.f32 %v11966_v12, %v16959_v23  ;;  %v4597_v56 = vpop.f32.mrb[81].mxu1 }
0x1132   : > { %v16965_v58 = vadd.f32 %v16959_v23, %v4597_v56 }
0x1133   : > { %v16968_v13 = vmul.f32 0.70710677, %v16962_v9 }
0x1134   : > { %v16971_v39 = vmul.f32 0.70710677, %v16965_v58 }
0x1135   : > { %v4709_v1 = vand.u32 2147483647, %v16968_v13  ;;  %vm5029_vm7 = vcmp.ge.f32.partialorder %v16968_v13, 0.0 }
0x1136   : > { %v4708_v59 = vand.u32 2147483647, %v16971_v39  ;;  %vm5028_vm8 = vcmp.ge.f32.partialorder %v16971_v39, 0.0 }
0x1137   : > { %v4725_v0 = vmul.f32 0.3275911, %v4709_v1  ;;  %v4933_v5 = vsub.f32 0.0, %v4709_v1 }
0x1138   : > { %v4724_v27 = vmul.f32 0.3275911, %v4708_v59  ;;  %v4932_v35 = vsub.f32 0.0, %v4708_v59 }
0x1139   : > { %v4741_v10 = vadd.f32 1.0, %v4725_v0  ;;  %v4949_v62 = vmul.f32 %v4933_v5, %v4709_v1 }
0x113a   : > { %v4740_v57 = vadd.f32 1.0, %v4724_v27  ;;  %v4948_v21 = vmul.f32 %v4932_v35, %v4708_v59 }
0x113b   : > { %14450 = vrcp.f32 %v4741_v10  ;;  %v11969_v43 = vpop.f32.mrb[82].mxu1  ;;  %v4966_v6 = vmul.f32 1.442695, %v4949_v62 }
0x113c   : > { %v16976_v55 = vadd.f32 %v11969_v43, %v16959_v23  ;;  %v4607_v46 = vpop.f32.mrb[83].mxu1  ;;  %14452 = vrcp.f32 %v4740_v57  ;;  %v4964_v27 = vmul.f32 1.442695, %v4948_v21 }
0x113d   : > { %v16979_v49 = vadd.f32 %v16959_v23, %v4607_v46 }
0x113e   : > { %v16982_v50 = vmul.f32 0.70710677, %v16976_v55 }
0x113f   : > { %v16985_v63 = vmul.f32 0.70710677, %v16979_v49 }
0x1140   : > { %v4711_v40 = vand.u32 2147483647, %v16982_v50  ;;  %vm5031_vm9 = vcmp.ge.f32.partialorder %v16982_v50, 0.0 }
0x1141   : > { %v4710_v37 = vand.u32 2147483647, %v16985_v63  ;;  %v11972_v28 = vpop.f32.mrb[84].mxu1  ;;  %vm5030_vm10 = vcmp.ge.f32.partialorder %v16985_v63, 0.0  ;;  %v4679_v63 = vmul.f32 0.5, %v16976_v55 }
0x1142   : > { %v4727_v32 = vmul.f32 0.3275911, %v4711_v40  ;;  %v16990_v18 = vadd.f32 %v11972_v28, %v16959_v23  ;;  %v4617_v24 = vpop.f32.mrb[85].mxu1  ;;  %v4935_v12 = vsub.f32 0.0, %v4711_v40 }
0x1143   : > { %v4726_v52 = vmul.f32 0.3275911, %v4710_v37  ;;  %v16993_v4 = vadd.f32 %v16959_v23, %v4617_v24  ;;  %v4934_v10 = vsub.f32 0.0, %v4710_v37 }
0x1144   : > { %v4743_v20 = vadd.f32 1.0, %v4727_v32  ;;  %v16996_v25 = vmul.f32 0.70710677, %v16990_v18  ;;  %v4951_v46 = vmul.f32 %v4935_v12, %v4711_v40 }
0x1145   : > { %v14451_v30 = vpop.eup %14450  ;;  %v4742_v33 = vadd.f32 1.0, %v4726_v52  ;;  %v16999_v31 = vmul.f32 0.70710677, %v16993_v4  ;;  %v4950_v24 = vmul.f32 %v4934_v10, %v4710_v37 }
0x1146   : > { %v4789_v15 = vmul.f32 1.0614054, %v14451_v30  ;;  %14454 = vrcp.f32 %v4743_v20  ;;  %v4713_v14 = vand.u32 2147483647, %v16996_v25  ;;  %v14453_v42 = vpop.eup %14452  ;;  %vm5033_vm12 = vcmp.ge.f32.partialorder %v16996_v25, 0.0 }
0x1147   : > { %14456 = vrcp.f32 %v4742_v33  ;;  %v4712_v2 = vand.u32 2147483647, %v16999_v31  ;;  %v4788_v26 = vmul.f32 1.0614054, %v14453_v42  ;;  %vm5032_vm11 = vcmp.ge.f32.partialorder %v16999_v31, 0.0 }
0x1148   : > { %v4805_v60 = vadd.f32 -1.4531521, %v4789_v15  ;;  %v4729_v17 = vmul.f32 0.3275911, %v4713_v14  ;;  %14458 = vpow2.f32 %v4966_v6  ;;  %v4937_v62 = vsub.f32 0.0, %v4713_v14 }
0x1149   : > { %v4728_v16 = vmul.f32 0.3275911, %v4712_v2  ;;  %v4804_v0 = vadd.f32 -1.4531521, %v4788_v26  ;;  %v4970_v15 = vmul.f32 1.442695, %v4951_v46 }
0x114a   : > { %v4821_v47 = vmul.f32 %v14451_v30, %v4805_v60  ;;  %v4745_v36 = vadd.f32 1.0, %v4729_v17  ;;  %v4936_v6 = vsub.f32 0.0, %v4712_v2  ;;  %v4680_v31 = vmul.f32 0.5, %v16993_v4 }
0x114b   : > { %v4744_v56 = vadd.f32 1.0, %v4728_v16  ;;  %v4820_v43 = vmul.f32 %v14453_v42, %v4804_v0 }
0x114c   : > { %v4837_v1 = vadd.f32 1.4214138, %v4821_v47  ;;  %14460 = vrcp.f32 %v4745_v36  ;;  %v4968_v47 = vmul.f32 1.442695, %v4950_v24  ;;  %v4953_v36 = vmul.f32 %v4937_v62, %v4713_v14 }
0x114d   : > { %14462 = vrcp.f32 %v4744_v56  ;;  %v4836_v59 = vadd.f32 1.4214138, %v4820_v43 }
0x114e   : > { %v4853_v57 = vmul.f32 %v14451_v30, %v4837_v1  ;;  %14464 = vpow2.f32 %v4964_v27  ;;  %v4952_v27 = vmul.f32 %v4936_v6, %v4712_v2 }
0x114f   : > { %v4852_v35 = vmul.f32 %v14453_v42, %v4836_v59  ;;  %14466 = vpow2.f32 %v4970_v15  ;;  %v4974_v59 = vmul.f32 1.442695, %v4953_v36 }
0x1150   : > { %v17003_v5 = vpop.eup %14454  ;;  %v4869_v28 = vadd.f32 -0.28449672, %v4853_v57  ;;  %14468 = vpow2.f32 %v4968_v47  ;;  %v4972_v2 = vmul.f32 1.442695, %v4952_v27 }
0x1151   : > { %v17005_v32 = vpop.eup %14456  ;;  %v4791_v52 = vmul.f32 1.0614054, %v17003_v5  ;;  %v4868_v40 = vadd.f32 -0.28449672, %v4852_v35  ;;  %14470 = vpow2.f32 %v4974_v59 }
0x1152   : > { %v4885_v20 = vmul.f32 %v14451_v30, %v4869_v28  ;;  %v4790_v33 = vmul.f32 1.0614054, %v17005_v32  ;;  %v14459_v16 = vpop.eup %14458  ;;  %14472 = vpow2.f32 %v4972_v2 }
0x1153   : > { %v4807_v60 = vadd.f32 -1.4531521, %v4791_v52  ;;  %v4884_v56 = vmul.f32 %v14453_v42, %v4868_v40 }
0x1154   : > { %v4901_v17 = vadd.f32 0.2548296, %v4885_v20  ;;  %v4806_v21 = vadd.f32 -1.4531521, %v4790_v33 }
0x1155   : > { %v4823_v26 = vmul.f32 %v17003_v5, %v4807_v60  ;;  %v4900_v46 = vadd.f32 0.2548296, %v4884_v56 }
0x1156   : > { %v17010_v12 = vpop.eup %14460  ;;  %v4917_v37 = vmul.f32 %v14451_v30, %v4901_v17  ;;  %v4822_v1 = vmul.f32 %v17005_v32, %v4806_v21 }
0x1157   : > { %v17013_v0 = vpop.eup %14462  ;;  %v4839_v10 = vadd.f32 1.4214138, %v4823_v26  ;;  %v4793_v57 = vmul.f32 1.0614054, %v17010_v12  ;;  %v4916_v52 = vmul.f32 %v14453_v42, %v4900_v46 }
0x1158   : > { %v4997_v43 = vmul.f32 %v14459_v16, %v4917_v37  ;;  %v4838_v28 = vadd.f32 1.4214138, %v4822_v1  ;;  %v4792_v14 = vmul.f32 1.0614054, %v17013_v0  ;;  %v14465_v33 = vpop.eup %14464 }
0x1159   : > { %v4855_v24 = vmul.f32 %v17003_v5, %v4839_v10  ;;  %v4809_v30 = vadd.f32 -1.4531521, %v4793_v57  ;;  %v4996_v17 = vmul.f32 %v14465_v33, %v4916_v52  ;;  %v4677_v33 = vmul.f32 0.5, %v16962_v9 }
0x115a   : > { %v5013_v62 = vsub.f32 1.0, %v4997_v43  ;;  %v4854_v20 = vmul.f32 %v17005_v32, %v4838_v28  ;;  %v4808_v35 = vadd.f32 -1.4531521, %v4792_v14  ;;  %v14467_v43 = vpop.eup %14466 }
0x115b   : > { %v4871_v15 = vadd.f32 -0.28449672, %v4855_v24  ;;  %v4825_v6 = vmul.f32 %v17010_v12, %v4809_v30  ;;  %v5012_v42 = vsub.f32 1.0, %v4996_v17  ;;  %v14469_v30 = vpop.eup %14468 }
0x115c   : > { %v5045_v60 = vsub.f32 0.0, %v5013_v62  ;;  %v4870_v40 = vadd.f32 -0.28449672, %v4854_v20  ;;  %v4824_v21 = vmul.f32 %v17013_v0, %v4808_v35 }
0x115d   : > { %v4887_v16 = vmul.f32 %v17003_v5, %v4871_v15  ;;  %v4841_v47 = vadd.f32 1.4214138, %v4825_v6  ;;  %v5044_v27 = vsub.f32 0.0, %v5012_v42 }
0x115e   : > { %v4886_v36 = vmul.f32 %v17005_v32, %v4870_v40  ;;  %v4840_v26 = vadd.f32 1.4214138, %v4824_v21  ;;  %v5061_v37 = vsel %vm5029_vm7, %v5013_v62, %v5045_v60  ;;  %v4676_v62 = vmul.f32 0.5, %v16965_v58 }
0x115f   : > { %v4903_v56 = vadd.f32 0.2548296, %v4887_v16  ;;  %v4857_v1 = vmul.f32 %v17010_v12, %v4841_v47  ;;  %v5077_v28 = vadd.f32 1.0, %v5061_v37  ;;  %v5060_v14 = vsel %vm5028_vm8, %v5012_v42, %v5044_v27  ;;  %v14471_v16 = vpop.eup %14470 }
0x1160   : > { %v4902_v10 = vadd.f32 0.2548296, %v4886_v36  ;;  %v4856_v57 = vmul.f32 %v17013_v0, %v4840_v26  ;;  %v5076_v52 = vadd.f32 1.0, %v5060_v14 }
0x1161   : > { %v4919_v13 = vmul.f32 %v17003_v5, %v4903_v56  ;;  %v4873_v46 = vadd.f32 -0.28449672, %v4857_v1  ;;  %v5093_v60 = vmul.f32 %v5077_v28, %v4677_v33  ;;  %v14473_v1 = vpop.eup %14472 }
0x1162   : > { %v4918_v59 = vmul.f32 %v17005_v32, %v4902_v10  ;;  %v4872_v24 = vadd.f32 -0.28449672, %v4856_v57  ;;  %v5092_v15 = vmul.f32 %v5076_v52, %v4676_v62  ;;  %v4678_v10 = vmul.f32 0.5, %v16979_v49 }
0x1163   : > { %v4999_v20 = vmul.f32 %v14467_v43, %v4919_v13  ;;  %v4889_v35 = vmul.f32 %v17010_v12, %v4873_v46 }
0x1164   : > { %v4998_v2 = vmul.f32 %v14469_v30, %v4918_v59  ;;  %v4888_v39 = vmul.f32 %v17013_v0, %v4872_v24  ;;  %12020 = vmatprep.mubr.f32.mxu0 %v5092_v15 }
0x1165   : > { %v5015_v5 = vsub.f32 1.0, %v4999_v20  ;;  %v4905_v6 = vadd.f32 0.2548296, %v4889_v35  ;;  %12021 = vmatmul.mubr.f32.vlgmr.msra.gmra.mrb[96].mxu0 %v5093_v60 }
0x1166   : > { %v5014_v17 = vsub.f32 1.0, %v4998_v2  ;;  %v4904_v40 = vadd.f32 0.2548296, %v4888_v39 }
0x1167   : > { %v11975_v32 = vpop.f32.mrb[86].mxu1  ;;  %v5047_v21 = vsub.f32 0.0, %v5015_v5  ;;  %v4921_v58 = vmul.f32 %v17010_v12, %v4905_v6 }
0x1168   : > { %v17036_v9 = vadd.f32 %v11975_v32, %v16959_v23  ;;  %v4627_v47 = vpop.f32.mrb[87].mxu1  ;;  %v5046_v42 = vsub.f32 0.0, %v5014_v17  ;;  %v4920_v36 = vmul.f32 %v17013_v0, %v4904_v40 }
0x1169   : > { %v17041_v26 = vadd.f32 %v16959_v23, %v4627_v47  ;;  %v5063_v37 = vsel %vm5031_vm9, %v5015_v5, %v5047_v21  ;;  %v5001_v56 = vmul.f32 %v14471_v16, %v4921_v58  ;;  %v4681_v21 = vmul.f32 0.5, %v16990_v18 }
0x116a   : > { %v17044_v12 = vmul.f32 0.70710677, %v17036_v9  ;;  %v5062_v50 = vsel %vm5030_vm10, %v5014_v17, %v5046_v42  ;;  %v5079_v27 = vadd.f32 1.0, %v5063_v37  ;;  %v5000_v0 = vmul.f32 %v14473_v1, %v4920_v36 }
0x116b   : > { %v17048_v57 = vmul.f32 0.70710677, %v17041_v26  ;;  %v5078_v43 = vadd.f32 1.0, %v5062_v50  ;;  %v5017_v46 = vsub.f32 1.0, %v5001_v56 }
0x116c   : > { %v4715_v13 = vand.u32 2147483647, %v17044_v12  ;;  %v5016_v59 = vsub.f32 1.0, %v5000_v0  ;;  %v5095_v30 = vmul.f32 %v5079_v27, %v4679_v63  ;;  %vm5035_vm13 = vcmp.ge.f32.partialorder %v17044_v12, 0.0 }
0x116d   : > { %v4714_v28 = vand.u32 2147483647, %v17048_v57  ;;  %v5094_v14 = vmul.f32 %v5078_v43, %v4678_v10  ;;  %v5049_v62 = vsub.f32 0.0, %v5017_v46  ;;  %vm5034_vm14 = vcmp.ge.f32.partialorder %v17048_v57, 0.0 }
0x116e   : > { %v4731_v24 = vmul.f32 0.3275911, %v4715_v13  ;;  %v5048_v49 = vsub.f32 0.0, %v5016_v59  ;;  %v4939_v17 = vsub.f32 0.0, %v4715_v13 }
0x116f   : > { %v4730_v52 = vmul.f32 0.3275911, %v4714_v28  ;;  %v11978_v20 = vpop.f32.mrb[88].mxu1  ;;  %12023 = vmatprep.mubr.f32.mxu0 %v5094_v14  ;;  %v5065_v6 = vsel %vm5033_vm12, %v5017_v46, %v5049_v62  ;;  %v4938_v40 = vsub.f32 0.0, %v4714_v28 }
0x1170   : > { %v4747_v35 = vadd.f32 1.0, %v4731_v24  ;;  %v17055_v33 = vadd.f32 %v11978_v20, %v16959_v23  ;;  %v4637_v55 = vpop.f32.mrb[89].mxu1  ;;  %12024 = vmatmul.mubr.f32.gmra.mrb[98].mxu0 %v5095_v30  ;;  %v5064_v15 = vsel %vm5032_vm11, %v5016_v59, %v5048_v49  ;;  %v5081_v16 = vadd.f32 1.0, %v5065_v6 }
0x1171   : > { %v4746_v2 = vadd.f32 1.0, %v4730_v52  ;;  %v17059_v39 = vadd.f32 %v16959_v23, %v4637_v55  ;;  %v5080_v32 = vadd.f32 1.0, %v5064_v15  ;;  %v4955_v56 = vmul.f32 %v4939_v17, %v4715_v13 }
0x1172   : > { %14474 = vrcp.f32 %v4747_v35  ;;  %v17062_v5 = vmul.f32 0.70710677, %v17055_v33  ;;  %v5097_v36 = vmul.f32 %v5081_v16, %v4681_v21  ;;  %v4954_v4 = vmul.f32 %v4938_v40, %v4714_v28 }
0x1173   : > { %14476 = vrcp.f32 %v4746_v2  ;;  %v17066_v60 = vmul.f32 0.70710677, %v17059_v39  ;;  %v5096_v47 = vmul.f32 %v5080_v32, %v4680_v31  ;;  %v4978_v28 = vmul.f32 1.442695, %v4955_v56 }
0x1174   : > { %v4717_v25 = vand.u32 2147483647, %v17062_v5  ;;  %v4976_v14 = vmul.f32 1.442695, %v4954_v4  ;;  %vm5037_vm0 = vcmp.ge.f32.partialorder %v17062_v5, 0.0 }
0x1175   : > { %v4716_v58 = vand.u32 2147483647, %v17066_v60  ;;  %12026 = vmatprep.mubr.f32.mxu0 %v5096_v47  ;;  %vm5036_vm15 = vcmp.ge.f32.partialorder %v17066_v60, 0.0 }
0x1176   : > { %v4941_v1 = vsub.f32 0.0, %v4717_v25  ;;  %12027 = vmatmul.mubr.f32.gmra.mrb[100].mxu0 %v5097_v36  ;;  %v4733_v63 = vmul.f32 0.3275911, %v4717_v25 }
0x1177   : > { %v4732_v42 = vmul.f32 0.3275911, %v4716_v58  ;;  %v11981_v37 = vpop.f32.mrb[90].mxu1  ;;  %v4940_v43 = vsub.f32 0.0, %v4716_v58 }
0x1178   : > { %v17072_v50 = vadd.f32 %v11981_v37, %v16959_v23  ;;  %v4647_v27 = vpop.f32.mrb[91].mxu1  ;;  %v4957_v59 = vmul.f32 %v4941_v1, %v4717_v25  ;;  %v4749_v2 = vadd.f32 1.0, %v4733_v63 }
0x1179   : > { %v4748_v10 = vadd.f32 1.0, %v4732_v42  ;;  %v17075_v18 = vadd.f32 %v16959_v23, %v4647_v27  ;;  %v4956_v62 = vmul.f32 %v4940_v43, %v4716_v58  ;;  %v17099_v42 = vmul.f32 0.5, %v17036_v9 }
0x117a   : > { %v17078_v0 = vmul.f32 0.70710677, %v17072_v50  ;;  %v4982_v17 = vmul.f32 1.442695, %v4957_v59  ;;  %v17108_v27 = vmul.f32 0.5, %v17041_v26 }
0x117b   : > { %v17081_v46 = vmul.f32 0.70710677, %v17075_v18  ;;  %14478 = vrcp.f32 %v4748_v10  ;;  %v4980_v21 = vmul.f32 1.442695, %v4956_v62 }
0x117c   : > { %v17083_v13 = vpop.eup %14474  ;;  %v4719_v24 = vand.u32 2147483647, %v17078_v0  ;;  %14480 = vpow2.f32 %v4978_v28  ;;  %vm5039_vm1 = vcmp.ge.f32.partialorder %v17078_v0, 0.0 }
0x117d   : > { %v17086_v30 = vpop.eup %14476  ;;  %v4718_v52 = vand.u32 2147483647, %v17081_v46  ;;  %v4795_v20 = vmul.f32 1.0614054, %v17083_v13  ;;  %14482 = vpow2.f32 %v4976_v14  ;;  %vm5038_vm7 = vcmp.ge.f32.partialorder %v17081_v46, 0.0 }
0x117e   : > { %v4735_v49 = vmul.f32 0.3275911, %v4719_v24  ;;  %v4943_v35 = vsub.f32 0.0, %v4719_v24  ;;  %v4794_v55 = vmul.f32 1.0614054, %v17086_v30  ;;  %14484 = vrcp.f32 %v4749_v2 }
0x117f   : > { %v4734_v15 = vmul.f32 0.3275911, %v4718_v52  ;;  %v11984_v6 = vpop.f32.mrb[92].mxu1  ;;  %v4811_v31 = vadd.f32 -1.4531521, %v4795_v20  ;;  %v4942_v4 = vsub.f32 0.0, %v4718_v52  ;;  %14486 = vpow2.f32 %v4982_v17 }
0x1180   : > { %v17092_v40 = vadd.f32 %v11984_v6, %v16959_v23  ;;  %v4657_v25 = vpop.f32.mrb[93].mxu1  ;;  %v4810_v32 = vadd.f32 -1.4531521, %v4794_v55  ;;  %v4959_v58 = vmul.f32 %v4943_v35, %v4719_v24  ;;  %v4751_v36 = vadd.f32 1.0, %v4735_v49 }
0x1181   : > { %v17095_v16 = vadd.f32 %v16959_v23, %v4657_v25  ;;  %v4827_v47 = vmul.f32 %v17083_v13, %v4811_v31  ;;  %v4750_v56 = vadd.f32 1.0, %v4734_v15  ;;  %14488 = vpow2.f32 %v4980_v21 }
0x1182   : > { %v17102_v37 = vmul.f32 0.70710677, %v17092_v40  ;;  %v4826_v9 = vmul.f32 %v17086_v30, %v4810_v32  ;;  %v4986_v43 = vmul.f32 1.442695, %v4959_v58  ;;  %14490 = vrcp.f32 %v4751_v36 }
0x1183   : > { %v17105_v1 = vmul.f32 0.70710677, %v17095_v16  ;;  %v4843_v28 = vadd.f32 1.4214138, %v4827_v47  ;;  %14492 = vrcp.f32 %v4750_v56  ;;  %v4958_v20 = vmul.f32 %v4942_v4, %v4718_v52 }
0x1184   : > { %v4721_v10 = vand.u32 2147483647, %v17102_v37  ;;  %v4842_v24 = vadd.f32 1.4214138, %v4826_v9  ;;  %v17124_v52 = vmul.f32 0.5, %v17055_v33  ;;  %14494 = vpow2.f32 %v4986_v43 }
0x1185   : > { %v4720_v63 = vand.u32 2147483647, %v17105_v1  ;;  %v17113_v62 = vpop.eup %14478  ;;  %v4859_v35 = vmul.f32 %v17083_v13, %v4843_v28  ;;  %v17131_v56 = vmul.f32 0.5, %v17059_v39  ;;  %v4984_v4 = vmul.f32 1.442695, %v4958_v20 }
0x1186   : > { %v4737_v14 = vmul.f32 0.3275911, %v4721_v10  ;;  %v4945_v59 = vsub.f32 0.0, %v4721_v10  ;;  %v4858_v31 = vmul.f32 %v17086_v30, %v4842_v24  ;;  %v14481_v58 = vpop.eup %14480  ;;  %v4796_v36 = vmul.f32 1.0614054, %v17113_v62 }
0x1187   : > { %v4736_v26 = vmul.f32 0.3275911, %v4720_v63  ;;  %v11987_v49 = vpop.f32.mrb[94].mxu1  ;;  %v4944_v2 = vsub.f32 0.0, %v4720_v63  ;;  %v4875_v21 = vadd.f32 -0.28449672, %v4859_v35 }
0x1188   : > { %v4753_v55 = vadd.f32 1.0, %v4737_v14  ;;  %v17117_v15 = vadd.f32 %v11987_v49, %v16959_v23  ;;  %v4667_v6 = vpop.f32.mrb[95].mxu1  ;;  %v4961_v17 = vmul.f32 %v4945_v59, %v4721_v10  ;;  %v17137_v9 = vmul.f32 0.5, %v17075_v18 }
0x1189   : > { %v4752_v25 = vadd.f32 1.0, %v4736_v26  ;;  %v17121_v32 = vadd.f32 %v16959_v23, %v4667_v6  ;;  %v14483_v23 = vpop.eup %14482  ;;  %v4874_v43 = vadd.f32 -0.28449672, %v4858_v31  ;;  %v4960_v59 = vmul.f32 %v4944_v2, %v4720_v63 }
0x118a   : > { %v17127_v47 = vmul.f32 0.70710677, %v17117_v15  ;;  %v17140_v28 = vpop.eup %14484  ;;  %v4990_v14 = vmul.f32 1.442695, %v4961_v17  ;;  %v4891_v24 = vmul.f32 %v17083_v13, %v4875_v21  ;;  %v4812_v18 = vadd.f32 -1.4531521, %v4796_v36 }
0x118b   : > { %14496 = vrcp.f32 %v4752_v25  ;;  %v17134_v10 = vmul.f32 0.70710677, %v17121_v32  ;;  %v17144_v20 = vpop.eup %14486  ;;  %v4890_v35 = vmul.f32 %v17086_v30, %v4874_v43  ;;  %v4797_v48 = vmul.f32 1.0614054, %v17140_v28 }
0x118c   : > { %14498 = vrcp.f32 %v4753_v55  ;;  %v4723_v33 = vand.u32 2147483647, %v17127_v47  ;;  %v17147_v6 = vpop.eup %14488  ;;  %v4907_v25 = vadd.f32 0.2548296, %v4891_v24  ;;  %v4828_v21 = vmul.f32 %v17113_v62, %v4812_v18 }
0x118d   : > { %v4722_v39 = vand.u32 2147483647, %v17134_v10  ;;  %14500 = vpow2.f32 %v4984_v4  ;;  %v17149_v22 = vpop.eup %14490  ;;  %v4906_v17 = vadd.f32 0.2548296, %v4890_v35  ;;  %v4988_v24 = vmul.f32 1.442695, %v4960_v59 }
0x118e   : > { %v4739_v26 = vmul.f32 0.3275911, %v4723_v33  ;;  %v4947_v49 = vsub.f32 0.0, %v4723_v33  ;;  %v17153_v34 = vpop.eup %14492  ;;  %v4923_v4 = vmul.f32 %v17083_v13, %v4907_v25  ;;  %v4844_v29 = vadd.f32 1.4214138, %v4828_v21 }
0x118f   : > { %v4738_v55 = vmul.f32 0.3275911, %v4722_v39  ;;  %v4946_v31 = vsub.f32 0.0, %v4722_v39  ;;  %v4922_v61 = vmul.f32 %v17086_v30, %v4906_v17  ;;  %v17159_v35 = vpop.eup %14494  ;;  %v4799_v30 = vmul.f32 1.0614054, %v17149_v22 }
0x1190   : > { %v4755_v63 = vadd.f32 1.0, %v4739_v26  ;;  %v4963_v2 = vmul.f32 %v4947_v49, %v4723_v33  ;;  %v5003_v33 = vmul.f32 %v14481_v58, %v4923_v4  ;;  %v4813_v49 = vadd.f32 -1.4531521, %v4797_v48 }
0x1191   : > { %v4754_v36 = vadd.f32 1.0, %v4738_v55  ;;  %v4962_v43 = vmul.f32 %v4946_v31, %v4722_v39  ;;  %v5002_v18 = vmul.f32 %v14483_v23, %v4922_v61  ;;  %v4860_v55 = vmul.f32 %v17113_v62, %v4844_v29 }
0x1192   : > { %14502 = vrcp.f32 %v4755_v63  ;;  %v4994_v26 = vmul.f32 1.442695, %v4963_v2  ;;  %v4798_v39 = vmul.f32 1.0614054, %v17153_v34  ;;  %v5019_v59 = vsub.f32 1.0, %v5003_v33 }
0x1193   : > { %14504 = vrcp.f32 %v4754_v36  ;;  %v4992_v31 = vmul.f32 1.442695, %v4962_v43  ;;  %v4829_v25 = vmul.f32 %v17140_v28, %v4813_v49  ;;  %v5018_v48 = vsub.f32 1.0, %v5002_v18 }
0x1194   : > { %14506 = vpow2.f32 %v4990_v14  ;;  %v4876_v58 = vadd.f32 -0.28449672, %v4860_v55  ;;  %v4814_v2 = vadd.f32 -1.4531521, %v4798_v39  ;;  %v5051_v61 = vsub.f32 0.0, %v5019_v59 }
0x1195   : > { %v17163_v13 = vpop.eup %14496  ;;  %14508 = vpow2.f32 %v4988_v24  ;;  %v4845_v23 = vadd.f32 1.4214138, %v4829_v25  ;;  %v4815_v29 = vadd.f32 -1.4531521, %v4799_v30  ;;  %v5050_v14 = vsub.f32 0.0, %v5018_v48 }
0x1196   : > { %v17167_v63 = vpop.eup %14498  ;;  %14510 = vpow2.f32 %v4994_v26  ;;  %v4892_v17 = vmul.f32 %v17113_v62, %v4876_v58  ;;  %v4830_v21 = vmul.f32 %v17153_v34, %v4814_v2  ;;  %v4800_v36 = vmul.f32 1.0614054, %v17163_v13 }
0x1197   : > { %v17172_v43 = vpop.eup %14500  ;;  %v5067_v4 = vsel %vm5035_vm13, %v5019_v59, %v5051_v61  ;;  %v4861_v24 = vmul.f32 %v17140_v28, %v4845_v23  ;;  %v4831_v33 = vmul.f32 %v17149_v22, %v4815_v29  ;;  %v4801_v26 = vmul.f32 1.0614054, %v17167_v63 }
0x1198   : > { %v5066_v49 = vsel %vm5034_vm14, %v5018_v48, %v5050_v14  ;;  %v5083_v18 = vadd.f32 1.0, %v5067_v4  ;;  %v4908_v55 = vadd.f32 0.2548296, %v4892_v17  ;;  %v4846_v39 = vadd.f32 1.4214138, %v4830_v21 }
0x1199   : > { %14512 = vpow2.f32 %v4992_v31  ;;  %v5082_v25 = vadd.f32 1.0, %v5066_v49  ;;  %v4877_v30 = vadd.f32 -0.28449672, %v4861_v24  ;;  %v4847_v58 = vadd.f32 1.4214138, %v4831_v33 }
0x119a   : > { %v5099_v59 = vmul.f32 %v5083_v18, %v17099_v42  ;;  %v4924_v2 = vmul.f32 %v17113_v62, %v4908_v55  ;;  %v4862_v61 = vmul.f32 %v17153_v34, %v4846_v39  ;;  %v4816_v23 = vadd.f32 -1.4531521, %v4800_v36 }
0x119b   : > { %v5098_v48 = vmul.f32 %v5082_v25, %v17108_v27  ;;  %v4893_v29 = vmul.f32 %v17140_v28, %v4877_v30  ;;  %v4863_v31 = vmul.f32 %v17149_v22, %v4847_v58  ;;  %v4817_v14 = vadd.f32 -1.4531521, %v4801_v26 }
0x119c   : > { %v17182_v12 = vpop.eup %14502  ;;  %v5004_v21 = vmul.f32 %v17147_v6, %v4924_v2  ;;  %v4878_v4 = vadd.f32 -0.28449672, %v4862_v61  ;;  %v4832_v42 = vmul.f32 %v17163_v13, %v4816_v23  ;;  %vm5040_vm8 = vcmp.ge.f32.partialorder %v17105_v1, 0.0 }
0x119d   : > { %v17187_v57 = vpop.eup %14504  ;;  %12029 = vmatprep.mubr.f32.mxu0 %v5098_v48  ;;  %v4909_v36 = vadd.f32 0.2548296, %v4893_v29  ;;  %v4879_v24 = vadd.f32 -0.28449672, %v4863_v31  ;;  %v4833_v33 = vmul.f32 %v17167_v63, %v4817_v14  ;;  %v4803_v27 = vmul.f32 1.0614054, %v17182_v12 }
0x119e   : > { %v17192_v17 = vpop.eup %14506  ;;  %v4802_v62 = vmul.f32 1.0614054, %v17187_v57  ;;  %12030 = vmatmul.mubr.f32.gmra.mrb[102].mxu0 %v5099_v59  ;;  %v5020_v26 = vsub.f32 1.0, %v5004_v21  ;;  %v4894_v18 = vmul.f32 %v17153_v34, %v4878_v4  ;;  %v4848_v6 = vadd.f32 1.4214138, %v4832_v42 }
0x119f   : > { %v14509_v49 = vpop.eup %14508  ;;  %v4925_v25 = vmul.f32 %v17140_v28, %v4909_v36  ;;  %v4895_v30 = vmul.f32 %v17149_v22, %v4879_v24  ;;  %v4849_v58 = vadd.f32 1.4214138, %v4833_v33  ;;  %v4819_v2 = vadd.f32 -1.4531521, %v4803_v27 }
0x11a0   : > { %v4818_v55 = vadd.f32 -1.4531521, %v4802_v62  ;;  %v17201_v39 = vpop.eup %14510  ;;  %v5052_v61 = vsub.f32 0.0, %v5020_v26  ;;  %v4910_v23 = vadd.f32 0.2548296, %v4894_v18  ;;  %v4864_v48 = vmul.f32 %v17163_v13, %v4848_v6 }
0x11a1   : > { %v5005_v59 = vmul.f32 %v17144_v20, %v4925_v25  ;;  %v4911_v31 = vadd.f32 0.2548296, %v4895_v30  ;;  %v4865_v14 = vmul.f32 %v17167_v63, %v4849_v58  ;;  %v4835_v21 = vmul.f32 %v17182_v12, %v4819_v2 }
0x11a2   : > { %v4834_v29 = vmul.f32 %v17187_v57, %v4818_v55  ;;  %v5068_v28 = vsel %vm5036_vm15, %v5020_v26, %v5052_v61  ;;  %v4926_v4 = vmul.f32 %v17153_v34, %v4910_v23  ;;  %v4880_v42 = vadd.f32 -0.28449672, %v4864_v48 }
0x11a3   : > { %v14513_v36 = vpop.eup %14512  ;;  %v5084_v24 = vadd.f32 1.0, %v5068_v28  ;;  %v5021_v33 = vsub.f32 1.0, %v5005_v59  ;;  %v4927_v27 = vmul.f32 %v17149_v22, %v4911_v31  ;;  %v4881_v18 = vadd.f32 -0.28449672, %v4865_v14 }
0x11a4   : > { %v4850_v62 = vadd.f32 1.4214138, %v4834_v29  ;;  %v5006_v20 = vmul.f32 %v17172_v43, %v4926_v4  ;;  %v4896_v6 = vmul.f32 %v17163_v13, %v4880_v42  ;;  %v4851_v25 = vadd.f32 1.4214138, %v4835_v21 }
0x11a5   : > { %v5100_v60 = vmul.f32 %v5084_v24, %v17131_v56  ;;  %v5053_v26 = vsub.f32 0.0, %v5021_v33  ;;  %v5007_v34 = vmul.f32 %v17159_v35, %v4927_v27  ;;  %v4897_v30 = vmul.f32 %v17167_v63, %v4881_v18 }
0x11a6   : > { %v4866_v55 = vmul.f32 %v17187_v57, %v4850_v62  ;;  %v5022_v58 = vsub.f32 1.0, %v5006_v20  ;;  %v4912_v2 = vadd.f32 0.2548296, %v4896_v6  ;;  %v4867_v22 = vmul.f32 %v17182_v12, %v4851_v25 }
0x11a7   : > { %12032 = vmatprep.mubr.f32.mxu0 %v5100_v60  ;;  %v5069_v43 = vsel %vm5037_vm0, %v5021_v33, %v5053_v26  ;;  %v5023_v23 = vsub.f32 1.0, %v5007_v34  ;;  %v4913_v48 = vadd.f32 0.2548296, %v4897_v30  ;;  %v4687_v27 = vmul.f32 0.5, %v17072_v50 }
0x11a8   : > { %v4882_v61 = vadd.f32 -0.28449672, %v4866_v55  ;;  %v5085_v29 = vadd.f32 1.0, %v5069_v43  ;;  %v5054_v56 = vsub.f32 0.0, %v5022_v58  ;;  %v4928_v59 = vmul.f32 %v17163_v13, %v4912_v2 }
0x11a9   : > { %v5055_v31 = vsub.f32 0.0, %v5023_v23  ;;  %v4929_v14 = vmul.f32 %v17167_v63, %v4913_v48  ;;  %v4883_v21 = vadd.f32 -0.28449672, %v4867_v22  ;;  %vm5041_vm9 = vcmp.ge.f32.partialorder %v17102_v37, 0.0 }
0x11aa   : > { %v4898_v35 = vmul.f32 %v17187_v57, %v4882_v61  ;;  %v5101_v28 = vmul.f32 %v5085_v29, %v17124_v52  ;;  %v5070_v4 = vsel %vm5038_vm7, %v5022_v58, %v5054_v56  ;;  %v5008_v42 = vmul.f32 %v14509_v49, %v4928_v59  ;;  %v17249_v29 = vld [vmem:[%s19756_s14] ss:$0 sm:$0xff] }
0x11ab   : > { %v5086_v62 = vadd.f32 1.0, %v5070_v4  ;;  %v5071_v24 = vsel %vm5039_vm1, %v5023_v23, %v5055_v31  ;;  %v5009_v33 = vmul.f32 %v17192_v17, %v4929_v14  ;;  %v4899_v13 = vmul.f32 %v17182_v12, %v4883_v21 }
0x11ac   : > { %v4914_v5 = vadd.f32 0.2548296, %v4898_v35  ;;  %12033 = vmatmul.mubr.f32.gmra.mrb[104].mxu0 %v5101_v28  ;;  %v5087_v46 = vadd.f32 1.0, %v5071_v24  ;;  %v5024_v18 = vsub.f32 1.0, %v5008_v42  ;;  %v4689_v30 = vmul.f32 0.5, %v17092_v40 }
0x11ad   : > { %v5102_v52 = vmul.f32 %v5086_v62, %v17137_v9  ;;  %v5025_v20 = vsub.f32 1.0, %v5009_v33  ;;  %v4915_v49 = vadd.f32 0.2548296, %v4899_v13  ;;  %vm5042_vm10 = vcmp.ge.f32.partialorder %v17134_v10, 0.0 }
0x11ae   : > { %v4930_v63 = vmul.f32 %v17187_v57, %v4914_v5  ;;  %v5103_v6 = vmul.f32 %v5087_v46, %v4687_v27  ;;  %v5056_v55 = vsub.f32 0.0, %v5024_v18  ;;  %v4688_v57 = vmul.f32 0.5, %v17095_v16 }
0x11af   : > { %12035 = vmatprep.mubr.f32.mxu0 %v5102_v52  ;;  %v5057_v0 = vsub.f32 0.0, %v5025_v20  ;;  %v4931_v17 = vmul.f32 %v17182_v12, %v4915_v49  ;;  %v4690_v37 = vmul.f32 0.5, %v17121_v32  ;;  %vm5043_vm11 = vcmp.ge.f32.partialorder %v17127_v47, 0.0 }
0x11b0   : > { %v5010_v25 = vmul.f32 %v14513_v36, %v4930_v63  ;;  %12036 = vmatmul.mubr.f32.gmra.mrb[106].mxu0 %v5103_v6  ;;  %v5072_v50 = vsel %vm5040_vm8, %v5024_v18, %v5056_v55  ;;  %v4691_v40 = vmul.f32 0.5, %v17117_v15 }
0x11b1   : > { %v5088_v26 = vadd.f32 1.0, %v5072_v50  ;;  %v5073_v9 = vsel %vm5041_vm9, %v5025_v20, %v5057_v0  ;;  %v5011_v34 = vmul.f32 %v17201_v39, %v4931_v17 }
0x11b2   : > { %v5026_v60 = vsub.f32 1.0, %v5010_v25  ;;  %v5089_v36 = vadd.f32 1.0, %v5073_v9 }
0x11b3   : > { %v5104_v1 = vmul.f32 %v5088_v26, %v4688_v57  ;;  %v5027_v2 = vsub.f32 1.0, %v5011_v34 }
0x11b4   : > { %v5058_v58 = vsub.f32 0.0, %v5026_v60  ;;  %v5105_v12 = vmul.f32 %v5089_v36, %v4689_v30 }
0x11b5   : > { %12038 = vmatprep.mubr.f32.mxu0 %v5104_v1  ;;  %v5059_v43 = vsub.f32 0.0, %v5027_v2 }
0x11b6   : > { %v5074_v61 = vsel %vm5042_vm10, %v5026_v60, %v5058_v58  ;;  %12039 = vmatmul.mubr.f32.gmra.mrb[108].mxu0 %v5105_v12  ;;  %v19948_v58 = vld [vmem:[#allocation35_spill] sm:$0xff] }
0x11b7   : > { %v5090_v22 = vadd.f32 1.0, %v5074_v61  ;;  %v5075_v39 = vsel %vm5043_vm11, %v5027_v2, %v5059_v43 }
0x11b8   : > { %v5091_v23 = vadd.f32 1.0, %v5075_v39  ;;  %v19952_v39 = vld [vmem:[#allocation38_spill] sm:$0xff] }
0x11b9   : > { %v5106_v16 = vmul.f32 %v5090_v22, %v4690_v37 }
0x11ba   : > { %v5107_v48 = vmul.f32 %v5091_v23, %v4691_v40 }
0x11bb   : > { %12041 = vmatprep.mubr.f32.mxu0 %v5106_v16 }
0x11bc   : > { %12042 = vmatmul.mubr.f32.gmra.mrb[110].mxu0 %v5107_v48  ;;  %v19953_v48 = vld [vmem:[#allocation37_spill] sm:$0xff] }
0x1238   : > { %v12022_v10 = vpop.f32.mrb[96].mxu0 }
0x1239   : > { %v5270_v32 = vadd.f32 %v12022_v10, %v16633_v38  ;;  %v5190_v56 = vpop.f32.mrb[97].mxu0 }
0x123a   : > { %v5269_v47 = vadd.f32 %v5190_v56, %v16636_v44 }
0x123b   : > { %v17254_v59 = vadd.f32 %v17249_v29, %v5270_v32 }
0x123c   : > { %v17257_v15 = vadd.f32 %v17249_v29, %v5269_v47 }
0x123d   : > { %19936 = vst [vmem:[#allocation40_spill] sm:$0xff] %v17254_v59  ;;  %v5315_v35 = vsel %vm825_vm2, %v17254_v59, 0.0 }
0x123e   : > { %19937 = vst [vmem:[#allocation39_spill] sm:$0xff] %v17257_v15  ;;  %5316 = vadd.xlane.f32.xlu1 %v5315_v35  ;;  %v5312_v31 = vsel %vm825_vm2, %v17257_v15, 0.0 }
0x123f   : > { %5313 = vadd.xlane.f32.xlu0 %v5312_v31 }
0x1243   : > { %v12025_v14 = vpop.f32.mrb[98].mxu0 }
0x1244   : > { %v5272_v38 = vadd.f32 %v12025_v14, %v16648_v54  ;;  %v5200_v21 = vpop.f32.mrb[99].mxu0 }
0x1245   : > { %v5271_v44 = vadd.f32 %v5200_v21, %v16645_v11 }
0x1246   : > { %v17266_v28 = vadd.f32 %v17249_v29, %v5272_v38 }
0x1247   : > { %v17269_v4 = vadd.f32 %v17249_v29, %v5271_v44 }
0x1248   : > { %19938 = vst [vmem:[#allocation42_spill] sm:$0xff] %v17266_v28  ;;  %v5321_v42 = vsel %vm825_vm2, %v17266_v28, 0.0 }
0x1249   : > { %19939 = vst [vmem:[#allocation41_spill] sm:$0xff] %v17269_v4  ;;  %5322 = vadd.xlane.f32.xlu1 %v5321_v42  ;;  %v5318_v5 = vsel %vm825_vm2, %v17269_v4, 0.0  ;;  %v12028_v62 = vpop.f32.mrb[100].mxu0 }
0x124a   : > { %5319 = vadd.xlane.f32.xlu0 %v5318_v5  ;;  %v5274_v54 = vadd.f32 %v12028_v62, %v16657_v51  ;;  %v5210_v24 = vpop.f32.mrb[101].mxu0 }
0x124b   : > { %v5273_v11 = vadd.f32 %v5210_v24, %v16660_v45 }
0x124c   : > { %v17278_v33 = vadd.f32 %v17249_v29, %v5274_v54 }
0x124d   : > { %v17281_v13 = vadd.f32 %v17249_v29, %v5273_v11 }
0x124e   : > { %19940 = vst [vmem:[#allocation44_spill] sm:$0xff] %v17278_v33  ;;  %v5327_v27 = vsel %vm825_vm2, %v17278_v33, 0.0 }
0x124f   : > { %19941 = vst [vmem:[#allocation43_spill] sm:$0xff] %v17281_v13  ;;  %5328 = vadd.xlane.f32.xlu1 %v5327_v27  ;;  %v5324_v46 = vsel %vm825_vm2, %v17281_v13, 0.0 }
0x1250   : > { %5325 = vadd.xlane.f32.xlu0 %v5324_v46 }
0x1271   : > { %v12031_v18 = vpop.f32.mrb[102].mxu0 }
0x1272   : > { %v5276_v51 = vadd.f32 %v12031_v18, %v16669_v7  ;;  %v5220_v63 = vpop.f32.mrb[103].mxu0 }
0x1273   : > { %v5275_v45 = vadd.f32 %v5220_v63, %v16672_v53 }
0x1274   : > { %v17290_v52 = vadd.f32 %v17249_v29, %v5276_v51 }
0x1275   : > { %v17293_v20 = vadd.f32 %v17249_v29, %v5275_v45 }
0x1276   : > { %19942 = vst [vmem:[#allocation45_spill] sm:$0xff] %v17290_v52  ;;  %v5333_v49 = vsel %vm825_vm2, %v17290_v52, 0.0 }
0x1277   : > { %19943 = vst [vmem:[#allocation46_spill] sm:$0xff] %v17293_v20  ;;  %5334 = vadd.xlane.f32.xlu1 %v5333_v49  ;;  %v5330_v6 = vsel %vm825_vm2, %v17293_v20, 0.0 }
0x1278   : > { %5331 = vadd.xlane.f32.xlu0 %v5330_v6 }
0x127f   : > { %v12034_v55 = vpop.f32.mrb[104].mxu0 }
0x1280   : > { %v5278_v7 = vadd.f32 %v12034_v55, %v16681_v19  ;;  %v5230_v25 = vpop.f32.mrb[105].mxu0 }
0x1281   : > { %v5277_v53 = vadd.f32 %v5230_v25, %v16684_v41 }
0x1282   : > { %v17302_v0 = vadd.f32 %v17249_v29, %v5278_v7 }
0x1283   : > { %v17305_v17 = vadd.f32 %v17249_v29, %v5277_v53  ;;  %v12037_v50 = vpop.f32.mrb[106].mxu0 }
0x1284   : > { %19944 = vst [vmem:[#allocation47_spill] sm:$0xff] %v17302_v0  ;;  %v5339_v60 = vsel %vm825_vm2, %v17302_v0, 0.0  ;;  %v5280_v57 = vadd.f32 %v12037_v50, %v16693_v8  ;;  %v5240_v26 = vpop.f32.mrb[107].mxu0 }
0x1285   : > { %19945 = vst [vmem:[#allocation48_spill] sm:$0xff] %v17305_v17  ;;  %5340 = vadd.xlane.f32.xlu1 %v5339_v60  ;;  %v5336_v19 = vsel %vm825_vm2, %v17305_v17, 0.0  ;;  %v5279_v9 = vadd.f32 %v5240_v26, %v16696_v3  ;;  %v19949_v3 = vld [vmem:[#allocation36_spill] sm:$0xff] }
0x1286   : > { %5337 = vadd.xlane.f32.xlu0 %v5336_v19  ;;  %v17314_v41 = vadd.f32 %v17249_v29, %v5280_v57 }
0x1287   : > { %v17317_v34 = vadd.f32 %v17249_v29, %v5279_v9 }
0x1288   : > { %19946 = vst [vmem:[#allocation49_spill] sm:$0xff] %v17314_v41  ;;  %v5345_v30 = vsel %vm825_vm2, %v17314_v41, 0.0 }
0x1289   : > { %19947 = vst [vmem:[#allocation50_spill] sm:$0xff] %v17317_v34  ;;  %5346 = vadd.xlane.f32.xlu1 %v5345_v30  ;;  %v5342_v8 = vsel %vm825_vm2, %v17317_v34, 0.0  ;;  %v12040_v36 = vpop.f32.mrb[108].mxu0  ;;  %v10450_v30 = vld [vmem:[%s19747_s5 + $0x20] sm:$0xff] }
0x128a   : > { %5343 = vadd.xlane.f32.xlu0 %v5342_v8  ;;  %v5282_v1 = vadd.f32 %v12040_v36, %v19948_v58  ;;  %v5250_v2 = vpop.f32.mrb[109].mxu0  ;;  %v10451_v8 = vld [vmem:[%s19747_s5 + $0x28] sm:$0xff]  ;;  %v10452_v58 = vld [vmem:[%s19747_s5 + $0x30] sm:$0xff] }
0x128b   : > { %v5281_v12 = vadd.f32 %v5250_v2, %v19949_v3  ;;  %v13055_v36 = vpack.c.bf16 %v10451_v8, %v10450_v30 }
0x128c   : > { %v17326_v61 = vadd.f32 %v17249_v29, %v5282_v1  ;;  %v10453_v1 = vld [vmem:[%s19747_s5 + $0x38] sm:$0xff] }
0x128d   : > { %v17329_v37 = vadd.f32 %v17249_v29, %v5281_v12  ;;  %13056 = vmatprep.subr.bf16.mxu1 %v13055_v36  ;;  %v13059_v2 = vpack.c.bf16 %v10453_v1, %v10452_v58 }
0x128e   : > { %19950 = vst [vmem:[#allocation20_spill] sm:$0xff] %v17326_v61  ;;  %v5351_v22 = vsel %vm825_vm2, %v17326_v61, 0.0  ;;  %13058 = vmatpush3.bf16.msra.mxu1 %v13055_v36 }
0x128f   : > { %19951 = vst [vmem:[#allocation19_spill] sm:$0xff] %v17329_v37  ;;  %5352 = vadd.xlane.f32.xlu1 %v5351_v22  ;;  %v5348_v43 = vsel %vm825_vm2, %v17329_v37, 0.0  ;;  %v12043_v16 = vpop.f32.mrb[110].mxu0  ;;  %13060 = vmatprep.subr.bf16.mxu1 %v13059_v2 }
0x1290   : > { %5349 = vadd.xlane.f32.xlu0 %v5348_v43  ;;  %v5284_v40 = vadd.f32 %v12043_v16, %v19952_v39  ;;  %v5260_v23 = vpop.f32.mrb[111].mxu0 }
0x1291   : > { %v5283_v10 = vadd.f32 %v5260_v23, %v19953_v48 }
0x1292   : > { %v17338_v32 = vadd.f32 %v17249_v29, %v5284_v40  ;;  %13062 = vmatpush3.bf16.msra.mxu1 %v13059_v2 }
0x1293   : > { %v17341_v56 = vadd.f32 %v17249_v29, %v5283_v10 }
0x1294   : > { %19954 = vst [vmem:[#allocation22_spill] sm:$0xff] %v17338_v32  ;;  %v5357_v47 = vsel %vm825_vm2, %v17338_v32, 0.0 }
0x1295   : > { %19955 = vst [vmem:[#allocation21_spill] sm:$0xff] %v17341_v56  ;;  %5358 = vadd.xlane.f32.xlu1 %v5357_v47  ;;  %v5354_v35 = vsel %vm825_vm2, %v17341_v56, 0.0 }
0x1296   : > { %5355 = vadd.xlane.f32.xlu0 %v5354_v35 }
0x12cb   : > { %v5317_v31 = vpop.xlane.xlu1 %5316 }
0x12cc   : > { %v5361_v14 = vmul.f32 0.03125, %v5317_v31  ;;  %v5314_v38 = vpop.xlane.xlu0 %5313 }
0x12cd   : > { %v5360_v21 = vmul.f32 0.03125, %v5314_v38 }
0x12ce   : > { %v17348_v44 = vsub.f32 %v17254_v59, %v5361_v14 }
0x12cf   : > { %v17351_v42 = vsub.f32 %v17257_v15, %v5360_v21 }
0x12d0   : > { %v5393_v29 = vmul.f32 %v17348_v44, %v17348_v44 }
0x12d1   : > { %v5392_v5 = vmul.f32 %v17351_v42, %v17351_v42 }
0x12d2   : > { %v5411_v62 = vsel %vm825_vm2, %v5393_v29, 0.0 }
0x12d3   : > { %5412 = vadd.xlane.f32.xlu1 %v5411_v62  ;;  %v5408_v54 = vsel %vm825_vm2, %v5392_v5, 0.0 }
0x12d4   : > { %5409 = vadd.xlane.f32.xlu0 %v5408_v54 }
0x12d6   : > { %v5323_v24 = vpop.xlane.xlu1 %5322 }
0x12d7   : > { %v5363_v11 = vmul.f32 0.03125, %v5323_v24  ;;  %v5320_v27 = vpop.xlane.xlu0 %5319 }
0x12d8   : > { %v5362_v46 = vmul.f32 0.03125, %v5320_v27 }
0x12d9   : > { %v17360_v18 = vsub.f32 %v17266_v28, %v5363_v11 }
0x12da   : > { %v17363_v51 = vsub.f32 %v17269_v4, %v5362_v46 }
0x12db   : > { %v5395_v63 = vmul.f32 %v17360_v18, %v17360_v18 }
0x12dc   : > { %v5394_v45 = vmul.f32 %v17363_v51, %v17363_v51  ;;  %v5329_v55 = vpop.xlane.xlu1 %5328 }
0x12dd   : > { %v5417_v49 = vsel %vm825_vm2, %v5395_v63, 0.0  ;;  %v5365_v7 = vmul.f32 0.03125, %v5329_v55  ;;  %v5326_v25 = vpop.xlane.xlu0 %5325 }
0x12de   : > { %5418 = vadd.xlane.f32.xlu1 %v5417_v49  ;;  %v5414_v6 = vsel %vm825_vm2, %v5394_v45, 0.0  ;;  %v5364_v53 = vmul.f32 0.03125, %v5326_v25 }
0x12df   : > { %5415 = vadd.xlane.f32.xlu0 %v5414_v6  ;;  %v17372_v50 = vsub.f32 %v17278_v33, %v5365_v7 }
0x12e0   : > { %v17375_v60 = vsub.f32 %v17281_v13, %v5364_v53 }
0x12e1   : > { %v5397_v57 = vmul.f32 %v17372_v50, %v17372_v50 }
0x12e2   : > { %v5396_v26 = vmul.f32 %v17375_v60, %v17375_v60 }
0x12e3   : > { %v5423_v19 = vsel %vm825_vm2, %v5397_v57, 0.0 }
0x12e4   : > { %5424 = vadd.xlane.f32.xlu1 %v5423_v19  ;;  %v5420_v9 = vsel %vm825_vm2, %v5396_v26, 0.0 }
0x12e5   : > { %5421 = vadd.xlane.f32.xlu0 %v5420_v9 }
0x1304   : > { %v5335_v3 = vpop.xlane.xlu1 %5334 }
0x1305   : > { %v5367_v12 = vmul.f32 0.03125, %v5335_v3  ;;  %v5332_v22 = vpop.xlane.xlu0 %5331 }
0x1306   : > { %v5366_v43 = vmul.f32 0.03125, %v5332_v22 }
0x1307   : > { %v17396_v16 = vsub.f32 %v17290_v52, %v5367_v12 }
0x1308   : > { %v17399_v39 = vsub.f32 %v17293_v20, %v5366_v43 }
0x1309   : > { %v5399_v40 = vmul.f32 %v17396_v16, %v17396_v16 }
0x130a   : > { %v5398_v23 = vmul.f32 %v17399_v39, %v17399_v39 }
0x130b   : > { %v5429_v48 = vsel %vm825_vm2, %v5399_v40, 0.0 }
0x130c   : > { %5430 = vadd.xlane.f32.xlu1 %v5429_v48  ;;  %v5426_v10 = vsel %vm825_vm2, %v5398_v23, 0.0 }
0x130d   : > { %5427 = vadd.xlane.f32.xlu0 %v5426_v10 }
0x1312   : > { %v5341_v47 = vpop.xlane.xlu1 %5340 }
0x1313   : > { %v5369_v35 = vmul.f32 0.03125, %v5341_v47  ;;  %v5338_v31 = vpop.xlane.xlu0 %5337 }
0x1314   : > { %v5368_v14 = vmul.f32 0.03125, %v5338_v31 }
0x1315   : > { %v17408_v38 = vsub.f32 %v17302_v0, %v5369_v35 }
0x1316   : > { %v17411_v21 = vsub.f32 %v17305_v17, %v5368_v14  ;;  %v5347_v29 = vpop.xlane.xlu1 %5346 }
0x1317   : > { %v5371_v5 = vmul.f32 0.03125, %v5347_v29  ;;  %v5401_v62 = vmul.f32 %v17408_v38, %v17408_v38  ;;  %v5344_v54 = vpop.xlane.xlu0 %5343 }
0x1318   : > { %v5400_v24 = vmul.f32 %v17411_v21, %v17411_v21  ;;  %v5370_v11 = vmul.f32 0.03125, %v5344_v54 }
0x1319   : > { %v17418_v27 = vsub.f32 %v17314_v41, %v5371_v5  ;;  %v5435_v46 = vsel %vm825_vm2, %v5401_v62, 0.0 }
0x131a   : > { %5436 = vadd.xlane.f32.xlu1 %v5435_v46  ;;  %v5432_v63 = vsel %vm825_vm2, %v5400_v24, 0.0  ;;  %v17423_v45 = vsub.f32 %v17317_v34, %v5370_v11 }
0x131b   : > { %5433 = vadd.xlane.f32.xlu0 %v5432_v63  ;;  %v5403_v49 = vmul.f32 %v17418_v27, %v17418_v27 }
0x131c   : > { %v5353_v6 = vpop.xlane.xlu1 %5352  ;;  %v5402_v55 = vmul.f32 %v17423_v45, %v17423_v45 }
0x131d   : > { %v5373_v7 = vmul.f32 0.03125, %v5353_v6  ;;  %v5441_v25 = vsel %vm825_vm2, %v5403_v49, 0.0  ;;  %v5350_v53 = vpop.xlane.xlu0 %5349  ;;  %v17458_v6 = vld [vmem:[%s19848_s3 + $0x1] ss:$0 sm:$0xff] }
0x131e   : > { %5442 = vadd.xlane.f32.xlu1 %v5441_v25  ;;  %v5438_v57 = vsel %vm825_vm2, %v5402_v55, 0.0  ;;  %v5372_v26 = vmul.f32 0.03125, %v5350_v53 }
0x131f   : > { %v17432_v19 = vsub.f32 %v17326_v61, %v5373_v7  ;;  %5439 = vadd.xlane.f32.xlu0 %v5438_v57 }
0x1320   : > { %v17435_v9 = vsub.f32 %v17329_v37, %v5372_v26 }
0x1321   : > { %v5405_v30 = vmul.f32 %v17432_v19, %v17432_v19 }
0x1322   : > { %v5359_v8 = vpop.xlane.xlu1 %5358  ;;  %v5404_v36 = vmul.f32 %v17435_v9, %v17435_v9 }
0x1323   : > { %v5447_v58 = vsel %vm825_vm2, %v5405_v30, 0.0  ;;  %v5375_v1 = vmul.f32 0.03125, %v5359_v8  ;;  %v5356_v2 = vpop.xlane.xlu0 %5355  ;;  %v17466_v8 = vld [vmem:[%s19746_s4 + $0x1] ss:$0 sm:$0xff] }
0x1324   : > { %5448 = vadd.xlane.f32.xlu1 %v5447_v58  ;;  %v5444_v3 = vsel %vm825_vm2, %v5404_v36, 0.0  ;;  %v5374_v12 = vmul.f32 0.03125, %v5356_v2 }
0x1325   : > { %v17444_v22 = vsub.f32 %v17338_v32, %v5375_v1  ;;  %5445 = vadd.xlane.f32.xlu0 %v5444_v3 }
0x1326   : > { %v17447_v43 = vsub.f32 %v17341_v56, %v5374_v12 }
0x1327   : > { %v5407_v40 = vmul.f32 %v17444_v22, %v17444_v22 }
0x1328   : > { %v5406_v23 = vmul.f32 %v17447_v43, %v17447_v43 }
0x1329   : > { %v5453_v48 = vsel %vm825_vm2, %v5407_v40, 0.0 }
0x132a   : > { %5454 = vadd.xlane.f32.xlu1 %v5453_v48  ;;  %v5450_v10 = vsel %vm825_vm2, %v5406_v23, 0.0 }
0x132b   : > { %5451 = vadd.xlane.f32.xlu0 %v5450_v10 }
0x1360   : > { %v5413_v47 = vpop.xlane.xlu1 %5412 }
0x1361   : > { %v5457_v35 = vmul.f32 0.03125, %v5413_v47  ;;  %v5410_v31 = vpop.xlane.xlu0 %5409 }
0x1362   : > { %v5456_v14 = vmul.f32 0.03125, %v5410_v31 }
0x1363   : > { %v5473_v29 = vadd.f32 1e-12, %v5457_v35 }
0x1364   : > { %v5472_v5 = vadd.f32 1e-12, %v5456_v14 }
0x1365   : > { %14514 = vrsqrt.f32 %v5473_v29 }
0x1366   : > { %14516 = vrsqrt.f32 %v5472_v5 }
0x136b   : > { %v5419_v62 = vpop.xlane.xlu1 %5418 }
0x136c   : > { %v5459_v54 = vmul.f32 0.03125, %v5419_v62  ;;  %v5416_v24 = vpop.xlane.xlu0 %5415 }
0x136d   : > { %v5458_v11 = vmul.f32 0.03125, %v5416_v24 }
0x136e   : > { %v5475_v46 = vadd.f32 1e-12, %v5459_v54 }
0x136f   : > { %v5474_v63 = vadd.f32 1e-12, %v5458_v11  ;;  %v14515_v49 = vpop.eup %14514 }
0x1370   : > { %14518 = vrsqrt.f32 %v5475_v46  ;;  %v14517_v55 = vpop.eup %14516  ;;  %v5505_v7 = vmul.f32 %v14515_v49, %v17348_v44 }
0x1371   : > { %14520 = vrsqrt.f32 %v5474_v63  ;;  %v5425_v25 = vpop.xlane.xlu1 %5424  ;;  %v5504_v53 = vmul.f32 %v14517_v55, %v17351_v42 }
0x1372   : > { %v5527_v57 = vmul.f32 %v17458_v6, %v5505_v7  ;;  %v5461_v26 = vmul.f32 0.03125, %v5425_v25  ;;  %v5422_v30 = vpop.xlane.xlu0 %5421 }
0x1373   : > { %v5460_v36 = vmul.f32 0.03125, %v5422_v30  ;;  %v5526_v58 = vmul.f32 %v17458_v6, %v5504_v53 }
0x1374   : > { %v5477_v1 = vadd.f32 1e-12, %v5461_v26  ;;  %v5549_v44 = vadd.f32 %v17466_v8, %v5527_v57 }
0x1375   : > { %v5476_v2 = vadd.f32 1e-12, %v5460_v36  ;;  %v5548_v3 = vadd.f32 %v17466_v8, %v5526_v58 }
0x1376   : > { %14522 = vrsqrt.f32 %v5477_v1 }
0x1377   : > { %14524 = vrsqrt.f32 %v5476_v2  ;;  %12052 = vmatprep.mubr.msk.f32.mxu1 %vm825_vm2, %v5548_v3 }
0x1378   : > { %12053 = vmatmul.mubr.msk.f32.vlgmr.msra.gmra.mrb[96].mxu1 %vm825_vm2, %v5549_v44 }
0x137a   : > { %v14519_v42 = vpop.eup %14518 }
0x137b   : > { %v14521_v12 = vpop.eup %14520  ;;  %v5507_v40 = vmul.f32 %v14519_v42, %v17360_v18 }
0x137c   : > { %v5506_v23 = vmul.f32 %v14521_v12, %v17363_v51 }
0x137d   : > { %v5529_v48 = vmul.f32 %v17458_v6, %v5507_v40 }
0x137e   : > { %v5528_v10 = vmul.f32 %v17458_v6, %v5506_v23 }
0x137f   : > { %v5551_v35 = vadd.f32 %v17466_v8, %v5529_v48 }
0x1380   : > { %v5550_v47 = vadd.f32 %v17466_v8, %v5528_v10  ;;  %v14523_v31 = vpop.eup %14522 }
0x1381   : > { %v14525_v14 = vpop.eup %14524  ;;  %v5509_v29 = vmul.f32 %v14523_v31, %v17372_v50 }
0x1382   : > { %12055 = vmatprep.mubr.msk.f32.mxu1 %vm825_vm2, %v5550_v47  ;;  %v5508_v18 = vmul.f32 %v14525_v14, %v17375_v60 }
0x1383   : > { %12056 = vmatmul.mubr.msk.f32.gmra.mrb[98].mxu1 %vm825_vm2, %v5551_v35  ;;  %v5531_v51 = vmul.f32 %v17458_v6, %v5509_v29 }
0x1384   : > { %v5530_v5 = vmul.f32 %v17458_v6, %v5508_v18 }
0x1385   : > { %v5553_v54 = vadd.f32 %v17466_v8, %v5531_v51 }
0x1386   : > { %v5552_v62 = vadd.f32 %v17466_v8, %v5530_v5 }
0x1388   : > { %12058 = vmatprep.mubr.msk.f32.mxu1 %vm825_vm2, %v5552_v62 }
0x1389   : > { %12059 = vmatmul.mubr.msk.f32.gmra.mrb[100].mxu1 %vm825_vm2, %v5553_v54 }
0x1399   : > { %v5431_v24 = vpop.xlane.xlu1 %5430 }
0x139a   : > { %v5463_v11 = vmul.f32 0.03125, %v5431_v24  ;;  %v5428_v46 = vpop.xlane.xlu0 %5427 }
0x139b   : > { %v5462_v63 = vmul.f32 0.03125, %v5428_v46 }
0x139c   : > { %v5479_v49 = vadd.f32 1e-12, %v5463_v11 }
0x139d   : > { %v5478_v50 = vadd.f32 1e-12, %v5462_v63 }
0x139e   : > { %14526 = vrsqrt.f32 %v5479_v49 }
0x139f   : > { %14528 = vrsqrt.f32 %v5478_v50 }
0x13a7   : > { %v5437_v60 = vpop.xlane.xlu1 %5436 }
0x13a8   : > { %v14527_v55 = vpop.eup %14526  ;;  %v5465_v7 = vmul.f32 0.03125, %v5437_v60  ;;  %v5434_v25 = vpop.xlane.xlu0 %5433 }
0x13a9   : > { %v14529_v53 = vpop.eup %14528  ;;  %v5464_v57 = vmul.f32 0.03125, %v5434_v25  ;;  %v5511_v26 = vmul.f32 %v14527_v55, %v17396_v16 }
0x13aa   : > { %v5481_v30 = vadd.f32 1e-12, %v5465_v7  ;;  %v5510_v36 = vmul.f32 %v14529_v53, %v17399_v39 }
0x13ab   : > { %v5480_v58 = vadd.f32 1e-12, %v5464_v57  ;;  %v5443_v1 = vpop.xlane.xlu1 %5442  ;;  %v5533_v2 = vmul.f32 %v17458_v6, %v5511_v26 }
0x13ac   : > { %14530 = vrsqrt.f32 %v5481_v30  ;;  %v5467_v3 = vmul.f32 0.03125, %v5443_v1  ;;  %v5440_v44 = vpop.xlane.xlu0 %5439  ;;  %v5532_v42 = vmul.f32 %v17458_v6, %v5510_v36 }
0x13ad   : > { %14532 = vrsqrt.f32 %v5480_v58  ;;  %v5466_v12 = vmul.f32 0.03125, %v5440_v44  ;;  %v5555_v16 = vadd.f32 %v17466_v8, %v5533_v2 }
0x13ae   : > { %v5483_v40 = vadd.f32 1e-12, %v5467_v3  ;;  %v5554_v23 = vadd.f32 %v17466_v8, %v5532_v42 }
0x13af   : > { %v5482_v48 = vadd.f32 1e-12, %v5466_v12 }
0x13b0   : > { %14534 = vrsqrt.f32 %v5483_v40  ;;  %12061 = vmatprep.mubr.msk.f32.mxu1 %vm825_vm2, %v5554_v23 }
0x13b1   : > { %14536 = vrsqrt.f32 %v5482_v48  ;;  %v5449_v39 = vpop.xlane.xlu1 %5448  ;;  %12062 = vmatmul.mubr.msk.f32.gmra.mrb[102].mxu1 %vm825_vm2, %v5555_v16 }
0x13b2   : > { %v5469_v10 = vmul.f32 0.03125, %v5449_v39  ;;  %v5446_v47 = vpop.xlane.xlu0 %5445 }
0x13b3   : > { %v5468_v35 = vmul.f32 0.03125, %v5446_v47 }
0x13b4   : > { %v5485_v31 = vadd.f32 1e-12, %v5469_v10 }
0x13b5   : > { %v5484_v14 = vadd.f32 1e-12, %v5468_v35 }
0x13b6   : > { %v14531_v29 = vpop.eup %14530  ;;  %14538 = vrsqrt.f32 %v5485_v31 }
0x13b7   : > { %v14533_v18 = vpop.eup %14532  ;;  %14540 = vrsqrt.f32 %v5484_v14  ;;  %v5455_v51 = vpop.xlane.xlu1 %5454  ;;  %v5513_v5 = vmul.f32 %v14531_v29, %v17408_v38 }
0x13b8   : > { %v5512_v62 = vmul.f32 %v14533_v18, %v17411_v21  ;;  %v5471_v54 = vmul.f32 0.03125, %v5455_v51  ;;  %v5452_v24 = vpop.xlane.xlu0 %5451 }
0x13b9   : > { %v5535_v11 = vmul.f32 %v17458_v6, %v5513_v5  ;;  %v5470_v46 = vmul.f32 0.03125, %v5452_v24 }
0x13ba   : > { %v14535_v63 = vpop.eup %14534  ;;  %v5534_v49 = vmul.f32 %v17458_v6, %v5512_v62  ;;  %v5487_v50 = vadd.f32 1e-12, %v5471_v54 }
0x13bb   : > { %v14537_v60 = vpop.eup %14536  ;;  %v5486_v55 = vadd.f32 1e-12, %v5470_v46  ;;  %v5515_v7 = vmul.f32 %v14535_v63, %v17418_v27  ;;  %v5557_v21 = vadd.f32 %v17466_v8, %v5535_v11 }
0x13bc   : > { %v5556_v25 = vadd.f32 %v17466_v8, %v5534_v49  ;;  %14542 = vrsqrt.f32 %v5487_v50  ;;  %v5514_v38 = vmul.f32 %v14537_v60, %v17423_v45 }
0x13bd   : > { %14544 = vrsqrt.f32 %v5486_v55  ;;  %v5537_v53 = vmul.f32 %v17458_v6, %v5515_v7 }
0x13be   : > { %12064 = vmatprep.mubr.msk.f32.mxu1 %vm825_vm2, %v5556_v25  ;;  %v5536_v57 = vmul.f32 %v17458_v6, %v5514_v38 }
0x13bf   : > { %12065 = vmatmul.mubr.msk.f32.gmra.mrb[104].mxu1 %vm825_vm2, %v5557_v21  ;;  %v5559_v36 = vadd.f32 %v17466_v8, %v5537_v53 }
0x13c0   : > { %v14539_v26 = vpop.eup %14538  ;;  %v5558_v30 = vadd.f32 %v17466_v8, %v5536_v57 }
0x13c1   : > { %v14541_v27 = vpop.eup %14540  ;;  %v5517_v58 = vmul.f32 %v14539_v26, %v17432_v19 }
0x13c2   : > { %12067 = vmatprep.mubr.msk.f32.mxu1 %vm825_vm2, %v5558_v30  ;;  %v5516_v45 = vmul.f32 %v14541_v27, %v17435_v9 }
0x13c3   : > { %12068 = vmatmul.mubr.msk.f32.gmra.mrb[106].mxu1 %vm825_vm2, %v5559_v36  ;;  %v5539_v1 = vmul.f32 %v17458_v6, %v5517_v58 }
0x13c4   : > { %v5538_v2 = vmul.f32 %v17458_v6, %v5516_v45 }
0x13c5   : > { %v5561_v12 = vadd.f32 %v17466_v8, %v5539_v1 }
0x13c6   : > { %v14543_v3 = vpop.eup %14542  ;;  %v5560_v44 = vadd.f32 %v17466_v8, %v5538_v2 }
0x13c7   : > { %v14545_v42 = vpop.eup %14544  ;;  %v5519_v40 = vmul.f32 %v14543_v3, %v17444_v22  ;;  %v10455_v22 = vld [vmem:[%s19748_s6 + $0x1] ss:$0 sm:$0xff] }
0x13c8   : > { %12070 = vmatprep.mubr.msk.f32.mxu1 %vm825_vm2, %v5560_v44  ;;  %v5518_v19 = vmul.f32 %v14545_v42, %v17447_v43 }
0x13c9   : > { %12071 = vmatmul.mubr.msk.f32.gmra.mrb[108].mxu1 %vm825_vm2, %v5561_v12  ;;  %v5541_v9 = vmul.f32 %v17458_v6, %v5519_v40 }
0x13ca   : > { %v5540_v23 = vmul.f32 %v17458_v6, %v5518_v19 }
0x13cb   : > { %v5563_v16 = vadd.f32 %v17466_v8, %v5541_v9 }
0x13cc   : > { %v5562_v48 = vadd.f32 %v17466_v8, %v5540_v23 }
0x13ce   : > { %12073 = vmatprep.mubr.msk.f32.mxu1 %vm825_vm2, %v5562_v48 }
0x13cf   : > { %12074 = vmatmul.mubr.msk.f32.gmra.mrb[110].mxu1 %vm825_vm2, %v5563_v16 }
0x144b   : > { %v12054_v39 = vpop.f32.mrb[96].mxu1 }
0x144c   : > { %v17532_v43 = vadd.f32 %v12054_v39, %v10455_v22  ;;  %v5691_v10 = vpop.f32.mrb[97].mxu1 }
0x144d   : > { %v5692_v47 = vadd.f32 %v10455_v22, %v5691_v10 }
0x144f   : > { %v17535_v35 = vpack.i.bf16 %v17532_v43, %v5692_v47  ;;  %v17537_v6 = vmul.f32 0.35355338, %v5692_v47 }
0x1451   : > { %13810 = vrot.lane.b32.xlu0 %v17535_v35, %s14938_s20  ;;  %12108 = vmatprep.mubr.msk.f32.mxu0 %vm1347_vm3, %v17537_v6 }
0x1456   : > { %v12057_v8 = vpop.f32.mrb[98].mxu1 }
0x1457   : > { %v17543_v31 = vadd.f32 %v12057_v8, %v10455_v22  ;;  %v5701_v14 = vpop.f32.mrb[99].mxu1 }
0x1458   : > { %v17545_v29 = vadd.f32 %v10455_v22, %v5701_v14 }
0x145a   : > { %v17549_v18 = vpack.i.bf16 %v17543_v31, %v17545_v29 }
0x145c   : > { %13815 = vrot.lane.b32.xlu1 %v17549_v18, %s14938_s20  ;;  %v12060_v51 = vpop.f32.mrb[100].mxu1 }
0x145d   : > { %v17553_v5 = vadd.f32 %v12060_v51, %v10455_v22  ;;  %v5711_v62 = vpop.f32.mrb[101].mxu1 }
0x145e   : > { %v17555_v54 = vadd.f32 %v10455_v22, %v5711_v62 }
0x1460   : > { %v17559_v24 = vpack.i.bf16 %v17553_v5, %v17555_v54 }
0x1462   : > { %13820 = vrot.lane.b32.xlu1 %v17559_v24, %s14938_s20 }
0x1484   : > { %v12063_v11 = vpop.f32.mrb[102].mxu1 }
0x1485   : > { %v17563_v46 = vadd.f32 %v12063_v11, %v10455_v22  ;;  %v5721_v63 = vpop.f32.mrb[103].mxu1 }
0x1486   : > { %v17565_v49 = vadd.f32 %v10455_v22, %v5721_v63 }
0x1488   : > { %v17569_v50 = vpack.i.bf16 %v17563_v46, %v17565_v49 }
0x148a   : > { %13825 = vrot.lane.b32.xlu1 %v17569_v50, %s14938_s20 }
0x1492   : > { %v12066_v60 = vpop.f32.mrb[104].mxu1 }
0x1493   : > { %v17573_v55 = vadd.f32 %v12066_v60, %v10455_v22  ;;  %v5731_v7 = vpop.f32.mrb[105].mxu1 }
0x1494   : > { %v17575_v25 = vadd.f32 %v10455_v22, %v5731_v7 }
0x1496   : > { %v17579_v38 = vpack.i.bf16 %v17573_v55, %v17575_v25  ;;  %v12069_v21 = vpop.f32.mrb[106].mxu1 }
0x1497   : > { %v17581_v53 = vadd.f32 %v12069_v21, %v10455_v22  ;;  %v5741_v57 = vpop.f32.mrb[107].mxu1 }
0x1498   : > { %13830 = vrot.lane.b32.xlu0 %v17579_v38, %s14938_s20  ;;  %v17585_v26 = vadd.f32 %v10455_v22, %v5741_v57 }
0x149a   : > { %v17589_v30 = vpack.i.bf16 %v17581_v53, %v17585_v26 }
0x149c   : > { %13835 = vrot.lane.b32.xlu1 %v17589_v30, %s14938_s20  ;;  %v12072_v27 = vpop.f32.mrb[108].mxu1 }
0x149d   : > { %v17593_v36 = vadd.f32 %v12072_v27, %v10455_v22  ;;  %v5751_v58 = vpop.f32.mrb[109].mxu1 }
0x149e   : > { %v17595_v45 = vadd.f32 %v10455_v22, %v5751_v58 }
0x14a0   : > { %v17599_v1 = vpack.i.bf16 %v17593_v36, %v17595_v45 }
0x14a2   : > { %13840 = vrot.lane.b32.xlu0 %v17599_v1, %s14938_s20  ;;  %v12075_v2 = vpop.f32.mrb[110].mxu1 }
0x14a3   : > { %v17603_v3 = vadd.f32 %v12075_v2, %v10455_v22  ;;  %v5761_v44 = vpop.f32.mrb[111].mxu1 }
0x14a4   : > { %v17605_v42 = vadd.f32 %v10455_v22, %v5761_v44 }
0x14a6   : > { %13850 = vrot.lane.b32.xlu0 %v17535_v35, %s14939_s21  ;;  %v17611_v12 = vpack.i.bf16 %v17603_v3, %v17605_v42 }
0x14a8   : > { %13845 = vrot.lane.b32.xlu1 %v17611_v12, %s14938_s20  ;;  %s19958_s20 = smov 120  }
0x14aa   : > { %13865 = vrot.lane.b32.xlu0 %v17569_v50, %s14939_s21 }
0x14ac   : > { %13855 = vrot.lane.b32.xlu1 %v17549_v18, %s14939_s21 }
0x14ae   : > { %13870 = vrot.lane.b32.xlu0 %v17579_v38, %s14939_s21 }
0x14b0   : > { %13860 = vrot.lane.b32.xlu1 %v17559_v24, %s14939_s21 }
0x14b2   : > { %13885 = vrot.lane.b32.xlu0 %v17535_v35, %s19956_s1 }
0x14b4   : > { %13875 = vrot.lane.b32.xlu1 %v17589_v30, %s14939_s21 }
0x14b6   : > { %13895 = vrot.lane.b32.xlu0 %v17559_v24, %s19956_s1 }
0x14b8   : > { %13880 = vrot.lane.b32.xlu1 %v17599_v1, %s14939_s21 }
0x14bc   : > { %13890 = vrot.lane.b32.xlu1 %v17549_v18, %s19956_s1 }
0x14c0   : > { %13900 = vrot.lane.b32.xlu1 %v17611_v12, %s14939_s21  ;;  %s19959_s21 = smov 56  }
0x14c3   : > { %v13811_v40 = vpop.permute.xlu0 %13810 }
0x14c4   : > { %v13813_v19 = vunpack.i.h.bf16 %v13811_v40  ;;  %v13812_v9 = vunpack.i.l.bf16 %v13811_v40 }
0x14c6   : > { %v13063_v23 = vpack.c.bf16 %v13813_v19, %v13812_v9 }
0x14c8   : > { %13065 = vmatprep.subr.msk.bf16.mxu0 %vm15464_vm4, %v13063_v23 }
0x14c9   : > { %13068 = vmatpush3.bf16.xpose.msk.msra.mxu0 %vm15464_vm4, %v13063_v23 }
0x14ce   : > { %v13816_v16 = vpop.permute.xlu1 %13815 }
0x14cf   : > { %v13818_v22 = vunpack.i.h.bf16 %v13816_v16  ;;  %v13817_v39 = vunpack.i.l.bf16 %v13816_v16 }
0x14d1   : > { %v13069_v10 = vpack.c.bf16 %v13818_v22, %v13817_v39 }
0x14d3   : > { %13071 = vmatprep.subr.msk.bf16.mxu0 %vm15464_vm4, %v13069_v10 }
0x14d4   : > { %13074 = vmatpush3.bf16.xpose.msk.msra.mxu0 %vm15464_vm4, %v13069_v10  ;;  %v13821_v47 = vpop.permute.xlu1 %13820 }
0x14d5   : > { %v13823_v8 = vunpack.i.h.bf16 %v13821_v47  ;;  %v13822_v14 = vunpack.i.l.bf16 %v13821_v47 }
0x14d7   : > { %v13075_v51 = vpack.c.bf16 %v13823_v8, %v13822_v14 }
0x14d9   : > { %13077 = vmatprep.subr.msk.bf16.mxu0 %vm15464_vm4, %v13075_v51 }
0x14dc   : > { %13080 = vmatpush3.bf16.xpose.msk.msra.mxu0 %vm15464_vm4, %v13075_v51 }
0x14fc   : > { %v13826_v62 = vpop.permute.xlu1 %13825 }
0x14fd   : > { %v13828_v11 = vunpack.i.h.bf16 %v13826_v62  ;;  %v13827_v63 = vunpack.i.l.bf16 %v13826_v62 }
0x14ff   : > { %v13081_v60 = vpack.c.bf16 %v13828_v11, %v13827_v63 }
0x1501   : > { %13083 = vmatprep.subr.msk.bf16.mxu0 %vm15464_vm4, %v13081_v60 }
0x1502   : > { %13086 = vmatpush3.bf16.xpose.msk.msra.mxu0 %vm15464_vm4, %v13081_v60 }
0x150a   : > { %v13831_v7 = vpop.permute.xlu0 %13830 }
0x150b   : > { %v13833_v21 = vunpack.i.h.bf16 %v13831_v7  ;;  %v13832_v57 = vunpack.i.l.bf16 %v13831_v7 }
0x150d   : > { %v13087_v27 = vpack.c.bf16 %v13833_v21, %v13832_v57 }
0x150e   : > { %v13836_v58 = vpop.permute.xlu1 %13835 }
0x150f   : > { %13089 = vmatprep.subr.msk.bf16.mxu0 %vm15464_vm4, %v13087_v27  ;;  %v13838_v2 = vunpack.i.h.bf16 %v13836_v58  ;;  %v13837_v44 = vunpack.i.l.bf16 %v13836_v58 }
0x1510   : > { %13092 = vmatpush3.bf16.xpose.msk.msra.mxu0 %vm15464_vm4, %v13087_v27 }
0x1511   : > { %v13093_v40 = vpack.c.bf16 %v13838_v2, %v13837_v44 }
0x1513   : > { %13095 = vmatprep.subr.msk.bf16.mxu0 %vm15464_vm4, %v13093_v40 }
0x1514   : > { %v13841_v19 = vpop.permute.xlu0 %13840 }
0x1515   : > { %v13843_v9 = vunpack.i.h.bf16 %v13841_v19  ;;  %v13842_v23 = vunpack.i.l.bf16 %v13841_v19 }
0x1517   : > { %v13099_v16 = vpack.c.bf16 %v13843_v9, %v13842_v23 }
0x1518   : > { %13098 = vmatpush3.bf16.xpose.msk.msra.mxu0 %vm15464_vm4, %v13093_v40  ;;  %v13851_v22 = vpop.permute.xlu0 %13850 }
0x1519   : > { %v13853_v39 = vunpack.i.h.bf16 %v13851_v22  ;;  %v13852_v10 = vunpack.i.l.bf16 %v13851_v22  ;;  %13101 = vmatprep.subr.msk.bf16.mxu0 %vm15464_vm4, %v13099_v16 }
0x151a   : > { %v13846_v47 = vpop.permute.xlu1 %13845 }
0x151b   : > { %v13848_v8 = vunpack.i.h.bf16 %v13846_v47  ;;  %v13847_v14 = vunpack.i.l.bf16 %v13846_v47  ;;  %v13111_v51 = vpack.c.bf16 %v13853_v39, %v13852_v10 }
0x151c   : > { %v13866_v11 = vpop.permute.xlu0 %13865 }
0x151d   : > { %v13105_v62 = vpack.c.bf16 %v13848_v8, %v13847_v14  ;;  %13112 = vmatprep.subr.bf16.mxu1 %v13111_v51  ;;  %v13868_v27 = vunpack.i.h.bf16 %v13866_v11  ;;  %v13867_v58 = vunpack.i.l.bf16 %v13866_v11  ;;  %v17668_v14 = vmul.f32 0.35355338, %v17532_v43 }
0x151e   : > { %13114 = vmatpush3.bf16.msra.mxu1 %v13111_v51  ;;  %v13856_v63 = vpop.permute.xlu1 %13855  ;;  %v17671_v51 = vmul.f32 0.35355338, %v17545_v29  ;;  %v17683_v43 = vmul.f32 0.35355338, %v17555_v54 }
0x151f   : > { %v13858_v60 = vunpack.i.h.bf16 %v13856_v63  ;;  %v13857_v7 = vunpack.i.l.bf16 %v13856_v63  ;;  %v13123_v39 = vpack.c.bf16 %v13868_v27, %v13867_v58 }
0x1520   : > { %13104 = vmatpush3.bf16.xpose.msk.msra.mxu0 %vm15464_vm4, %v13099_v16  ;;  %v13871_v40 = vpop.permute.xlu0 %13870 }
0x1521   : > { %13107 = vmatprep.subr.msk.bf16.mxu0 %vm15464_vm4, %v13105_v62  ;;  %v13115_v21 = vpack.c.bf16 %v13858_v60, %v13857_v7  ;;  %v13873_v23 = vunpack.i.h.bf16 %v13871_v40  ;;  %v13872_v22 = vunpack.i.l.bf16 %v13871_v40  ;;  %v17680_v7 = vmul.f32 0.35355338, %v17543_v31 }
0x1522   : > { %v13861_v57 = vpop.permute.xlu1 %13860  ;;  %v17693_v31 = vmul.f32 0.35355338, %v17565_v49  ;;  %v17712_v49 = vmul.f32 0.35355338, %v17573_v55  ;;  %v17735_v55 = vmul.f32 0.35355338, %v17593_v36 }
0x1523   : > { %v13863_v2 = vunpack.i.h.bf16 %v13861_v57  ;;  %v13862_v44 = vunpack.i.l.bf16 %v13861_v57  ;;  %13116 = vmatprep.subr.bf16.mxu1 %v13115_v21  ;;  %v13127_v8 = vpack.c.bf16 %v13873_v23, %v13872_v22  ;;  %v17728_v23 = vmul.f32 0.35355338, %v17595_v45 }
0x1524   : > { %13118 = vmatpush3.bf16.msra.mxu1 %v13115_v21  ;;  %v13886_v58 = vpop.permute.xlu0 %13885 }
0x1525   : > { %v13119_v19 = vpack.c.bf16 %v13863_v2, %v13862_v44  ;;  %v17690_v2 = vmul.f32 0.35355338, %v17553_v5  ;;  %v13888_v54 = vunpack.i.h.bf16 %v13886_v58  ;;  %v13887_v44 = vunpack.i.l.bf16 %v13886_v58 }
0x1526   : > { %v13876_v9 = vpop.permute.xlu1 %13875  ;;  %v17703_v5 = vmul.f32 0.35355338, %v17575_v25  ;;  %v17725_v25 = vmul.f32 0.35355338, %v17581_v53  ;;  %v17745_v53 = vmul.f32 0.35355338, %v17603_v3 }
0x1527   : > { %13120 = vmatprep.subr.bf16.mxu1 %v13119_v19  ;;  %v13878_v10 = vunpack.i.h.bf16 %v13876_v9  ;;  %v13877_v47 = vunpack.i.l.bf16 %v13876_v9  ;;  %v17705_v9 = vpack.c.bf16 %v13888_v54, %v13887_v44 }
0x1528   : > { %13110 = vmatpush3.bf16.xpose.msk.msra.mxu0 %vm15464_vm4, %v13105_v62  ;;  %13122 = vmatpush3.bf16.msra.mxu1 %v13119_v19  ;;  %v17700_v19 = vmul.f32 0.35355338, %v17563_v46  ;;  %v17718_v46 = vmul.f32 0.35355338, %v17585_v26  ;;  %v17738_v26 = vmul.f32 0.35355338, %v17605_v42 }
0x1529   : > { %13124 = vmatprep.subr.bf16.mxu1 %v13123_v39  ;;  %v13131_v60 = vpack.c.bf16 %v13878_v10, %v13877_v47 }
0x152a   : > { %v13881_v16 = vpop.permute.xlu1 %13880 }
0x152b   : > { %v13883_v62 = vunpack.i.h.bf16 %v13881_v16  ;;  %v13882_v63 = vunpack.i.l.bf16 %v13881_v16 }
0x152c   : > { %13126 = vmatpush3.bf16.msra.mxu1 %v13123_v39 }
0x152d   : > { %13128 = vmatprep.subr.bf16.mxu1 %v13127_v8  ;;  %v13135_v27 = vpack.c.bf16 %v13883_v62, %v13882_v63 }
0x152e   : > { %v17673_v11 = vpop.permute.xlu1 %13890 }
0x152f   : > { %12109 = vmatmul.mubr.msk.f32.vlgmr.msra.gmra.mrb[112].mxu0 %vm1347_vm3, %v17668_v14 }
0x1530   : > { %12111 = vmatprep.mubr.msk.f32.mxu0 %vm1347_vm3, %v17671_v51  ;;  %13130 = vmatpush3.bf16.msra.mxu1 %v13127_v8 }
0x1531   : > { %13132 = vmatprep.subr.bf16.mxu1 %v13131_v60 }
0x1532   : > { %v13901_v29 = vpop.permute.xlu1 %13900 }
0x1533   : > { %12112 = vmatmul.mubr.msk.f32.gmra.mrb[114].mxu0 %vm1347_vm3, %v17680_v7  ;;  %v13903_v21 = vunpack.i.h.bf16 %v13901_v29  ;;  %v13902_v57 = vunpack.i.l.bf16 %v13901_v29 }
0x1534   : > { %12114 = vmatprep.mubr.msk.f32.mxu0 %vm1347_vm3, %v17683_v43  ;;  %13134 = vmatpush3.bf16.msra.mxu1 %v13131_v60 }
0x1535   : > { %13136 = vmatprep.subr.bf16.mxu1 %v13135_v27  ;;  %v13139_v40 = vpack.c.bf16 %v13903_v21, %v13902_v57 }
0x1537   : > { %12115 = vmatmul.mubr.msk.f32.gmra.mrb[116].mxu0 %vm1347_vm3, %v17690_v2 }
0x1538   : > { %12117 = vmatprep.mubr.msk.f32.mxu0 %vm1347_vm3, %v17693_v31  ;;  %13138 = vmatpush3.bf16.msra.mxu1 %v13135_v27  ;;  %v17780_v27 = vpop.permute.xlu0 %13895 }
0x1539   : > { %13140 = vmatprep.subr.bf16.mxu1 %v13139_v40 }
0x153b   : > { %12118 = vmatmul.mubr.msk.f32.gmra.mrb[118].mxu0 %vm1347_vm3, %v17700_v19 }
0x153c   : > { %12120 = vmatprep.mubr.msk.f32.mxu0 %vm1347_vm3, %v17703_v5  ;;  %13142 = vmatpush3.bf16.msra.mxu1 %v13139_v40 }
0x153d   : > { %13145 = vmatprep.subr.msk.bf16.mxu1 %vm15464_vm4, %v17705_v9 }
0x153f   : > { %12121 = vmatmul.mubr.msk.f32.gmra.mrb[120].mxu0 %vm1347_vm3, %v17712_v49 }
0x1540   : > { %12123 = vmatprep.mubr.msk.f32.mxu0 %vm1347_vm3, %v17718_v46 }
0x1543   : > { %12124 = vmatmul.mubr.msk.f32.gmra.mrb[122].mxu0 %vm1347_vm3, %v17725_v25 }
0x1544   : > { %12126 = vmatprep.mubr.msk.f32.mxu0 %vm1347_vm3, %v17728_v23 }
0x1547   : > { %12127 = vmatmul.mubr.msk.f32.gmra.mrb[124].mxu0 %vm1347_vm3, %v17735_v55 }
0x1548   : > { %12129 = vmatprep.mubr.msk.f32.mxu0 %vm1347_vm3, %v17738_v26 }
0x154b   : > { %12130 = vmatmul.mubr.msk.f32.gmra.mrb[126].mxu0 %vm1347_vm3, %v17745_v53 }
0x1602   : > { %v12110_v45 = vpop.f32.mrb[112].mxu0 }
0x1603   : > { %6061 = vmax.xlane.f32.xlu1 %v12110_v45  ;;  %v5980_v22 = vpop.f32.mrb[113].mxu0 }
0x1604   : > { %6059 = vmax.xlane.f32.xlu0 %v5980_v22 }
0x1606   : > { %v12113_v36 = vpop.f32.mrb[114].mxu0 }
0x1607   : > { %v5990_v39 = vpop.f32.mrb[115].mxu0 }
0x1608   : > { %6065 = vmax.xlane.f32.xlu0 %v12113_v36 }
0x160a   : > { %v12116_v42 = vpop.f32.mrb[116].mxu0 }
0x160b   : > { %v17749_v16 = vpop.f32.mrb[117].mxu0 }
0x160c   : > { %6063 = vmax.xlane.f32.xlu0 %v5990_v39 }
0x160e   : > { %v12119_v10 = vpop.f32.mrb[118].mxu0 }
0x160f   : > { %v17751_v47 = vpop.f32.mrb[119].mxu0 }
0x1610   : > { %6067 = vmax.xlane.f32.xlu0 %v17749_v16 }
0x1612   : > { %v17754_v3 = vpop.f32.mrb[120].mxu0 }
0x1613   : > { %v17756_v8 = vpop.f32.mrb[121].mxu0 }
0x1614   : > { %13905 = vrot.lane.b32.xlu1 %v17569_v50, %s19956_s1  ;;  %6071 = vmax.xlane.f32.xlu0 %v17751_v47 }
0x1616   : > { %v17761_v62 = vpop.f32.mrb[122].mxu0 }
0x1617   : > { %v6030_v63 = vpop.f32.mrb[123].mxu0 }
0x1618   : > { %6075 = vmax.xlane.f32.xlu0 %v17756_v8 }
0x161a   : > { %v17764_v60 = vpop.f32.mrb[124].mxu0 }
0x161b   : > { %v17766_v29 = vpop.f32.mrb[125].mxu0 }
0x161c   : > { %6079 = vmax.xlane.f32.xlu0 %v6030_v63 }
0x161e   : > { %v17768_v21 = vpop.f32.mrb[126].mxu0 }
0x161f   : > { %v17770_v57 = vpop.f32.mrb[127].mxu0 }
0x1620   : > { %6083 = vmax.xlane.f32.xlu0 %v17766_v29 }
0x1624   : > { %6087 = vmax.xlane.f32.xlu0 %v17770_v57 }
0x1638   : > { %6069 = vmax.xlane.f32.xlu1 %v12116_v42 }
0x163a   : > { %13910 = vrot.lane.b32.xlu0 %v17579_v38, %s19956_s1 }
0x163c   : > { %6073 = vmax.xlane.f32.xlu1 %v12119_v10 }
0x1640   : > { %6077 = vmax.xlane.f32.xlu1 %v17754_v3 }
0x1644   : > { %6081 = vmax.xlane.f32.xlu1 %v17761_v62 }
0x1648   : > { %6085 = vmax.xlane.f32.xlu1 %v17764_v60 }
0x164c   : > { %6089 = vmax.xlane.f32.xlu1 %v17768_v21 }
0x1690   : > { %v6062_v58 = vpop.xlane.xlu1 %6061 }
0x1691   : > { %v6092_v54 = vsub.f32 %v12110_v45, %v6062_v58  ;;  %v6060_v44 = vpop.xlane.xlu0 %6059 }
0x1692   : > { %v6091_v40 = vsub.f32 %v5980_v22, %v6060_v44 }
0x1693   : > { %v6109_v56 = vmul.f32 1.442695, %v6092_v54 }
0x1694   : > { %v6107_v32 = vmul.f32 1.442695, %v6091_v40 }
0x1695   : > { %14546 = vpow2.f32 %v6109_v56  ;;  %v6066_v34 = vpop.xlane.xlu0 %6065  ;;  %v17792_v56 = vpop.permute.xlu1 %13905 }
0x1696   : > { %14548 = vpow2.f32 %v6107_v32  ;;  %v6094_v58 = vsub.f32 %v12113_v36, %v6066_v34 }
0x1698   : > { %v6113_v0 = vmul.f32 1.442695, %v6094_v58 }
0x1699   : > { %v6064_v41 = vpop.xlane.xlu0 %6063 }
0x169a   : > { %v6093_v32 = vsub.f32 %v5990_v39, %v6064_v41 }
0x169c   : > { %v6111_v40 = vmul.f32 1.442695, %v6093_v32 }
0x169d   : > { %v6068_v45 = vpop.xlane.xlu0 %6067 }
0x169e   : > { %14550 = vpow2.f32 %v6111_v40  ;;  %v6095_v13 = vsub.f32 %v17749_v16, %v6068_v45 }
0x169f   : > { %v17782_v37 = vpop.eup %14546  ;;  %14552 = vpow2.f32 %v6113_v0 }
0x16a0   : > { %v17784_v61 = vpop.eup %14548  ;;  %6141 = vadd.xlane.f32.xlu0 %v17782_v37  ;;  %v6115_v41 = vmul.f32 1.442695, %v6095_v13 }
0x16a1   : > { %6139 = vadd.xlane.f32.xlu1 %v17784_v61  ;;  %v6072_v22 = vpop.xlane.xlu0 %6071 }
0x16a2   : > { %v6097_v4 = vsub.f32 %v17751_v47, %v6072_v22 }
0x16a4   : > { %v6119_v36 = vmul.f32 1.442695, %v6097_v4 }
0x16a5   : > { %v6076_v54 = vpop.xlane.xlu0 %6075 }
0x16a6   : > { %v6099_v16 = vsub.f32 %v17756_v8, %v6076_v54 }
0x16a8   : > { %v6123_v4 = vmul.f32 1.442695, %v6099_v16 }
0x16a9   : > { %v6080_v28 = vpop.xlane.xlu0 %6079 }
0x16aa   : > { %v6101_v34 = vsub.f32 %v6030_v63, %v6080_v28 }
0x16b2   : > { %13915 = vrot.lane.b32.xlu1 %v17589_v30, %s19956_s1 }
0x16b6   : > { %13920 = vrot.lane.b32.xlu0 %v17599_v1, %s19956_s1 }
0x16c5   : > { %v6070_v44 = vpop.xlane.xlu1 %6069 }
0x16c6   : > { %v6096_v17 = vsub.f32 %v12116_v42, %v6070_v44 }
0x16c8   : > { %v6117_v20 = vmul.f32 1.442695, %v6096_v17  ;;  %v6127_v17 = vmul.f32 1.442695, %v6101_v34 }
0x16c9   : > { %v6074_v52 = vpop.xlane.xlu1 %6073 }
0x16ca   : > { %v6098_v33 = vsub.f32 %v12119_v10, %v6074_v52  ;;  %14554 = vpow2.f32 %v6117_v20  ;;  %v6084_v52 = vpop.xlane.xlu0 %6083  ;;  %v17798_v10 = vpop.eup %14550 }
0x16cb   : > { %v17800_v47 = vpop.eup %14552 }
0x16cc   : > { %v6121_v15 = vmul.f32 1.442695, %v6098_v33 }
0x16cd   : > { %v6078_v59 = vpop.xlane.xlu1 %6077 }
0x16ce   : > { %14556 = vpow2.f32 %v6121_v15  ;;  %v6100_v39 = vsub.f32 %v17754_v3, %v6078_v59  ;;  %v6103_v15 = vsub.f32 %v17766_v29, %v6084_v52  ;;  %v6088_v22 = vpop.xlane.xlu0 %6087 }
0x16cf   : > { %14558 = vpow2.f32 %v6115_v41 }
0x16d0   : > { %14560 = vpow2.f32 %v6119_v36  ;;  %v6125_v0 = vmul.f32 1.442695, %v6100_v39  ;;  %v6131_v63 = vmul.f32 1.442695, %v6103_v15  ;;  %v13892_v15 = vunpack.i.l.bf16 %v17673_v11 }
0x16d1   : > { %v6082_v42 = vpop.xlane.xlu1 %6081  ;;  %14562 = vpow2.f32 %v6127_v17 }
0x16d2   : > { %14564 = vpow2.f32 %v6125_v0  ;;  %v6102_v13 = vsub.f32 %v17761_v62, %v6082_v42  ;;  %v6105_v62 = vsub.f32 %v17770_v57, %v6088_v22  ;;  %v13911_v42 = vpop.permute.xlu0 %13910 }
0x16d4   : > { %v17806_v28 = vpop.eup %14554 }
0x16d5   : > { %v6086_v33 = vpop.xlane.xlu1 %6085  ;;  %6143 = vadd.xlane.f32.xlu0 %v17798_v10 }
0x16d6   : > { %v6104_v59 = vsub.f32 %v17764_v60, %v6086_v33  ;;  %6145 = vadd.xlane.f32.xlu1 %v17800_v47  ;;  %v6129_v60 = vmul.f32 1.442695, %v6102_v13  ;;  %v13893_v33 = vunpack.i.h.bf16 %v17673_v11 }
0x16d8   : > { %v17809_v20 = vpop.eup %14556  ;;  %v6133_v3 = vmul.f32 1.442695, %v6104_v59  ;;  %v13149_v13 = vpack.c.bf16 %v13893_v33, %v13892_v15 }
0x16d9   : > { %v6090_v8 = vpop.xlane.xlu1 %6089  ;;  %6149 = vadd.xlane.f32.xlu0 %v17806_v28  ;;  %v17814_v45 = vpop.eup %14558 }
0x16da   : > { %14566 = vpow2.f32 %v6133_v3  ;;  %6153 = vadd.xlane.f32.xlu1 %v17809_v20  ;;  %v6106_v29 = vsub.f32 %v17768_v21, %v6090_v8  ;;  %v17816_v32 = vpop.eup %14560  ;;  %v6135_v21 = vmul.f32 1.442695, %v6105_v62  ;;  %v13898_v3 = vunpack.i.h.bf16 %v17780_v27 }
0x16db   : > { %14568 = vpow2.f32 %v6123_v4  ;;  %v17821_v54 = vpop.eup %14562  ;;  %v13897_v8 = vunpack.i.l.bf16 %v17780_v27  ;;  %v13912_v27 = vunpack.i.l.bf16 %v13911_v42 }
0x16dc   : > { %14570 = vpow2.f32 %v6131_v63  ;;  %v6137_v58 = vmul.f32 1.442695, %v6106_v29  ;;  %v17823_v44 = vpop.eup %14564 }
0x16dd   : > { %6147 = vadd.xlane.f32.xlu0 %v17814_v45  ;;  %14572 = vpow2.f32 %v6129_v60  ;;  %v13155_v63 = vpack.c.bf16 %v13898_v3, %v13897_v8 }
0x16de   : > { %6151 = vadd.xlane.f32.xlu1 %v17816_v32  ;;  %14574 = vpow2.f32 %v6137_v58 }
0x16df   : > { %14576 = vpow2.f32 %v6135_v21 }
0x16e1   : > { %6159 = vadd.xlane.f32.xlu0 %v17821_v54 }
0x16e2   : > { %6157 = vadd.xlane.f32.xlu1 %v17823_v44 }
0x16e4   : > { %v17827_v40 = vpop.eup %14566 }
0x16e5   : > { %v17829_v41 = vpop.eup %14568  ;;  %6165 = vadd.xlane.f32.xlu0 %v17827_v40 }
0x16e6   : > { %6155 = vadd.xlane.f32.xlu1 %v17829_v41  ;;  %v17833_v57 = vpop.eup %14570 }
0x16e7   : > { %v17835_v34 = vpop.eup %14572 }
0x16e8   : > { %v17839_v36 = vpop.eup %14574 }
0x16e9   : > { %6163 = vadd.xlane.f32.xlu0 %v17833_v57  ;;  %v17842_v39 = vpop.eup %14576 }
0x16ea   : > { %6161 = vadd.xlane.f32.xlu1 %v17835_v34 }
0x16ee   : > { %6169 = vadd.xlane.f32.xlu1 %v17839_v36 }
0x16f2   : > { %6167 = vadd.xlane.f32.xlu1 %v17842_v39 }
0x16ff   : > { %13925 = vrot.lane.b32.xlu0 %v17611_v12, %s19956_s1 }
0x1703   : > { %6396 = vrot.lane.b32.xlu0 %v17537_v6, %s19958_s20  ;;  %6398 = vrot.lane.b32.xlu1 %v17668_v14, %s19958_s20 }
0x1707   : > { %6400 = vrot.lane.b32.xlu0 %v17671_v51, %s19958_s20  ;;  %6402 = vrot.lane.b32.xlu1 %v17680_v7, %s19958_s20 }
0x170b   : > { %6404 = vrot.lane.b32.xlu0 %v17683_v43, %s19958_s20  ;;  %6406 = vrot.lane.b32.xlu1 %v17690_v2, %s19958_s20 }
0x170f   : > { %6408 = vrot.lane.b32.xlu0 %v17693_v31, %s19958_s20  ;;  %6410 = vrot.lane.b32.xlu1 %v17700_v19, %s19958_s20 }
0x1713   : > { %6412 = vrot.lane.b32.xlu0 %v17703_v5, %s19958_s20  ;;  %6414 = vrot.lane.b32.xlu1 %v17712_v49, %s19958_s20 }
0x1717   : > { %6416 = vrot.lane.b32.xlu0 %v17718_v46, %s19958_s20  ;;  %6418 = vrot.lane.b32.xlu1 %v17725_v25, %s19958_s20 }
0x171b   : > { %6420 = vrot.lane.b32.xlu0 %v17728_v23, %s19958_s20  ;;  %6422 = vrot.lane.b32.xlu1 %v17735_v55, %s19958_s20 }
0x171f   : > { %6424 = vrot.lane.b32.xlu0 %v17738_v26, %s19958_s20  ;;  %6426 = vrot.lane.b32.xlu1 %v17745_v53, %s19958_s20 }
0x1723   : > { %13930 = vrot.lane.b32.xlu0 %v17535_v35, %s19959_s21  ;;  %13935 = vrot.lane.b32.xlu1 %v17549_v18, %s19959_s21 }
0x1727   : > { %13945 = vrot.lane.b32.xlu0 %v17569_v50, %s19959_s21  ;;  %13940 = vrot.lane.b32.xlu1 %v17559_v24, %s19959_s21 }
0x172b   : > { %13950 = vrot.lane.b32.xlu0 %v17579_v38, %s19959_s21  ;;  %13955 = vrot.lane.b32.xlu1 %v17589_v30, %s19959_s21 }
0x172d   : > { %v6142_v17 = vpop.xlane.xlu0 %6141 }
0x172e   : > { %14578 = vrcp.f32 %v6142_v17  ;;  %v6140_v16 = vpop.xlane.xlu1 %6139 }
0x172f   : > { %14580 = vrcp.f32 %v6140_v16  ;;  %13970 = vrot.lane.b32.xlu0 %v17535_v35, %s19960_s22  ;;  %13960 = vrot.lane.b32.xlu1 %v17599_v1, %s19959_s21 }
0x1731   : > { %v13921_v58 = vpop.permute.xlu0 %13920 }
0x1732   : > { %v13916_v29 = vpop.permute.xlu1 %13915  ;;  %v13923_v21 = vunpack.i.h.bf16 %v13921_v58 }
0x1733   : > { %13980 = vrot.lane.b32.xlu0 %v17559_v24, %s19960_s22  ;;  %13965 = vrot.lane.b32.xlu1 %v17611_v12, %s19959_s21  ;;  %v13918_v22 = vunpack.i.h.bf16 %v13916_v29  ;;  %v13917_v62 = vunpack.i.l.bf16 %v13916_v29 }
0x1737   : > { %13975 = vrot.lane.b32.xlu1 %v17549_v18, %s19960_s22 }
0x1738   : > { %v14579_v52 = vpop.eup %14578 }
0x1739   : > { %v14581_v0 = vpop.eup %14580  ;;  %v6188_v4 = vmul.f32 %v14579_v52, %v17782_v37  ;;  %v13907_v37 = vunpack.i.l.bf16 %v17792_v56 }
0x173a   : > { %v6187_v59 = vmul.f32 %v14581_v0, %v17784_v61  ;;  %v13908_v61 = vunpack.i.h.bf16 %v17792_v56  ;;  %v13173_v56 = vpack.c.bf16 %v13918_v22, %v13917_v62 }
0x173c   : > { %12164 = vmatprep.mubr.f32.mxu1 %v6187_v59  ;;  %v13161_v11 = vpack.c.bf16 %v13908_v61, %v13907_v37 }
0x173d   : > { %12165 = vmatmul.mubr.f32.vlgmr.msra.gmra.mrb[112].mxu1 %v6188_v4 }
0x173e   : > { %13148 = vmatpush3.bf16.xpose.msk.msra.mxu1 %vm15464_vm4, %v17705_v9  ;;  %v13913_v9 = vunpack.i.h.bf16 %v13911_v42  ;;  %v13922_v42 = vunpack.i.l.bf16 %v13921_v58 }
0x173f   : > { %13151 = vmatprep.subr.msk.bf16.mxu1 %vm15464_vm4, %v13149_v13 }
0x1740   : > { %v13167_v60 = vpack.c.bf16 %v13913_v9, %v13912_v27  ;;  %v13179_v52 = vpack.c.bf16 %v13923_v21, %v13922_v42 }
0x1746   : > { %13154 = vmatpush3.bf16.xpose.msk.msra.mxu1 %vm15464_vm4, %v13149_v13 }
0x1747   : > { %13157 = vmatprep.subr.msk.bf16.mxu1 %vm15464_vm4, %v13155_v63 }
0x174e   : > { %13160 = vmatpush3.bf16.xpose.msk.msra.mxu1 %vm15464_vm4, %v13155_v63 }
0x174f   : > { %13163 = vmatprep.subr.msk.bf16.mxu1 %vm15464_vm4, %v13161_v11 }
0x1756   : > { %13166 = vmatpush3.bf16.xpose.msk.msra.mxu1 %vm15464_vm4, %v13161_v11 }
0x1757   : > { %13169 = vmatprep.subr.msk.bf16.mxu1 %vm15464_vm4, %v13167_v60 }
0x175e   : > { %13172 = vmatpush3.bf16.xpose.msk.msra.mxu1 %vm15464_vm4, %v13167_v60 }
0x175f   : > { %13175 = vmatprep.subr.msk.bf16.mxu1 %vm15464_vm4, %v13173_v56 }
0x1762   : > { %v6144_v17 = vpop.xlane.xlu0 %6143 }
0x1763   : > { %14582 = vrcp.f32 %v6144_v17  ;;  %v6146_v16 = vpop.xlane.xlu1 %6145 }
0x1764   : > { %14584 = vrcp.f32 %v6146_v16 }
0x1766   : > { %13178 = vmatpush3.bf16.xpose.msk.msra.mxu1 %vm15464_vm4, %v13173_v56  ;;  %v6150_v0 = vpop.xlane.xlu0 %6149 }
0x1767   : > { %13181 = vmatprep.subr.msk.bf16.mxu1 %vm15464_vm4, %v13179_v52  ;;  %v6154_v33 = vpop.xlane.xlu1 %6153  ;;  %14586 = vrcp.f32 %v6150_v0 }
0x176a   : > { %v6148_v15 = vpop.xlane.xlu0 %6147 }
0x176b   : > { %14588 = vrcp.f32 %v6148_v15  ;;  %v6152_v59 = vpop.xlane.xlu1 %6151 }
0x176c   : > { %14590 = vrcp.f32 %v6152_v59 }
0x176d   : > { %v14583_v4 = vpop.eup %14582  ;;  %14592 = vrcp.f32 %v6154_v33 }
0x176e   : > { %v14585_v13 = vpop.eup %14584  ;;  %13184 = vmatpush3.bf16.xpose.msk.msra.mxu1 %vm15464_vm4, %v13179_v52  ;;  %v6160_v3 = vpop.xlane.xlu0 %6159  ;;  %v6189_v8 = vmul.f32 %v14583_v4, %v17798_v10 }
0x176f   : > { %v6158_v63 = vpop.xlane.xlu1 %6157  ;;  %v6190_v61 = vmul.f32 %v14585_v13, %v17800_v47  ;;  %14594 = vrcp.f32 %v6160_v3 }
0x1770   : > { %12167 = vmatprep.mubr.f32.mxu1 %v6189_v8  ;;  %14596 = vrcp.f32 %v6158_v63 }
0x1771   : > { %12168 = vmatmul.mubr.f32.gmra.mrb[114].mxu1 %v6190_v61  ;;  %v14587_v9 = vpop.eup %14586 }
0x1772   : > { %v6166_v37 = vpop.xlane.xlu0 %6165  ;;  %v6192_v10 = vmul.f32 %v14587_v9, %v17806_v28 }
0x1773   : > { %v6156_v11 = vpop.xlane.xlu1 %6155 }
0x1774   : > { %14598 = vrcp.f32 %v6156_v11 }
0x1775   : > { %v14589_v27 = vpop.eup %14588 }
0x1776   : > { %v14591_v60 = vpop.eup %14590  ;;  %v6164_v29 = vpop.xlane.xlu0 %6163  ;;  %v6191_v22 = vmul.f32 %v14589_v27, %v17814_v45 }
0x1777   : > { %14600 = vrcp.f32 %v6164_v29  ;;  %v6162_v62 = vpop.xlane.xlu1 %6161  ;;  %v6193_v56 = vmul.f32 %v14591_v60, %v17816_v32  ;;  %v14593_v47 = vpop.eup %14592 }
0x1778   : > { %14602 = vrcp.f32 %v6162_v62  ;;  %12170 = vmatprep.mubr.f32.mxu1 %v6191_v22  ;;  %v6194_v16 = vmul.f32 %v14593_v47, %v17809_v20 }
0x1779   : > { %12171 = vmatmul.mubr.f32.gmra.mrb[116].mxu1 %v6192_v10  ;;  %14604 = vrcp.f32 %v6166_v37  ;;  %v14595_v52 = vpop.eup %14594 }
0x177a   : > { %12173 = vmatprep.mubr.f32.mxu1 %v6193_v56  ;;  %v13926_v58 = vpop.permute.xlu0 %13925  ;;  %v14597_v45 = vpop.eup %14596  ;;  %v6197_v4 = vmul.f32 %v14595_v52, %v17821_v54 }
0x177b   : > { %v13928_v21 = vunpack.i.h.bf16 %v13926_v58  ;;  %v13927_v42 = vunpack.i.l.bf16 %v13926_v58  ;;  %v6170_v17 = vpop.xlane.xlu1 %6169  ;;  %v6196_v59 = vmul.f32 %v14597_v45, %v17823_v44 }
0x177c   : > { %14606 = vrcp.f32 %v6170_v17 }
0x177d   : > { %v13185_v0 = vpack.c.bf16 %v13928_v21, %v13927_v42  ;;  %12174 = vmatmul.mubr.f32.gmra.mrb[118].mxu1 %v6194_v16 }
0x177e   : > { %v14599_v33 = vpop.eup %14598  ;;  %v6397_v28 = vpop.permute.xlu0 %6396 }
0x177f   : > { %v6168_v32 = vpop.xlane.xlu1 %6167  ;;  %13187 = vmatprep.subr.msk.bf16.mxu1 %vm15464_vm4, %v13185_v0  ;;  %v6195_v15 = vmul.f32 %v14599_v33, %v17829_v41 }
0x1780   : > { %14608 = vrcp.f32 %v6168_v32  ;;  %13190 = vmatpush3.bf16.xpose.msk.msra.mxu1 %vm15464_vm4, %v13185_v0 }
0x1781   : > { %v14601_v20 = vpop.eup %14600  ;;  %12176 = vmatprep.mubr.f32.mxu1 %v6195_v15 }
0x1782   : > { %v14603_v13 = vpop.eup %14602  ;;  %12177 = vmatmul.mubr.f32.gmra.mrb[120].mxu1 %v6196_v59  ;;  %v6401_v3 = vpop.permute.xlu0 %6400  ;;  %v6199_v41 = vmul.f32 %v14601_v20, %v17833_v57 }
0x1783   : > { %v6399_v8 = vpop.permute.xlu1 %6398  ;;  %12179 = vmatprep.mubr.f32.mxu1 %v6197_v4  ;;  %v6198_v63 = vmul.f32 %v14603_v13, %v17835_v34  ;;  %v14605_v61 = vpop.eup %14604 }
0x1784   : > { %v6200_v44 = vmul.f32 %v14605_v61, %v17827_v40 }
0x1786   : > { %12180 = vmatmul.mubr.f32.gmra.mrb[122].mxu1 %v6198_v63  ;;  %v6405_v37 = vpop.permute.xlu0 %6404  ;;  %v14607_v9 = vpop.eup %14606 }
0x1787   : > { %v6403_v11 = vpop.permute.xlu1 %6402  ;;  %12182 = vmatprep.mubr.f32.mxu1 %v6199_v41  ;;  %v6202_v22 = vmul.f32 %v14607_v9, %v17839_v36 }
0x178a   : > { %v14609_v27 = vpop.eup %14608  ;;  %12183 = vmatmul.mubr.f32.gmra.mrb[124].mxu1 %v6200_v44  ;;  %v6409_v54 = vpop.permute.xlu0 %6408 }
0x178b   : > { %v6407_v60 = vpop.permute.xlu1 %6406  ;;  %v6201_v29 = vmul.f32 %v14609_v27, %v17842_v39 }
0x178d   : > { %12185 = vmatprep.mubr.f32.mxu1 %v6201_v29 }
0x178e   : > { %12186 = vmatmul.mubr.f32.gmra.mrb[126].mxu1 %v6202_v22  ;;  %v6413_v34 = vpop.permute.xlu0 %6412 }
0x178f   : > { %v6411_v62 = vpop.permute.xlu1 %6410  ;;  %12220 = vmatprep.mubr.msk.f32.mxu1 %vm1347_vm3, %v6397_v28 }
0x1792   : > { %v6417_v57 = vpop.permute.xlu0 %6416  ;;  %12221 = vmatmul.mubr.msk.f32.vlgmr.msra.gmra.mrb[128].mxu1 %vm1347_vm3, %v6399_v8 }
0x1793   : > { %v6415_v10 = vpop.permute.xlu1 %6414  ;;  %12223 = vmatprep.mubr.msk.f32.mxu1 %vm1347_vm3, %v6401_v3 }
0x1796   : > { %v6421_v40 = vpop.permute.xlu0 %6420  ;;  %12224 = vmatmul.mubr.msk.f32.gmra.mrb[130].mxu1 %vm1347_vm3, %v6403_v11 }
0x1797   : > { %v6419_v56 = vpop.permute.xlu1 %6418  ;;  %12226 = vmatprep.mubr.msk.f32.mxu1 %vm1347_vm3, %v6405_v37 }
0x179a   : > { %v6425_v39 = vpop.permute.xlu0 %6424  ;;  %12227 = vmatmul.mubr.msk.f32.gmra.mrb[132].mxu1 %vm1347_vm3, %v6407_v60 }
0x179b   : > { %v6423_v36 = vpop.permute.xlu1 %6422  ;;  %12229 = vmatprep.mubr.msk.f32.mxu1 %vm1347_vm3, %v6409_v54 }
0x179e   : > { %v13931_v47 = vpop.permute.xlu0 %13930  ;;  %12230 = vmatmul.mubr.msk.f32.gmra.mrb[134].mxu1 %vm1347_vm3, %v6411_v62 }
0x179f   : > { %v13933_v58 = vunpack.i.h.bf16 %v13931_v47  ;;  %v13932_v21 = vunpack.i.l.bf16 %v13931_v47  ;;  %v6427_v42 = vpop.permute.xlu1 %6426  ;;  %12232 = vmatprep.mubr.msk.f32.mxu1 %vm1347_vm3, %v6413_v34 }
0x17a1   : > { %v13191_v17 = vpack.c.bf16 %v13933_v58, %v13932_v21 }
0x17a2   : > { %12233 = vmatmul.mubr.msk.f32.gmra.mrb[136].mxu1 %vm1347_vm3, %v6415_v10  ;;  %v13946_v16 = vpop.permute.xlu0 %13945 }
0x17a3   : > { %v13936_v52 = vpop.permute.xlu1 %13935  ;;  %12235 = vmatprep.mubr.msk.f32.mxu1 %vm1347_vm3, %v6417_v57  ;;  %13192 = vmatprep.subr.bf16.mxu0 %v13191_v17  ;;  %v13948_v32 = vunpack.i.h.bf16 %v13946_v16  ;;  %v13947_v15 = vunpack.i.l.bf16 %v13946_v16 }
0x17a4   : > { %v13938_v45 = vunpack.i.h.bf16 %v13936_v52  ;;  %v13937_v0 = vunpack.i.l.bf16 %v13936_v52  ;;  %13194 = vmatpush3.bf16.msra.mxu0 %v13191_v17 }
0x17a5   : > { %v13203_v61 = vpack.c.bf16 %v13948_v32, %v13947_v15 }
0x17a6   : > { %12236 = vmatmul.mubr.msk.f32.gmra.mrb[138].mxu1 %vm1347_vm3, %v6419_v56  ;;  %v13195_v33 = vpack.c.bf16 %v13938_v45, %v13937_v0  ;;  %v13951_v4 = vpop.permute.xlu0 %13950 }
0x17a7   : > { %v13941_v28 = vpop.permute.xlu1 %13940  ;;  %12238 = vmatprep.mubr.msk.f32.mxu1 %vm1347_vm3, %v6421_v40  ;;  %v13953_v8 = vunpack.i.h.bf16 %v13951_v4  ;;  %v13952_v63 = vunpack.i.l.bf16 %v13951_v4 }
0x17a8   : > { %v13943_v59 = vunpack.i.h.bf16 %v13941_v28  ;;  %v13942_v20 = vunpack.i.l.bf16 %v13941_v28  ;;  %13196 = vmatprep.subr.bf16.mxu0 %v13195_v33 }
0x17a9   : > { %13198 = vmatpush3.bf16.msra.mxu0 %v13195_v33  ;;  %v13207_v44 = vpack.c.bf16 %v13953_v8, %v13952_v63 }
0x17aa   : > { %12239 = vmatmul.mubr.msk.f32.gmra.mrb[140].mxu1 %vm1347_vm3, %v6423_v36  ;;  %v13199_v13 = vpack.c.bf16 %v13943_v59, %v13942_v20  ;;  %v13971_v62 = vpop.permute.xlu0 %13970 }
0x17ab   : > { %v13956_v3 = vpop.permute.xlu1 %13955  ;;  %12241 = vmatprep.mubr.msk.f32.mxu1 %vm1347_vm3, %v6425_v39  ;;  %v13973_v57 = vunpack.i.h.bf16 %v13971_v62  ;;  %v13972_v10 = vunpack.i.l.bf16 %v13971_v62 }
0x17ac   : > { %13200 = vmatprep.subr.bf16.mxu0 %v13199_v13  ;;  %v13958_v37 = vunpack.i.h.bf16 %v13956_v3  ;;  %v13957_v11 = vunpack.i.l.bf16 %v13956_v3 }
0x17ad   : > { %13202 = vmatpush3.bf16.msra.mxu0 %v13199_v13  ;;  %v17970_v56 = vpack.c.bf16 %v13973_v57, %v13972_v10 }
0x17ae   : > { %12242 = vmatmul.mubr.msk.f32.gmra.mrb[142].mxu1 %vm1347_vm3, %v6427_v42  ;;  %13204 = vmatprep.subr.bf16.mxu0 %v13203_v61  ;;  %v13211_v54 = vpack.c.bf16 %v13958_v37, %v13957_v11 }
0x17af   : > { %v13961_v41 = vpop.permute.xlu1 %13960 }
0x17b0   : > { %v13963_v9 = vunpack.i.h.bf16 %v13961_v41  ;;  %v13962_v27 = vunpack.i.l.bf16 %v13961_v41 }
0x17b1   : > { %13206 = vmatpush3.bf16.msra.mxu0 %v13203_v61 }
0x17b2   : > { %13208 = vmatprep.subr.bf16.mxu0 %v13207_v44  ;;  %v13215_v34 = vpack.c.bf16 %v13963_v9, %v13962_v27 }
0x17b3   : > { %v13966_v60 = vpop.permute.xlu1 %13965 }
0x17b4   : > { %v13968_v29 = vunpack.i.h.bf16 %v13966_v60  ;;  %v13967_v22 = vunpack.i.l.bf16 %v13966_v60 }
0x17b5   : > { %13210 = vmatpush3.bf16.msra.mxu0 %v13207_v44 }
0x17b6   : > { %13212 = vmatprep.subr.bf16.mxu0 %v13211_v54  ;;  %v13219_v40 = vpack.c.bf16 %v13968_v29, %v13967_v22 }
0x17b7   : > { %v18038_v22 = vpop.permute.xlu1 %13975 }
0x17b9   : > { %13214 = vmatpush3.bf16.msra.mxu0 %v13211_v54 }
0x17ba   : > { %13216 = vmatprep.subr.bf16.mxu0 %v13215_v34 }
0x17bd   : > { %13218 = vmatpush3.bf16.msra.mxu0 %v13215_v34  ;;  %v18040_v34 = vpop.permute.xlu0 %13980 }
0x17be   : > { %13220 = vmatprep.subr.bf16.mxu0 %v13219_v40 }
0x17c1   : > { %13222 = vmatpush3.bf16.msra.mxu0 %v13219_v40 }
0x17c2   : > { %13225 = vmatprep.subr.msk.bf16.mxu0 %vm15464_vm4, %v17970_v56 }
0x1810   : > { %v17975_v39 = vpop.f32.mrb[112].mxu1 }
0x1811   : > { %19961 = vst [vmem:[#allocation24_spill] sm:$0xff] %v17975_v39  ;;  %v17977_v36 = vpop.f32.mrb[113].mxu1 }
0x1812   : > { %19962 = vst [vmem:[#allocation23_spill] sm:$0xff] %v17977_v36 }
0x1844   : > { %v17979_v47 = vpop.f32.mrb[114].mxu1 }
0x1845   : > { %19963 = vst [vmem:[#allocation26_spill] sm:$0xff] %v17979_v47  ;;  %v17981_v58 = vpop.f32.mrb[115].mxu1 }
0x1846   : > { %19964 = vst [vmem:[#allocation25_spill] sm:$0xff] %v17981_v58 }
0x184c   : > { %v17983_v21 = vpop.f32.mrb[116].mxu1 }
0x184d   : > { %19965 = vst [vmem:[#allocation28_spill] sm:$0xff] %v17983_v21  ;;  %v17985_v42 = vpop.f32.mrb[117].mxu1 }
0x184e   : > { %19966 = vst [vmem:[#allocation27_spill] sm:$0xff] %v17985_v42 }
0x1850   : > { %v17987_v17 = vpop.f32.mrb[118].mxu1 }
0x1851   : > { %19967 = vst [vmem:[#allocation30_spill] sm:$0xff] %v17987_v17  ;;  %v17989_v16 = vpop.f32.mrb[119].mxu1 }
0x1852   : > { %19968 = vst [vmem:[#allocation29_spill] sm:$0xff] %v17989_v16 }
0x1855   : > { %v17991_v52 = vpop.f32.mrb[120].mxu1 }
0x1856   : > { %19969 = vst [vmem:[#allocation32_spill] sm:$0xff] %v17991_v52  ;;  %v17993_v45 = vpop.f32.mrb[121].mxu1 }
0x1857   : > { %19970 = vst [vmem:[#allocation31_spill] sm:$0xff] %v17993_v45 }
0x1859   : > { %v17995_v0 = vpop.f32.mrb[122].mxu1 }
0x185a   : > { %19971 = vst [vmem:[#allocation34_spill] sm:$0xff] %v17995_v0  ;;  %v17997_v33 = vpop.f32.mrb[123].mxu1 }
0x185b   : > { %19972 = vst [vmem:[#allocation33_spill] sm:$0xff] %v17997_v33 }
0x185d   : > { %v17999_v28 = vpop.f32.mrb[124].mxu1 }
0x185e   : > { %19973 = vst [vmem:[#allocation3_spill] sm:$0xff] %v17999_v28  ;;  %v18001_v32 = vpop.f32.mrb[125].mxu1 }
0x185f   : > { %19974 = vst [vmem:[#allocation2_spill] sm:$0xff] %v18001_v32 }
0x1861   : > { %v18003_v15 = vpop.f32.mrb[126].mxu1 }
0x1862   : > { %19975 = vst [vmem:[#allocation4_spill] sm:$0xff] %v18003_v15  ;;  %v18005_v59 = vpop.f32.mrb[127].mxu1 }
0x1863   : > { %19976 = vst [vmem:[#allocation5_spill] sm:$0xff] %v18005_v59 }
0x1865   : > { %v12222_v20 = vpop.f32.mrb[128].mxu1 }
0x1866   : > { %6671 = vmax.xlane.f32.xlu1 %v12222_v20  ;;  %v6590_v4 = vpop.f32.mrb[129].mxu1 }
0x1867   : > { %6669 = vmax.xlane.f32.xlu0 %v6590_v4 }
0x1869   : > { %v12225_v13 = vpop.f32.mrb[130].mxu1 }
0x186a   : > { %v6600_v3 = vpop.f32.mrb[131].mxu1 }
0x186b   : > { %6675 = vmax.xlane.f32.xlu0 %v12225_v13 }
0x186d   : > { %v12228_v8 = vpop.f32.mrb[132].mxu1 }
0x186e   : > { %v18007_v63 = vpop.f32.mrb[133].mxu1 }
0x186f   : > { %6673 = vmax.xlane.f32.xlu0 %v6600_v3 }
0x1871   : > { %v12231_v61 = vpop.f32.mrb[134].mxu1 }
0x1872   : > { %v18009_v41 = vpop.f32.mrb[135].mxu1 }
0x1873   : > { %6677 = vmax.xlane.f32.xlu0 %v18007_v63 }
0x1875   : > { %v18012_v37 = vpop.f32.mrb[136].mxu1 }
0x1876   : > { %v18014_v11 = vpop.f32.mrb[137].mxu1 }
0x1877   : > { %13985 = vrot.lane.b32.xlu1 %v17569_v50, %s19960_s22  ;;  %6681 = vmax.xlane.f32.xlu0 %v18009_v41 }
0x1879   : > { %v18019_v44 = vpop.f32.mrb[138].mxu1 }
0x187a   : > { %v6640_v9 = vpop.f32.mrb[139].mxu1 }
0x187b   : > { %6685 = vmax.xlane.f32.xlu0 %v18014_v11 }
0x187d   : > { %v18022_v27 = vpop.f32.mrb[140].mxu1 }
0x187e   : > { %v18024_v54 = vpop.f32.mrb[141].mxu1 }
0x187f   : > { %6689 = vmax.xlane.f32.xlu0 %v6640_v9 }
0x1881   : > { %v18026_v60 = vpop.f32.mrb[142].mxu1 }
0x1882   : > { %v18028_v29 = vpop.f32.mrb[143].mxu1 }
0x1883   : > { %6693 = vmax.xlane.f32.xlu0 %v18024_v54 }
0x1887   : > { %6697 = vmax.xlane.f32.xlu0 %v18028_v29 }
0x189b   : > { %6679 = vmax.xlane.f32.xlu1 %v12228_v8 }
0x189d   : > { %13990 = vrot.lane.b32.xlu0 %v17579_v38, %s19960_s22 }
0x189f   : > { %6683 = vmax.xlane.f32.xlu1 %v12231_v61 }
0x18a3   : > { %6687 = vmax.xlane.f32.xlu1 %v18012_v37 }
0x18a7   : > { %6691 = vmax.xlane.f32.xlu1 %v18019_v44 }
0x18ab   : > { %6695 = vmax.xlane.f32.xlu1 %v18022_v27 }
0x18af   : > { %6699 = vmax.xlane.f32.xlu1 %v18026_v60 }
0x18f3   : > { %v6672_v62 = vpop.xlane.xlu1 %6671 }
0x18f4   : > { %v6702_v57 = vsub.f32 %v12222_v20, %v6672_v62  ;;  %v6670_v10 = vpop.xlane.xlu0 %6669 }
0x18f5   : > { %v6701_v40 = vsub.f32 %v6590_v4, %v6670_v10 }
0x18f6   : > { %v6719_v15 = vmul.f32 1.442695, %v6702_v57 }
0x18f7   : > { %v6717_v59 = vmul.f32 1.442695, %v6701_v40 }
0x18f8   : > { %14610 = vpow2.f32 %v6719_v15  ;;  %v6676_v0 = vpop.xlane.xlu0 %6675  ;;  %v18052_v15 = vpop.permute.xlu1 %13985 }
0x18f9   : > { %14612 = vpow2.f32 %v6717_v59  ;;  %v6704_v62 = vsub.f32 %v12225_v13, %v6676_v0 }
0x18fb   : > { %v6723_v16 = vmul.f32 1.442695, %v6704_v62 }
0x18fc   : > { %v6674_v33 = vpop.xlane.xlu0 %6673 }
0x18fd   : > { %v6703_v59 = vsub.f32 %v6600_v3, %v6674_v33 }
0x18ff   : > { %v6721_v40 = vmul.f32 1.442695, %v6703_v59 }
0x1900   : > { %v6678_v20 = vpop.xlane.xlu0 %6677 }
0x1901   : > { %14614 = vpow2.f32 %v6721_v40  ;;  %v6705_v47 = vsub.f32 %v18007_v63, %v6678_v20 }
0x1902   : > { %v18042_v28 = vpop.eup %14610  ;;  %14616 = vpow2.f32 %v6723_v16 }
0x1903   : > { %v18044_v32 = vpop.eup %14612  ;;  %6751 = vadd.xlane.f32.xlu0 %v18042_v28  ;;  %v6725_v33 = vmul.f32 1.442695, %v6705_v47 }
0x1904   : > { %6749 = vadd.xlane.f32.xlu1 %v18044_v32  ;;  %v6682_v4 = vpop.xlane.xlu0 %6681 }
0x1905   : > { %v6707_v39 = vsub.f32 %v18009_v41, %v6682_v4 }
0x1907   : > { %v6729_v13 = vmul.f32 1.442695, %v6707_v39 }
0x1908   : > { %v6686_v57 = vpop.xlane.xlu0 %6685 }
0x1909   : > { %v6709_v63 = vsub.f32 %v18014_v11, %v6686_v57 }
0x190c   : > { %v6690_v36 = vpop.xlane.xlu0 %6689 }
0x190d   : > { %v6711_v0 = vsub.f32 %v6640_v9, %v6690_v36 }
0x1915   : > { %13995 = vrot.lane.b32.xlu1 %v17589_v30, %s19960_s22 }
0x1919   : > { %14000 = vrot.lane.b32.xlu0 %v17599_v1, %s19960_s22 }
0x1928   : > { %v6680_v10 = vpop.xlane.xlu1 %6679 }
0x1929   : > { %v6706_v45 = vsub.f32 %v12228_v8, %v6680_v10 }
0x192b   : > { %v6727_v21 = vmul.f32 1.442695, %v6706_v45  ;;  %v6737_v45 = vmul.f32 1.442695, %v6711_v0 }
0x192c   : > { %v6684_v42 = vpop.xlane.xlu1 %6683 }
0x192d   : > { %v6708_v58 = vsub.f32 %v12231_v61, %v6684_v42  ;;  %14618 = vpow2.f32 %v6727_v21  ;;  %v6694_v42 = vpop.xlane.xlu0 %6693  ;;  %v18058_v61 = vpop.eup %14614  ;;  %v6733_v21 = vmul.f32 1.442695, %v6709_v63 }
0x192e   : > { %v18060_v41 = vpop.eup %14616  ;;  %v6713_v39 = vsub.f32 %v18024_v54, %v6694_v42 }
0x192f   : > { %v6731_v52 = vmul.f32 1.442695, %v6708_v58 }
0x1930   : > { %v6688_v17 = vpop.xlane.xlu1 %6687  ;;  %v6741_v9 = vmul.f32 1.442695, %v6713_v39  ;;  %v13977_v39 = vunpack.i.l.bf16 %v18038_v22 }
0x1931   : > { %14620 = vpow2.f32 %v6731_v52  ;;  %v6710_v3 = vsub.f32 %v18012_v37, %v6688_v17  ;;  %v6698_v4 = vpop.xlane.xlu0 %6697 }
0x1932   : > { %14622 = vpow2.f32 %v6725_v33 }
0x1933   : > { %14624 = vpow2.f32 %v6729_v13  ;;  %v6735_v16 = vmul.f32 1.442695, %v6710_v3 }
0x1934   : > { %v6692_v8 = vpop.xlane.xlu1 %6691  ;;  %14626 = vpow2.f32 %v6737_v45 }
0x1935   : > { %14628 = vpow2.f32 %v6735_v16  ;;  %v6712_v17 = vsub.f32 %v18019_v44, %v6692_v8  ;;  %v6715_v44 = vsub.f32 %v18028_v29, %v6698_v4  ;;  %v13991_v8 = vpop.permute.xlu0 %13990 }
0x1937   : > { %v18066_v47 = vpop.eup %14618 }
0x1938   : > { %v6696_v58 = vpop.xlane.xlu1 %6695  ;;  %6753 = vadd.xlane.f32.xlu0 %v18058_v61 }
0x1939   : > { %v6714_v36 = vsub.f32 %v18022_v27, %v6696_v58  ;;  %6755 = vadd.xlane.f32.xlu1 %v18060_v41  ;;  %v6739_v27 = vmul.f32 1.442695, %v6712_v17  ;;  %v13978_v58 = vunpack.i.h.bf16 %v18038_v22 }
0x193b   : > { %v18069_v52 = vpop.eup %14620  ;;  %v6743_v37 = vmul.f32 1.442695, %v6714_v36  ;;  %v13229_v17 = vpack.c.bf16 %v13978_v58, %v13977_v39 }
0x193c   : > { %v6700_v11 = vpop.xlane.xlu1 %6699  ;;  %6759 = vadd.xlane.f32.xlu0 %v18066_v47  ;;  %v18074_v20 = vpop.eup %14622 }
0x193d   : > { %14630 = vpow2.f32 %v6743_v37  ;;  %6763 = vadd.xlane.f32.xlu1 %v18069_v52  ;;  %v6716_v54 = vsub.f32 %v18026_v60, %v6700_v11  ;;  %v18076_v59 = vpop.eup %14624  ;;  %v6745_v60 = vmul.f32 1.442695, %v6715_v44  ;;  %v13983_v37 = vunpack.i.h.bf16 %v18040_v34 }
0x193e   : > { %14632 = vpow2.f32 %v6733_v21  ;;  %v18081_v57 = vpop.eup %14626  ;;  %v13982_v11 = vunpack.i.l.bf16 %v18040_v34  ;;  %v13992_v34 = vunpack.i.l.bf16 %v13991_v8 }
0x193f   : > { %14634 = vpow2.f32 %v6741_v9  ;;  %v6747_v62 = vmul.f32 1.442695, %v6716_v54  ;;  %v18083_v10 = vpop.eup %14628 }
0x1940   : > { %6757 = vadd.xlane.f32.xlu0 %v18074_v20  ;;  %14636 = vpow2.f32 %v6739_v27  ;;  %v13235_v9 = vpack.c.bf16 %v13983_v37, %v13982_v11 }
0x1941   : > { %6761 = vadd.xlane.f32.xlu1 %v18076_v59  ;;  %14638 = vpow2.f32 %v6747_v62 }
0x1942   : > { %14640 = vpow2.f32 %v6745_v60 }
0x1944   : > { %6769 = vadd.xlane.f32.xlu0 %v18081_v57 }
0x1945   : > { %6767 = vadd.xlane.f32.xlu1 %v18083_v10 }
0x1947   : > { %v18087_v40 = vpop.eup %14630 }
0x1948   : > { %v18089_v33 = vpop.eup %14632  ;;  %6775 = vadd.xlane.f32.xlu0 %v18087_v40 }
0x1949   : > { %6765 = vadd.xlane.f32.xlu1 %v18089_v33  ;;  %v18093_v29 = vpop.eup %14634 }
0x194a   : > { %v18095_v0 = vpop.eup %14636 }
0x194b   : > { %v18099_v13 = vpop.eup %14638 }
0x194c   : > { %6773 = vadd.xlane.f32.xlu0 %v18093_v29  ;;  %v18102_v3 = vpop.eup %14640 }
0x194d   : > { %6771 = vadd.xlane.f32.xlu1 %v18095_v0 }
0x1951   : > { %6779 = vadd.xlane.f32.xlu1 %v18099_v13 }
0x1955   : > { %6777 = vadd.xlane.f32.xlu1 %v18102_v3 }
0x1962   : > { %14005 = vrot.lane.b32.xlu0 %v17611_v12, %s19960_s22 }
0x1966   : > { %7006 = vrot.lane.b32.xlu0 %v17537_v6, %s19977_s26  ;;  %7008 = vrot.lane.b32.xlu1 %v17668_v14, %s19977_s26 }
0x196a   : > { %7010 = vrot.lane.b32.xlu0 %v17671_v51, %s19977_s26  ;;  %7012 = vrot.lane.b32.xlu1 %v17680_v7, %s19977_s26 }
0x196e   : > { %7014 = vrot.lane.b32.xlu0 %v17683_v43, %s19977_s26  ;;  %7016 = vrot.lane.b32.xlu1 %v17690_v2, %s19977_s26 }
0x1972   : > { %7018 = vrot.lane.b32.xlu0 %v17693_v31, %s19977_s26  ;;  %7020 = vrot.lane.b32.xlu1 %v17700_v19, %s19977_s26 }
0x1976   : > { %7022 = vrot.lane.b32.xlu0 %v17703_v5, %s19977_s26  ;;  %7024 = vrot.lane.b32.xlu1 %v17712_v49, %s19977_s26 }
0x197a   : > { %7026 = vrot.lane.b32.xlu0 %v17718_v46, %s19977_s26  ;;  %7028 = vrot.lane.b32.xlu1 %v17725_v25, %s19977_s26 }
0x197e   : > { %7030 = vrot.lane.b32.xlu0 %v17728_v23, %s19977_s26  ;;  %7032 = vrot.lane.b32.xlu1 %v17735_v55, %s19977_s26 }
0x1982   : > { %7034 = vrot.lane.b32.xlu0 %v17738_v26, %s19977_s26  ;;  %7036 = vrot.lane.b32.xlu1 %v17745_v53, %s19977_s26 }
0x1986   : > { %14010 = vrot.lane.b32.xlu0 %v17535_v35, %s19978_s2  ;;  %14015 = vrot.lane.b32.xlu1 %v17549_v18, %s19978_s2 }
0x198a   : > { %14025 = vrot.lane.b32.xlu0 %v17569_v50, %s19978_s2  ;;  %14020 = vrot.lane.b32.xlu1 %v17559_v24, %s19978_s2 }
0x198e   : > { %14030 = vrot.lane.b32.xlu0 %v17579_v38, %s19978_s2  ;;  %14035 = vrot.lane.b32.xlu1 %v17589_v30, %s19978_s2 }
0x1990   : > { %v6752_v45 = vpop.xlane.xlu0 %6751 }
0x1991   : > { %14642 = vrcp.f32 %v6752_v45  ;;  %v6750_v63 = vpop.xlane.xlu1 %6749 }
0x1992   : > { %14644 = vrcp.f32 %v6750_v63  ;;  %14050 = vrot.lane.b32.xlu0 %v17535_v35, %s19979_s23  ;;  %14040 = vrot.lane.b32.xlu1 %v17599_v1, %s19978_s2 }
0x1994   : > { %v14001_v62 = vpop.permute.xlu0 %14000 }
0x1995   : > { %v13996_v54 = vpop.permute.xlu1 %13995  ;;  %v14003_v60 = vunpack.i.h.bf16 %v14001_v62 }
0x1996   : > { %14060 = vrot.lane.b32.xlu0 %v17559_v24, %s19979_s23  ;;  %14045 = vrot.lane.b32.xlu1 %v17611_v12, %s19978_s2  ;;  %v13998_v4 = vunpack.i.h.bf16 %v13996_v54  ;;  %v13997_v44 = vunpack.i.l.bf16 %v13996_v54 }
0x199a   : > { %14055 = vrot.lane.b32.xlu1 %v17549_v18, %s19979_s23 }
0x199b   : > { %v14643_v42 = vpop.eup %14642 }
0x199c   : > { %v14645_v16 = vpop.eup %14644  ;;  %v6798_v21 = vmul.f32 %v14643_v42, %v18042_v28  ;;  %v13988_v28 = vunpack.i.h.bf16 %v18052_v15 }
0x199d   : > { %v6797_v36 = vmul.f32 %v14645_v16, %v18044_v32  ;;  %v13987_v32 = vunpack.i.l.bf16 %v18052_v15  ;;  %v13253_v15 = vpack.c.bf16 %v13998_v4, %v13997_v44 }
0x199f   : > { %12276 = vmatprep.mubr.f32.mxu0 %v6797_v36  ;;  %v13241_v22 = vpack.c.bf16 %v13988_v28, %v13987_v32 }
0x19a0   : > { %12277 = vmatmul.mubr.f32.vlgmr.msra.gmra.mrb[128].mxu0 %v6798_v21 }
0x19a1   : > { %13228 = vmatpush3.bf16.xpose.msk.msra.mxu0 %vm15464_vm4, %v17970_v56  ;;  %v13993_v56 = vunpack.i.h.bf16 %v13991_v8  ;;  %v14002_v8 = vunpack.i.l.bf16 %v14001_v62 }
0x19a2   : > { %13231 = vmatprep.subr.msk.bf16.mxu0 %vm15464_vm4, %v13229_v17 }
0x19a3   : > { %v13247_v27 = vpack.c.bf16 %v13993_v56, %v13992_v34  ;;  %v13259_v42 = vpack.c.bf16 %v14003_v60, %v14002_v8 }
0x19a9   : > { %13234 = vmatpush3.bf16.xpose.msk.msra.mxu0 %vm15464_vm4, %v13229_v17 }
0x19aa   : > { %13237 = vmatprep.subr.msk.bf16.mxu0 %vm15464_vm4, %v13235_v9 }
0x19b1   : > { %13240 = vmatpush3.bf16.xpose.msk.msra.mxu0 %vm15464_vm4, %v13235_v9 }
0x19b2   : > { %13243 = vmatprep.subr.msk.bf16.mxu0 %vm15464_vm4, %v13241_v22 }
0x19b9   : > { %13246 = vmatpush3.bf16.xpose.msk.msra.mxu0 %vm15464_vm4, %v13241_v22 }
0x19ba   : > { %13249 = vmatprep.subr.msk.bf16.mxu0 %vm15464_vm4, %v13247_v27 }
0x19c1   : > { %13252 = vmatpush3.bf16.xpose.msk.msra.mxu0 %vm15464_vm4, %v13247_v27 }
0x19c2   : > { %13255 = vmatprep.subr.msk.bf16.mxu0 %vm15464_vm4, %v13253_v15 }
0x19c5   : > { %v6754_v45 = vpop.xlane.xlu0 %6753 }
0x19c6   : > { %14646 = vrcp.f32 %v6754_v45  ;;  %v6756_v63 = vpop.xlane.xlu1 %6755 }
0x19c7   : > { %14648 = vrcp.f32 %v6756_v63 }
0x19c9   : > { %13258 = vmatpush3.bf16.xpose.msk.msra.mxu0 %vm15464_vm4, %v13253_v15  ;;  %v6760_v16 = vpop.xlane.xlu0 %6759 }
0x19ca   : > { %13261 = vmatprep.subr.msk.bf16.mxu0 %vm15464_vm4, %v13259_v42  ;;  %v6764_v58 = vpop.xlane.xlu1 %6763  ;;  %14650 = vrcp.f32 %v6760_v16 }
0x19cd   : > { %v6758_v39 = vpop.xlane.xlu0 %6757 }
0x19ce   : > { %14652 = vrcp.f32 %v6758_v39  ;;  %v6762_v36 = vpop.xlane.xlu1 %6761 }
0x19cf   : > { %14654 = vrcp.f32 %v6762_v36 }
0x19d0   : > { %v14647_v21 = vpop.eup %14646  ;;  %14656 = vrcp.f32 %v6764_v58 }
0x19d1   : > { %v14649_v17 = vpop.eup %14648  ;;  %13264 = vmatpush3.bf16.xpose.msk.msra.mxu0 %vm15464_vm4, %v13259_v42  ;;  %v6770_v37 = vpop.xlane.xlu0 %6769  ;;  %v6799_v11 = vmul.f32 %v14647_v21, %v18058_v61 }
0x19d2   : > { %v6768_v9 = vpop.xlane.xlu1 %6767  ;;  %v6800_v28 = vmul.f32 %v14649_v17, %v18060_v41  ;;  %14658 = vrcp.f32 %v6770_v37 }
0x19d3   : > { %12279 = vmatprep.mubr.f32.mxu0 %v6799_v11  ;;  %14660 = vrcp.f32 %v6768_v9 }
0x19d4   : > { %12280 = vmatmul.mubr.f32.gmra.mrb[130].mxu0 %v6800_v28  ;;  %v14651_v56 = vpop.eup %14650 }
0x19d5   : > { %v6776_v32 = vpop.xlane.xlu0 %6775  ;;  %v6802_v61 = vmul.f32 %v14651_v56, %v18066_v47 }
0x19d6   : > { %v6766_v22 = vpop.xlane.xlu1 %6765 }
0x19d7   : > { %14662 = vrcp.f32 %v6766_v22 }
0x19d8   : > { %v14653_v34 = vpop.eup %14652 }
0x19d9   : > { %v14655_v27 = vpop.eup %14654  ;;  %v6774_v54 = vpop.xlane.xlu0 %6773  ;;  %v6801_v4 = vmul.f32 %v14653_v34, %v18074_v20 }
0x19da   : > { %14664 = vrcp.f32 %v6774_v54  ;;  %v6772_v44 = vpop.xlane.xlu1 %6771  ;;  %v6803_v15 = vmul.f32 %v14655_v27, %v18076_v59  ;;  %v14657_v41 = vpop.eup %14656 }
0x19db   : > { %14666 = vrcp.f32 %v6772_v44  ;;  %12282 = vmatprep.mubr.f32.mxu0 %v6801_v4  ;;  %v6804_v63 = vmul.f32 %v14657_v41, %v18069_v52 }
0x19dc   : > { %12283 = vmatmul.mubr.f32.gmra.mrb[132].mxu0 %v6802_v61  ;;  %14668 = vrcp.f32 %v6776_v32  ;;  %v14659_v42 = vpop.eup %14658 }
0x19dd   : > { %12285 = vmatprep.mubr.f32.mxu0 %v6803_v15  ;;  %v14006_v62 = vpop.permute.xlu0 %14005  ;;  %v14661_v20 = vpop.eup %14660  ;;  %v6807_v21 = vmul.f32 %v14659_v42, %v18081_v57 }
0x19de   : > { %v14008_v60 = vunpack.i.h.bf16 %v14006_v62  ;;  %v14007_v8 = vunpack.i.l.bf16 %v14006_v62  ;;  %v6780_v45 = vpop.xlane.xlu1 %6779  ;;  %v6806_v36 = vmul.f32 %v14661_v20, %v18083_v10 }
0x19df   : > { %14670 = vrcp.f32 %v6780_v45 }
0x19e0   : > { %v13265_v16 = vpack.c.bf16 %v14008_v60, %v14007_v8  ;;  %12286 = vmatmul.mubr.f32.gmra.mrb[134].mxu0 %v6804_v63 }
0x19e1   : > { %v14663_v58 = vpop.eup %14662  ;;  %v7007_v47 = vpop.permute.xlu0 %7006 }
0x19e2   : > { %v6778_v59 = vpop.xlane.xlu1 %6777  ;;  %13267 = vmatprep.subr.msk.bf16.mxu0 %vm15464_vm4, %v13265_v16  ;;  %v6805_v39 = vmul.f32 %v14663_v58, %v18089_v33 }
0x19e3   : > { %14672 = vrcp.f32 %v6778_v59  ;;  %13270 = vmatpush3.bf16.xpose.msk.msra.mxu0 %vm15464_vm4, %v13265_v16 }
0x19e4   : > { %v14665_v52 = vpop.eup %14664  ;;  %12288 = vmatprep.mubr.f32.mxu0 %v6805_v39 }
0x19e5   : > { %v14667_v17 = vpop.eup %14666  ;;  %12289 = vmatmul.mubr.f32.gmra.mrb[136].mxu0 %v6806_v36  ;;  %v7011_v37 = vpop.permute.xlu0 %7010  ;;  %v6809_v33 = vmul.f32 %v14665_v52, %v18093_v29 }
0x19e6   : > { %v7009_v11 = vpop.permute.xlu1 %7008  ;;  %12291 = vmatprep.mubr.f32.mxu0 %v6807_v21  ;;  %v6808_v9 = vmul.f32 %v14667_v17, %v18095_v0  ;;  %v14669_v28 = vpop.eup %14668 }
0x19e7   : > { %v6810_v10 = vmul.f32 %v14669_v28, %v18087_v40 }
0x19e9   : > { %12292 = vmatmul.mubr.f32.gmra.mrb[138].mxu0 %v6808_v9  ;;  %v7015_v32 = vpop.permute.xlu0 %7014  ;;  %v14671_v56 = vpop.eup %14670 }
0x19ea   : > { %v7013_v22 = vpop.permute.xlu1 %7012  ;;  %12294 = vmatprep.mubr.f32.mxu0 %v6809_v33  ;;  %v6812_v4 = vmul.f32 %v14671_v56, %v18099_v13 }
0x19ed   : > { %v14673_v34 = vpop.eup %14672  ;;  %12295 = vmatmul.mubr.f32.gmra.mrb[140].mxu0 %v6810_v10  ;;  %v7019_v57 = vpop.permute.xlu0 %7018 }
0x19ee   : > { %v7017_v27 = vpop.permute.xlu1 %7016  ;;  %v6811_v54 = vmul.f32 %v14673_v34, %v18102_v3 }
0x19f0   : > { %12297 = vmatprep.mubr.f32.mxu0 %v6811_v54 }
0x19f1   : > { %12298 = vmatmul.mubr.f32.gmra.mrb[142].mxu0 %v6812_v4  ;;  %v7023_v0 = vpop.permute.xlu0 %7022 }
0x19f2   : > { %v7021_v44 = vpop.permute.xlu1 %7020  ;;  %12332 = vmatprep.mubr.msk.f32.mxu0 %vm1347_vm3, %v7007_v47 }
0x19f5   : > { %v7027_v29 = vpop.permute.xlu0 %7026  ;;  %12333 = vmatmul.mubr.msk.f32.vlgmr.msra.gmra.mrb[144].mxu0 %vm1347_vm3, %v7009_v11 }
0x19f6   : > { %v7025_v61 = vpop.permute.xlu1 %7024  ;;  %12335 = vmatprep.mubr.msk.f32.mxu0 %vm1347_vm3, %v7011_v37 }
0x19f9   : > { %v7031_v40 = vpop.permute.xlu0 %7030  ;;  %12336 = vmatmul.mubr.msk.f32.gmra.mrb[146].mxu0 %vm1347_vm3, %v7013_v22 }
0x19fa   : > { %v7029_v15 = vpop.permute.xlu1 %7028  ;;  %12338 = vmatprep.mubr.msk.f32.mxu0 %vm1347_vm3, %v7015_v32 }
0x19fd   : > { %v7035_v3 = vpop.permute.xlu0 %7034  ;;  %12339 = vmatmul.mubr.msk.f32.gmra.mrb[148].mxu0 %vm1347_vm3, %v7017_v27 }
0x19fe   : > { %v7033_v13 = vpop.permute.xlu1 %7032  ;;  %12341 = vmatprep.mubr.msk.f32.mxu0 %vm1347_vm3, %v7019_v57 }
0x1a01   : > { %v14011_v41 = vpop.permute.xlu0 %14010  ;;  %12342 = vmatmul.mubr.msk.f32.gmra.mrb[150].mxu0 %vm1347_vm3, %v7021_v44 }
0x1a02   : > { %v14013_v62 = vunpack.i.h.bf16 %v14011_v41  ;;  %v14012_v60 = vunpack.i.l.bf16 %v14011_v41  ;;  %v7037_v8 = vpop.permute.xlu1 %7036  ;;  %12344 = vmatprep.mubr.msk.f32.mxu0 %vm1347_vm3, %v7023_v0 }
0x1a04   : > { %v13271_v45 = vpack.c.bf16 %v14013_v62, %v14012_v60 }
0x1a05   : > { %12345 = vmatmul.mubr.msk.f32.gmra.mrb[152].mxu0 %vm1347_vm3, %v7025_v61  ;;  %v14026_v63 = vpop.permute.xlu0 %14025 }
0x1a06   : > { %v14016_v42 = vpop.permute.xlu1 %14015  ;;  %12347 = vmatprep.mubr.msk.f32.mxu0 %vm1347_vm3, %v7027_v29  ;;  %13272 = vmatprep.subr.bf16.mxu1 %v13271_v45  ;;  %v14028_v59 = vunpack.i.h.bf16 %v14026_v63  ;;  %v14027_v39 = vunpack.i.l.bf16 %v14026_v63 }
0x1a07   : > { %v14018_v20 = vunpack.i.h.bf16 %v14016_v42  ;;  %v14017_v16 = vunpack.i.l.bf16 %v14016_v42  ;;  %13274 = vmatpush3.bf16.msra.mxu1 %v13271_v45 }
0x1a08   : > { %v13283_v28 = vpack.c.bf16 %v14028_v59, %v14027_v39 }
0x1a09   : > { %12348 = vmatmul.mubr.msk.f32.gmra.mrb[154].mxu0 %vm1347_vm3, %v7029_v15  ;;  %v13275_v58 = vpack.c.bf16 %v14018_v20, %v14017_v16  ;;  %v14031_v21 = vpop.permute.xlu0 %14030 }
0x1a0a   : > { %v14021_v47 = vpop.permute.xlu1 %14020  ;;  %12350 = vmatprep.mubr.msk.f32.mxu0 %vm1347_vm3, %v7031_v40  ;;  %v14033_v11 = vunpack.i.h.bf16 %v14031_v21  ;;  %v14032_v9 = vunpack.i.l.bf16 %v14031_v21 }
0x1a0b   : > { %v14023_v36 = vunpack.i.h.bf16 %v14021_v47  ;;  %v14022_v52 = vunpack.i.l.bf16 %v14021_v47  ;;  %13276 = vmatprep.subr.bf16.mxu1 %v13275_v58 }
0x1a0c   : > { %13278 = vmatpush3.bf16.msra.mxu1 %v13275_v58  ;;  %v13287_v10 = vpack.c.bf16 %v14033_v11, %v14032_v9 }
0x1a0d   : > { %12351 = vmatmul.mubr.msk.f32.gmra.mrb[156].mxu0 %vm1347_vm3, %v7033_v13  ;;  %v13279_v17 = vpack.c.bf16 %v14023_v36, %v14022_v52  ;;  %v14051_v44 = vpop.permute.xlu0 %14050 }
0x1a0e   : > { %v14036_v37 = vpop.permute.xlu1 %14035  ;;  %12353 = vmatprep.mubr.msk.f32.mxu0 %vm1347_vm3, %v7035_v3  ;;  %v14053_v29 = vunpack.i.h.bf16 %v14051_v44  ;;  %v14052_v61 = vunpack.i.l.bf16 %v14051_v44 }
0x1a0f   : > { %13280 = vmatprep.subr.bf16.mxu1 %v13279_v17  ;;  %v14038_v32 = vunpack.i.h.bf16 %v14036_v37  ;;  %v14037_v22 = vunpack.i.l.bf16 %v14036_v37 }
0x1a10   : > { %13282 = vmatpush3.bf16.msra.mxu1 %v13279_v17  ;;  %v18230_v15 = vpack.c.bf16 %v14053_v29, %v14052_v61 }
0x1a11   : > { %12354 = vmatmul.mubr.msk.f32.gmra.mrb[158].mxu0 %vm1347_vm3, %v7037_v8  ;;  %13284 = vmatprep.subr.bf16.mxu1 %v13283_v28  ;;  %v13291_v57 = vpack.c.bf16 %v14038_v32, %v14037_v22 }
0x1a12   : > { %v14041_v33 = vpop.permute.xlu1 %14040 }
0x1a13   : > { %v14043_v56 = vunpack.i.h.bf16 %v14041_v33  ;;  %v14042_v34 = vunpack.i.l.bf16 %v14041_v33 }
0x1a14   : > { %13286 = vmatpush3.bf16.msra.mxu1 %v13283_v28 }
0x1a15   : > { %13288 = vmatprep.subr.bf16.mxu1 %v13287_v10  ;;  %v13295_v0 = vpack.c.bf16 %v14043_v56, %v14042_v34 }
0x1a16   : > { %v14046_v27 = vpop.permute.xlu1 %14045 }
0x1a17   : > { %v14048_v54 = vunpack.i.h.bf16 %v14046_v27  ;;  %v14047_v4 = vunpack.i.l.bf16 %v14046_v27 }
0x1a18   : > { %13290 = vmatpush3.bf16.msra.mxu1 %v13287_v10 }
0x1a19   : > { %13292 = vmatprep.subr.bf16.mxu1 %v13291_v57  ;;  %v13299_v40 = vpack.c.bf16 %v14048_v54, %v14047_v4 }
0x1a1a   : > { %v18298_v4 = vpop.permute.xlu1 %14055 }
0x1a1c   : > { %13294 = vmatpush3.bf16.msra.mxu1 %v13291_v57 }
0x1a1d   : > { %13296 = vmatprep.subr.bf16.mxu1 %v13295_v0 }
0x1a20   : > { %13298 = vmatpush3.bf16.msra.mxu1 %v13295_v0  ;;  %v18300_v0 = vpop.permute.xlu0 %14060 }
0x1a21   : > { %13300 = vmatprep.subr.bf16.mxu1 %v13299_v40 }
0x1a24   : > { %13302 = vmatpush3.bf16.msra.mxu1 %v13299_v40 }
0x1a25   : > { %13305 = vmatprep.subr.msk.bf16.mxu1 %vm15464_vm4, %v18230_v15 }
0x1a73   : > { %v18235_v3 = vpop.f32.mrb[128].mxu0 }
0x1a74   : > { %19980 = vst [vmem:[#allocation6_spill] sm:$0xff] %v18235_v3  ;;  %v18237_v13 = vpop.f32.mrb[129].mxu0 }
0x1a75   : > { %19981 = vst [vmem:[#allocation7_spill] sm:$0xff] %v18237_v13 }
0x1aa7   : > { %v18239_v41 = vpop.f32.mrb[130].mxu0 }
0x1aa8   : > { %19982 = vst [vmem:[#allocation8_spill] sm:$0xff] %v18239_v41  ;;  %v18241_v62 = vpop.f32.mrb[131].mxu0 }
0x1aa9   : > { %19983 = vst [vmem:[#allocation9_spill] sm:$0xff] %v18241_v62 }
0x1aaf   : > { %v18243_v60 = vpop.f32.mrb[132].mxu0 }
0x1ab0   : > { %19984 = vst [vmem:[#allocation10_spill] sm:$0xff] %v18243_v60  ;;  %v18245_v8 = vpop.f32.mrb[133].mxu0 }
0x1ab1   : > { %19985 = vst [vmem:[#allocation11_spill] sm:$0xff] %v18245_v8 }
0x1ab3   : > { %v18247_v45 = vpop.f32.mrb[134].mxu0 }
0x1ab4   : > { %19986 = vst [vmem:[#allocation12_spill] sm:$0xff] %v18247_v45  ;;  %v18249_v63 = vpop.f32.mrb[135].mxu0 }
0x1ab5   : > { %19987 = vst [vmem:[#allocation13_spill] sm:$0xff] %v18249_v63 }
0x1ab8   : > { %v18251_v42 = vpop.f32.mrb[136].mxu0 }
0x1ab9   : > { %19988 = vst [vmem:[#allocation14_spill] sm:$0xff] %v18251_v42  ;;  %v18253_v20 = vpop.f32.mrb[137].mxu0 }
0x1aba   : > { %19989 = vst [vmem:[#allocation15_spill] sm:$0xff] %v18253_v20 }
0x1abc   : > { %v18255_v16 = vpop.f32.mrb[138].mxu0 }
0x1abd   : > { %19990 = vst [vmem:[#allocation16_spill] sm:$0xff] %v18255_v16  ;;  %v18257_v58 = vpop.f32.mrb[139].mxu0 }
0x1abe   : > { %19991 = vst [vmem:[#allocation17_spill] sm:$0xff] %v18257_v58 }
0x1ac0   : > { %v18259_v47 = vpop.f32.mrb[140].mxu0 }
0x1ac1   : > { %19992 = vst [vmem:[#allocation35_spill] sm:$0xff] %v18259_v47  ;;  %v18261_v59 = vpop.f32.mrb[141].mxu0 }
0x1ac2   : > { %19993 = vst [vmem:[#allocation36_spill] sm:$0xff] %v18261_v59 }
0x1ac4   : > { %v18263_v39 = vpop.f32.mrb[142].mxu0 }
0x1ac5   : > { %19994 = vst [vmem:[#allocation38_spill] sm:$0xff] %v18263_v39  ;;  %v18265_v36 = vpop.f32.mrb[143].mxu0 }
0x1ac6   : > { %19995 = vst [vmem:[#allocation37_spill] sm:$0xff] %v18265_v36 }
0x1ac8   : > { %v12334_v52 = vpop.f32.mrb[144].mxu0 }
0x1ac9   : > { %7281 = vmax.xlane.f32.xlu1 %v12334_v52  ;;  %v7200_v21 = vpop.f32.mrb[145].mxu0 }
0x1aca   : > { %7279 = vmax.xlane.f32.xlu0 %v7200_v21 }
0x1acc   : > { %v12337_v17 = vpop.f32.mrb[146].mxu0 }
0x1acd   : > { %v7210_v37 = vpop.f32.mrb[147].mxu0 }
0x1ace   : > { %7285 = vmax.xlane.f32.xlu0 %v12337_v17 }
0x1ad0   : > { %v12340_v11 = vpop.f32.mrb[148].mxu0 }
0x1ad1   : > { %v18267_v9 = vpop.f32.mrb[149].mxu0 }
0x1ad2   : > { %7283 = vmax.xlane.f32.xlu0 %v7210_v37 }
0x1ad4   : > { %v12343_v28 = vpop.f32.mrb[150].mxu0 }
0x1ad5   : > { %v18269_v33 = vpop.f32.mrb[151].mxu0 }
0x1ad6   : > { %7287 = vmax.xlane.f32.xlu0 %v18267_v9 }
0x1ad8   : > { %v18272_v32 = vpop.f32.mrb[152].mxu0 }
0x1ad9   : > { %v18274_v22 = vpop.f32.mrb[153].mxu0 }
0x1ada   : > { %14065 = vrot.lane.b32.xlu1 %v17569_v50, %s19979_s23  ;;  %7291 = vmax.xlane.f32.xlu0 %v18269_v33 }
0x1adc   : > { %v18279_v10 = vpop.f32.mrb[154].mxu0 }
0x1add   : > { %v7250_v56 = vpop.f32.mrb[155].mxu0 }
0x1ade   : > { %7295 = vmax.xlane.f32.xlu0 %v18274_v22 }
0x1ae0   : > { %v18282_v34 = vpop.f32.mrb[156].mxu0 }
0x1ae1   : > { %v18284_v57 = vpop.f32.mrb[157].mxu0 }
0x1ae2   : > { %7299 = vmax.xlane.f32.xlu0 %v7250_v56 }
0x1ae4   : > { %v18286_v27 = vpop.f32.mrb[158].mxu0 }
0x1ae5   : > { %v18288_v54 = vpop.f32.mrb[159].mxu0 }
0x1ae6   : > { %7303 = vmax.xlane.f32.xlu0 %v18284_v57 }
0x1aea   : > { %7307 = vmax.xlane.f32.xlu0 %v18288_v54 }
0x1afe   : > { %7289 = vmax.xlane.f32.xlu1 %v12340_v11 }
0x1b00   : > { %14070 = vrot.lane.b32.xlu0 %v17579_v38, %s19979_s23 }
0x1b02   : > { %7293 = vmax.xlane.f32.xlu1 %v12343_v28 }
0x1b06   : > { %7297 = vmax.xlane.f32.xlu1 %v18272_v32 }
0x1b0a   : > { %7301 = vmax.xlane.f32.xlu1 %v18279_v10 }
0x1b0e   : > { %7305 = vmax.xlane.f32.xlu1 %v18282_v34 }
0x1b12   : > { %7309 = vmax.xlane.f32.xlu1 %v18286_v27 }
0x1b56   : > { %v7282_v44 = vpop.xlane.xlu1 %7281 }
0x1b57   : > { %v7312_v29 = vsub.f32 %v12334_v52, %v7282_v44  ;;  %v7280_v61 = vpop.xlane.xlu0 %7279 }
0x1b58   : > { %v7311_v40 = vsub.f32 %v7200_v21, %v7280_v61 }
0x1b59   : > { %v7329_v36 = vmul.f32 1.442695, %v7312_v29 }
0x1b5a   : > { %v7327_v39 = vmul.f32 1.442695, %v7311_v40 }
0x1b5b   : > { %14674 = vpow2.f32 %v7329_v36  ;;  %v7286_v58 = vpop.xlane.xlu0 %7285  ;;  %v18312_v36 = vpop.permute.xlu1 %14065 }
0x1b5c   : > { %14676 = vpow2.f32 %v7327_v39  ;;  %v7314_v44 = vsub.f32 %v12337_v17, %v7286_v58 }
0x1b5e   : > { %v7333_v20 = vmul.f32 1.442695, %v7314_v44 }
0x1b5f   : > { %v7284_v16 = vpop.xlane.xlu0 %7283 }
0x1b60   : > { %v7313_v39 = vsub.f32 %v7210_v37, %v7284_v16 }
0x1b62   : > { %v7331_v40 = vmul.f32 1.442695, %v7313_v39 }
0x1b63   : > { %v7288_v52 = vpop.xlane.xlu0 %7287 }
0x1b64   : > { %14678 = vpow2.f32 %v7331_v40  ;;  %v7315_v60 = vsub.f32 %v18267_v9, %v7288_v52 }
0x1b65   : > { %v18302_v59 = vpop.eup %14674  ;;  %14680 = vpow2.f32 %v7333_v20 }
0x1b66   : > { %v18304_v47 = vpop.eup %14676  ;;  %7361 = vadd.xlane.f32.xlu0 %v18302_v59  ;;  %v7335_v16 = vmul.f32 1.442695, %v7315_v60 }
0x1b67   : > { %7359 = vadd.xlane.f32.xlu1 %v18304_v47  ;;  %v7292_v21 = vpop.xlane.xlu0 %7291 }
0x1b68   : > { %v7317_v41 = vsub.f32 %v18269_v33, %v7292_v21 }
0x1b6a   : > { %v7339_v17 = vmul.f32 1.442695, %v7317_v41 }
0x1b6b   : > { %v7296_v29 = vpop.xlane.xlu0 %7295 }
0x1b6c   : > { %v7319_v9 = vsub.f32 %v18274_v22, %v7296_v29 }
0x1b6f   : > { %v7300_v62 = vpop.xlane.xlu0 %7299 }
0x1b70   : > { %v7321_v58 = vsub.f32 %v7250_v56, %v7300_v62  ;;  %v7343_v62 = vmul.f32 1.442695, %v7319_v9 }
0x1b78   : > { %14075 = vrot.lane.b32.xlu1 %v17589_v30, %s19979_s23 }
0x1b7c   : > { %14080 = vrot.lane.b32.xlu0 %v17599_v1, %s19979_s23 }
0x1b8b   : > { %v7290_v61 = vpop.xlane.xlu1 %7289 }
0x1b8c   : > { %v7316_v42 = vsub.f32 %v12340_v11, %v7290_v61 }
0x1b8e   : > { %v7337_v45 = vmul.f32 1.442695, %v7316_v42  ;;  %v7347_v42 = vmul.f32 1.442695, %v7321_v58 }
0x1b8f   : > { %v7294_v63 = vpop.xlane.xlu1 %7293 }
0x1b90   : > { %v7318_v8 = vsub.f32 %v12343_v28, %v7294_v63  ;;  %14682 = vpow2.f32 %v7337_v45  ;;  %v7304_v63 = vpop.xlane.xlu0 %7303  ;;  %v18318_v28 = vpop.eup %14678 }
0x1b91   : > { %v18320_v33 = vpop.eup %14680 }
0x1b92   : > { %v7341_v13 = vmul.f32 1.442695, %v7318_v8 }
0x1b93   : > { %v7298_v3 = vpop.xlane.xlu1 %7297 }
0x1b94   : > { %14684 = vpow2.f32 %v7341_v13  ;;  %v7320_v37 = vsub.f32 %v18272_v32, %v7298_v3  ;;  %v7323_v13 = vsub.f32 %v18284_v57, %v7304_v63  ;;  %v7308_v21 = vpop.xlane.xlu0 %7307 }
0x1b95   : > { %14686 = vpow2.f32 %v7335_v16 }
0x1b96   : > { %14688 = vpow2.f32 %v7339_v17  ;;  %v7345_v20 = vmul.f32 1.442695, %v7320_v37  ;;  %v7351_v56 = vmul.f32 1.442695, %v7323_v13 }
0x1b97   : > { %v7302_v11 = vpop.xlane.xlu1 %7301  ;;  %14690 = vpow2.f32 %v7347_v42 }
0x1b98   : > { %14692 = vpow2.f32 %v7345_v20  ;;  %v7322_v60 = vsub.f32 %v18279_v10, %v7302_v11  ;;  %v7325_v10 = vsub.f32 %v18288_v54, %v7308_v21 }
0x1b9a   : > { %v18326_v41 = vpop.eup %14682 }
0x1b9b   : > { %v7306_v8 = vpop.xlane.xlu1 %7305  ;;  %7363 = vadd.xlane.f32.xlu0 %v18318_v28 }
0x1b9c   : > { %v7324_v3 = vsub.f32 %v18282_v34, %v7306_v8  ;;  %7365 = vadd.xlane.f32.xlu1 %v18320_v33  ;;  %v7349_v34 = vmul.f32 1.442695, %v7322_v60 }
0x1b9e   : > { %v18329_v45 = vpop.eup %14684  ;;  %v7353_v32 = vmul.f32 1.442695, %v7324_v3 }
0x1b9f   : > { %v7310_v22 = vpop.xlane.xlu1 %7309  ;;  %7369 = vadd.xlane.f32.xlu0 %v18326_v41  ;;  %v18334_v52 = vpop.eup %14686 }
0x1ba0   : > { %14694 = vpow2.f32 %v7353_v32  ;;  %7373 = vadd.xlane.f32.xlu1 %v18329_v45  ;;  %v7326_v57 = vsub.f32 %v18286_v27, %v7310_v22  ;;  %v18336_v39 = vpop.eup %14688  ;;  %v7355_v27 = vmul.f32 1.442695, %v7325_v10 }
0x1ba1   : > { %14696 = vpow2.f32 %v7343_v62  ;;  %v18341_v29 = vpop.eup %14690 }
0x1ba2   : > { %14698 = vpow2.f32 %v7351_v56  ;;  %v7357_v44 = vmul.f32 1.442695, %v7326_v57  ;;  %v18343_v61 = vpop.eup %14692 }
0x1ba3   : > { %7367 = vadd.xlane.f32.xlu0 %v18334_v52  ;;  %14700 = vpow2.f32 %v7349_v34 }
0x1ba4   : > { %7371 = vadd.xlane.f32.xlu1 %v18336_v39  ;;  %14702 = vpow2.f32 %v7357_v44 }
0x1ba5   : > { %14704 = vpow2.f32 %v7355_v27 }
0x1ba7   : > { %7379 = vadd.xlane.f32.xlu0 %v18341_v29 }
0x1ba8   : > { %7377 = vadd.xlane.f32.xlu1 %v18343_v61 }
0x1baa   : > { %v18347_v40 = vpop.eup %14694 }
0x1bab   : > { %v18349_v16 = vpop.eup %14696  ;;  %7385 = vadd.xlane.f32.xlu0 %v18347_v40 }
0x1bac   : > { %7375 = vadd.xlane.f32.xlu1 %v18349_v16  ;;  %v18353_v54 = vpop.eup %14698 }
0x1bad   : > { %v18355_v58 = vpop.eup %14700 }
0x1bae   : > { %v18359_v17 = vpop.eup %14702 }
0x1baf   : > { %7383 = vadd.xlane.f32.xlu0 %v18353_v54  ;;  %v18362_v37 = vpop.eup %14704 }
0x1bb0   : > { %7381 = vadd.xlane.f32.xlu1 %v18355_v58 }
0x1bb4   : > { %7389 = vadd.xlane.f32.xlu1 %v18359_v17 }
0x1bb8   : > { %7387 = vadd.xlane.f32.xlu1 %v18362_v37 }
0x1bc5   : > { %14085 = vrot.lane.b32.xlu0 %v17611_v12, %s19979_s23  ;;  %s10243_s23 = sshll.u32 %s20058_s30, 2 }
0x1bc9   : > { %7616 = vrot.lane.b32.xlu0 %v17537_v6, %s19996_s24  ;;  %7618 = vrot.lane.b32.xlu1 %v17668_v14, %s19996_s24  ;;  %v14071_v6 = vpop.permute.xlu0 %14070 }
0x1bcd   : > { %7620 = vrot.lane.b32.xlu0 %v17671_v51, %s19996_s24  ;;  %7622 = vrot.lane.b32.xlu1 %v17680_v7, %s19996_s24 }
0x1bd1   : > { %7624 = vrot.lane.b32.xlu0 %v17683_v43, %s19996_s24  ;;  %7626 = vrot.lane.b32.xlu1 %v17690_v2, %s19996_s24  ;;  %v14058_v2 = vunpack.i.h.bf16 %v18298_v4 }
0x1bd5   : > { %7628 = vrot.lane.b32.xlu0 %v17693_v31, %s19996_s24  ;;  %7630 = vrot.lane.b32.xlu1 %v17700_v19, %s19996_s24  ;;  %v14062_v19 = vunpack.i.l.bf16 %v18300_v0 }
0x1bd9   : > { %7632 = vrot.lane.b32.xlu0 %v17703_v5, %s19996_s24  ;;  %7634 = vrot.lane.b32.xlu1 %v17712_v49, %s19996_s24  ;;  %v14068_v49 = vunpack.i.h.bf16 %v18312_v36 }
0x1bdd   : > { %7636 = vrot.lane.b32.xlu0 %v17718_v46, %s19996_s24  ;;  %7638 = vrot.lane.b32.xlu1 %v17725_v25, %s19996_s24  ;;  %v14067_v46 = vunpack.i.l.bf16 %v18312_v36 }
0x1bdf   : > { %v13321_v25 = vpack.c.bf16 %v14068_v49, %v14067_v46 }
0x1be1   : > { %7640 = vrot.lane.b32.xlu0 %v17728_v23, %s19996_s24  ;;  %7642 = vrot.lane.b32.xlu1 %v17735_v55, %s19996_s24  ;;  %v14073_v23 = vunpack.i.h.bf16 %v14071_v6  ;;  %v14072_v55 = vunpack.i.l.bf16 %v14071_v6 }
0x1be5   : > { %7644 = vrot.lane.b32.xlu0 %v17738_v26, %s19996_s24  ;;  %7646 = vrot.lane.b32.xlu1 %v17745_v53, %s19996_s24  ;;  %v13327_v26 = vpack.c.bf16 %v14073_v23, %v14072_v55  ;;  %s20010_s24 = smov 24  }
0x1be9   : > { %14090 = vrot.lane.b32.xlu0 %v17535_v35, %s19997_s25  ;;  %14095 = vrot.lane.b32.xlu1 %v17549_v18, %s19997_s25  ;;  %v14057_v35 = vunpack.i.l.bf16 %v18298_v4 }
0x1bed   : > { %14100 = vrot.lane.b32.xlu0 %v17559_v24, %s19997_s25  ;;  %14105 = vrot.lane.b32.xlu1 %v17569_v50, %s19997_s25  ;;  %v13309_v24 = vpack.c.bf16 %v14058_v2, %v14057_v35  ;;  %v14063_v50 = vunpack.i.h.bf16 %v18300_v0 }
0x1bef   : > { %v13315_v5 = vpack.c.bf16 %v14063_v50, %v14062_v19 }
0x1bf3   : > { %v7362_v14 = vpop.xlane.xlu0 %7361 }
0x1bf4   : > { %14706 = vrcp.f32 %v7362_v14  ;;  %v7360_v51 = vpop.xlane.xlu1 %7359 }
0x1bf5   : > { %14708 = vrcp.f32 %v7360_v51 }
0x1bf7   : > { %v14081_v4 = vpop.permute.xlu0 %14080 }
0x1bf8   : > { %v14076_v53 = vpop.permute.xlu1 %14075  ;;  %v14083_v0 = vunpack.i.h.bf16 %v14081_v4  ;;  %v14082_v36 = vunpack.i.l.bf16 %v14081_v4 }
0x1bfa   : > { %v13339_v9 = vpack.c.bf16 %v14083_v0, %v14082_v36 }
0x1bfe   : > { %v14707_v7 = vpop.eup %14706 }
0x1bff   : > { %v14709_v43 = vpop.eup %14708  ;;  %v7408_v18 = vmul.f32 %v14707_v7, %v18302_v59 }
0x1c00   : > { %v7407_v31 = vmul.f32 %v14709_v43, %v18304_v47  ;;  %v14077_v47 = vunpack.i.l.bf16 %v14076_v53 }
0x1c02   : > { %12388 = vmatprep.mubr.f32.mxu1 %v7407_v31 }
0x1c03   : > { %12389 = vmatmul.mubr.f32.vlgmr.msra.gmra.mrb[144].mxu1 %v7408_v18 }
0x1c04   : > { %13308 = vmatpush3.bf16.xpose.msk.msra.mxu1 %vm15464_vm4, %v18230_v15  ;;  %v14078_v15 = vunpack.i.h.bf16 %v14076_v53 }
0x1c05   : > { %13311 = vmatprep.subr.msk.bf16.mxu1 %vm15464_vm4, %v13309_v24 }
0x1c06   : > { %v13333_v59 = vpack.c.bf16 %v14078_v15, %v14077_v47 }
0x1c0c   : > { %13314 = vmatpush3.bf16.xpose.msk.msra.mxu1 %vm15464_vm4, %v13309_v24 }
0x1c0d   : > { %13317 = vmatprep.subr.msk.bf16.mxu1 %vm15464_vm4, %v13315_v5 }
0x1c14   : > { %13320 = vmatpush3.bf16.xpose.msk.msra.mxu1 %vm15464_vm4, %v13315_v5 }
0x1c15   : > { %13323 = vmatprep.subr.msk.bf16.mxu1 %vm15464_vm4, %v13321_v25 }
0x1c1c   : > { %13326 = vmatpush3.bf16.xpose.msk.msra.mxu1 %vm15464_vm4, %v13321_v25 }
0x1c1d   : > { %13329 = vmatprep.subr.msk.bf16.mxu1 %vm15464_vm4, %v13327_v26 }
0x1c24   : > { %13332 = vmatpush3.bf16.xpose.msk.msra.mxu1 %vm15464_vm4, %v13327_v26 }
0x1c25   : > { %13335 = vmatprep.subr.msk.bf16.mxu1 %vm15464_vm4, %v13333_v59 }
0x1c28   : > { %v7364_v11 = vpop.xlane.xlu0 %7363 }
0x1c29   : > { %14710 = vrcp.f32 %v7364_v11  ;;  %v7366_v42 = vpop.xlane.xlu1 %7365 }
0x1c2a   : > { %14712 = vrcp.f32 %v7366_v42 }
0x1c2c   : > { %13338 = vmatpush3.bf16.xpose.msk.msra.mxu1 %vm15464_vm4, %v13333_v59  ;;  %v7370_v63 = vpop.xlane.xlu0 %7369 }
0x1c2d   : > { %13341 = vmatprep.subr.msk.bf16.mxu1 %vm15464_vm4, %v13339_v9  ;;  %v7374_v20 = vpop.xlane.xlu1 %7373  ;;  %14714 = vrcp.f32 %v7370_v63 }
0x1c30   : > { %v7368_v8 = vpop.xlane.xlu0 %7367 }
0x1c31   : > { %14716 = vrcp.f32 %v7368_v8  ;;  %v7372_v13 = vpop.xlane.xlu1 %7371 }
0x1c32   : > { %14718 = vrcp.f32 %v7372_v13 }
0x1c33   : > { %v14711_v3 = vpop.eup %14710  ;;  %14720 = vrcp.f32 %v7374_v20 }
0x1c34   : > { %v14713_v62 = vpop.eup %14712  ;;  %13344 = vmatpush3.bf16.xpose.msk.msra.mxu1 %vm15464_vm4, %v13339_v9  ;;  %v7380_v60 = vpop.xlane.xlu0 %7379  ;;  %v7409_v32 = vmul.f32 %v14711_v3, %v18318_v28 }
0x1c35   : > { %v7378_v22 = vpop.xlane.xlu1 %7377  ;;  %v7410_v56 = vmul.f32 %v14713_v62, %v18320_v33  ;;  %14722 = vrcp.f32 %v7380_v60 }
0x1c36   : > { %12391 = vmatprep.mubr.f32.mxu1 %v7409_v32  ;;  %14724 = vrcp.f32 %v7378_v22 }
0x1c37   : > { %12392 = vmatmul.mubr.f32.gmra.mrb[146].mxu1 %v7410_v56  ;;  %v14715_v21 = vpop.eup %14714 }
0x1c38   : > { %v7386_v34 = vpop.xlane.xlu0 %7385  ;;  %v7412_v28 = vmul.f32 %v14715_v21, %v18326_v41 }
0x1c39   : > { %v7376_v57 = vpop.xlane.xlu1 %7375 }
0x1c3a   : > { %14726 = vrcp.f32 %v7376_v57 }
0x1c3b   : > { %v14717_v10 = vpop.eup %14716 }
0x1c3c   : > { %v14719_v44 = vpop.eup %14718  ;;  %v7384_v27 = vpop.xlane.xlu0 %7383  ;;  %v7411_v6 = vmul.f32 %v14717_v10, %v18334_v52 }
0x1c3d   : > { %14728 = vrcp.f32 %v7384_v27  ;;  %v7382_v14 = vpop.xlane.xlu1 %7381  ;;  %v7413_v51 = vmul.f32 %v14719_v44, %v18336_v39  ;;  %v14721_v33 = vpop.eup %14720 }
0x1c3e   : > { %14730 = vrcp.f32 %v7382_v14  ;;  %12394 = vmatprep.mubr.f32.mxu1 %v7411_v6  ;;  %v7414_v31 = vmul.f32 %v14721_v33, %v18329_v45 }
0x1c3f   : > { %12395 = vmatmul.mubr.f32.gmra.mrb[148].mxu1 %v7412_v28  ;;  %14732 = vrcp.f32 %v7386_v34  ;;  %v14723_v18 = vpop.eup %14722 }
0x1c40   : > { %12397 = vmatprep.mubr.f32.mxu1 %v7413_v51  ;;  %v14086_v7 = vpop.permute.xlu0 %14085  ;;  %v14725_v52 = vpop.eup %14724  ;;  %v7417_v49 = vmul.f32 %v14723_v18, %v18341_v29 }
0x1c41   : > { %v14088_v43 = vunpack.i.h.bf16 %v14086_v7  ;;  %v14087_v2 = vunpack.i.l.bf16 %v14086_v7  ;;  %v7390_v35 = vpop.xlane.xlu1 %7389  ;;  %v7416_v5 = vmul.f32 %v14725_v52, %v18343_v61 }
0x1c42   : > { %14734 = vrcp.f32 %v7390_v35 }
0x1c43   : > { %v13345_v24 = vpack.c.bf16 %v14088_v43, %v14087_v2  ;;  %12398 = vmatmul.mubr.f32.gmra.mrb[150].mxu1 %v7414_v31 }
0x1c44   : > { %v14727_v50 = vpop.eup %14726  ;;  %v7617_v41 = vpop.permute.xlu0 %7616 }
0x1c45   : > { %v7388_v39 = vpop.xlane.xlu1 %7387  ;;  %13347 = vmatprep.subr.msk.bf16.mxu1 %vm15464_vm4, %v13345_v24  ;;  %v7415_v19 = vmul.f32 %v14727_v50, %v18349_v16 }
0x1c46   : > { %14736 = vrcp.f32 %v7388_v39  ;;  %13350 = vmatpush3.bf16.xpose.msk.msra.mxu1 %vm15464_vm4, %v13345_v24 }
0x1c47   : > { %v14729_v45 = vpop.eup %14728  ;;  %12400 = vmatprep.mubr.f32.mxu1 %v7415_v19 }
0x1c48   : > { %v14731_v46 = vpop.eup %14730  ;;  %12401 = vmatmul.mubr.f32.gmra.mrb[152].mxu1 %v7416_v5  ;;  %v7621_v25 = vpop.permute.xlu0 %7620  ;;  %v7419_v16 = vmul.f32 %v14729_v45, %v18353_v54 }
0x1c49   : > { %v7619_v23 = vpop.permute.xlu1 %7618  ;;  %12403 = vmatprep.mubr.f32.mxu1 %v7417_v49  ;;  %v7418_v55 = vmul.f32 %v14731_v46, %v18355_v58  ;;  %v14733_v26 = vpop.eup %14732 }
0x1c4a   : > { %v7420_v61 = vmul.f32 %v14733_v26, %v18347_v40 }
0x1c4c   : > { %12404 = vmatmul.mubr.f32.gmra.mrb[154].mxu1 %v7418_v55  ;;  %v7625_v53 = vpop.permute.xlu0 %7624  ;;  %v14735_v15 = vpop.eup %14734 }
0x1c4d   : > { %v7623_v48 = vpop.permute.xlu1 %7622  ;;  %12406 = vmatprep.mubr.f32.mxu1 %v7419_v16  ;;  %v7422_v0 = vmul.f32 %v14735_v15, %v18359_v17 }
0x1c50   : > { %v14737_v47 = vpop.eup %14736  ;;  %12407 = vmatmul.mubr.f32.gmra.mrb[156].mxu1 %v7420_v61  ;;  %v7629_v29 = vpop.permute.xlu0 %7628 }
0x1c51   : > { %v7627_v59 = vpop.permute.xlu1 %7626  ;;  %v7421_v4 = vmul.f32 %v14737_v47, %v18362_v37 }
0x1c53   : > { %12409 = vmatprep.mubr.f32.mxu1 %v7421_v4 }
0x1c54   : > { %12410 = vmatmul.mubr.f32.gmra.mrb[158].mxu1 %v7422_v0  ;;  %v7633_v58 = vpop.permute.xlu0 %7632 }
0x1c55   : > { %v7631_v36 = vpop.permute.xlu1 %7630  ;;  %12444 = vmatprep.mubr.msk.f32.mxu1 %vm1347_vm3, %v7617_v41 }
0x1c58   : > { %v7637_v54 = vpop.permute.xlu0 %7636  ;;  %12445 = vmatmul.mubr.msk.f32.vlgmr.msra.gmra.mrb[160].mxu1 %vm1347_vm3, %v7619_v23 }
0x1c59   : > { %v7635_v11 = vpop.permute.xlu1 %7634  ;;  %12447 = vmatprep.mubr.msk.f32.mxu1 %vm1347_vm3, %v7621_v25 }
0x1c5c   : > { %v7641_v40 = vpop.permute.xlu0 %7640  ;;  %12448 = vmatmul.mubr.msk.f32.gmra.mrb[162].mxu1 %vm1347_vm3, %v7623_v48 }
0x1c5d   : > { %v7639_v42 = vpop.permute.xlu1 %7638  ;;  %12450 = vmatprep.mubr.msk.f32.mxu1 %vm1347_vm3, %v7625_v53 }
0x1c60   : > { %v7645_v37 = vpop.permute.xlu0 %7644  ;;  %12451 = vmatmul.mubr.msk.f32.gmra.mrb[164].mxu1 %vm1347_vm3, %v7627_v59 }
0x1c61   : > { %v7643_v17 = vpop.permute.xlu1 %7642  ;;  %12453 = vmatprep.mubr.msk.f32.mxu1 %vm1347_vm3, %v7629_v29 }
0x1c64   : > { %v14091_v9 = vpop.permute.xlu0 %14090  ;;  %12454 = vmatmul.mubr.msk.f32.gmra.mrb[166].mxu1 %vm1347_vm3, %v7631_v36 }
0x1c65   : > { %v14093_v63 = vunpack.i.h.bf16 %v14091_v9  ;;  %v14092_v20 = vunpack.i.l.bf16 %v14091_v9  ;;  %v7647_v8 = vpop.permute.xlu1 %7646  ;;  %12456 = vmatprep.mubr.msk.f32.mxu1 %vm1347_vm3, %v7633_v58 }
0x1c67   : > { %v13351_v13 = vpack.c.bf16 %v14093_v63, %v14092_v20 }
0x1c68   : > { %v14101_v3 = vpop.permute.xlu0 %14100  ;;  %12457 = vmatmul.mubr.msk.f32.gmra.mrb[168].mxu1 %vm1347_vm3, %v7635_v11 }
0x1c69   : > { %v14096_v62 = vpop.permute.xlu1 %14095  ;;  %12459 = vmatprep.mubr.msk.f32.mxu1 %vm1347_vm3, %v7637_v54  ;;  %13352 = vmatprep.subr.bf16.mxu0 %v13351_v13  ;;  %v14103_v60 = vunpack.i.h.bf16 %v14101_v3  ;;  %v14102_v32 = vunpack.i.l.bf16 %v14101_v3 }
0x1c6a   : > { %v14098_v22 = vunpack.i.h.bf16 %v14096_v62  ;;  %v14097_v56 = vunpack.i.l.bf16 %v14096_v62  ;;  %13354 = vmatpush3.bf16.msra.mxu0 %v13351_v13 }
0x1c6b   : > { %v13359_v44 = vpack.c.bf16 %v14103_v60, %v14102_v32 }
0x1c6c   : > { %12460 = vmatmul.mubr.msk.f32.gmra.mrb[170].mxu1 %vm1347_vm3, %v7639_v42  ;;  %v13355_v34 = vpack.c.bf16 %v14098_v22, %v14097_v56 }
0x1c6d   : > { %v14106_v57 = vpop.permute.xlu1 %14105  ;;  %12462 = vmatprep.mubr.msk.f32.mxu1 %vm1347_vm3, %v7641_v40 }
0x1c6e   : > { %v14108_v21 = vunpack.i.h.bf16 %v14106_v57  ;;  %v14107_v10 = vunpack.i.l.bf16 %v14106_v57  ;;  %13356 = vmatprep.subr.bf16.mxu0 %v13355_v34 }
0x1c6f   : > { %13358 = vmatpush3.bf16.msra.mxu0 %v13355_v34 }
0x1c70   : > { %12463 = vmatmul.mubr.msk.f32.gmra.mrb[172].mxu1 %vm1347_vm3, %v7643_v17  ;;  %13360 = vmatprep.subr.bf16.mxu0 %v13359_v44  ;;  %v13363_v27 = vpack.c.bf16 %v14108_v21, %v14107_v10 }
0x1c71   : > { %12465 = vmatprep.mubr.msk.f32.mxu1 %vm1347_vm3, %v7645_v37 }
0x1c73   : > { %13362 = vmatpush3.bf16.msra.mxu0 %v13359_v44 }
0x1c74   : > { %12466 = vmatmul.mubr.msk.f32.gmra.mrb[174].mxu1 %vm1347_vm3, %v7647_v8  ;;  %13364 = vmatprep.subr.bf16.mxu0 %v13363_v27 }
0x1c77   : > { %13366 = vmatpush3.bf16.msra.mxu0 %v13363_v27 }
0x1cd6   : > { %v18476_v6 = vpop.f32.mrb[144].mxu1 }
0x1cd7   : > { %v18478_v14 = vpop.f32.mrb[145].mxu1 }
0x1d0a   : > { %v18480_v28 = vpop.f32.mrb[146].mxu1 }
0x1d0b   : > { %v18482_v51 = vpop.f32.mrb[147].mxu1 }
0x1d12   : > { %v18484_v33 = vpop.f32.mrb[148].mxu1 }
0x1d13   : > { %v18486_v7 = vpop.f32.mrb[149].mxu1 }
0x1d16   : > { %v18488_v43 = vpop.f32.mrb[150].mxu1 }
0x1d17   : > { %v18490_v2 = vpop.f32.mrb[151].mxu1 }
0x1d1b   : > { %v18492_v35 = vpop.f32.mrb[152].mxu1 }
0x1d1c   : > { %v18494_v31 = vpop.f32.mrb[153].mxu1 }
0x1d1f   : > { %v18496_v18 = vpop.f32.mrb[154].mxu1 }
0x1d20   : > { %v18498_v52 = vpop.f32.mrb[155].mxu1 }
0x1d23   : > { %v18500_v24 = vpop.f32.mrb[156].mxu1 }
0x1d24   : > { %v18502_v50 = vpop.f32.mrb[157].mxu1 }
0x1d27   : > { %v18504_v41 = vpop.f32.mrb[158].mxu1 }
0x1d28   : > { %v18506_v39 = vpop.f32.mrb[159].mxu1 }
0x1d2b   : > { %v12446_v19 = vpop.f32.mrb[160].mxu1 }
0x1d2c   : > { %7891 = vmax.xlane.f32.xlu1 %v12446_v19  ;;  %v7810_v5 = vpop.f32.mrb[161].mxu1 }
0x1d2d   : > { %7889 = vmax.xlane.f32.xlu0 %v7810_v5 }
0x1d2f   : > { %v12449_v45 = vpop.f32.mrb[162].mxu1 }
0x1d30   : > { %v7820_v49 = vpop.f32.mrb[163].mxu1 }
0x1d31   : > { %7895 = vmax.xlane.f32.xlu0 %v12449_v45 }
0x1d33   : > { %v12452_v46 = vpop.f32.mrb[164].mxu1 }
0x1d34   : > { %7899 = vmax.xlane.f32.xlu1 %v12452_v46  ;;  %v7830_v25 = vpop.f32.mrb[165].mxu1 }
0x1d35   : > { %7893 = vmax.xlane.f32.xlu0 %v7820_v49 }
0x1d37   : > { %v18508_v23 = vpop.f32.mrb[166].mxu1 }
0x1d38   : > { %7903 = vmax.xlane.f32.xlu1 %v18508_v23  ;;  %v18511_v55 = vpop.f32.mrb[167].mxu1 }
0x1d39   : > { %7897 = vmax.xlane.f32.xlu0 %v7830_v25 }
0x1d3b   : > { %v18513_v26 = vpop.f32.mrb[168].mxu1 }
0x1d3c   : > { %7907 = vmax.xlane.f32.xlu1 %v18513_v26  ;;  %v18516_v16 = vpop.f32.mrb[169].mxu1 }
0x1d3d   : > { %7901 = vmax.xlane.f32.xlu0 %v18511_v55 }
0x1d3f   : > { %v18519_v53 = vpop.f32.mrb[170].mxu1 }
0x1d40   : > { %v18521_v48 = vpop.f32.mrb[171].mxu1 }
0x1d41   : > { %7905 = vmax.xlane.f32.xlu0 %v18516_v16 }
0x1d43   : > { %v18524_v61 = vpop.f32.mrb[172].mxu1 }
0x1d44   : > { %v18526_v15 = vpop.f32.mrb[173].mxu1 }
0x1d47   : > { %v18528_v47 = vpop.f32.mrb[174].mxu1 }
0x1d48   : > { %v18530_v29 = vpop.f32.mrb[175].mxu1 }
0x1d4d   : > { %14115 = vrot.lane.b32.xlu1 %v17589_v30, %s19997_s25 }
0x1d57   : > { %14110 = vrot.lane.b32.xlu0 %v17579_v38, %s19997_s25 }
0x1d71   : > { %7911 = vmax.xlane.f32.xlu1 %v18519_v53 }
0x1d75   : > { %7915 = vmax.xlane.f32.xlu1 %v18524_v61 }
0x1d76   : > { %7909 = vmax.xlane.f32.xlu0 %v18521_v48 }
0x1d79   : > { %7919 = vmax.xlane.f32.xlu1 %v18528_v47 }
0x1d7a   : > { %7913 = vmax.xlane.f32.xlu0 %v18526_v15 }
0x1d7e   : > { %7917 = vmax.xlane.f32.xlu0 %v18530_v29 }
0x1db9   : > { %v7892_v59 = vpop.xlane.xlu1 %7891 }
0x1dba   : > { %v7922_v4 = vsub.f32 %v12446_v19, %v7892_v59  ;;  %v7890_v0 = vpop.xlane.xlu0 %7889 }
0x1dbb   : > { %v7921_v58 = vsub.f32 %v7810_v5, %v7890_v0 }
0x1dbc   : > { %v7939_v30 = vmul.f32 1.442695, %v7922_v4 }
0x1dbd   : > { %v7937_v36 = vmul.f32 1.442695, %v7921_v58 }
0x1dbe   : > { %14738 = vpow2.f32 %v7939_v30  ;;  %v7896_v38 = vpop.xlane.xlu0 %7895 }
0x1dbf   : > { %14740 = vpow2.f32 %v7937_v36  ;;  %v7924_v54 = vsub.f32 %v12449_v45, %v7896_v38 }
0x1dc1   : > { %v7943_v11 = vmul.f32 1.442695, %v7924_v54  ;;  %v7900_v40 = vpop.xlane.xlu1 %7899 }
0x1dc2   : > { %v7926_v42 = vsub.f32 %v12452_v46, %v7900_v40  ;;  %v7894_v37 = vpop.xlane.xlu0 %7893 }
0x1dc3   : > { %14742 = vpow2.f32 %v7943_v11  ;;  %v7923_v17 = vsub.f32 %v7820_v49, %v7894_v37 }
0x1dc4   : > { %v7947_v9 = vmul.f32 1.442695, %v7926_v42 }
0x1dc5   : > { %v7941_v63 = vmul.f32 1.442695, %v7923_v17  ;;  %v7904_v20 = vpop.xlane.xlu1 %7903 }
0x1dc6   : > { %14744 = vpow2.f32 %v7947_v9  ;;  %v7898_v8 = vpop.xlane.xlu0 %7897  ;;  %v7928_v59 = vsub.f32 %v18508_v23, %v7904_v20 }
0x1dc7   : > { %14746 = vpow2.f32 %v7941_v63  ;;  %v7925_v13 = vsub.f32 %v7830_v25, %v7898_v8 }
0x1dc8   : > { %v18542_v3 = vpop.eup %14738  ;;  %v7951_v0 = vmul.f32 1.442695, %v7928_v59 }
0x1dc9   : > { %v18544_v62 = vpop.eup %14740  ;;  %v7945_v60 = vmul.f32 1.442695, %v7925_v13  ;;  %7971 = vadd.xlane.f32.xlu0 %v18542_v3  ;;  %v7908_v32 = vpop.xlane.xlu1 %7907 }
0x1dca   : > { %v7902_v22 = vpop.xlane.xlu0 %7901  ;;  %7969 = vadd.xlane.f32.xlu1 %v18544_v62  ;;  %v7930_v36 = vsub.f32 %v18513_v26, %v7908_v32 }
0x1dcb   : > { %14748 = vpow2.f32 %v7945_v60  ;;  %v7927_v4 = vsub.f32 %v18511_v55, %v7902_v22 }
0x1dcc   : > { %14750 = vpow2.f32 %v7951_v0 }
0x1dcd   : > { %v18548_v56 = vpop.eup %14742  ;;  %v14116_v21 = vpop.permute.xlu1 %14115  ;;  %v7949_v30 = vmul.f32 1.442695, %v7927_v4 }
0x1dce   : > { %v7906_v34 = vpop.xlane.xlu0 %7905  ;;  %7975 = vadd.xlane.f32.xlu0 %v18548_v56  ;;  %v14118_v27 = vunpack.i.h.bf16 %v14116_v21  ;;  %v14117_v19 = vunpack.i.l.bf16 %v14116_v21 }
0x1dcf   : > { %v7929_v58 = vsub.f32 %v18516_v16, %v7906_v34  ;;  %14752 = vpow2.f32 %v7949_v30 }
0x1dd0   : > { %v18551_v57 = vpop.eup %14744  ;;  %v13371_v25 = vpack.c.bf16 %v14118_v27, %v14117_v19  ;;  %v19998_v27 = vld [vmem:[#allocation6_spill] sm:$0xff]  ;;  %v19999_v19 = vld [vmem:[#allocation7_spill] sm:$0xff] }
0x1dd1   : > { %v18553_v10 = vpop.eup %14746  ;;  %v7953_v38 = vmul.f32 1.442695, %v7929_v58 }
0x1dd2   : > { %v14111_v44 = vpop.permute.xlu0 %14110  ;;  %7973 = vadd.xlane.f32.xlu1 %v18553_v10  ;;  %7979 = vadd.xlane.f32.xlu0 %v18551_v57 }
0x1dd3   : > { %v14113_v5 = vunpack.i.h.bf16 %v14111_v44  ;;  %v14112_v45 = vunpack.i.l.bf16 %v14111_v44  ;;  %14754 = vpow2.f32 %v7953_v38 }
0x1dd5   : > { %v18557_v49 = vpop.eup %14748  ;;  %v13367_v46 = vpack.c.bf16 %v14113_v5, %v14112_v45  ;;  %v20000_v5 = vld [vmem:[#allocation9_spill] sm:$0xff]  ;;  %v20001_v45 = vld [vmem:[#allocation8_spill] sm:$0xff] }
0x1dd6   : > { %7977 = vadd.xlane.f32.xlu1 %v18557_v49  ;;  %v18571_v16 = vpop.eup %14750 }
0x1dd7   : > { %13368 = vmatprep.subr.bf16.mxu0 %v13367_v46 }
0x1dd8   : > { %13370 = vmatpush3.bf16.msra.mxu0 %v13367_v46  ;;  %v20003_v46 = vld [vmem:[#allocation10_spill] sm:$0xff] }
0x1dd9   : > { %13372 = vmatprep.subr.bf16.mxu0 %v13371_v25  ;;  %v18576_v20 = vpop.eup %14752 }
0x1ddc   : > { %13374 = vmatpush3.bf16.msra.mxu0 %v13371_v25 }
0x1de7   : > { %14125 = vrot.lane.b32.xlu1 %v17611_v12, %s19997_s25  ;;  %v7955_v12 = vmul.f32 1.442695, %v7930_v36 }
0x1de8   : > { %14120 = vrot.lane.b32.xlu0 %v17599_v1, %s19997_s25 }
0x1de9   : > { %14756 = vpow2.f32 %v7955_v12 }
0x1dfe   : > { %v7912_v54 = vpop.xlane.xlu1 %7911 }
0x1dff   : > { %v7932_v11 = vsub.f32 %v18519_v53, %v7912_v54 }
0x1e01   : > { %v7959_v1 = vmul.f32 1.442695, %v7932_v11 }
0x1e02   : > { %v7916_v40 = vpop.xlane.xlu1 %7915 }
0x1e03   : > { %v7934_v23 = vsub.f32 %v18524_v61, %v7916_v40  ;;  %v7910_v42 = vpop.xlane.xlu0 %7909  ;;  %14758 = vpow2.f32 %v7959_v1  ;;  %v18578_v61 = vpop.eup %14754 }
0x1e04   : > { %v7931_v55 = vsub.f32 %v18521_v48, %v7910_v42  ;;  %v18583_v60 = vpop.eup %14756 }
0x1e05   : > { %v7963_v26 = vmul.f32 1.442695, %v7934_v23 }
0x1e06   : > { %v7957_v37 = vmul.f32 1.442695, %v7931_v55  ;;  %v7920_v17 = vpop.xlane.xlu1 %7919 }
0x1e07   : > { %v7936_v9 = vsub.f32 %v18528_v47, %v7920_v17  ;;  %v7914_v63 = vpop.xlane.xlu0 %7913  ;;  %7983 = vadd.xlane.f32.xlu0 %v18571_v16 }
0x1e08   : > { %14760 = vpow2.f32 %v7957_v37  ;;  %v7933_v53 = vsub.f32 %v18526_v15, %v7914_v63 }
0x1e09   : > { %14762 = vpow2.f32 %v7963_v26  ;;  %v7967_v48 = vmul.f32 1.442695, %v7936_v9 }
0x1e0a   : > { %v7961_v8 = vmul.f32 1.442695, %v7933_v53 }
0x1e0b   : > { %7981 = vadd.xlane.f32.xlu1 %v18576_v20  ;;  %7985 = vadd.xlane.f32.xlu0 %v18578_v61  ;;  %v7918_v13 = vpop.xlane.xlu0 %7917 }
0x1e0c   : > { %14764 = vpow2.f32 %v7961_v8  ;;  %v7935_v47 = vsub.f32 %v18530_v29, %v7918_v13 }
0x1e0d   : > { %14766 = vpow2.f32 %v7967_v48  ;;  %v18586_v15 = vpop.eup %14758 }
0x1e0e   : > { %v7965_v32 = vmul.f32 1.442695, %v7935_v47 }
0x1e0f   : > { %7987 = vadd.xlane.f32.xlu1 %v18583_v60 }
0x1e10   : > { %14768 = vpow2.f32 %v7965_v32 }
0x1e12   : > { %v18588_v22 = vpop.eup %14760 }
0x1e13   : > { %7991 = vadd.xlane.f32.xlu1 %v18586_v15  ;;  %7989 = vadd.xlane.f32.xlu0 %v18588_v22  ;;  %v18592_v34 = vpop.eup %14762 }
0x1e16   : > { %v18594_v21 = vpop.eup %14764 }
0x1e17   : > { %7995 = vadd.xlane.f32.xlu1 %v18592_v34  ;;  %7993 = vadd.xlane.f32.xlu0 %v18594_v21  ;;  %v18598_v29 = vpop.eup %14766 }
0x1e1a   : > { %v18600_v44 = vpop.eup %14768 }
0x1e1b   : > { %7999 = vadd.xlane.f32.xlu1 %v18598_v29  ;;  %7997 = vadd.xlane.f32.xlu0 %v18600_v44 }
0x1e2c   : > { %8244 = vrot.lane.b32.xlu1 %v19998_v27, %s14949_s29 }
0x1e30   : > { %8306 = vrot.lane.b32.xlu1 %v18478_v14, %s14950_s28  ;;  %v20002_v14 = vld [vmem:[#allocation11_spill] sm:$0xff] }
0x1e31   : > { %8242 = vrot.lane.b32.xlu0 %v19999_v19, %s14949_s29 }
0x1e34   : > { %8308 = vrot.lane.b32.xlu1 %v18476_v6, %s14950_s28  ;;  %v20004_v6 = vld [vmem:[#allocation13_spill] sm:$0xff] }
0x1e35   : > { %8246 = vrot.lane.b32.xlu0 %v20000_v5, %s14949_s29 }
0x1e38   : > { %8248 = vrot.lane.b32.xlu1 %v20001_v45, %s14949_s29 }
0x1e39   : > { %8310 = vrot.lane.b32.xlu0 %v18482_v51, %s14950_s28  ;;  %v20005_v51 = vld [vmem:[#allocation12_spill] sm:$0xff] }
0x1e3c   : > { %8312 = vrot.lane.b32.xlu1 %v18480_v28, %s14950_s28  ;;  %v20006_v28 = vld [vmem:[#allocation15_spill] sm:$0xff] }
0x1e3d   : > { %8250 = vrot.lane.b32.xlu0 %v20002_v14, %s14949_s29 }
0x1e40   : > { %8252 = vrot.lane.b32.xlu1 %v20003_v46, %s14949_s29 }
0x1e41   : > { %8314 = vrot.lane.b32.xlu0 %v18486_v7, %s14950_s28  ;;  %v20007_v7 = vld [vmem:[#allocation14_spill] sm:$0xff] }
0x1e44   : > { %8316 = vrot.lane.b32.xlu1 %v18484_v33, %s14950_s28 }
0x1e45   : > { %8254 = vrot.lane.b32.xlu0 %v20004_v6, %s14949_s29 }
0x1e48   : > { %8256 = vrot.lane.b32.xlu1 %v20005_v51, %s14949_s29 }
0x1e49   : > { %8318 = vrot.lane.b32.xlu0 %v18490_v2, %s14950_s28 }
0x1e4c   : > { %8320 = vrot.lane.b32.xlu1 %v18488_v43, %s14950_s28 }
0x1e4d   : > { %8258 = vrot.lane.b32.xlu0 %v20006_v28, %s14949_s29 }
0x1e50   : > { %8260 = vrot.lane.b32.xlu1 %v20007_v7, %s14949_s29 }
0x1e56   : > { %v7972_v25 = vpop.xlane.xlu0 %7971 }
0x1e57   : > { %v7970_v33 = vpop.xlane.xlu1 %7969 }
0x1e58   : > { %14770 = vrcp.f32 %v7970_v33 }
0x1e59   : > { %14772 = vrcp.f32 %v7972_v25 }
0x1e5b   : > { %v7976_v59 = vpop.xlane.xlu0 %7975 }
0x1e5f   : > { %v7974_v4 = vpop.xlane.xlu1 %7973  ;;  %v7980_v0 = vpop.xlane.xlu0 %7979 }
0x1e60   : > { %14774 = vrcp.f32 %v7974_v4 }
0x1e61   : > { %14776 = vrcp.f32 %v7976_v59 }
0x1e62   : > { %v14771_v58 = vpop.eup %14770 }
0x1e63   : > { %v7978_v30 = vpop.xlane.xlu1 %7977  ;;  %v14121_v2 = vpop.permute.xlu0 %14120  ;;  %v8017_v36 = vmul.f32 %v14771_v58, %v18544_v62 }
0x1e64   : > { %v14123_v43 = vunpack.i.h.bf16 %v14121_v2  ;;  %v14122_v38 = vunpack.i.l.bf16 %v14121_v2  ;;  %14778 = vrcp.f32 %v7978_v30  ;;  %v14773_v23 = vpop.eup %14772 }
0x1e65   : > { %12500 = vmatprep.mubr.f32.mxu0 %v8017_v36  ;;  %14780 = vrcp.f32 %v7980_v0  ;;  %v8018_v55 = vmul.f32 %v14773_v23, %v18542_v3  ;;  %v10602_v23 = vld [vmem:[%s19749_s7 + $0x30] sm:$0xff] }
0x1e66   : > { %v13375_v54 = vpack.c.bf16 %v14123_v43, %v14122_v38  ;;  %v20008_v38 = vld [vmem:[#allocation30_spill] sm:$0xff] }
0x1e67   : > { %v14126_v11 = vpop.permute.xlu1 %14125 }
0x1e68   : > { %v14128_v12 = vunpack.i.h.bf16 %v14126_v11  ;;  %v14127_v40 = vunpack.i.l.bf16 %v14126_v11  ;;  %13376 = vmatprep.subr.bf16.mxu0 %v13375_v54 }
0x1e69   : > { %13378 = vmatpush3.bf16.msra.mxu0 %v13375_v54 }
0x1e6a   : > { %v13379_v1 = vpack.c.bf16 %v14128_v12, %v14127_v40  ;;  %v14775_v42 = vpop.eup %14774  ;;  %v20009_v12 = vld [vmem:[#allocation32_spill] sm:$0xff]  ;;  %v10600_v40 = vld [vmem:[%s19749_s7 + $0x20] sm:$0xff] }
0x1e6b   : > { %v14777_v62 = vpop.eup %14776  ;;  %v8019_v37 = vmul.f32 %v14775_v42, %v18553_v10 }
0x1e6c   : > { %13380 = vmatprep.subr.bf16.mxu0 %v13379_v1  ;;  %v8020_v26 = vmul.f32 %v14777_v62, %v18548_v56 }
0x1e6d   : > { %13382 = vmatpush3.bf16.msra.mxu0 %v13379_v1  ;;  %v10601_v1 = vld [vmem:[%s19749_s7 + $0x28] sm:$0xff] }
0x1e6e   : > { %v14779_v17 = vpop.eup %14778  ;;  %v13383_v42 = vpack.c.bf16 %v10601_v1, %v10600_v40 }
0x1e6f   : > { %v14781_v9 = vpop.eup %14780  ;;  %v8021_v63 = vmul.f32 %v14779_v17, %v18557_v49 }
0x1e70   : > { %12501 = vmatmul.mubr.f32.vlgmr.msra.gmra.mrb[160].mxu0 %v8018_v55  ;;  %v8022_v53 = vmul.f32 %v14781_v9, %v18551_v57  ;;  %v10603_v55 = vld [vmem:[%s19749_s7 + $0x38] sm:$0xff]  ;;  %13384 = vmatprep.subr.bf16.mxu0 %v13383_v42 }
0x1e71   : > { %12503 = vmatprep.mubr.f32.mxu0 %v8019_v37  ;;  %v13387_v62 = vpack.c.bf16 %v10603_v55, %v10602_v23  ;;  %13386 = vmatpush3.bf16.msra.mxu0 %v13383_v42  ;;  %v20021_v42 = vld [vmem:[#allocation27_spill] sm:$0xff] }
0x1e73   : > { %13388 = vmatprep.subr.bf16.mxu0 %v13387_v62 }
0x1e74   : > { %12504 = vmatmul.mubr.f32.gmra.mrb[162].mxu0 %v8020_v26 }
0x1e75   : > { %12506 = vmatprep.mubr.f32.mxu0 %v8021_v63  ;;  %13390 = vmatpush3.bf16.msra.mxu0 %v13387_v62 }
0x1e78   : > { %12507 = vmatmul.mubr.f32.gmra.mrb[164].mxu0 %v8022_v53 }
0x1e94   : > { %v7984_v8 = vpop.xlane.xlu0 %7983 }
0x1e95   : > { %14782 = vrcp.f32 %v7984_v8  ;;  %v20011_v8 = vld [vmem:[#allocation16_spill] sm:$0xff] }
0x1e98   : > { %v7982_v48 = vpop.xlane.xlu1 %7981  ;;  %v7986_v3 = vpop.xlane.xlu0 %7985 }
0x1e99   : > { %14784 = vrcp.f32 %v7982_v48  ;;  %v20012_v48 = vld [vmem:[#allocation17_spill] sm:$0xff] }
0x1e9a   : > { %14786 = vrcp.f32 %v7986_v3 }
0x1e9c   : > { %v7988_v10 = vpop.xlane.xlu1 %7987 }
0x1e9d   : > { %14788 = vrcp.f32 %v7988_v10  ;;  %v20013_v10 = vld [vmem:[#allocation35_spill] sm:$0xff] }
0x1e9f   : > { %v14783_v56 = vpop.eup %14782 }
0x1ea0   : > { %v7992_v13 = vpop.xlane.xlu1 %7991  ;;  %v7990_v47 = vpop.xlane.xlu0 %7989  ;;  %v8024_v5 = vmul.f32 %v14783_v56, %v18571_v16 }
0x1ea1   : > { %14790 = vrcp.f32 %v7992_v13 }
0x1ea2   : > { %14792 = vrcp.f32 %v7990_v47  ;;  %v20014_v47 = vld [vmem:[#allocation36_spill] sm:$0xff] }
0x1ea3   : > { %v14785_v32 = vpop.eup %14784 }
0x1ea4   : > { %v14787_v49 = vpop.eup %14786  ;;  %v7996_v27 = vpop.xlane.xlu1 %7995  ;;  %v8023_v57 = vmul.f32 %v14785_v32, %v18576_v20 }
0x1ea5   : > { %v7994_v19 = vpop.xlane.xlu0 %7993  ;;  %14794 = vrcp.f32 %v7996_v27  ;;  %v8025_v45 = vmul.f32 %v14787_v49, %v18578_v61 }
0x1ea6   : > { %14796 = vrcp.f32 %v7994_v19  ;;  %12509 = vmatprep.mubr.f32.mxu0 %v8023_v57 }
0x1ea7   : > { %v14789_v14 = vpop.eup %14788  ;;  %12510 = vmatmul.mubr.f32.gmra.mrb[166].mxu0 %v8024_v5  ;;  %v20015_v5 = vld [vmem:[#allocation38_spill] sm:$0xff] }
0x1ea8   : > { %v8000_v46 = vpop.xlane.xlu1 %7999  ;;  %12512 = vmatprep.mubr.f32.mxu0 %v8025_v45  ;;  %v8026_v51 = vmul.f32 %v14789_v14, %v18583_v60  ;;  %v20016_v45 = vld [vmem:[#allocation37_spill] sm:$0xff] }
0x1ea9   : > { %v7998_v6 = vpop.xlane.xlu0 %7997  ;;  %14798 = vrcp.f32 %v8000_v46 }
0x1eaa   : > { %14800 = vrcp.f32 %v7998_v6 }
0x1eab   : > { %v14791_v28 = vpop.eup %14790  ;;  %12513 = vmatmul.mubr.f32.gmra.mrb[168].mxu0 %v8026_v51 }
0x1eac   : > { %v14793_v7 = vpop.eup %14792  ;;  %v18650_v20 = vpop.permute.xlu1 %8244  ;;  %v8028_v16 = vmul.f32 %v14791_v28, %v18586_v15  ;;  %v20017_v28 = vld [vmem:[#allocation23_spill] sm:$0xff] }
0x1ead   : > { %v8027_v25 = vmul.f32 %v14793_v7, %v18588_v22  ;;  %v8243_v49 = vpop.permute.xlu0 %8242 }
0x1eae   : > { %v8418_v7 = vsel %vm1347_vm3, %v20017_v28, %v8243_v49 }
0x1eaf   : > { %v14795_v33 = vpop.eup %14794  ;;  %12515 = vmatprep.mubr.f32.mxu0 %v8027_v25  ;;  %v20018_v25 = vld [vmem:[#allocation24_spill] sm:$0xff] }
0x1eb0   : > { %v14797_v61 = vpop.eup %14796  ;;  %12516 = vmatmul.mubr.f32.gmra.mrb[170].mxu0 %v8028_v16  ;;  %v18654_v59 = vpop.permute.xlu1 %8306  ;;  %v8030_v4 = vmul.f32 %v14795_v33, %v18592_v34 }
0x1eb1   : > { %v8029_v60 = vmul.f32 %v14797_v61, %v18594_v21  ;;  %v8247_v57 = vpop.permute.xlu0 %8246 }
0x1eb3   : > { %v14799_v0 = vpop.eup %14798  ;;  %12518 = vmatprep.mubr.f32.mxu0 %v8029_v60 }
0x1eb4   : > { %v14801_v58 = vpop.eup %14800  ;;  %12519 = vmatmul.mubr.f32.gmra.mrb[172].mxu0 %v8030_v4  ;;  %v18658_v30 = vpop.permute.xlu1 %8308  ;;  %v8032_v15 = vmul.f32 %v14799_v0, %v18598_v29 }
0x1eb5   : > { %v8031_v22 = vmul.f32 %v14801_v58, %v18600_v44 }
0x1eb7   : > { %12521 = vmatprep.mubr.f32.mxu0 %v8031_v22 }
0x1eb8   : > { %12522 = vmatmul.mubr.f32.gmra.mrb[174].mxu0 %v8032_v15  ;;  %v18662_v2 = vpop.permute.xlu1 %8248  ;;  %v20019_v15 = vld [vmem:[#allocation25_spill] sm:$0xff] }
0x1ebc   : > { %v18664_v36 = vpop.permute.xlu1 %8312 }
0x1ec0   : > { %v18666_v43 = vpop.permute.xlu1 %8252 }
0x1ec4   : > { %v18668_v34 = vpop.permute.xlu1 %8316 }
0x1ec8   : > { %v8257_v21 = vpop.permute.xlu1 %8256 }
0x1ec9   : > { %v18672_v54 = vsel %vm1347_vm3, %v20008_v38, %v8257_v21  ;;  %v20020_v21 = vld [vmem:[#allocation26_spill] sm:$0xff] }
0x1ecc   : > { %v18674_v11 = vpop.permute.xlu1 %8320 }
0x1ed0   : > { %v8261_v29 = vpop.permute.xlu1 %8260 }
0x1ed1   : > { %v18678_v44 = vsel %vm1347_vm3, %v20009_v12, %v8261_v29 }
0x1f43   : > { %v12502_v37 = vpop.f32.mrb[160].mxu0 }
0x1f44   : > { %8372 = vrot.lane.b32.xlu1 %v12502_v37, %s20010_s24  ;;  %v8147_v17 = vpop.f32.mrb[161].mxu0  ;;  %v20022_v37 = vld [vmem:[#allocation28_spill] sm:$0xff] }
0x1f45   : > { %8370 = vrot.lane.b32.xlu0 %v8147_v17, %s20010_s24 }
0x1f47   : > { %v12505_v26 = vpop.f32.mrb[162].mxu0 }
0x1f48   : > { %8324 = vrot.lane.b32.xlu1 %v18492_v35, %s14950_s28  ;;  %v8157_v9 = vpop.f32.mrb[163].mxu0 }
0x1f49   : > { %8322 = vrot.lane.b32.xlu0 %v18494_v31, %s14950_s28 }
0x1f4b   : > { %v12508_v63 = vpop.f32.mrb[164].mxu0 }
0x1f4c   : > { %8376 = vrot.lane.b32.xlu1 %v12505_v26, %s20010_s24  ;;  %v8167_v53 = vpop.f32.mrb[165].mxu0 }
0x1f4d   : > { %8374 = vrot.lane.b32.xlu0 %v8157_v9, %s20010_s24 }
0x1f50   : > { %8264 = vrot.lane.b32.xlu1 %v20011_v8, %s14949_s29 }
0x1f51   : > { %8262 = vrot.lane.b32.xlu0 %v20012_v48, %s14949_s29  ;;  %v20023_v48 = vld [vmem:[#allocation29_spill] sm:$0xff] }
0x1f54   : > { %8380 = vrot.lane.b32.xlu1 %v12508_v63, %s20010_s24 }
0x1f55   : > { %8378 = vrot.lane.b32.xlu0 %v8167_v53, %s20010_s24 }
0x1f58   : > { %8328 = vrot.lane.b32.xlu1 %v18496_v18, %s14950_s28 }
0x1f59   : > { %8326 = vrot.lane.b32.xlu0 %v18498_v52, %s14950_s28 }
0x1f7a   : > { %v12511_v35 = vpop.f32.mrb[166].mxu0 }
0x1f7b   : > { %8384 = vrot.lane.b32.xlu1 %v12511_v35, %s20010_s24  ;;  %v8177_v31 = vpop.f32.mrb[167].mxu0 }
0x1f7c   : > { %8382 = vrot.lane.b32.xlu0 %v8177_v31, %s20010_s24 }
0x1f7e   : > { %v12514_v3 = vpop.f32.mrb[168].mxu0 }
0x1f7f   : > { %8268 = vrot.lane.b32.xlu1 %v20013_v10, %s14949_s29  ;;  %v8187_v13 = vpop.f32.mrb[169].mxu0 }
0x1f80   : > { %8266 = vrot.lane.b32.xlu0 %v20014_v47, %s14949_s29 }
0x1f83   : > { %v12517_v56 = vpop.f32.mrb[170].mxu0  ;;  %8388 = vrot.lane.b32.xlu1 %v12514_v3, %s20010_s24 }
0x1f84   : > { %v8197_v18 = vpop.f32.mrb[171].mxu0  ;;  %8386 = vrot.lane.b32.xlu0 %v8187_v13, %s20010_s24 }
0x1f87   : > { %v12520_v52 = vpop.f32.mrb[172].mxu0  ;;  %8332 = vrot.lane.b32.xlu1 %v18500_v24, %s14950_s28  ;;  %v8311_v24 = vpop.permute.xlu0 %8310 }
0x1f88   : > { %v8207_v32 = vpop.f32.mrb[173].mxu0  ;;  %8330 = vrot.lane.b32.xlu0 %v18502_v50, %s14950_s28 }
0x1f8b   : > { %v12523_v27 = vpop.f32.mrb[174].mxu0  ;;  %8392 = vrot.lane.b32.xlu1 %v12517_v56, %s20010_s24  ;;  %v8251_v50 = vpop.permute.xlu0 %8250 }
0x1f8c   : > { %v8217_v19 = vpop.f32.mrb[175].mxu0  ;;  %8390 = vrot.lane.b32.xlu0 %v8197_v18, %s20010_s24  ;;  %v8422_v55 = vsel %vm1347_vm3, %v20021_v42, %v8251_v50  ;;  %v20024_v18 = vld [vmem:[#allocation31_spill] sm:$0xff] }
0x1f8f   : > { %8272 = vrot.lane.b32.xlu1 %v20015_v5, %s14949_s29  ;;  %v8315_v14 = vpop.permute.xlu0 %8314 }
0x1f90   : > { %8270 = vrot.lane.b32.xlu0 %v20016_v45, %s14949_s29  ;;  %v20025_v45 = vld [vmem:[#allocation33_spill] sm:$0xff]  ;;  %s600_s29 = scalar_lea.vmem %s19761_s19, %s10243_s23 }
0x1f93   : > { %8396 = vrot.lane.b32.xlu1 %v12520_v52, %s20010_s24  ;;  %v8255_v46 = vpop.permute.xlu0 %8254 }
0x1f94   : > { %8394 = vrot.lane.b32.xlu0 %v8207_v32, %s20010_s24  ;;  %v8424_v35 = vsel %vm1347_vm3, %v20023_v48, %v8255_v46 }
0x1f97   : > { %8336 = vrot.lane.b32.xlu1 %v18504_v41, %s14950_s28  ;;  %v8319_v6 = vpop.permute.xlu0 %8318  ;;  %v8419_v41 = vsel %vm1347_vm3, %v20018_v25, %v18650_v20  ;;  %v8420_v20 = vsel %vm1347_vm3, %v20019_v15, %v8247_v57 }
0x1f98   : > { %8334 = vrot.lane.b32.xlu0 %v18506_v39, %s14950_s28  ;;  %v8434_v39 = vsel %vm3948_vm5, %v8418_v7, %v18654_v59  ;;  %v8435_v61 = vsel %vm3948_vm5, %v8419_v41, %v18658_v30  ;;  %v8436_v59 = vsel %vm3948_vm5, %v8420_v20, %v8311_v24  ;;  %v8421_v30 = vsel %vm1347_vm3, %v20020_v21, %v18662_v2  ;;  %v20027_v41 = vld [vmem:[#allocation2_spill] sm:$0xff]  ;;  %v20029_v21 = vld [vmem:[#allocation5_spill] sm:$0xff] }
0x1f99   : > { %v8437_v29 = vsel %vm3948_vm5, %v8421_v30, %v18664_v36  ;;  %v8438_v2 = vsel %vm3948_vm5, %v8422_v55, %v8315_v14  ;;  %v8423_v36 = vsel %vm1347_vm3, %v20022_v37, %v18666_v43  ;;  %v8440_v43 = vsel %vm3948_vm5, %v8424_v35, %v8319_v6  ;;  %v20026_v14 = vld [vmem:[#allocation34_spill] sm:$0xff]  ;;  %v20031_v37 = vld [vmem:[#allocation40_spill] sm:$0xff] }
0x1f9a   : > { %v8439_v26 = vsel %vm3948_vm5, %v8423_v36, %v18668_v34  ;;  %v8441_v34 = vsel %vm3948_vm5, %v18672_v54, %v18674_v11 }
0x1f9b   : > { %8400 = vrot.lane.b32.xlu1 %v12523_v27, %s20010_s24  ;;  %v8259_v51 = vpop.permute.xlu0 %8258 }
0x1f9c   : > { %8398 = vrot.lane.b32.xlu0 %v8217_v19, %s20010_s24  ;;  %v8426_v52 = vsel %vm1347_vm3, %v20024_v18, %v8259_v51 }
0x1fb6   : > { %v8373_v16 = vpop.permute.xlu1 %8372 }
0x1fb7   : > { %v8371_v33 = vpop.permute.xlu0 %8370  ;;  %v8451_v60 = vsel %vm3965_vm6, %v8435_v61, %v8373_v16  ;;  %v20028_v61 = vld [vmem:[#allocation3_spill] sm:$0xff] }
0x1fb8   : > { %v8450_v4 = vsel %vm3965_vm6, %v8434_v39, %v8371_v33 }
0x1fb9   : > { %12532 = vmatprep.mubr.msk.f32.mxu0 %vm825_vm2, %v8450_v4 }
0x1fba   : > { %v8325_v0 = vpop.permute.xlu1 %8324  ;;  %12533 = vmatmul.mubr.msk.f32.vlgmr.msra.gmra.mrb[176].mxu0 %vm825_vm2, %v8451_v60 }
0x1fbb   : > { %v8323_v58 = vpop.permute.xlu0 %8322  ;;  %v8443_v54 = vsel %vm3948_vm5, %v18678_v44, %v8325_v0 }
0x1fbc   : > { %v8442_v49 = vsel %vm3948_vm5, %v8426_v52, %v8323_v58  ;;  %v20035_v52 = vld [vmem:[#allocation44_spill] sm:$0xff] }
0x1fbe   : > { %v8377_v22 = vpop.permute.xlu1 %8376 }
0x1fbf   : > { %v8375_v38 = vpop.permute.xlu0 %8374  ;;  %v8453_v40 = vsel %vm3965_vm6, %v8437_v29, %v8377_v22  ;;  %v20030_v29 = vld [vmem:[#allocation4_spill] sm:$0xff] }
0x1fc0   : > { %v8452_v12 = vsel %vm3965_vm6, %v8436_v59, %v8375_v38 }
0x1fc1   : > { %12535 = vmatprep.mubr.msk.f32.mxu0 %vm825_vm2, %v8452_v12 }
0x1fc2   : > { %v8265_v1 = vpop.permute.xlu1 %8264  ;;  %12536 = vmatmul.mubr.msk.f32.gmra.mrb[178].mxu0 %vm825_vm2, %v8453_v40 }
0x1fc3   : > { %v8263_v23 = vpop.permute.xlu0 %8262  ;;  %v8429_v46 = vsel %vm1347_vm3, %v20026_v14, %v8265_v1 }
0x1fc4   : > { %v8428_v24 = vsel %vm1347_vm3, %v20025_v45, %v8263_v23 }
0x1fc6   : > { %v8381_v62 = vpop.permute.xlu1 %8380 }
0x1fc7   : > { %v8379_v17 = vpop.permute.xlu0 %8378  ;;  %v8455_v63 = vsel %vm3965_vm6, %v8439_v26, %v8381_v62  ;;  %v20032_v26 = vld [vmem:[#allocation39_spill] sm:$0xff] }
0x1fc8   : > { %v8454_v9 = vsel %vm3965_vm6, %v8438_v2, %v8379_v17  ;;  %v18825_v2 = vld [vmem:[%s19750_s8 + $0x1] ss:$0 sm:$0xff] }
0x1fc9   : > { %12538 = vmatprep.mubr.msk.f32.mxu0 %vm825_vm2, %v8454_v9 }
0x1fca   : > { %12539 = vmatmul.mubr.msk.f32.gmra.mrb[180].mxu0 %vm825_vm2, %v8455_v63  ;;  %v8329_v53 = vpop.permute.xlu1 %8328 }
0x1fcb   : > { %v8327_v8 = vpop.permute.xlu0 %8326  ;;  %v8445_v51 = vsel %vm3948_vm5, %v8429_v46, %v8329_v53 }
0x1fcc   : > { %v8444_v6 = vsel %vm3948_vm5, %v8428_v24, %v8327_v8 }
0x1fed   : > { %v8385_v31 = vpop.permute.xlu1 %8384 }
0x1fee   : > { %v8383_v3 = vpop.permute.xlu0 %8382  ;;  %v8457_v13 = vsel %vm3965_vm6, %v8441_v34, %v8385_v31  ;;  %v20034_v34 = vld [vmem:[#allocation41_spill] sm:$0xff] }
0x1fef   : > { %v8456_v10 = vsel %vm3965_vm6, %v8440_v43, %v8383_v3  ;;  %v20033_v43 = vld [vmem:[#allocation42_spill] sm:$0xff] }
0x1ff0   : > { %12541 = vmatprep.mubr.msk.f32.mxu0 %vm825_vm2, %v8456_v10 }
0x1ff1   : > { %v8269_v47 = vpop.permute.xlu1 %8268  ;;  %12542 = vmatmul.mubr.msk.f32.gmra.mrb[182].mxu0 %vm825_vm2, %v8457_v13 }
0x1ff2   : > { %v8267_v56 = vpop.permute.xlu0 %8266  ;;  %v8431_v4 = vsel %vm1347_vm3, %v20028_v61, %v8269_v47  ;;  %v20040_v61 = vld [vmem:[#allocation48_spill] sm:$0xff] }
0x1ff3   : > { %v8430_v39 = vsel %vm1347_vm3, %v20027_v41, %v8267_v56  ;;  %v20039_v41 = vld [vmem:[#allocation47_spill] sm:$0xff] }
0x1ff5   : > { %v8389_v32 = vpop.permute.xlu1 %8388 }
0x1ff6   : > { %v8387_v27 = vpop.permute.xlu0 %8386  ;;  %v8459_v19 = vsel %vm3965_vm6, %v8443_v54, %v8389_v32 }
0x1ff7   : > { %v8458_v11 = vsel %vm3965_vm6, %v8442_v49, %v8387_v27  ;;  %v20036_v27 = vld [vmem:[#allocation43_spill] sm:$0xff] }
0x1ff8   : > { %12544 = vmatprep.mubr.msk.f32.mxu0 %vm825_vm2, %v8458_v11 }
0x1ff9   : > { %v8333_v57 = vpop.permute.xlu1 %8332  ;;  %12545 = vmatmul.mubr.msk.f32.gmra.mrb[184].mxu0 %vm825_vm2, %v8459_v19 }
0x1ffa   : > { %v8331_v5 = vpop.permute.xlu0 %8330  ;;  %v8447_v58 = vsel %vm3948_vm5, %v8431_v4, %v8333_v57 }
0x1ffb   : > { %v8446_v60 = vsel %vm3948_vm5, %v8430_v39, %v8331_v5 }
0x1ffd   : > { %v8393_v50 = vpop.permute.xlu1 %8392 }
0x1ffe   : > { %v8391_v44 = vpop.permute.xlu0 %8390  ;;  %v8461_v7 = vsel %vm3965_vm6, %v8445_v51, %v8393_v50  ;;  %v20037_v50 = vld [vmem:[#allocation45_spill] sm:$0xff] }
0x1fff   : > { %v8460_v28 = vsel %vm3965_vm6, %v8444_v6, %v8391_v44  ;;  %v20038_v6 = vld [vmem:[#allocation46_spill] sm:$0xff] }
0x2000   : > { %12547 = vmatprep.mubr.msk.f32.mxu0 %vm825_vm2, %v8460_v28 }
0x2001   : > { %v8273_v16 = vpop.permute.xlu1 %8272  ;;  %12548 = vmatmul.mubr.msk.f32.gmra.mrb[186].mxu0 %vm825_vm2, %v8461_v7 }
0x2002   : > { %v8271_v25 = vpop.permute.xlu0 %8270  ;;  %v8433_v12 = vsel %vm1347_vm3, %v20030_v29, %v8273_v16 }
0x2003   : > { %v8432_v30 = vsel %vm1347_vm3, %v20029_v21, %v8271_v25 }
0x2005   : > { %v8397_v33 = vpop.permute.xlu1 %8396 }
0x2006   : > { %v8395_v0 = vpop.permute.xlu0 %8394  ;;  %v8463_v20 = vsel %vm3965_vm6, %v8447_v58, %v8397_v33 }
0x2007   : > { %v8462_v15 = vsel %vm3965_vm6, %v8446_v60, %v8395_v0 }
0x2008   : > { %12550 = vmatprep.mubr.msk.f32.mxu0 %vm825_vm2, %v8462_v15 }
0x2009   : > { %v8337_v22 = vpop.permute.xlu1 %8336  ;;  %12551 = vmatmul.mubr.msk.f32.gmra.mrb[188].mxu0 %vm825_vm2, %v8463_v20 }
0x200a   : > { %v8335_v59 = vpop.permute.xlu0 %8334  ;;  %v8449_v23 = vsel %vm3948_vm5, %v8433_v12, %v8337_v22  ;;  %v20041_v22 = vld [vmem:[#allocation49_spill] sm:$0xff] }
0x200b   : > { %v8448_v40 = vsel %vm3948_vm5, %v8432_v30, %v8335_v59  ;;  %v20042_v30 = vld [vmem:[#allocation50_spill] sm:$0xff] }
0x200d   : > { %v8401_v38 = vpop.permute.xlu1 %8400 }
0x200e   : > { %v8399_v1 = vpop.permute.xlu0 %8398  ;;  %v8465_v55 = vsel %vm3965_vm6, %v8449_v23, %v8401_v38 }
0x200f   : > { %v8464_v42 = vsel %vm3965_vm6, %v8448_v40, %v8399_v1 }
0x2010   : > { %12553 = vmatprep.mubr.msk.f32.mxu0 %vm825_vm2, %v8464_v42  ;;  %v20043_v42 = vld [vmem:[#allocation20_spill] sm:$0xff] }
0x2011   : > { %12554 = vmatmul.mubr.msk.f32.gmra.mrb[190].mxu0 %vm825_vm2, %v8465_v55 }
0x208d   : > { %v12534_v62 = vpop.f32.mrb[176].mxu0 }
0x208e   : > { %v8665_v36 = vadd.f32 %v12534_v62, %v20031_v37  ;;  %v8585_v17 = vpop.f32.mrb[177].mxu0  ;;  %v20044_v37 = vld [vmem:[#allocation19_spill] sm:$0xff] }
0x208f   : > { %v8664_v9 = vadd.f32 %v8585_v17, %v20032_v26 }
0x2090   : > { %v18830_v63 = vadd.f32 %v18825_v2, %v8665_v36 }
0x2091   : > { %v18833_v53 = vadd.f32 %v18825_v2, %v8664_v9 }
0x2092   : > { %v8711_v8 = vsel %vm825_vm2, %v18830_v63, 0.0 }
0x2093   : > { %8712 = vadd.xlane.f32.xlu1 %v8711_v8  ;;  %v8708_v48 = vsel %vm825_vm2, %v18833_v53, 0.0 }
0x2094   : > { %8709 = vadd.xlane.f32.xlu0 %v8708_v48 }
0x2095   : > { %v12537_v35 = vpop.f32.mrb[178].mxu0 }
0x2096   : > { %v8595_v31 = vpop.f32.mrb[179].mxu0  ;;  %v8667_v3 = vadd.f32 %v12537_v35, %v20033_v43  ;;  %v20047_v35 = vld [vmem:[#allocation22_spill] sm:$0xff] }
0x2097   : > { %v8666_v10 = vadd.f32 %v8595_v31, %v20034_v34 }
0x2098   : > { %v18845_v47 = vadd.f32 %v18825_v2, %v8667_v3  ;;  %v20048_v3 = vld [vmem:[#allocation21_spill] sm:$0xff] }
0x2099   : > { %v18842_v13 = vadd.f32 %v18825_v2, %v8666_v10 }
0x209a   : > { %v8717_v11 = vsel %vm825_vm2, %v18845_v47, 0.0 }
0x209b   : > { %v8714_v56 = vsel %vm825_vm2, %v18842_v13, 0.0 }
0x209c   : > { %8715 = vadd.xlane.f32.xlu0 %v8714_v56 }
0x209d   : > { %v12540_v18 = vpop.f32.mrb[180].mxu0 }
0x209e   : > { %v8669_v32 = vadd.f32 %v12540_v18, %v20035_v52  ;;  %v8605_v49 = vpop.f32.mrb[181].mxu0 }
0x209f   : > { %v8668_v54 = vadd.f32 %v8605_v49, %v20036_v27 }
0x20a0   : > { %v18854_v19 = vadd.f32 %v18825_v2, %v8669_v32  ;;  %8718 = vadd.xlane.f32.xlu0 %v8717_v11 }
0x20a1   : > { %v18857_v57 = vadd.f32 %v18825_v2, %v8668_v54 }
0x20a2   : > { %v8723_v5 = vsel %vm825_vm2, %v18854_v19, 0.0 }
0x20a3   : > { %8724 = vadd.xlane.f32.xlu1 %v8723_v5  ;;  %v8720_v45 = vsel %vm825_vm2, %v18857_v57, 0.0 }
0x20a4   : > { %8721 = vadd.xlane.f32.xlu0 %v8720_v45 }
0x20c4   : > { %v12543_v24 = vpop.f32.mrb[182].mxu0 }
0x20c5   : > { %v8671_v14 = vadd.f32 %v12543_v24, %v20037_v50  ;;  %v8615_v46 = vpop.f32.mrb[183].mxu0 }
0x20c6   : > { %v8670_v44 = vadd.f32 %v8615_v46, %v20038_v6 }
0x20c7   : > { %v18866_v51 = vadd.f32 %v18825_v2, %v8671_v14 }
0x20c8   : > { %v18869_v28 = vadd.f32 %v18825_v2, %v8670_v44 }
0x20c9   : > { %v8729_v7 = vsel %vm825_vm2, %v18866_v51, 0.0 }
0x20ca   : > { %8730 = vadd.xlane.f32.xlu1 %v8729_v7  ;;  %v8726_v16 = vsel %vm825_vm2, %v18869_v28, 0.0 }
0x20cb   : > { %8727 = vadd.xlane.f32.xlu0 %v8726_v16 }
0x20cc   : > { %v12546_v25 = vpop.f32.mrb[184].mxu0 }
0x20cd   : > { %v8673_v39 = vadd.f32 %v12546_v25, %v20039_v41  ;;  %v8625_v33 = vpop.f32.mrb[185].mxu0 }
0x20ce   : > { %v8672_v4 = vadd.f32 %v8625_v33, %v20040_v61 }
0x20cf   : > { %v18878_v60 = vadd.f32 %v18825_v2, %v8673_v39 }
0x20d0   : > { %v18881_v0 = vadd.f32 %v18825_v2, %v8672_v4 }
0x20d1   : > { %v8735_v58 = vsel %vm825_vm2, %v18878_v60, 0.0 }
0x20d2   : > { %8736 = vadd.xlane.f32.xlu1 %v8735_v58  ;;  %v8732_v15 = vsel %vm825_vm2, %v18881_v0, 0.0 }
0x20d3   : > { %8733 = vadd.xlane.f32.xlu0 %v8732_v15 }
0x20d4   : > { %v12549_v20 = vpop.f32.mrb[186].mxu0 }
0x20d5   : > { %v8675_v59 = vadd.f32 %v12549_v20, %v20041_v22  ;;  %v8635_v21 = vpop.f32.mrb[187].mxu0 }
0x20d6   : > { %v8674_v38 = vadd.f32 %v8635_v21, %v20042_v30 }
0x20d7   : > { %v18890_v29 = vadd.f32 %v18825_v2, %v8675_v59 }
0x20d8   : > { %v18893_v12 = vadd.f32 %v18825_v2, %v8674_v38 }
0x20d9   : > { %v8741_v40 = vsel %vm825_vm2, %v18890_v29, 0.0 }
0x20da   : > { %8742 = vadd.xlane.f32.xlu1 %v8741_v40  ;;  %v8738_v1 = vsel %vm825_vm2, %v18893_v12, 0.0  ;;  %v10626_v40 = vld [vmem:[%s19753_s11 + $0x20] sm:$0xff] }
0x20db   : > { %8739 = vadd.xlane.f32.xlu0 %v8738_v1  ;;  %v10627_v1 = vld [vmem:[%s19753_s11 + $0x28] sm:$0xff] }
0x20dc   : > { %v12552_v23 = vpop.f32.mrb[188].mxu0 }
0x20dd   : > { %v8677_v55 = vadd.f32 %v12552_v23, %v20043_v42  ;;  %v8645_v62 = vpop.f32.mrb[189].mxu0  ;;  %v13391_v23 = vpack.c.bf16 %v10627_v1, %v10626_v40  ;;  %v10628_v42 = vld [vmem:[%s19753_s11 + $0x30] sm:$0xff] }
0x20de   : > { %v8676_v36 = vadd.f32 %v8645_v62, %v20044_v37 }
0x20df   : > { %v18902_v17 = vadd.f32 %v18825_v2, %v8677_v55  ;;  %13392 = vmatprep.subr.bf16.mxu1 %v13391_v23  ;;  %v10629_v55 = vld [vmem:[%s19753_s11 + $0x38] sm:$0xff] }
0x20e0   : > { %v18905_v26 = vadd.f32 %v18825_v2, %v8676_v36  ;;  %13394 = vmatpush3.bf16.msra.mxu1 %v13391_v23  ;;  %v13395_v62 = vpack.c.bf16 %v10629_v55, %v10628_v42 }
0x20e1   : > { %20045 = vst [vmem:[#allocation18_spill] sm:$0xff] %v18902_v17  ;;  %v8747_v9 = vsel %vm825_vm2, %v18902_v17, 0.0 }
0x20e2   : > { %20046 = vst [vmem:[#allocation6_spill] sm:$0xff] %v18905_v26  ;;  %8748 = vadd.xlane.f32.xlu1 %v8747_v9  ;;  %v8744_v8 = vsel %vm825_vm2, %v18905_v26, 0.0  ;;  %13396 = vmatprep.subr.bf16.mxu1 %v13395_v62 }
0x20e3   : > { %8745 = vadd.xlane.f32.xlu0 %v8744_v8 }
0x20e4   : > { %v12555_v48 = vpop.f32.mrb[190].mxu0  ;;  %13398 = vmatpush3.bf16.msra.mxu1 %v13395_v62 }
0x20e5   : > { %v8679_v31 = vadd.f32 %v12555_v48, %v20047_v35  ;;  %v8655_v43 = vpop.f32.mrb[191].mxu0 }
0x20e6   : > { %v8678_v34 = vadd.f32 %v8655_v43, %v20048_v3 }
0x20e7   : > { %v18914_v10 = vadd.f32 %v18825_v2, %v8679_v31 }
0x20e8   : > { %v18917_v56 = vadd.f32 %v18825_v2, %v8678_v34 }
0x20e9   : > { %20049 = vst [vmem:[#allocation7_spill] sm:$0xff] %v18914_v10  ;;  %v8753_v18 = vsel %vm825_vm2, %v18914_v10, 0.0 }
0x20ea   : > { %20050 = vst [vmem:[#allocation9_spill] sm:$0xff] %v18917_v56  ;;  %8754 = vadd.xlane.f32.xlu1 %v8753_v18  ;;  %v8750_v52 = vsel %vm825_vm2, %v18917_v56, 0.0 }
0x20eb   : > { %8751 = vadd.xlane.f32.xlu0 %v8750_v52 }
0x2120   : > { %v8713_v32 = vpop.xlane.xlu1 %8712 }
0x2121   : > { %v8757_v49 = vmul.f32 0.03125, %v8713_v32  ;;  %v8710_v27 = vpop.xlane.xlu0 %8709 }
0x2122   : > { %v8756_v54 = vmul.f32 0.03125, %v8710_v27 }
0x2123   : > { %v18924_v11 = vsub.f32 %v18830_v63, %v8757_v49 }
0x2124   : > { %v18927_v5 = vsub.f32 %v18833_v53, %v8756_v54 }
0x2125   : > { %v8789_v2 = vmul.f32 %v18924_v11, %v18924_v11 }
0x2126   : > { %v8788_v45 = vmul.f32 %v18927_v5, %v18927_v5 }
0x2127   : > { %v8807_v24 = vsel %vm825_vm2, %v8789_v2, 0.0 }
0x2128   : > { %8808 = vadd.xlane.f32.xlu1 %v8807_v24  ;;  %v8804_v50 = vsel %vm825_vm2, %v8788_v45, 0.0 }
0x2129   : > { %v8716_v14 = vpop.xlane.xlu0 %8715  ;;  %8805 = vadd.xlane.f32.xlu0 %v8804_v50 }
0x212a   : > { %v8758_v46 = vmul.f32 0.03125, %v8716_v14 }
0x212c   : > { %v18936_v6 = vsub.f32 %v18842_v13, %v8758_v46 }
0x212d   : > { %v8719_v44 = vpop.xlane.xlu0 %8718 }
0x212e   : > { %v8759_v7 = vmul.f32 0.03125, %v8719_v44  ;;  %v8790_v16 = vmul.f32 %v18936_v6, %v18936_v6 }
0x2130   : > { %v18941_v25 = vsub.f32 %v18845_v47, %v8759_v7  ;;  %v8725_v41 = vpop.xlane.xlu1 %8724  ;;  %v8810_v39 = vsel %vm825_vm2, %v8790_v16, 0.0 }
0x2131   : > { %v8761_v33 = vmul.f32 0.03125, %v8725_v41  ;;  %v8722_v61 = vpop.xlane.xlu0 %8721  ;;  %8811 = vadd.xlane.f32.xlu0 %v8810_v39 }
0x2132   : > { %v8760_v4 = vmul.f32 0.03125, %v8722_v61  ;;  %v8791_v58 = vmul.f32 %v18941_v25, %v18941_v25 }
0x2133   : > { %v18947_v15 = vsub.f32 %v18854_v19, %v8761_v33 }
0x2134   : > { %v18950_v20 = vsub.f32 %v18857_v57, %v8760_v4  ;;  %v8813_v22 = vsel %vm825_vm2, %v8791_v58, 0.0 }
0x2135   : > { %8814 = vadd.xlane.f32.xlu1 %v8813_v22  ;;  %v8793_v59 = vmul.f32 %v18947_v15, %v18947_v15 }
0x2136   : > { %v8792_v21 = vmul.f32 %v18950_v20, %v18950_v20 }
0x2137   : > { %v8819_v30 = vsel %vm825_vm2, %v8793_v59, 0.0 }
0x2138   : > { %v8816_v38 = vsel %vm825_vm2, %v8792_v21, 0.0 }
0x2139   : > { %8820 = vadd.xlane.f32.xlu1 %v8819_v30  ;;  %8817 = vadd.xlane.f32.xlu0 %v8816_v38 }
0x2157   : > { %v8731_v37 = vpop.xlane.xlu1 %8730 }
0x2158   : > { %v8763_v36 = vmul.f32 0.03125, %v8731_v37  ;;  %v8728_v9 = vpop.xlane.xlu0 %8727 }
0x2159   : > { %v8762_v8 = vmul.f32 0.03125, %v8728_v9 }
0x215a   : > { %v18972_v48 = vsub.f32 %v18866_v51, %v8763_v36 }
0x215b   : > { %v18975_v35 = vsub.f32 %v18869_v28, %v8762_v8 }
0x215c   : > { %v8795_v31 = vmul.f32 %v18972_v48, %v18972_v48 }
0x215d   : > { %v8794_v43 = vmul.f32 %v18975_v35, %v18975_v35 }
0x215e   : > { %v8825_v3 = vsel %vm825_vm2, %v8795_v31, 0.0 }
0x215f   : > { %v8737_v34 = vpop.xlane.xlu1 %8736  ;;  %8826 = vadd.xlane.f32.xlu1 %v8825_v3  ;;  %v8822_v18 = vsel %vm825_vm2, %v8794_v43, 0.0 }
0x2160   : > { %v8765_v52 = vmul.f32 0.03125, %v8737_v34  ;;  %v8734_v32 = vpop.xlane.xlu0 %8733  ;;  %8823 = vadd.xlane.f32.xlu0 %v8822_v18 }
0x2161   : > { %v8764_v49 = vmul.f32 0.03125, %v8734_v32 }
0x2162   : > { %v18984_v27 = vsub.f32 %v18878_v60, %v8765_v52 }
0x2163   : > { %v18987_v54 = vsub.f32 %v18881_v0, %v8764_v49 }
0x2164   : > { %v8797_v2 = vmul.f32 %v18984_v27, %v18984_v27 }
0x2165   : > { %v8796_v45 = vmul.f32 %v18987_v54, %v18987_v54 }
0x2166   : > { %v8831_v24 = vsel %vm825_vm2, %v8797_v2, 0.0 }
0x2167   : > { %v8743_v50 = vpop.xlane.xlu1 %8742  ;;  %8832 = vadd.xlane.f32.xlu1 %v8831_v24  ;;  %v8828_v14 = vsel %vm825_vm2, %v8796_v45, 0.0 }
0x2168   : > { %v8767_v46 = vmul.f32 0.03125, %v8743_v50  ;;  %v8740_v44 = vpop.xlane.xlu0 %8739  ;;  %8829 = vadd.xlane.f32.xlu0 %v8828_v14 }
0x2169   : > { %v8766_v7 = vmul.f32 0.03125, %v8740_v44 }
0x216a   : > { %v18996_v16 = vsub.f32 %v18890_v29, %v8767_v46 }
0x216b   : > { %v18999_v41 = vsub.f32 %v18893_v12, %v8766_v7 }
0x216c   : > { %v8799_v39 = vmul.f32 %v18996_v16, %v18996_v16 }
0x216d   : > { %v8798_v33 = vmul.f32 %v18999_v41, %v18999_v41 }
0x216e   : > { %v8837_v61 = vsel %vm825_vm2, %v8799_v39, 0.0  ;;  %v19034_v39 = vld [vmem:[%s19751_s9 + $0x1] ss:$0 sm:$0xff] }
0x216f   : > { %v8749_v4 = vpop.xlane.xlu1 %8748  ;;  %8838 = vadd.xlane.f32.xlu1 %v8837_v61  ;;  %v8834_v58 = vsel %vm825_vm2, %v8798_v33, 0.0 }
0x2170   : > { %v8769_v22 = vmul.f32 0.03125, %v8749_v4  ;;  %v8746_v59 = vpop.xlane.xlu0 %8745  ;;  %8835 = vadd.xlane.f32.xlu0 %v8834_v58 }
0x2171   : > { %v8768_v21 = vmul.f32 0.03125, %v8746_v59 }
0x2172   : > { %v19008_v30 = vsub.f32 %v18902_v17, %v8769_v22 }
0x2173   : > { %v19011_v38 = vsub.f32 %v18905_v26, %v8768_v21  ;;  %v19041_v21 = vld [vmem:[%s19752_s10 + $0x1] ss:$0 sm:$0xff] }
0x2174   : > { %v8801_v40 = vmul.f32 %v19008_v30, %v19008_v30 }
0x2175   : > { %v8800_v1 = vmul.f32 %v19011_v38, %v19011_v38 }
0x2176   : > { %v8843_v23 = vsel %vm825_vm2, %v8801_v40, 0.0 }
0x2177   : > { %8844 = vadd.xlane.f32.xlu1 %v8843_v23  ;;  %v8755_v42 = vpop.xlane.xlu1 %8754  ;;  %v8840_v55 = vsel %vm825_vm2, %v8800_v1, 0.0 }
0x2178   : > { %v8771_v62 = vmul.f32 0.03125, %v8755_v42  ;;  %8841 = vadd.xlane.f32.xlu0 %v8840_v55  ;;  %v8752_v37 = vpop.xlane.xlu0 %8751 }
0x2179   : > { %v8770_v36 = vmul.f32 0.03125, %v8752_v37 }
0x217a   : > { %v19020_v9 = vsub.f32 %v18914_v10, %v8771_v62 }
0x217b   : > { %v19023_v8 = vsub.f32 %v18917_v56, %v8770_v36 }
0x217c   : > { %v8803_v31 = vmul.f32 %v19020_v9, %v19020_v9 }
0x217d   : > { %v8802_v43 = vmul.f32 %v19023_v8, %v19023_v8 }
0x217e   : > { %v8849_v3 = vsel %vm825_vm2, %v8803_v31, 0.0 }
0x217f   : > { %8850 = vadd.xlane.f32.xlu1 %v8849_v3  ;;  %v8846_v34 = vsel %vm825_vm2, %v8802_v43, 0.0 }
0x2180   : > { %8847 = vadd.xlane.f32.xlu0 %v8846_v34 }
0x21b5   : > { %v8809_v18 = vpop.xlane.xlu1 %8808 }
0x21b6   : > { %v8853_v52 = vmul.f32 0.03125, %v8809_v18  ;;  %v8806_v32 = vpop.xlane.xlu0 %8805 }
0x21b7   : > { %v8852_v49 = vmul.f32 0.03125, %v8806_v32 }
0x21b8   : > { %v8869_v2 = vadd.f32 1e-12, %v8853_v52 }
0x21b9   : > { %v8868_v45 = vadd.f32 1e-12, %v8852_v49 }
0x21ba   : > { %14802 = vrsqrt.f32 %v8869_v2 }
0x21bb   : > { %14804 = vrsqrt.f32 %v8868_v45 }
0x21be   : > { %v8812_v24 = vpop.xlane.xlu0 %8811 }
0x21bf   : > { %v8854_v50 = vmul.f32 0.03125, %v8812_v24 }
0x21c1   : > { %v8870_v14 = vadd.f32 1e-12, %v8854_v50 }
0x21c2   : > { %v8815_v46 = vpop.xlane.xlu1 %8814 }
0x21c3   : > { %14806 = vrsqrt.f32 %v8870_v14  ;;  %v8855_v44 = vmul.f32 0.03125, %v8815_v46 }
0x21c4   : > { %v14803_v7 = vpop.eup %14802 }
0x21c5   : > { %v14805_v33 = vpop.eup %14804  ;;  %v8901_v61 = vmul.f32 %v14803_v7, %v18924_v11  ;;  %v8871_v4 = vadd.f32 1e-12, %v8855_v44 }
0x21c6   : > { %v8821_v58 = vpop.xlane.xlu1 %8820  ;;  %v8818_v22 = vpop.xlane.xlu0 %8817  ;;  %v8900_v59 = vmul.f32 %v14805_v33, %v18927_v5 }
0x21c7   : > { %v8923_v40 = vmul.f32 %v19034_v39, %v8901_v61  ;;  %14808 = vrsqrt.f32 %v8871_v4  ;;  %v8857_v1 = vmul.f32 0.03125, %v8821_v58  ;;  %v8856_v23 = vmul.f32 0.03125, %v8818_v22 }
0x21c8   : > { %v8922_v42 = vmul.f32 %v19034_v39, %v8900_v59 }
0x21c9   : > { %v8873_v55 = vadd.f32 1e-12, %v8857_v1  ;;  %v8872_v62 = vadd.f32 1e-12, %v8856_v23  ;;  %v8945_v37 = vadd.f32 %v19041_v21, %v8923_v40 }
0x21ca   : > { %v8944_v11 = vadd.f32 %v19041_v21, %v8922_v42 }
0x21cb   : > { %14810 = vrsqrt.f32 %v8873_v55 }
0x21cc   : > { %14812 = vrsqrt.f32 %v8872_v62  ;;  %12564 = vmatprep.mubr.msk.f32.mxu1 %vm825_vm2, %v8944_v11 }
0x21cd   : > { %v14807_v5 = vpop.eup %14806  ;;  %12565 = vmatmul.mubr.msk.f32.vlgmr.msra.gmra.mrb[176].mxu1 %vm825_vm2, %v8945_v37 }
0x21ce   : > { %v8902_v36 = vmul.f32 %v14807_v5, %v18936_v6 }
0x21d0   : > { %v8924_v31 = vmul.f32 %v19034_v39, %v8902_v36 }
0x21d1   : > { %v14809_v43 = vpop.eup %14808 }
0x21d2   : > { %v8946_v3 = vadd.f32 %v19041_v21, %v8924_v31  ;;  %v8903_v34 = vmul.f32 %v14809_v43, %v18941_v25 }
0x21d4   : > { %12567 = vmatprep.mubr.msk.f32.mxu1 %vm825_vm2, %v8946_v3  ;;  %v8925_v18 = vmul.f32 %v19034_v39, %v8903_v34 }
0x21d5   : > { %v14811_v52 = vpop.eup %14810 }
0x21d6   : > { %v14813_v32 = vpop.eup %14812  ;;  %v8947_v49 = vadd.f32 %v19041_v21, %v8925_v18  ;;  %v8905_v2 = vmul.f32 %v14811_v52, %v18947_v15 }
0x21d7   : > { %v8904_v45 = vmul.f32 %v14813_v32, %v18950_v20 }
0x21d8   : > { %12568 = vmatmul.mubr.msk.f32.gmra.mrb[178].mxu1 %vm825_vm2, %v8947_v49  ;;  %v8927_v6 = vmul.f32 %v19034_v39, %v8905_v2 }
0x21d9   : > { %v8926_v24 = vmul.f32 %v19034_v39, %v8904_v45 }
0x21da   : > { %v8949_v25 = vadd.f32 %v19041_v21, %v8927_v6 }
0x21db   : > { %v8948_v50 = vadd.f32 %v19041_v21, %v8926_v24 }
0x21dd   : > { %12570 = vmatprep.mubr.msk.f32.mxu1 %vm825_vm2, %v8948_v50 }
0x21de   : > { %12571 = vmatmul.mubr.msk.f32.gmra.mrb[180].mxu1 %vm825_vm2, %v8949_v25 }
0x21ec   : > { %v8827_v14 = vpop.xlane.xlu1 %8826 }
0x21ed   : > { %v8859_v46 = vmul.f32 0.03125, %v8827_v14  ;;  %v8824_v44 = vpop.xlane.xlu0 %8823 }
0x21ee   : > { %v8858_v15 = vmul.f32 0.03125, %v8824_v44 }
0x21ef   : > { %v8875_v7 = vadd.f32 1e-12, %v8859_v46 }
0x21f0   : > { %v8874_v20 = vadd.f32 1e-12, %v8858_v15 }
0x21f1   : > { %14814 = vrsqrt.f32 %v8875_v7 }
0x21f2   : > { %14816 = vrsqrt.f32 %v8874_v20 }
0x21f4   : > { %v8833_v33 = vpop.xlane.xlu1 %8832 }
0x21f5   : > { %v8861_v61 = vmul.f32 0.03125, %v8833_v33  ;;  %v8830_v4 = vpop.xlane.xlu0 %8829 }
0x21f6   : > { %v8860_v58 = vmul.f32 0.03125, %v8830_v4 }
0x21f7   : > { %v8877_v22 = vadd.f32 1e-12, %v8861_v61 }
0x21f8   : > { %v8876_v59 = vadd.f32 1e-12, %v8860_v58 }
0x21f9   : > { %14818 = vrsqrt.f32 %v8877_v22 }
0x21fa   : > { %14820 = vrsqrt.f32 %v8876_v59 }
0x21fb   : > { %v14815_v40 = vpop.eup %14814 }
0x21fc   : > { %v14817_v1 = vpop.eup %14816  ;;  %v8839_v23 = vpop.xlane.xlu1 %8838  ;;  %v8907_v42 = vmul.f32 %v14815_v40, %v18972_v48 }
0x21fd   : > { %v8863_v55 = vmul.f32 0.03125, %v8839_v23  ;;  %v8836_v62 = vpop.xlane.xlu0 %8835  ;;  %v8906_v11 = vmul.f32 %v14817_v1, %v18975_v35 }
0x21fe   : > { %v8862_v37 = vmul.f32 0.03125, %v8836_v62  ;;  %v8929_v5 = vmul.f32 %v19034_v39, %v8907_v42 }
0x21ff   : > { %v8879_v36 = vadd.f32 1e-12, %v8863_v55  ;;  %v8928_v31 = vmul.f32 %v19034_v39, %v8906_v11 }
0x2200   : > { %v8878_v43 = vadd.f32 1e-12, %v8862_v37  ;;  %v8951_v34 = vadd.f32 %v19041_v21, %v8929_v5 }
0x2201   : > { %14822 = vrsqrt.f32 %v8879_v36  ;;  %v8950_v3 = vadd.f32 %v19041_v21, %v8928_v31 }
0x2202   : > { %14824 = vrsqrt.f32 %v8878_v43 }
0x2203   : > { %v14819_v18 = vpop.eup %14818  ;;  %12573 = vmatprep.mubr.msk.f32.mxu1 %vm825_vm2, %v8950_v3 }
0x2204   : > { %v14821_v48 = vpop.eup %14820  ;;  %v8845_v52 = vpop.xlane.xlu1 %8844  ;;  %12574 = vmatmul.mubr.msk.f32.gmra.mrb[182].mxu1 %vm825_vm2, %v8951_v34  ;;  %v8909_v35 = vmul.f32 %v14819_v18, %v18984_v27  ;;  %v10648_v18 = vld [vmem:[%s19755_s13 + $0x80] sm:$0xff] }
0x2205   : > { %v8865_v32 = vmul.f32 0.03125, %v8845_v52  ;;  %v8842_v49 = vpop.xlane.xlu0 %8841  ;;  %v8908_v2 = vmul.f32 %v14821_v48, %v18987_v54  ;;  %v10652_v52 = vld [vmem:[%s19755_s13 + $0xa0] sm:$0xff] }
0x2206   : > { %v8864_v45 = vmul.f32 0.03125, %v8842_v49  ;;  %v8931_v6 = vmul.f32 %v19034_v39, %v8909_v35  ;;  %v10653_v35 = vld [vmem:[%s19755_s13 + $0xa8] sm:$0xff]  ;;  %v10654_v49 = vld [vmem:[%s19755_s13 + $0xb0] sm:$0xff] }
0x2207   : > { %v8881_v24 = vadd.f32 1e-12, %v8865_v32  ;;  %v8930_v25 = vmul.f32 %v19034_v39, %v8908_v2  ;;  %v13407_v32 = vpack.c.bf16 %v10653_v35, %v10652_v52  ;;  %v10655_v2 = vld [vmem:[%s19755_s13 + $0xb8] sm:$0xff] }
0x2208   : > { %v8880_v50 = vadd.f32 1e-12, %v8864_v45  ;;  %v8953_v46 = vadd.f32 %v19041_v21, %v8931_v6  ;;  %v13411_v45 = vpack.c.bf16 %v10655_v2, %v10654_v49  ;;  %v10656_v6 = vld [vmem:[%s19755_s13 + $0xc0] sm:$0xff] }
0x2209   : > { %14826 = vrsqrt.f32 %v8881_v24  ;;  %v8952_v14 = vadd.f32 %v19041_v21, %v8930_v25  ;;  %v10657_v24 = vld [vmem:[%s19755_s13 + $0xc8] sm:$0xff] }
0x220a   : > { %14828 = vrsqrt.f32 %v8880_v50  ;;  %v13415_v25 = vpack.c.bf16 %v10657_v24, %v10656_v6  ;;  %v10658_v50 = vld [vmem:[%s19755_s13 + $0xd0] sm:$0xff] }
0x220b   : > { %v14823_v44 = vpop.eup %14822  ;;  %12576 = vmatprep.mubr.msk.f32.mxu1 %vm825_vm2, %v8952_v14  ;;  %v10659_v14 = vld [vmem:[%s19755_s13 + $0xd8] sm:$0xff] }
0x220c   : > { %v14825_v27 = vpop.eup %14824  ;;  %v8851_v15 = vpop.xlane.xlu1 %8850  ;;  %12577 = vmatmul.mubr.msk.f32.gmra.mrb[184].mxu1 %vm825_vm2, %v8953_v46  ;;  %v8911_v54 = vmul.f32 %v14823_v44, %v18996_v16  ;;  %v13419_v46 = vpack.c.bf16 %v10659_v14, %v10658_v50  ;;  %v10660_v44 = vld [vmem:[%s19755_s13 + $0xe0] sm:$0xff] }
0x220d   : > { %v8867_v7 = vmul.f32 0.03125, %v8851_v15  ;;  %v8848_v20 = vpop.xlane.xlu0 %8847  ;;  %v8910_v33 = vmul.f32 %v14825_v27, %v18999_v41  ;;  %v10661_v27 = vld [vmem:[%s19755_s13 + $0xe8] sm:$0xff] }
0x220e   : > { %v8866_v61 = vmul.f32 0.03125, %v8848_v20  ;;  %v8933_v4 = vmul.f32 %v19034_v39, %v8911_v54  ;;  %v13423_v15 = vpack.c.bf16 %v10661_v27, %v10660_v44  ;;  %v10662_v54 = vld [vmem:[%s19755_s13 + $0xf0] sm:$0xff] }
0x220f   : > { %v8883_v58 = vadd.f32 1e-12, %v8867_v7  ;;  %v8932_v22 = vmul.f32 %v19034_v39, %v8910_v33  ;;  %v10663_v7 = vld [vmem:[%s19755_s13 + $0xf8] sm:$0xff]  ;;  %v19156_v33 = vld [vmem:[%s19754_s12 + $0x1] ss:$0 sm:$0xff] }
0x2210   : > { %v8882_v59 = vadd.f32 1e-12, %v8866_v61  ;;  %v8955_v1 = vadd.f32 %v19041_v21, %v8933_v4  ;;  %v13427_v20 = vpack.c.bf16 %v10663_v7, %v10662_v54 }
0x2211   : > { %14830 = vrsqrt.f32 %v8883_v58  ;;  %v8954_v40 = vadd.f32 %v19041_v21, %v8932_v22 }
0x2212   : > { %14832 = vrsqrt.f32 %v8882_v59 }
0x2213   : > { %v14827_v23 = vpop.eup %14826  ;;  %12579 = vmatprep.mubr.msk.f32.mxu1 %vm825_vm2, %v8954_v40 }
0x2214   : > { %v14829_v16 = vpop.eup %14828  ;;  %12580 = vmatmul.mubr.msk.f32.gmra.mrb[186].mxu1 %vm825_vm2, %v8955_v1  ;;  %v8913_v41 = vmul.f32 %v14827_v23, %v19008_v30 }
0x2215   : > { %v8912_v42 = vmul.f32 %v14829_v16, %v19011_v38 }
0x2216   : > { %v8935_v55 = vmul.f32 %v19034_v39, %v8913_v41 }
0x2217   : > { %v8934_v62 = vmul.f32 %v19034_v39, %v8912_v42 }
0x2218   : > { %v8957_v37 = vadd.f32 %v19041_v21, %v8935_v55 }
0x2219   : > { %v8956_v11 = vadd.f32 %v19041_v21, %v8934_v62 }
0x221b   : > { %v14831_v5 = vpop.eup %14830  ;;  %12582 = vmatprep.mubr.msk.f32.mxu1 %vm825_vm2, %v8956_v11 }
0x221c   : > { %v14833_v36 = vpop.eup %14832  ;;  %12583 = vmatmul.mubr.msk.f32.gmra.mrb[188].mxu1 %vm825_vm2, %v8957_v37  ;;  %v8915_v31 = vmul.f32 %v14831_v5, %v19020_v9  ;;  %v10649_v9 = vld [vmem:[%s19755_s13 + $0x88] sm:$0xff] }
0x221d   : > { %v8914_v30 = vmul.f32 %v14833_v36, %v19023_v8  ;;  %v13399_v8 = vpack.c.bf16 %v10649_v9, %v10648_v18 }
0x221e   : > { %v8937_v38 = vmul.f32 %v19034_v39, %v8915_v31 }
0x221f   : > { %v8936_v43 = vmul.f32 %v19034_v39, %v8914_v30  ;;  %13400 = vmatprep.subr.bf16.mxu0 %v13399_v8  ;;  %v10650_v39 = vld [vmem:[%s19755_s13 + $0x90] sm:$0xff] }
0x2220   : > { %v8959_v34 = vadd.f32 %v19041_v21, %v8937_v38  ;;  %13402 = vmatpush3.bf16.msra.mxu0 %v13399_v8 }
0x2221   : > { %v8958_v3 = vadd.f32 %v19041_v21, %v8936_v43  ;;  %v10651_v21 = vld [vmem:[%s19755_s13 + $0x98] sm:$0xff] }
0x2222   : > { %v13403_v48 = vpack.c.bf16 %v10651_v21, %v10650_v39 }
0x2223   : > { %12585 = vmatprep.mubr.msk.f32.mxu1 %vm825_vm2, %v8958_v3 }
0x2224   : > { %12586 = vmatmul.mubr.msk.f32.gmra.mrb[190].mxu1 %vm825_vm2, %v8959_v34  ;;  %13404 = vmatprep.subr.bf16.mxu0 %v13403_v48 }
0x2225   : > { %13406 = vmatpush3.bf16.msra.mxu0 %v13403_v48 }
0x2226   : > { %13408 = vmatprep.subr.bf16.mxu0 %v13407_v32 }
0x2229   : > { %13410 = vmatpush3.bf16.msra.mxu0 %v13407_v32 }
0x222a   : > { %13412 = vmatprep.subr.bf16.mxu0 %v13411_v45 }
0x222d   : > { %13414 = vmatpush3.bf16.msra.mxu0 %v13411_v45 }
0x222e   : > { %13416 = vmatprep.subr.bf16.mxu0 %v13415_v25 }
0x2231   : > { %13418 = vmatpush3.bf16.msra.mxu0 %v13415_v25 }
0x2232   : > { %13420 = vmatprep.subr.bf16.mxu0 %v13419_v46 }
0x2235   : > { %13422 = vmatpush3.bf16.msra.mxu0 %v13419_v46 }
0x2236   : > { %13424 = vmatprep.subr.bf16.mxu0 %v13423_v15 }
0x2239   : > { %13426 = vmatpush3.bf16.msra.mxu0 %v13423_v15 }
0x223a   : > { %13428 = vmatprep.subr.bf16.mxu0 %v13427_v20 }
0x223d   : > { %13430 = vmatpush3.bf16.msra.mxu0 %v13427_v20 }
0x22a0   : > { %v12566_v61 = vpop.f32.mrb[176].mxu1 }
0x22a1   : > { %v19159_v4 = vadd.f32 %v12566_v61, %v19156_v33  ;;  %v9087_v58 = vpop.f32.mrb[177].mxu1 }
0x22a2   : > { %v19162_v22 = vadd.f32 %v19156_v33, %v9087_v58 }
0x22a3   : > { %v19165_v59 = vmul.f32 0.70710677, %v19159_v4 }
0x22a4   : > { %v19168_v40 = vmul.f32 0.70710677, %v19162_v22 }
0x22a5   : > { %v9199_v1 = vand.u32 2147483647, %v19165_v59  ;;  %vm9519_vm3 = vcmp.ge.f32.partialorder %v19165_v59, 0.0 }
0x22a6   : > { %v9198_v23 = vand.u32 2147483647, %v19168_v40  ;;  %vm9518_vm4 = vcmp.ge.f32.partialorder %v19168_v40, 0.0 }
0x22a7   : > { %v9215_v16 = vmul.f32 0.3275911, %v9199_v1  ;;  %v9423_v31 = vsub.f32 0.0, %v9199_v1 }
0x22a8   : > { %v9214_v41 = vmul.f32 0.3275911, %v9198_v23  ;;  %v9422_v32 = vsub.f32 0.0, %v9198_v23 }
0x22a9   : > { %v9231_v42 = vadd.f32 1.0, %v9215_v16  ;;  %v9439_v8 = vmul.f32 %v9423_v31, %v9199_v1 }
0x22aa   : > { %v9230_v55 = vadd.f32 1.0, %v9214_v41  ;;  %v9438_v44 = vmul.f32 %v9422_v32, %v9198_v23 }
0x22ab   : > { %14834 = vrcp.f32 %v9231_v42  ;;  %v12569_v62 = vpop.f32.mrb[178].mxu1  ;;  %v9456_v25 = vmul.f32 1.442695, %v9439_v8 }
0x22ac   : > { %v19173_v11 = vadd.f32 %v12569_v62, %v19156_v33  ;;  %v9097_v37 = vpop.f32.mrb[179].mxu1  ;;  %14836 = vrcp.f32 %v9230_v55  ;;  %v9454_v16 = vmul.f32 1.442695, %v9438_v44 }
0x22ad   : > { %v19176_v5 = vadd.f32 %v19156_v33, %v9097_v37 }
0x22ae   : > { %v19179_v36 = vmul.f32 0.70710677, %v19173_v11 }
0x22af   : > { %v19182_v30 = vmul.f32 0.70710677, %v19176_v5 }
0x22b0   : > { %v9201_v38 = vand.u32 2147483647, %v19179_v36  ;;  %vm9521_vm5 = vcmp.ge.f32.partialorder %v19179_v36, 0.0 }
0x22b1   : > { %v9200_v43 = vand.u32 2147483647, %v19182_v30  ;;  %v12572_v3 = vpop.f32.mrb[180].mxu1  ;;  %vm9520_vm6 = vcmp.ge.f32.partialorder %v19182_v30, 0.0  ;;  %v9169_v30 = vmul.f32 0.5, %v19173_v11 }
0x22b2   : > { %v9217_v34 = vmul.f32 0.3275911, %v9201_v38  ;;  %v19187_v18 = vadd.f32 %v12572_v3, %v19156_v33  ;;  %v9107_v9 = vpop.f32.mrb[181].mxu1  ;;  %v9425_v20 = vsub.f32 0.0, %v9201_v38 }
0x22b3   : > { %v9216_v39 = vmul.f32 0.3275911, %v9200_v43  ;;  %v19190_v21 = vadd.f32 %v19156_v33, %v9107_v9  ;;  %v9424_v41 = vsub.f32 0.0, %v9200_v43 }
0x22b4   : > { %v9233_v48 = vadd.f32 1.0, %v9217_v34  ;;  %v19193_v52 = vmul.f32 0.70710677, %v19187_v18  ;;  %v9441_v62 = vmul.f32 %v9425_v20, %v9201_v38 }
0x22b5   : > { %v14835_v35 = vpop.eup %14834  ;;  %v9232_v49 = vadd.f32 1.0, %v9216_v39  ;;  %v19196_v2 = vmul.f32 0.70710677, %v19190_v21  ;;  %v9440_v34 = vmul.f32 %v9424_v41, %v9200_v43 }
0x22b6   : > { %v9279_v45 = vmul.f32 1.0614054, %v14835_v35  ;;  %14838 = vrcp.f32 %v9233_v48  ;;  %v9203_v6 = vand.u32 2147483647, %v19193_v52  ;;  %v14837_v24 = vpop.eup %14836  ;;  %vm9523_vm13 = vcmp.ge.f32.partialorder %v19193_v52, 0.0 }
0x22b7   : > { %14840 = vrcp.f32 %v9232_v49  ;;  %v9202_v50 = vand.u32 2147483647, %v19196_v2  ;;  %v9278_v7 = vmul.f32 1.0614054, %v14837_v24  ;;  %v9460_v49 = vmul.f32 1.442695, %v9441_v62 }
0x22b8   : > { %v9295_v14 = vadd.f32 -1.4531521, %v9279_v45  ;;  %v9219_v46 = vmul.f32 0.3275911, %v9203_v6  ;;  %14842 = vpow2.f32 %v9456_v25  ;;  %v9427_v9 = vsub.f32 0.0, %v9203_v6 }
0x22b9   : > { %v9218_v27 = vmul.f32 0.3275911, %v9202_v50  ;;  %v9294_v1 = vadd.f32 -1.4531521, %v9278_v7  ;;  %v9426_v45 = vsub.f32 0.0, %v9202_v50  ;;  %vm9522_vm12 = vcmp.ge.f32.partialorder %v19196_v2, 0.0 }
0x22ba   : > { %v9311_v15 = vmul.f32 %v14835_v35, %v9295_v14  ;;  %v9235_v54 = vadd.f32 1.0, %v9219_v46  ;;  %v9170_v2 = vmul.f32 0.5, %v19190_v21 }
0x22bb   : > { %v9234_v61 = vadd.f32 1.0, %v9218_v27  ;;  %v9310_v55 = vmul.f32 %v14837_v24, %v9294_v1  ;;  %v9458_v27 = vmul.f32 1.442695, %v9440_v34  ;;  %v9442_v1 = vmul.f32 %v9426_v45, %v9202_v50 }
0x22bc   : > { %v9327_v58 = vadd.f32 1.4214138, %v9311_v15  ;;  %14844 = vrcp.f32 %v9235_v54  ;;  %v9443_v15 = vmul.f32 %v9427_v9, %v9203_v6 }
0x22bd   : > { %14846 = vrcp.f32 %v9234_v61  ;;  %v9326_v23 = vadd.f32 1.4214138, %v9310_v55  ;;  %v9462_v50 = vmul.f32 1.442695, %v9442_v1 }
0x22be   : > { %v9343_v42 = vmul.f32 %v14835_v35, %v9327_v58  ;;  %14848 = vpow2.f32 %v9454_v16 }
0x22bf   : > { %v9342_v48 = vmul.f32 %v14837_v24, %v9326_v23  ;;  %14850 = vpow2.f32 %v9460_v49 }
0x22c0   : > { %v19200_v37 = vpop.eup %14838  ;;  %v9359_v31 = vadd.f32 -0.28449672, %v9343_v42  ;;  %14852 = vpow2.f32 %v9458_v27 }
0x22c1   : > { %v19202_v3 = vpop.eup %14840  ;;  %v9281_v8 = vmul.f32 1.0614054, %v19200_v37  ;;  %v9358_v38 = vadd.f32 -0.28449672, %v9342_v48 }
0x22c2   : > { %v9375_v39 = vmul.f32 %v14835_v35, %v9359_v31  ;;  %v9280_v32 = vmul.f32 1.0614054, %v19202_v3  ;;  %v14843_v44 = vpop.eup %14842  ;;  %v9464_v31 = vmul.f32 1.442695, %v9443_v15 }
0x22c3   : > { %v9297_v25 = vadd.f32 -1.4531521, %v9281_v8  ;;  %v9374_v20 = vmul.f32 %v14837_v24, %v9358_v38 }
0x22c4   : > { %v9391_v14 = vadd.f32 0.2548296, %v9375_v39  ;;  %v9296_v46 = vadd.f32 -1.4531521, %v9280_v32  ;;  %14854 = vpow2.f32 %v9464_v31 }
0x22c5   : > { %v9313_v54 = vmul.f32 %v19200_v37, %v9297_v25  ;;  %v9390_v55 = vadd.f32 0.2548296, %v9374_v20  ;;  %14856 = vpow2.f32 %v9462_v50 }
0x22c6   : > { %v19207_v7 = vpop.eup %14844  ;;  %v9407_v43 = vmul.f32 %v14835_v35, %v9391_v14  ;;  %v9312_v61 = vmul.f32 %v19202_v3, %v9296_v46 }
0x22c7   : > { %v19210_v58 = vpop.eup %14846  ;;  %v9329_v16 = vadd.f32 1.4214138, %v9313_v54  ;;  %v9283_v41 = vmul.f32 1.0614054, %v19207_v7  ;;  %v9406_v9 = vmul.f32 %v14837_v24, %v9390_v55 }
0x22c8   : > { %v9487_v42 = vmul.f32 %v14843_v44, %v9407_v43  ;;  %v9328_v62 = vadd.f32 1.4214138, %v9312_v61  ;;  %v9282_v6 = vmul.f32 1.0614054, %v19210_v58  ;;  %v14849_v48 = vpop.eup %14848 }
0x22c9   : > { %v9345_v23 = vmul.f32 %v19200_v37, %v9329_v16  ;;  %v9299_v35 = vadd.f32 -1.4531521, %v9283_v41  ;;  %v9486_v25 = vmul.f32 %v14849_v48, %v9406_v9  ;;  %v14851_v41 = vpop.eup %14850 }
0x22ca   : > { %v9503_v34 = vsub.f32 1.0, %v9487_v42  ;;  %v9344_v8 = vmul.f32 %v19202_v3, %v9328_v62  ;;  %v9298_v39 = vadd.f32 -1.4531521, %v9282_v6 }
0x22cb   : > { %v9361_v32 = vadd.f32 -0.28449672, %v9345_v23  ;;  %v9315_v49 = vmul.f32 %v19207_v7, %v9299_v35  ;;  %v9502_v24 = vsub.f32 1.0, %v9486_v25  ;;  %v14853_v23 = vpop.eup %14852  ;;  %v9166_v35 = vmul.f32 0.5, %v19162_v22 }
0x22cc   : > { %v9535_v45 = vsub.f32 0.0, %v9503_v34  ;;  %v9360_v14 = vadd.f32 -0.28449672, %v9344_v8  ;;  %v9314_v38 = vmul.f32 %v19210_v58, %v9298_v39  ;;  %v9167_v39 = vmul.f32 0.5, %v19159_v4 }
0x22cd   : > { %v9377_v46 = vmul.f32 %v19200_v37, %v9361_v32  ;;  %v9331_v44 = vadd.f32 1.4214138, %v9315_v49  ;;  %v9534_v61 = vsub.f32 0.0, %v9502_v24 }
0x22ce   : > { %v9376_v27 = vmul.f32 %v19202_v3, %v9360_v14  ;;  %v9330_v15 = vadd.f32 1.4214138, %v9314_v38  ;;  %v9551_v54 = vsel %vm9519_vm3, %v9503_v34, %v9535_v45  ;;  %v14855_v38 = vpop.eup %14854 }
0x22cf   : > { %v9393_v43 = vadd.f32 0.2548296, %v9377_v46  ;;  %v9347_v20 = vmul.f32 %v19207_v7, %v9331_v44  ;;  %v9567_v55 = vadd.f32 1.0, %v9551_v54  ;;  %v9550_v62 = vsel %vm9518_vm4, %v9502_v24, %v9534_v61 }
0x22d0   : > { %v9392_v1 = vadd.f32 0.2548296, %v9376_v27  ;;  %v9346_v16 = vmul.f32 %v19210_v58, %v9330_v15  ;;  %v9566_v34 = vadd.f32 1.0, %v9550_v62  ;;  %v9168_v61 = vmul.f32 0.5, %v19176_v5 }
0x22d1   : > { %v9409_v59 = vmul.f32 %v19200_v37, %v9393_v43  ;;  %v9363_v42 = vadd.f32 -0.28449672, %v9347_v20  ;;  %v9583_v49 = vmul.f32 %v9567_v55, %v9167_v39  ;;  %v14857_v43 = vpop.eup %14856  ;;  %vm14953_vm4 = vmmov 0  }
0x22d2   : > { %v9408_v6 = vmul.f32 %v19202_v3, %v9392_v1  ;;  %v9362_v31 = vadd.f32 -0.28449672, %v9346_v16  ;;  %v9582_v50 = vmul.f32 %v9566_v34, %v9166_v35 }
0x22d3   : > { %v9489_v9 = vmul.f32 %v14851_v41, %v9409_v59  ;;  %v9379_v8 = vmul.f32 %v19207_v7, %v9363_v42 }
0x22d4   : > { %v9488_v48 = vmul.f32 %v14853_v23, %v9408_v6  ;;  %v9378_v40 = vmul.f32 %v19210_v58, %v9362_v31  ;;  %12620 = vmatprep.mubr.f32.mxu0 %v9582_v50 }
0x22d5   : > { %v9505_v37 = vsub.f32 1.0, %v9489_v9  ;;  %v9395_v32 = vadd.f32 0.2548296, %v9379_v8  ;;  %12621 = vmatmul.mubr.f32.vlgmr.msra.gmra.mrb[192].mxu0 %v9583_v49 }
0x22d6   : > { %v9504_v45 = vsub.f32 1.0, %v9488_v48  ;;  %v9394_v25 = vadd.f32 0.2548296, %v9378_v40 }
0x22d7   : > { %v12575_v3 = vpop.f32.mrb[182].mxu1  ;;  %v9537_v14 = vsub.f32 0.0, %v9505_v37  ;;  %v9411_v22 = vmul.f32 %v19207_v7, %v9395_v32 }
0x22d8   : > { %v19233_v4 = vadd.f32 %v12575_v3, %v19156_v33  ;;  %v9117_v46 = vpop.f32.mrb[183].mxu1  ;;  %v9536_v44 = vsub.f32 0.0, %v9504_v45  ;;  %v9410_v24 = vmul.f32 %v19210_v58, %v9394_v25  ;;  %v9171_v3 = vmul.f32 0.5, %v19187_v18 }
0x22d9   : > { %v19238_v27 = vadd.f32 %v19156_v33, %v9117_v46  ;;  %v9553_v15 = vsel %vm9521_vm5, %v9505_v37, %v9537_v14  ;;  %v9491_v54 = vmul.f32 %v14855_v38, %v9411_v22  ;;  %vm19662_vm5 = vmpackc.low %vm825_vm2, %vm825_vm2 }
0x22da   : > { %v19241_v7 = vmul.f32 0.70710677, %v19233_v4  ;;  %v9552_v36 = vsel %vm9520_vm6, %v9504_v45, %v9536_v44  ;;  %v9569_v20 = vadd.f32 1.0, %v9553_v15  ;;  %v9490_v58 = vmul.f32 %v14857_v43, %v9410_v24 }
0x22db   : > { %v19245_v1 = vmul.f32 0.70710677, %v19238_v27  ;;  %v9568_v16 = vadd.f32 1.0, %v9552_v36  ;;  %v9507_v59 = vsub.f32 1.0, %v9491_v54 }
0x22dc   : > { %v9205_v41 = vand.u32 2147483647, %v19241_v7  ;;  %v9506_v62 = vsub.f32 1.0, %v9490_v58  ;;  %v9585_v31 = vmul.f32 %v9569_v20, %v9169_v30  ;;  %vm9525_vm14 = vcmp.ge.f32.partialorder %v19241_v7, 0.0 }
0x22dd   : > { %v9204_v42 = vand.u32 2147483647, %v19245_v1  ;;  %v9584_v55 = vmul.f32 %v9568_v16, %v9168_v61  ;;  %v9539_v23 = vsub.f32 0.0, %v9507_v59  ;;  %vm9524_vm15 = vcmp.ge.f32.partialorder %v19245_v1, 0.0 }
0x22de   : > { %v9221_v6 = vmul.f32 0.3275911, %v9205_v41  ;;  %v9538_v5 = vsub.f32 0.0, %v9506_v62  ;;  %v9429_v49 = vsub.f32 0.0, %v9205_v41 }
0x22df   : > { %v9220_v35 = vmul.f32 0.3275911, %v9204_v42  ;;  %v12578_v34 = vpop.f32.mrb[184].mxu1  ;;  %12623 = vmatprep.mubr.f32.mxu0 %v9584_v55  ;;  %v9555_v37 = vsel %vm9523_vm13, %v9507_v59, %v9539_v23  ;;  %v9428_v45 = vsub.f32 0.0, %v9204_v42 }
0x22e0   : > { %v9237_v9 = vadd.f32 1.0, %v9221_v6  ;;  %v19252_v8 = vadd.f32 %v12578_v34, %v19156_v33  ;;  %v9127_v11 = vpop.f32.mrb[185].mxu1  ;;  %12624 = vmatmul.mubr.f32.gmra.mrb[194].mxu0 %v9585_v31  ;;  %v9554_v40 = vsel %vm9522_vm12, %v9506_v62, %v9538_v5  ;;  %v9571_v22 = vadd.f32 1.0, %v9555_v37 }
0x22e1   : > { %v9236_v39 = vadd.f32 1.0, %v9220_v35  ;;  %v19256_v48 = vadd.f32 %v19156_v33, %v9127_v11  ;;  %v9570_v25 = vadd.f32 1.0, %v9554_v40  ;;  %v9445_v15 = vmul.f32 %v9429_v49, %v9205_v41 }
0x22e2   : > { %14858 = vrcp.f32 %v9237_v9  ;;  %v19259_v50 = vmul.f32 0.70710677, %v19252_v8  ;;  %v9587_v44 = vmul.f32 %v9571_v22, %v9171_v3  ;;  %v9444_v21 = vmul.f32 %v9428_v45, %v9204_v42 }
0x22e3   : > { %14860 = vrcp.f32 %v9236_v39  ;;  %v19263_v32 = vmul.f32 0.70710677, %v19256_v48  ;;  %v9586_v38 = vmul.f32 %v9570_v25, %v9170_v2  ;;  %v9468_v59 = vmul.f32 1.442695, %v9445_v15 }
0x22e4   : > { %v9207_v52 = vand.u32 2147483647, %v19259_v50  ;;  %v9466_v42 = vmul.f32 1.442695, %v9444_v21  ;;  %vm9527_vm1 = vcmp.ge.f32.partialorder %v19259_v50, 0.0 }
0x22e5   : > { %v9206_v14 = vand.u32 2147483647, %v19263_v32  ;;  %12626 = vmatprep.mubr.f32.mxu0 %v9586_v38  ;;  %v19296_v38 = vmul.f32 0.5, %v19233_v4  ;;  %vm9526_vm0 = vcmp.ge.f32.partialorder %v19263_v32, 0.0 }
0x22e6   : > { %v9431_v54 = vsub.f32 0.0, %v9207_v52  ;;  %12627 = vmatmul.mubr.f32.gmra.mrb[196].mxu0 %v9587_v44  ;;  %v9223_v58 = vmul.f32 0.3275911, %v9207_v52 }
0x22e7   : > { %v9222_v46 = vmul.f32 0.3275911, %v9206_v14  ;;  %v12581_v24 = vpop.f32.mrb[186].mxu1  ;;  %v9430_v61 = vsub.f32 0.0, %v9206_v14 }
0x22e8   : > { %v19269_v43 = vadd.f32 %v12581_v24, %v19156_v33  ;;  %v9137_v36 = vpop.f32.mrb[187].mxu1  ;;  %v9447_v55 = vmul.f32 %v9431_v54, %v9207_v52  ;;  %v9239_v11 = vadd.f32 1.0, %v9223_v58  ;;  %v19305_v54 = vmul.f32 0.5, %v19238_v27 }
0x22e9   : > { %v9238_v20 = vadd.f32 1.0, %v9222_v46  ;;  %v19272_v18 = vadd.f32 %v19156_v33, %v9137_v36  ;;  %v9446_v31 = vmul.f32 %v9430_v61, %v9206_v14 }
0x22ea   : > { %v19275_v16 = vmul.f32 0.70710677, %v19269_v43  ;;  %v9472_v2 = vmul.f32 1.442695, %v9447_v55 }
0x22eb   : > { %v19278_v30 = vmul.f32 0.70710677, %v19272_v18  ;;  %14862 = vrcp.f32 %v9238_v20  ;;  %v9470_v25 = vmul.f32 1.442695, %v9446_v31 }
0x22ec   : > { %v19280_v41 = vpop.eup %14858  ;;  %v9209_v62 = vand.u32 2147483647, %v19275_v16  ;;  %14864 = vpow2.f32 %v9468_v59  ;;  %vm9529_vm7 = vcmp.ge.f32.partialorder %v19275_v16, 0.0 }
0x22ed   : > { %v19283_v6 = vpop.eup %14860  ;;  %v9208_v23 = vand.u32 2147483647, %v19278_v30  ;;  %v9285_v35 = vmul.f32 1.0614054, %v19280_v41  ;;  %14866 = vpow2.f32 %v9466_v42  ;;  %vm9528_vm8 = vcmp.ge.f32.partialorder %v19278_v30, 0.0 }
0x22ee   : > { %v9225_v34 = vmul.f32 0.3275911, %v9209_v62  ;;  %v9433_v5 = vsub.f32 0.0, %v9209_v62  ;;  %v9284_v9 = vmul.f32 1.0614054, %v19283_v6  ;;  %14868 = vrcp.f32 %v9239_v11 }
0x22ef   : > { %v9224_v39 = vmul.f32 0.3275911, %v9208_v23  ;;  %v12584_v40 = vpop.f32.mrb[188].mxu1  ;;  %v9301_v37 = vadd.f32 -1.4531521, %v9285_v35  ;;  %v9432_v15 = vsub.f32 0.0, %v9208_v23  ;;  %14870 = vpow2.f32 %v9472_v2 }
0x22f0   : > { %v19289_v49 = vadd.f32 %v12584_v40, %v19156_v33  ;;  %v9147_v45 = vpop.f32.mrb[189].mxu1  ;;  %v9300_v52 = vadd.f32 -1.4531521, %v9284_v9  ;;  %v9449_v3 = vmul.f32 %v9433_v5, %v9209_v62  ;;  %v9241_v46 = vadd.f32 1.0, %v9225_v34 }
0x22f1   : > { %v19292_v14 = vadd.f32 %v19156_v33, %v9147_v45  ;;  %v9317_v22 = vmul.f32 %v19280_v41, %v9301_v37  ;;  %v9240_v24 = vadd.f32 1.0, %v9224_v39  ;;  %14872 = vpow2.f32 %v9470_v25 }
0x22f2   : > { %v19299_v44 = vmul.f32 0.70710677, %v19289_v49  ;;  %v9316_v4 = vmul.f32 %v19283_v6, %v9300_v52  ;;  %v9476_v20 = vmul.f32 1.442695, %v9449_v3  ;;  %14874 = vrcp.f32 %v9241_v46 }
0x22f3   : > { %v19302_v21 = vmul.f32 0.70710677, %v19292_v14  ;;  %v9333_v58 = vadd.f32 1.4214138, %v9317_v22  ;;  %14876 = vrcp.f32 %v9240_v24  ;;  %v9448_v31 = vmul.f32 %v9432_v15, %v9208_v23 }
0x22f4   : > { %v9211_v36 = vand.u32 2147483647, %v19299_v44  ;;  %v9332_v55 = vadd.f32 1.4214138, %v9316_v4  ;;  %v19321_v23 = vmul.f32 0.5, %v19252_v8  ;;  %14878 = vpow2.f32 %v9476_v20 }
0x22f5   : > { %v9210_v61 = vand.u32 2147483647, %v19302_v21  ;;  %v19310_v62 = vpop.eup %14862  ;;  %v9349_v34 = vmul.f32 %v19280_v41, %v9333_v58  ;;  %v19328_v46 = vmul.f32 0.5, %v19256_v48  ;;  %v9474_v24 = vmul.f32 1.442695, %v9448_v31 }
0x22f6   : > { %v9227_v59 = vmul.f32 0.3275911, %v9211_v36  ;;  %v9435_v42 = vsub.f32 0.0, %v9211_v36  ;;  %v9348_v40 = vmul.f32 %v19283_v6, %v9332_v55  ;;  %v14865_v25 = vpop.eup %14864  ;;  %v9286_v22 = vmul.f32 1.0614054, %v19310_v62 }
0x22f7   : > { %v9226_v27 = vmul.f32 0.3275911, %v9210_v61  ;;  %v12587_v35 = vpop.f32.mrb[190].mxu1  ;;  %v9434_v9 = vsub.f32 0.0, %v9210_v61  ;;  %v9365_v52 = vadd.f32 -0.28449672, %v9349_v34 }
0x22f8   : > { %v9243_v5 = vadd.f32 1.0, %v9227_v59  ;;  %v19314_v11 = vadd.f32 %v12587_v35, %v19156_v33  ;;  %v9157_v39 = vpop.f32.mrb[191].mxu1  ;;  %v9451_v37 = vmul.f32 %v9435_v42, %v9211_v36  ;;  %v19334_v36 = vmul.f32 0.5, %v19272_v18 }
0x22f9   : > { %v9242_v2 = vadd.f32 1.0, %v9226_v27  ;;  %v19318_v45 = vadd.f32 %v19156_v33, %v9157_v39  ;;  %v14867_v33 = vpop.eup %14866  ;;  %v9364_v4 = vadd.f32 -0.28449672, %v9348_v40  ;;  %v9450_v59 = vmul.f32 %v9434_v9, %v9210_v61 }
0x22fa   : > { %v19324_v3 = vmul.f32 0.70710677, %v19314_v11  ;;  %v19337_v20 = vpop.eup %14868  ;;  %v9480_v58 = vmul.f32 1.442695, %v9451_v37  ;;  %v9381_v42 = vmul.f32 %v19280_v41, %v9365_v52  ;;  %v9302_v18 = vadd.f32 -1.4531521, %v9286_v22 }
0x22fb   : > { %14880 = vrcp.f32 %v9242_v2  ;;  %v19331_v15 = vmul.f32 0.70710677, %v19318_v45  ;;  %v19341_v55 = vpop.eup %14870  ;;  %v9380_v35 = vmul.f32 %v19283_v6, %v9364_v4  ;;  %v9287_v10 = vmul.f32 1.0614054, %v19337_v20 }
0x22fc   : > { %14882 = vrcp.f32 %v9243_v5  ;;  %v9213_v8 = vand.u32 2147483647, %v19324_v3  ;;  %v19344_v34 = vpop.eup %14872  ;;  %v9397_v40 = vadd.f32 0.2548296, %v9381_v42  ;;  %v9318_v52 = vmul.f32 %v19310_v62, %v9302_v18 }
0x22fd   : > { %v9212_v48 = vand.u32 2147483647, %v19331_v15  ;;  %14884 = vpow2.f32 %v9474_v24  ;;  %v19346_v2 = vpop.eup %14874  ;;  %v9396_v37 = vadd.f32 0.2548296, %v9380_v35  ;;  %v9478_v42 = vmul.f32 1.442695, %v9450_v59 }
0x22fe   : > { %v9229_v31 = vmul.f32 0.3275911, %v9213_v8  ;;  %v9437_v27 = vsub.f32 0.0, %v9213_v8  ;;  %v19350_v56 = vpop.eup %14876  ;;  %v9413_v24 = vmul.f32 %v19280_v41, %v9397_v40  ;;  %v9334_v17 = vadd.f32 1.4214138, %v9318_v52 }
0x22ff   : > { %v9228_v5 = vmul.f32 0.3275911, %v9212_v48  ;;  %v9436_v39 = vsub.f32 0.0, %v9212_v48  ;;  %v9412_v26 = vmul.f32 %v19283_v6, %v9396_v37  ;;  %v19356_v35 = vpop.eup %14878  ;;  %v9289_v6 = vmul.f32 1.0614054, %v19346_v2 }
0x2300   : > { %v9245_v61 = vadd.f32 1.0, %v9229_v31  ;;  %v9453_v9 = vmul.f32 %v9437_v27, %v9213_v8  ;;  %v9493_v8 = vmul.f32 %v14865_v25, %v9413_v24  ;;  %v9303_v27 = vadd.f32 -1.4531521, %v9287_v10 }
0x2301   : > { %v9244_v22 = vadd.f32 1.0, %v9228_v5  ;;  %v9452_v4 = vmul.f32 %v9436_v39, %v9212_v48  ;;  %v9492_v18 = vmul.f32 %v14867_v33, %v9412_v26  ;;  %v9350_v5 = vmul.f32 %v19310_v62, %v9334_v17 }
0x2302   : > { %14886 = vrcp.f32 %v9245_v61  ;;  %v9484_v31 = vmul.f32 1.442695, %v9453_v9  ;;  %v9288_v48 = vmul.f32 1.0614054, %v19350_v56  ;;  %v9509_v59 = vsub.f32 1.0, %v9493_v8 }
0x2303   : > { %14888 = vrcp.f32 %v9244_v22  ;;  %v9482_v39 = vmul.f32 1.442695, %v9452_v4  ;;  %v9319_v40 = vmul.f32 %v19337_v20, %v9303_v27  ;;  %v9508_v10 = vsub.f32 1.0, %v9492_v18 }
0x2304   : > { %14890 = vpow2.f32 %v9480_v58  ;;  %v9366_v25 = vadd.f32 -0.28449672, %v9350_v5  ;;  %v9304_v9 = vadd.f32 -1.4531521, %v9288_v48  ;;  %v9541_v26 = vsub.f32 0.0, %v9509_v59 }
0x2305   : > { %v19360_v41 = vpop.eup %14880  ;;  %14892 = vpow2.f32 %v9478_v42  ;;  %v9335_v33 = vadd.f32 1.4214138, %v9319_v40  ;;  %v9305_v17 = vadd.f32 -1.4531521, %v9289_v6  ;;  %v9540_v58 = vsub.f32 0.0, %v9508_v10 }
0x2306   : > { %v19364_v61 = vpop.eup %14882  ;;  %14894 = vpow2.f32 %v9484_v31  ;;  %v9382_v37 = vmul.f32 %v19310_v62, %v9366_v25  ;;  %v9320_v52 = vmul.f32 %v19350_v56, %v9304_v9  ;;  %v9290_v22 = vmul.f32 1.0614054, %v19360_v41 }
0x2307   : > { %v19369_v4 = vpop.eup %14884  ;;  %v9557_v24 = vsel %vm9525_vm14, %v9509_v59, %v9541_v26  ;;  %v9351_v42 = vmul.f32 %v19337_v20, %v9335_v33  ;;  %v9321_v8 = vmul.f32 %v19346_v2, %v9305_v17  ;;  %v9291_v31 = vmul.f32 1.0614054, %v19364_v61 }
0x2308   : > { %v9556_v27 = vsel %vm9524_vm15, %v9508_v10, %v9540_v58  ;;  %v9573_v18 = vadd.f32 1.0, %v9557_v24  ;;  %v9398_v5 = vadd.f32 0.2548296, %v9382_v37  ;;  %v9336_v48 = vadd.f32 1.4214138, %v9320_v52 }
0x2309   : > { %14896 = vpow2.f32 %v9482_v39  ;;  %v9572_v40 = vadd.f32 1.0, %v9556_v27  ;;  %v9367_v6 = vadd.f32 -0.28449672, %v9351_v42  ;;  %v9337_v25 = vadd.f32 1.4214138, %v9321_v8 }
0x230a   : > { %v9589_v59 = vmul.f32 %v9573_v18, %v19296_v38  ;;  %v9414_v9 = vmul.f32 %v19310_v62, %v9398_v5  ;;  %v9352_v26 = vmul.f32 %v19350_v56, %v9336_v48  ;;  %v9306_v33 = vadd.f32 -1.4531521, %v9290_v22 }
0x230b   : > { %v9588_v10 = vmul.f32 %v9572_v40, %v19305_v54  ;;  %v9383_v17 = vmul.f32 %v19337_v20, %v9367_v6  ;;  %v9353_v39 = vmul.f32 %v19346_v2, %v9337_v25  ;;  %v9307_v58 = vadd.f32 -1.4531521, %v9291_v31 }
0x230c   : > { %v19379_v7 = vpop.eup %14886  ;;  %v9494_v52 = vmul.f32 %v19344_v34, %v9414_v9  ;;  %v9368_v24 = vadd.f32 -0.28449672, %v9352_v26  ;;  %v9322_v38 = vmul.f32 %v19360_v41, %v9306_v33  ;;  %vm9530_vm9 = vcmp.ge.f32.partialorder %v19302_v21, 0.0 }
0x230d   : > { %v19384_v1 = vpop.eup %14888  ;;  %12629 = vmatprep.mubr.f32.mxu0 %v9588_v10  ;;  %v9399_v22 = vadd.f32 0.2548296, %v9383_v17  ;;  %v9369_v42 = vadd.f32 -0.28449672, %v9353_v39  ;;  %v9323_v8 = vmul.f32 %v19364_v61, %v9307_v58  ;;  %v9293_v54 = vmul.f32 1.0614054, %v19379_v7 }
0x230e   : > { %v19389_v37 = vpop.eup %14890  ;;  %v9292_v62 = vmul.f32 1.0614054, %v19384_v1  ;;  %12630 = vmatmul.mubr.f32.gmra.mrb[198].mxu0 %v9589_v59  ;;  %v9510_v31 = vsub.f32 1.0, %v9494_v52  ;;  %v9384_v18 = vmul.f32 %v19350_v56, %v9368_v24  ;;  %v9338_v34 = vadd.f32 1.4214138, %v9322_v38 }
0x230f   : > { %v14893_v27 = vpop.eup %14892  ;;  %v9415_v40 = vmul.f32 %v19337_v20, %v9399_v22  ;;  %v9385_v6 = vmul.f32 %v19346_v2, %v9369_v42  ;;  %v9339_v25 = vadd.f32 1.4214138, %v9323_v8  ;;  %v9309_v9 = vadd.f32 -1.4531521, %v9293_v54 }
0x2310   : > { %v9308_v5 = vadd.f32 -1.4531521, %v9292_v62  ;;  %v19398_v48 = vpop.eup %14894  ;;  %v9542_v26 = vsub.f32 0.0, %v9510_v31  ;;  %v9400_v33 = vadd.f32 0.2548296, %v9384_v18  ;;  %v9354_v10 = vmul.f32 %v19360_v41, %v9338_v34 }
0x2311   : > { %v9495_v59 = vmul.f32 %v19341_v55, %v9415_v40  ;;  %v9401_v39 = vadd.f32 0.2548296, %v9385_v6  ;;  %v9355_v58 = vmul.f32 %v19364_v61, %v9339_v25  ;;  %v9325_v52 = vmul.f32 %v19379_v7, %v9309_v9 }
0x2312   : > { %v9324_v17 = vmul.f32 %v19384_v1, %v9308_v5  ;;  %v9558_v20 = vsel %vm9526_vm0, %v9510_v31, %v9542_v26  ;;  %v9416_v24 = vmul.f32 %v19350_v56, %v9400_v33  ;;  %v9370_v38 = vadd.f32 -0.28449672, %v9354_v10 }
0x2313   : > { %v14897_v22 = vpop.eup %14896  ;;  %v9574_v42 = vadd.f32 1.0, %v9558_v20  ;;  %v9511_v8 = vsub.f32 1.0, %v9495_v59  ;;  %v9417_v54 = vmul.f32 %v19346_v2, %v9401_v39  ;;  %v9371_v18 = vadd.f32 -0.28449672, %v9355_v58 }
0x2314   : > { %v9340_v62 = vadd.f32 1.4214138, %v9324_v17  ;;  %v9496_v55 = vmul.f32 %v19369_v4, %v9416_v24  ;;  %v9386_v34 = vmul.f32 %v19360_v41, %v9370_v38  ;;  %v9341_v40 = vadd.f32 1.4214138, %v9325_v52 }
0x2315   : > { %v9590_v32 = vmul.f32 %v9574_v42, %v19328_v46  ;;  %v9543_v31 = vsub.f32 0.0, %v9511_v8  ;;  %v9497_v56 = vmul.f32 %v19356_v35, %v9417_v54  ;;  %v9387_v6 = vmul.f32 %v19364_v61, %v9371_v18 }
0x2316   : > { %v9356_v5 = vmul.f32 %v19384_v1, %v9340_v62  ;;  %v9512_v25 = vsub.f32 1.0, %v9496_v55  ;;  %v9402_v9 = vadd.f32 0.2548296, %v9386_v34  ;;  %v9357_v2 = vmul.f32 %v19379_v7, %v9341_v40 }
0x2317   : > { %12632 = vmatprep.mubr.f32.mxu0 %v9590_v32  ;;  %v9559_v4 = vsel %vm9527_vm1, %v9511_v8, %v9543_v31  ;;  %v9513_v33 = vsub.f32 1.0, %v9497_v56  ;;  %v9403_v10 = vadd.f32 0.2548296, %v9387_v6  ;;  %v9177_v54 = vmul.f32 0.5, %v19269_v43 }
0x2318   : > { %v9372_v26 = vadd.f32 -0.28449672, %v9356_v5  ;;  %v9575_v17 = vadd.f32 1.0, %v9559_v4  ;;  %v9544_v46 = vsub.f32 0.0, %v9512_v25  ;;  %v9418_v59 = vmul.f32 %v19360_v41, %v9402_v9 }
0x2319   : > { %v9545_v39 = vsub.f32 0.0, %v9513_v33  ;;  %v9419_v58 = vmul.f32 %v19364_v61, %v9403_v10  ;;  %v9373_v52 = vadd.f32 -0.28449672, %v9357_v2  ;;  %vm9531_vm10 = vcmp.ge.f32.partialorder %v19299_v44, 0.0 }
0x231a   : > { %v9388_v35 = vmul.f32 %v19384_v1, %v9372_v26  ;;  %v9591_v20 = vmul.f32 %v9575_v17, %v19321_v23  ;;  %v9560_v24 = vsel %vm9528_vm8, %v9512_v25, %v9544_v46  ;;  %v9498_v38 = vmul.f32 %v14893_v27, %v9418_v59  ;;  %v19446_v17 = vld [vmem:[%s19756_s14 + $0x1] ss:$0 sm:$0xff] }
0x231b   : > { %v9576_v62 = vadd.f32 1.0, %v9560_v24  ;;  %v9561_v42 = vsel %vm9529_vm7, %v9513_v33, %v9545_v39  ;;  %v9499_v8 = vmul.f32 %v19389_v37, %v9419_v58  ;;  %v9389_v41 = vmul.f32 %v19379_v7, %v9373_v52 }
0x231c   : > { %v9404_v50 = vadd.f32 0.2548296, %v9388_v35  ;;  %12633 = vmatmul.mubr.f32.gmra.mrb[200].mxu0 %v9591_v20  ;;  %v9577_v30 = vadd.f32 1.0, %v9561_v42  ;;  %v9514_v18 = vsub.f32 1.0, %v9498_v38  ;;  %v9179_v6 = vmul.f32 0.5, %v19289_v49 }
0x231d   : > { %v9592_v23 = vmul.f32 %v9576_v62, %v19334_v36  ;;  %v9515_v55 = vsub.f32 1.0, %v9499_v8  ;;  %v9405_v27 = vadd.f32 0.2548296, %v9389_v41  ;;  %vm9532_vm11 = vcmp.ge.f32.partialorder %v19331_v15, 0.0 }
0x231e   : > { %v9420_v61 = vmul.f32 %v19384_v1, %v9404_v50  ;;  %v9593_v34 = vmul.f32 %v9577_v30, %v9177_v54  ;;  %v9546_v5 = vsub.f32 0.0, %v9514_v18  ;;  %v9178_v1 = vmul.f32 0.5, %v19292_v14 }
0x231f   : > { %12635 = vmatprep.mubr.f32.mxu0 %v9592_v23  ;;  %v9547_v16 = vsub.f32 0.0, %v9515_v55  ;;  %v9421_v37 = vmul.f32 %v19379_v7, %v9405_v27  ;;  %v9180_v44 = vmul.f32 0.5, %v19318_v45  ;;  %vm9533_vm3 = vcmp.ge.f32.partialorder %v19324_v3, 0.0 }
0x2320   : > { %v9500_v40 = vmul.f32 %v14897_v22, %v9420_v61  ;;  %12636 = vmatmul.mubr.f32.gmra.mrb[202].mxu0 %v9593_v34  ;;  %v9562_v43 = vsel %vm9530_vm9, %v9514_v18, %v9546_v5  ;;  %v9181_v49 = vmul.f32 0.5, %v19314_v11 }
0x2321   : > { %v9578_v31 = vadd.f32 1.0, %v9562_v43  ;;  %v9563_v36 = vsel %vm9531_vm10, %v9515_v55, %v9547_v16  ;;  %v9501_v56 = vmul.f32 %v19398_v48, %v9421_v37 }
0x2322   : > { %v9516_v32 = vsub.f32 1.0, %v9500_v40  ;;  %v9579_v22 = vadd.f32 1.0, %v9563_v36 }
0x2323   : > { %v9594_v21 = vmul.f32 %v9578_v31, %v9178_v1  ;;  %v9517_v9 = vsub.f32 1.0, %v9501_v56 }
0x2324   : > { %v9548_v25 = vsub.f32 0.0, %v9516_v32  ;;  %v9595_v7 = vmul.f32 %v9579_v22, %v9179_v6 }
0x2325   : > { %12638 = vmatprep.mubr.f32.mxu0 %v9594_v21  ;;  %v9549_v4 = vsub.f32 0.0, %v9517_v9 }
0x2326   : > { %v9564_v26 = vsel %vm9532_vm11, %v9516_v32, %v9548_v25  ;;  %12639 = vmatmul.mubr.f32.gmra.mrb[204].mxu0 %v9595_v7  ;;  %v20051_v25 = vld [vmem:[#allocation18_spill] sm:$0xff] }
0x2327   : > { %v9580_v2 = vadd.f32 1.0, %v9564_v26  ;;  %v9565_v48 = vsel %vm9533_vm3, %v9517_v9, %v9549_v4 }
0x2328   : > { %v9581_v33 = vadd.f32 1.0, %v9565_v48  ;;  %v20053_v48 = vld [vmem:[#allocation7_spill] sm:$0xff] }
0x2329   : > { %v9596_v14 = vmul.f32 %v9580_v2, %v9180_v44 }
0x232a   : > { %v9597_v10 = vmul.f32 %v9581_v33, %v9181_v49 }
0x232b   : > { %12641 = vmatprep.mubr.f32.mxu0 %v9596_v14 }
0x232c   : > { %12642 = vmatmul.mubr.f32.gmra.mrb[206].mxu0 %v9597_v10  ;;  %v20054_v10 = vld [vmem:[#allocation9_spill] sm:$0xff] }
0x23a8   : > { %v12622_v15 = vpop.f32.mrb[192].mxu0 }
0x23a9   : > { %v9761_v45 = vadd.f32 %v12622_v15, %v18830_v63  ;;  %v9681_v46 = vpop.f32.mrb[193].mxu0 }
0x23aa   : > { %v9760_v3 = vadd.f32 %v9681_v46, %v18833_v53 }
0x23ab   : > { %v19451_v59 = vadd.f32 %v19446_v17, %v9761_v45 }
0x23ac   : > { %v19454_v11 = vadd.f32 %v19446_v17, %v9760_v3 }
0x23ad   : > { %v9805_v35 = vsel %vm825_vm2, %v19451_v59, 0.0 }
0x23ae   : > { %9806 = vadd.xlane.f32.xlu1 %v9805_v35  ;;  %v9802_v39 = vsel %vm825_vm2, %v19454_v11, 0.0 }
0x23af   : > { %9803 = vadd.xlane.f32.xlu0 %v9802_v39 }
0x23b3   : > { %v12625_v58 = vpop.f32.mrb[194].mxu0 }
0x23b4   : > { %v9763_v63 = vadd.f32 %v12625_v58, %v18845_v47  ;;  %v9691_v52 = vpop.f32.mrb[195].mxu0 }
0x23b5   : > { %v9762_v53 = vadd.f32 %v9691_v52, %v18842_v13 }
0x23b6   : > { %v19463_v20 = vadd.f32 %v19446_v17, %v9763_v63 }
0x23b7   : > { %v19466_v24 = vadd.f32 %v19446_v17, %v9762_v53 }
0x23b8   : > { %v9811_v38 = vsel %vm825_vm2, %v19463_v20, 0.0 }
0x23b9   : > { %9812 = vadd.xlane.f32.xlu1 %v9811_v38  ;;  %v9808_v50 = vsel %vm825_vm2, %v19466_v24, 0.0  ;;  %v12628_v62 = vpop.f32.mrb[196].mxu0 }
0x23ba   : > { %9809 = vadd.xlane.f32.xlu0 %v9808_v50  ;;  %v9765_v47 = vadd.f32 %v12628_v62, %v18854_v19  ;;  %v9701_v42 = vpop.f32.mrb[197].mxu0 }
0x23bb   : > { %v9764_v13 = vadd.f32 %v9701_v42, %v18857_v57 }
0x23bc   : > { %v19475_v8 = vadd.f32 %v19446_v17, %v9765_v47 }
0x23bd   : > { %v19478_v41 = vadd.f32 %v19446_v17, %v9764_v13 }
0x23be   : > { %v9817_v54 = vsel %vm825_vm2, %v19475_v8, 0.0 }
0x23bf   : > { %9818 = vadd.xlane.f32.xlu1 %v9817_v54  ;;  %v9814_v30 = vsel %vm825_vm2, %v19478_v41, 0.0 }
0x23c0   : > { %9815 = vadd.xlane.f32.xlu0 %v9814_v30 }
0x23e1   : > { %v12631_v18 = vpop.f32.mrb[198].mxu0 }
0x23e2   : > { %v9767_v19 = vadd.f32 %v12631_v18, %v18866_v51  ;;  %v9711_v61 = vpop.f32.mrb[199].mxu0 }
0x23e3   : > { %v9766_v57 = vadd.f32 %v9711_v61, %v18869_v28 }
0x23e4   : > { %v19487_v23 = vadd.f32 %v19446_v17, %v9767_v19 }
0x23e5   : > { %v19490_v55 = vadd.f32 %v19446_v17, %v9766_v57 }
0x23e6   : > { %v9823_v27 = vsel %vm825_vm2, %v19487_v23, 0.0 }
0x23e7   : > { %9824 = vadd.xlane.f32.xlu1 %v9823_v27  ;;  %v9820_v34 = vsel %vm825_vm2, %v19490_v55, 0.0 }
0x23e8   : > { %9821 = vadd.xlane.f32.xlu0 %v9820_v34 }
0x23ef   : > { %v12634_v5 = vpop.f32.mrb[200].mxu0 }
0x23f0   : > { %v9769_v51 = vadd.f32 %v12634_v5, %v18878_v60  ;;  %v9721_v40 = vpop.f32.mrb[201].mxu0 }
0x23f1   : > { %v9768_v28 = vadd.f32 %v9721_v40, %v18881_v0 }
0x23f2   : > { %v19499_v16 = vadd.f32 %v19446_v17, %v9769_v51 }
0x23f3   : > { %v19502_v37 = vadd.f32 %v19446_v17, %v9768_v28  ;;  %v12637_v43 = vpop.f32.mrb[202].mxu0 }
0x23f4   : > { %v9829_v32 = vsel %vm825_vm2, %v19499_v16, 0.0  ;;  %v9771_v1 = vadd.f32 %v12637_v43, %v18890_v29  ;;  %v9731_v31 = vpop.f32.mrb[203].mxu0 }
0x23f5   : > { %9830 = vadd.xlane.f32.xlu1 %v9829_v32  ;;  %v9826_v60 = vsel %vm825_vm2, %v19502_v37, 0.0  ;;  %v9770_v36 = vadd.f32 %v9731_v31, %v18893_v12  ;;  %v20052_v12 = vld [vmem:[#allocation6_spill] sm:$0xff] }
0x23f6   : > { %9827 = vadd.xlane.f32.xlu0 %v9826_v60  ;;  %v19511_v0 = vadd.f32 %v19446_v17, %v9771_v1  ;;  %v14952_v1 = vmov 0.0|0.0  }
0x23f7   : > { %v19514_v56 = vadd.f32 %v19446_v17, %v9770_v36  ;;  %13431 = vmatprep.subr.bf16.mxu1 %v14952_v1 }
0x23f8   : > { %v9835_v6 = vsel %vm825_vm2, %v19511_v0, 0.0 }
0x23f9   : > { %9836 = vadd.xlane.f32.xlu1 %v9835_v6  ;;  %v9832_v29 = vsel %vm825_vm2, %v19514_v56, 0.0  ;;  %v12640_v22 = vpop.f32.mrb[204].mxu0 }
0x23fa   : > { %9833 = vadd.xlane.f32.xlu0 %v9832_v29  ;;  %v9773_v21 = vadd.f32 %v12640_v22, %v20051_v25  ;;  %v9741_v9 = vpop.f32.mrb[205].mxu0 }
0x23fb   : > { %v9772_v7 = vadd.f32 %v9741_v9, %v20052_v12 }
0x23fc   : > { %v19523_v26 = vadd.f32 %v19446_v17, %v9773_v21 }
0x23fd   : > { %v19526_v44 = vadd.f32 %v19446_v17, %v9772_v7 }
0x23fe   : > { %v9841_v2 = vsel %vm825_vm2, %v19523_v26, 0.0 }
0x23ff   : > { %9842 = vadd.xlane.f32.xlu1 %v9841_v2  ;;  %v9838_v4 = vsel %vm825_vm2, %v19526_v44, 0.0  ;;  %v12643_v14 = vpop.f32.mrb[206].mxu0 }
0x2400   : > { %9839 = vadd.xlane.f32.xlu0 %v9838_v4  ;;  %v9775_v49 = vadd.f32 %v12643_v14, %v20053_v48  ;;  %v9751_v33 = vpop.f32.mrb[207].mxu0 }
0x2401   : > { %v9774_v15 = vadd.f32 %v9751_v33, %v20054_v10 }
0x2402   : > { %v19535_v45 = vadd.f32 %v19446_v17, %v9775_v49 }
0x2403   : > { %v19538_v46 = vadd.f32 %v19446_v17, %v9774_v15 }
0x2404   : > { %v9847_v3 = vsel %vm825_vm2, %v19535_v45, 0.0 }
0x2405   : > { %9848 = vadd.xlane.f32.xlu1 %v9847_v3  ;;  %v9844_v35 = vsel %vm825_vm2, %v19538_v46, 0.0 }
0x2406   : > { %9845 = vadd.xlane.f32.xlu0 %v9844_v35 }
0x243b   : > { %v9807_v39 = vpop.xlane.xlu1 %9806 }
0x243c   : > { %v9851_v58 = vmul.f32 0.03125, %v9807_v39  ;;  %v9804_v63 = vpop.xlane.xlu0 %9803 }
0x243d   : > { %v9850_v52 = vmul.f32 0.03125, %v9804_v63 }
0x243e   : > { %v19545_v53 = vsub.f32 %v19451_v59, %v9851_v58 }
0x243f   : > { %v19548_v38 = vsub.f32 %v19454_v11, %v9850_v52 }
0x2440   : > { %v9883_v17 = vmul.f32 %v19545_v53, %v19545_v53 }
0x2441   : > { %v9882_v50 = vmul.f32 %v19548_v38, %v19548_v38 }
0x2442   : > { %v9901_v62 = vsel %vm825_vm2, %v9883_v17, 0.0 }
0x2443   : > { %9902 = vadd.xlane.f32.xlu1 %v9901_v62  ;;  %v9898_v47 = vsel %vm825_vm2, %v9882_v50, 0.0 }
0x2444   : > { %9899 = vadd.xlane.f32.xlu0 %v9898_v47 }
0x2446   : > { %v9813_v42 = vpop.xlane.xlu1 %9812 }
0x2447   : > { %v9853_v13 = vmul.f32 0.03125, %v9813_v42  ;;  %v9810_v54 = vpop.xlane.xlu0 %9809 }
0x2448   : > { %v9852_v59 = vmul.f32 0.03125, %v9810_v54 }
0x2449   : > { %v19557_v30 = vsub.f32 %v19463_v20, %v9853_v13 }
0x244a   : > { %v19560_v11 = vsub.f32 %v19466_v24, %v9852_v59 }
0x244b   : > { %v9885_v18 = vmul.f32 %v19557_v30, %v19557_v30 }
0x244c   : > { %v9884_v19 = vmul.f32 %v19560_v11, %v19560_v11  ;;  %v9819_v27 = vpop.xlane.xlu1 %9818 }
0x244d   : > { %v9907_v61 = vsel %vm825_vm2, %v9885_v18, 0.0  ;;  %v9855_v34 = vmul.f32 0.03125, %v9819_v27  ;;  %v9816_v5 = vpop.xlane.xlu0 %9815 }
0x244e   : > { %9908 = vadd.xlane.f32.xlu1 %v9907_v61  ;;  %v9904_v57 = vsel %vm825_vm2, %v9884_v19, 0.0  ;;  %v9854_v20 = vmul.f32 0.03125, %v9816_v5 }
0x244f   : > { %9905 = vadd.xlane.f32.xlu0 %v9904_v57  ;;  %v19569_v51 = vsub.f32 %v19475_v8, %v9855_v34 }
0x2450   : > { %v19572_v24 = vsub.f32 %v19478_v41, %v9854_v20  ;;  %v14954_v20 = vmov 0.0  }
0x2451   : > { %v9887_v40 = vmul.f32 %v19569_v51, %v19569_v51  ;;  %12676 = vmatprep.mubr.msk.f32.mxu1 %vm14953_vm4, %v14954_v20 }
0x2452   : > { %v9886_v28 = vmul.f32 %v19572_v24, %v19572_v24 }
0x2453   : > { %v9913_v43 = vsel %vm825_vm2, %v9887_v40, 0.0 }
0x2454   : > { %9914 = vadd.xlane.f32.xlu1 %v9913_v43  ;;  %v9910_v32 = vsel %vm825_vm2, %v9886_v28, 0.0 }
0x2455   : > { %9911 = vadd.xlane.f32.xlu0 %v9910_v32 }
0x2474   : > { %v9825_v8 = vpop.xlane.xlu1 %9824 }
0x2475   : > { %v9857_v31 = vmul.f32 0.03125, %v9825_v8  ;;  %v9822_v60 = vpop.xlane.xlu0 %9821 }
0x2476   : > { %v9856_v41 = vmul.f32 0.03125, %v9822_v60 }
0x2477   : > { %v19582_v36 = vsub.f32 %v19487_v23, %v9857_v31 }
0x2478   : > { %v19585_v6 = vsub.f32 %v19490_v55, %v9856_v41 }
0x2479   : > { %v9889_v29 = vmul.f32 %v19582_v36, %v19582_v36 }
0x247a   : > { %v9888_v22 = vmul.f32 %v19585_v6, %v19585_v6 }
0x247b   : > { %v9919_v25 = vsel %vm825_vm2, %v9889_v29, 0.0 }
0x247c   : > { %9920 = vadd.xlane.f32.xlu1 %v9919_v25  ;;  %v9916_v21 = vsel %vm825_vm2, %v9888_v22, 0.0 }
0x247d   : > { %9917 = vadd.xlane.f32.xlu0 %v9916_v21 }
0x2482   : > { %v9831_v9 = vpop.xlane.xlu1 %9830 }
0x2483   : > { %v9859_v12 = vmul.f32 0.03125, %v9831_v9  ;;  %v9828_v7 = vpop.xlane.xlu0 %9827 }
0x2484   : > { %v9858_v23 = vmul.f32 0.03125, %v9828_v7 }
0x2485   : > { %v19594_v2 = vsub.f32 %v19499_v16, %v9859_v12  ;;  %v19647_v12 = vld [vmem:[%s19757_s15] ss:$0 sm:$0xff] }
0x2486   : > { %v19597_v55 = vsub.f32 %v19502_v37, %v9858_v23  ;;  %v9837_v4 = vpop.xlane.xlu1 %9836 }
0x2487   : > { %v9861_v14 = vmul.f32 0.03125, %v9837_v4  ;;  %v9891_v48 = vmul.f32 %v19594_v2, %v19594_v2  ;;  %v9834_v49 = vpop.xlane.xlu0 %9833 }
0x2488   : > { %v9890_v33 = vmul.f32 %v19597_v55, %v19597_v55  ;;  %v9860_v10 = vmul.f32 0.03125, %v9834_v49 }
0x2489   : > { %v19604_v15 = vsub.f32 %v19511_v0, %v9861_v14  ;;  %v9925_v3 = vsel %vm825_vm2, %v9891_v48, 0.0  ;;  %v19654_v48 = vld [vmem:[%s19758_s16] ss:$0 sm:$0xff] }
0x248a   : > { %9926 = vadd.xlane.f32.xlu1 %v9925_v3  ;;  %v9922_v16 = vsel %vm825_vm2, %v9890_v33, 0.0  ;;  %v19609_v37 = vsub.f32 %v19514_v56, %v9860_v10 }
0x248b   : > { %9923 = vadd.xlane.f32.xlu0 %v9922_v16  ;;  %v9893_v35 = vmul.f32 %v19604_v15, %v19604_v15 }
0x248c   : > { %v9843_v39 = vpop.xlane.xlu1 %9842  ;;  %v9892_v58 = vmul.f32 %v19609_v37, %v19609_v37 }
0x248d   : > { %v9863_v63 = vmul.f32 0.03125, %v9843_v39  ;;  %v9931_v0 = vsel %vm825_vm2, %v9893_v35, 0.0  ;;  %v9840_v52 = vpop.xlane.xlu0 %9839 }
0x248e   : > { %9932 = vadd.xlane.f32.xlu1 %v9931_v0  ;;  %v9928_v17 = vsel %vm825_vm2, %v9892_v58, 0.0  ;;  %v9862_v50 = vmul.f32 0.03125, %v9840_v52 }
0x248f   : > { %v19618_v62 = vsub.f32 %v19523_v26, %v9863_v63  ;;  %9929 = vadd.xlane.f32.xlu0 %v9928_v17 }
0x2490   : > { %v19621_v56 = vsub.f32 %v19526_v44, %v9862_v50 }
0x2491   : > { %v9895_v47 = vmul.f32 %v19618_v62, %v19618_v62 }
0x2492   : > { %v9849_v42 = vpop.xlane.xlu1 %9848  ;;  %v9894_v13 = vmul.f32 %v19621_v56, %v19621_v56 }
0x2493   : > { %v9937_v54 = vsel %vm825_vm2, %v9895_v47, 0.0  ;;  %v9865_v59 = vmul.f32 0.03125, %v9849_v42  ;;  %v9846_v18 = vpop.xlane.xlu0 %9845 }
0x2494   : > { %9938 = vadd.xlane.f32.xlu1 %v9937_v54  ;;  %v9934_v19 = vsel %vm825_vm2, %v9894_v13, 0.0  ;;  %v9864_v26 = vmul.f32 0.03125, %v9846_v18 }
0x2495   : > { %v19630_v61 = vsub.f32 %v19535_v45, %v9865_v59  ;;  %9935 = vadd.xlane.f32.xlu0 %v9934_v19  ;;  %v10055_v45 = vld [vmem:[%s19760_s18] sm:$0x7] }
0x2496   : > { %v19633_v44 = vsub.f32 %v19538_v46, %v9864_v26  ;;  %v14955_v46 = vmov 0  }
0x2497   : > { %v9897_v57 = vmul.f32 %v19630_v61, %v19630_v61  ;;  %14129 = vset.pattern.permute.xlu0 %v14955_v46 }
0x2498   : > { %v9896_v27 = vmul.f32 %v19633_v44, %v19633_v44 }
0x2499   : > { %v9943_v34 = vsel %vm825_vm2, %v9897_v57, 0.0 }
0x249a   : > { %9944 = vadd.xlane.f32.xlu1 %v9943_v34  ;;  %v9940_v5 = vsel %vm825_vm2, %v9896_v27, 0.0 }
0x249b   : > { %9941 = vadd.xlane.f32.xlu0 %v9940_v5 }
0x24b1   : > { %10058 = vperm.xlu0 %14129, %v10055_v45  }
0x24d0   : > { %v9903_v40 = vpop.xlane.xlu1 %9902 }
0x24d1   : > { %v9947_v28 = vmul.f32 0.03125, %v9903_v40  ;;  %v9900_v43 = vpop.xlane.xlu0 %9899 }
0x24d2   : > { %v9946_v32 = vmul.f32 0.03125, %v9900_v43 }
0x24d3   : > { %v9963_v8 = vadd.f32 1e-12, %v9947_v28 }
0x24d4   : > { %v9962_v31 = vadd.f32 1e-12, %v9946_v32 }
0x24d5   : > { %14898 = vrsqrt.f32 %v9963_v8 }
0x24d6   : > { %14900 = vrsqrt.f32 %v9962_v31 }
0x24db   : > { %v9909_v60 = vpop.xlane.xlu1 %9908 }
0x24dc   : > { %v9949_v41 = vmul.f32 0.03125, %v9909_v60  ;;  %v9906_v29 = vpop.xlane.xlu0 %9905 }
0x24dd   : > { %v9948_v22 = vmul.f32 0.03125, %v9906_v29 }
0x24de   : > { %v9965_v25 = vadd.f32 1e-12, %v9949_v41 }
0x24df   : > { %v9964_v21 = vadd.f32 1e-12, %v9948_v22  ;;  %v14899_v9 = vpop.eup %14898 }
0x24e0   : > { %14902 = vrsqrt.f32 %v9965_v25  ;;  %v14901_v7 = vpop.eup %14900  ;;  %v9995_v23 = vmul.f32 %v14899_v9, %v19545_v53 }
0x24e1   : > { %14904 = vrsqrt.f32 %v9964_v21  ;;  %v9994_v4 = vmul.f32 %v14901_v7, %v19548_v38  ;;  %v9915_v14 = vpop.xlane.xlu1 %9914 }
0x24e2   : > { %v10017_v49 = vmul.f32 %v19647_v12, %v9995_v23  ;;  %v9951_v33 = vmul.f32 0.03125, %v9915_v14  ;;  %v9912_v10 = vpop.xlane.xlu0 %9911 }
0x24e3   : > { %v10016_v3 = vmul.f32 %v19647_v12, %v9994_v4  ;;  %v9950_v16 = vmul.f32 0.03125, %v9912_v10 }
0x24e4   : > { %v9967_v35 = vadd.f32 1e-12, %v9951_v33  ;;  %v10039_v39 = vadd.f32 %v19654_v48, %v10017_v49 }
0x24e5   : > { %v9966_v58 = vadd.f32 1e-12, %v9950_v16  ;;  %v10038_v53 = vadd.f32 %v19654_v48, %v10016_v3 }
0x24e6   : > { %14906 = vrsqrt.f32 %v9967_v35 }
0x24e7   : > { %14908 = vrsqrt.f32 %v9966_v58  ;;  %v13432_v0 = vpack.c.bf16 %v10039_v39, %v10038_v53 }
0x24e9   : > { %13434 = vmatpush3.bf16.xpose.msk.msra.mxu1 %vm19662_vm5, %v13432_v0 }
0x24ea   : > { %v14903_v63 = vpop.eup %14902  ;;  %13435 = vmatprep.subr.bf16.mxu1 %v14952_v1 }
0x24eb   : > { %v14905_v52 = vpop.eup %14904  ;;  %v9997_v17 = vmul.f32 %v14903_v63, %v19557_v30 }
0x24ec   : > { %v9996_v50 = vmul.f32 %v14905_v52, %v19560_v11 }
0x24ed   : > { %v10019_v47 = vmul.f32 %v19647_v12, %v9997_v17 }
0x24ee   : > { %v10018_v42 = vmul.f32 %v19647_v12, %v9996_v50 }
0x24ef   : > { %v10041_v13 = vadd.f32 %v19654_v48, %v10019_v47 }
0x24f0   : > { %v10040_v54 = vadd.f32 %v19654_v48, %v10018_v42  ;;  %v14907_v18 = vpop.eup %14906 }
0x24f1   : > { %v14909_v19 = vpop.eup %14908  ;;  %v9999_v30 = vmul.f32 %v14907_v18, %v19569_v51 }
0x24f2   : > { %v13436_v59 = vpack.c.bf16 %v10041_v13, %v10040_v54  ;;  %v9998_v11 = vmul.f32 %v14909_v19, %v19572_v24 }
0x24f3   : > { %v10021_v26 = vmul.f32 %v19647_v12, %v9999_v30 }
0x24f4   : > { %13438 = vmatpush3.bf16.xpose.msk.msra.mxu1 %vm19662_vm5, %v13436_v59  ;;  %v10020_v57 = vmul.f32 %v19647_v12, %v9998_v11 }
0x24f5   : > { %13439 = vmatprep.subr.bf16.mxu1 %v14952_v1  ;;  %v10043_v27 = vadd.f32 %v19654_v48, %v10021_v26 }
0x24f6   : > { %v10042_v34 = vadd.f32 %v19654_v48, %v10020_v57 }
0x24f8   : > { %v13440_v5 = vpack.c.bf16 %v10043_v27, %v10042_v34 }
0x24fc   : > { %13442 = vmatpush3.bf16.xpose.msk.msra.mxu1 %vm19662_vm5, %v13440_v5 }
0x24fd   : > { %13443 = vmatprep.subr.bf16.mxu1 %v14952_v1 }
0x2509   : > { %v9921_v51 = vpop.xlane.xlu1 %9920 }
0x250a   : > { %v9953_v20 = vmul.f32 0.03125, %v9921_v51  ;;  %v9918_v45 = vpop.xlane.xlu0 %9917 }
0x250b   : > { %v9952_v24 = vmul.f32 0.03125, %v9918_v45 }
0x250c   : > { %v9969_v46 = vadd.f32 1e-12, %v9953_v20 }
0x250d   : > { %v9968_v40 = vadd.f32 1e-12, %v9952_v24 }
0x250e   : > { %14910 = vrsqrt.f32 %v9969_v46 }
0x250f   : > { %14912 = vrsqrt.f32 %v9968_v40 }
0x2517   : > { %v9927_v28 = vpop.xlane.xlu1 %9926 }
0x2518   : > { %v14911_v43 = vpop.eup %14910  ;;  %v9955_v32 = vmul.f32 0.03125, %v9927_v28  ;;  %v9924_v8 = vpop.xlane.xlu0 %9923 }
0x2519   : > { %v14913_v31 = vpop.eup %14912  ;;  %v10001_v60 = vmul.f32 %v14911_v43, %v19582_v36  ;;  %v9954_v41 = vmul.f32 0.03125, %v9924_v8 }
0x251a   : > { %v10000_v29 = vmul.f32 %v14913_v31, %v19585_v6  ;;  %v9971_v22 = vadd.f32 1e-12, %v9955_v32 }
0x251b   : > { %v10023_v25 = vmul.f32 %v19647_v12, %v10001_v60  ;;  %v9970_v21 = vadd.f32 1e-12, %v9954_v41  ;;  %v9933_v9 = vpop.xlane.xlu1 %9932 }
0x251c   : > { %v10022_v7 = vmul.f32 %v19647_v12, %v10000_v29  ;;  %14914 = vrsqrt.f32 %v9971_v22  ;;  %v9957_v23 = vmul.f32 0.03125, %v9933_v9  ;;  %v9930_v4 = vpop.xlane.xlu0 %9929 }
0x251d   : > { %14916 = vrsqrt.f32 %v9970_v21  ;;  %v9956_v14 = vmul.f32 0.03125, %v9930_v4  ;;  %v10045_v49 = vadd.f32 %v19654_v48, %v10023_v25  ;;  %v10054_v25 = vld [vmem:[%s19759_s17] sm:$0x7] }
0x251e   : > { %v9973_v33 = vadd.f32 1e-12, %v9957_v23  ;;  %v10044_v36 = vadd.f32 %v19654_v48, %v10022_v7 }
0x251f   : > { %v9972_v10 = vadd.f32 1e-12, %v9956_v14 }
0x2520   : > { %14918 = vrsqrt.f32 %v9973_v33  ;;  %v13444_v6 = vpack.c.bf16 %v10045_v49, %v10044_v36 }
0x2521   : > { %14920 = vrsqrt.f32 %v9972_v10  ;;  %v9939_v3 = vpop.xlane.xlu1 %9938 }
0x2522   : > { %v9959_v16 = vmul.f32 0.03125, %v9939_v3  ;;  %13446 = vmatpush3.bf16.xpose.msk.msra.mxu1 %vm19662_vm5, %v13444_v6  ;;  %v9936_v35 = vpop.xlane.xlu0 %9935 }
0x2523   : > { %v9958_v39 = vmul.f32 0.03125, %v9936_v35  ;;  %13447 = vmatprep.subr.bf16.mxu1 %v14952_v1 }
0x2524   : > { %v9975_v58 = vadd.f32 1e-12, %v9959_v16 }
0x2525   : > { %v9974_v53 = vadd.f32 1e-12, %v9958_v39 }
0x2526   : > { %v14915_v63 = vpop.eup %14914  ;;  %14922 = vrsqrt.f32 %v9975_v58 }
0x2527   : > { %v14917_v0 = vpop.eup %14916  ;;  %v10003_v52 = vmul.f32 %v14915_v63, %v19594_v2  ;;  %14924 = vrsqrt.f32 %v9974_v53  ;;  %v9945_v17 = vpop.xlane.xlu1 %9944 }
0x2528   : > { %v10002_v50 = vmul.f32 %v14917_v0, %v19597_v55  ;;  %v9961_v47 = vmul.f32 0.03125, %v9945_v17  ;;  %v9942_v42 = vpop.xlane.xlu0 %9941 }
0x2529   : > { %v10025_v13 = vmul.f32 %v19647_v12, %v10003_v52  ;;  %v9960_v54 = vmul.f32 0.03125, %v9942_v42 }
0x252a   : > { %v14919_v59 = vpop.eup %14918  ;;  %v10024_v18 = vmul.f32 %v19647_v12, %v10002_v50  ;;  %v9977_v19 = vadd.f32 1e-12, %v9961_v47 }
0x252b   : > { %v14921_v30 = vpop.eup %14920  ;;  %v10005_v11 = vmul.f32 %v14919_v59, %v19604_v15  ;;  %v10047_v26 = vadd.f32 %v19654_v48, %v10025_v13  ;;  %v9976_v57 = vadd.f32 1e-12, %v9960_v54 }
0x252c   : > { %v10004_v2 = vmul.f32 %v14921_v30, %v19609_v37  ;;  %14926 = vrsqrt.f32 %v9977_v19  ;;  %v10046_v55 = vadd.f32 %v19654_v48, %v10024_v18 }
0x252d   : > { %v10027_v27 = vmul.f32 %v19647_v12, %v10005_v11  ;;  %14928 = vrsqrt.f32 %v9976_v57 }
0x252e   : > { %v10026_v34 = vmul.f32 %v19647_v12, %v10004_v2  ;;  %v13448_v5 = vpack.c.bf16 %v10047_v26, %v10046_v55 }
0x252f   : > { %v10049_v20 = vadd.f32 %v19654_v48, %v10027_v27 }
0x2530   : > { %v14923_v51 = vpop.eup %14922  ;;  %13450 = vmatpush3.bf16.xpose.msk.msra.mxu1 %vm19662_vm5, %v13448_v5  ;;  %v10048_v15 = vadd.f32 %v19654_v48, %v10026_v34 }
0x2531   : > { %v14925_v45 = vpop.eup %14924  ;;  %v10007_v37 = vmul.f32 %v14923_v51, %v19618_v62  ;;  %13451 = vmatprep.subr.bf16.mxu1 %v14952_v1 }
0x2532   : > { %v10006_v24 = vmul.f32 %v14925_v45, %v19621_v56  ;;  %v13452_v28 = vpack.c.bf16 %v10049_v20, %v10048_v15 }
0x2533   : > { %v10029_v46 = vmul.f32 %v19647_v12, %v10007_v37 }
0x2534   : > { %v10028_v40 = vmul.f32 %v19647_v12, %v10006_v24 }
0x2535   : > { %v10051_v60 = vadd.f32 %v19654_v48, %v10029_v46 }
0x2536   : > { %v14927_v43 = vpop.eup %14926  ;;  %v10050_v62 = vadd.f32 %v19654_v48, %v10028_v40 }
0x2537   : > { %v14929_v32 = vpop.eup %14928  ;;  %v10009_v8 = vmul.f32 %v14927_v43, %v19630_v61 }
0x2538   : > { %v10008_v31 = vmul.f32 %v14929_v32, %v19633_v44  ;;  %13454 = vmatpush3.bf16.xpose.msk.msra.mxu1 %vm19662_vm5, %v13452_v28  ;;  %v13456_v29 = vpack.c.bf16 %v10051_v60, %v10050_v62 }
0x2539   : > { %13455 = vmatprep.subr.bf16.mxu1 %v14952_v1  ;;  %v10031_v56 = vmul.f32 %v19647_v12, %v10009_v8 }
0x253a   : > { %v10030_v41 = vmul.f32 %v19647_v12, %v10008_v31  ;;  %v10059_v12 = vpop.permute.xlu0 %10058 }
0x253b   : > { %v10053_v44 = vadd.f32 %v19654_v48, %v10031_v56 }
0x253c   : > { %v10052_v61 = vadd.f32 %v19654_v48, %v10030_v41 }
0x253e   : > { %v13460_v22 = vpack.c.bf16 %v10053_v44, %v10052_v61 }
0x2540   : > { %13458 = vmatpush3.bf16.xpose.msk.msra.mxu1 %vm19662_vm5, %v13456_v29 }
0x2541   : > { %13459 = vmatprep.subr.bf16.mxu1 %v14952_v1 }
0x2548   : > { %13462 = vmatpush3.bf16.xpose.msk.msra.mxu1 %vm19662_vm5, %v13460_v22 }
0x254f   : > { %12677 = vmatmul.mubr.msk.f32.vlgmr.msra.gmra.mrb[192].mxu1 %vm825_vm2, %v10054_v25 }
0x2622   : > { %v10178_v21 = vpop.f32.mrb[192].mxu1 }
0x2623   : > { %v10179_v48 = vadd.f32 %v10178_v21, %v10059_v12  ;;  %v12678_v9 = vpop.f32.mrb[193].mxu1 }
0x2625   : > { %10182 = vst [vmem:[%s600_s29] sm:$0x7] %v10179_v48 }
0x2626 PF: > { %s29_s0 = sadd.s32 1, %s14936_s0  }
0x2627   : > { %p26_p4 = scmp.ge.s32.totalorder %s29_s0, 4  }
0x2629   :  { %28 = sbr.rel (!%p26_p4) target bundleno = 5 (0x5), region = 138 }

</bundles_post_ra>
